<compile_context>
chip_gen: v6e
topology: v6e:2x2x1
jax: 0.10.0
libtpu: 0.0.40
codegen_flags: <defaults>
</compile_context>

<pallas_src>
import functools

import jax
import jax.numpy as jnp
from jax.experimental import pallas as pl
from jax.experimental.pallas import tpu as pltpu

LANE = 128
EPS = 1e-5


def _round_up(x, m):
    return (x + m - 1) // m * m


# ---------------------------------------------------------------------------
# Kernel 1: 3x3 conv (im2col, single matmul) + per-channel sum / sum-of-squares
# ---------------------------------------------------------------------------
def _conv_stats_kernel(x_ref, wmat_ref, pscale_ref, pshift_ref,   # inputs
                       y_ref, stats_ref,                           # outputs
                       xpad_ref, patch_ref,                        # scratch
                       *, fuse_input_bn_relu):
    """One image per grid step.

    x_ref     : (1, H, W, Cin)   image block
    wmat_ref  : (9*TAP, CP)      weights, row = (kh*3+kw)*TAP + ci
    pscale_ref: (1, 1, Cin)      fused BN scale for the *input* (block 2 only)
    pshift_ref: (1, 1, Cin)      fused BN shift for the *input* (block 2 only)
    y_ref     : (1, H*W, CP)     raw conv output, lane-dense (CP multiple of 128)
    stats_ref : (2, CP)          resident accumulator: [sum ; sum of squares]
    xpad_ref  : (H+2, W+2, Cin)  zero-padded image scratch (pad folded into VMEM)
    patch_ref : (H*W, 9*TAP)     im2col slab scratch
    """
    _, H, W, Cin = x_ref.shape
    HW = H * W
    TAP = patch_ref.shape[1] // 9

    n = pl.program_id(0)

    @pl.when(n == 0)
    def _init():
        # Zero once: xpad borders and the K-padding columns of the patch slab
        # are never written again, the interior is overwritten every step.
        xpad_ref[...] = jnp.zeros_like(xpad_ref)
        patch_ref[...] = jnp.zeros_like(patch_ref)
        stats_ref[...] = jnp.zeros_like(stats_ref)

    # Load image; optionally apply the previous block's BN+ReLU here so the
    # normalized activation never round-trips through HBM.
    x = x_ref[0].astype(jnp.float32)                              # (H, W, Cin)
    if fuse_input_bn_relu:
        x = jnp.maximum(x * pscale_ref[...] + pshift_ref[...], 0.0)

    # Fold the conv's zero padding into the VMEM scratch (no padded HBM copy).
    xpad_ref[1:H + 1, 1:W + 1, :] = x

    # im2col: scatter the 9 shifted windows into one (H*W, 9*TAP) slab.
    # Every tap lands at a 128-aligned column offset -> clean (at most
    # end-masked) stores; padding columns stay zero and multiply zero weights.
    for kh in range(3):
        for kw in range(3):
            t = kh * 3 + kw
            win = xpad_ref[kh:kh + H, kw:kw + W, :]               # (H, W, Cin)
            patch_ref[:, t * TAP:t * TAP + Cin] = win.reshape(HW, Cin)

    # Single MXU matmul for the whole image: (H*W, 9*TAP) x (9*TAP, CP).
    acc = jnp.dot(patch_ref[...], wmat_ref[...],
                  preferred_element_type=jnp.float32)             # (HW, CP)

    # One-pass batch-norm statistics (sum and sum-of-squares per channel),
    # accumulated into the resident stats output across the batch grid axis.
    stats_ref[0:1, :] += jnp.sum(acc, axis=0, keepdims=True)
    stats_ref[1:2, :] += jnp.sum(acc * acc, axis=0, keepdims=True)

    # Lane-dense store of the raw conv output (last dim = CP, multiple of 128).
    y_ref[0] = acc


def _conv_bn_stats(x_nhwc, wmat, pscale, pshift, cout_p, *, fuse_input_bn_relu):
    N, H, W, Cin = x_nhwc.shape
    HW = H * W
    kp = wmat.shape[0]
    kernel = functools.partial(_conv_stats_kernel,
                               fuse_input_bn_relu=fuse_input_bn_relu)
    y, stats = pl.pallas_call(
        kernel,
        grid=(N,),
        in_specs=[
            pl.BlockSpec((1, H, W, Cin), lambda n: (n, 0, 0, 0)),
            pl.BlockSpec((kp, cout_p), lambda n: (0, 0)),          # weights (resident)
            pl.BlockSpec((1, 1, Cin), lambda n: (0, 0, 0)),        # fused pre-BN scale
            pl.BlockSpec((1, 1, Cin), lambda n: (0, 0, 0)),        # fused pre-BN shift
        ],
        out_specs=[
            pl.BlockSpec((1, HW, cout_p), lambda n: (n, 0, 0)),
            pl.BlockSpec((2, cout_p), lambda n: (0, 0)),           # resident accumulator
        ],
        out_shape=[
            jax.ShapeDtypeStruct((N, HW, cout_p), jnp.float32),
            jax.ShapeDtypeStruct((2, cout_p), jnp.float32),
        ],
        scratch_shapes=[
            pltpu.VMEM((H + 2, W + 2, Cin), jnp.float32),          # padded image
            pltpu.VMEM((HW, kp), jnp.float32),                     # im2col slab
        ],
        compiler_params=pltpu.CompilerParams(
            # Stats accumulate across the batch axis -> must stay sequential.
            # TODO(synk): v7x 2-TC sharding would need a cross-core stats reduce.
            dimension_semantics=("arbitrary",),
            vmem_limit_bytes=32 * 1024 * 1024,
        ),
    )(x_nhwc, wmat, pscale, pshift)
    return y, stats


# ---------------------------------------------------------------------------
# Kernel 2: normalize + ReLU (final BatchNorm of the second block)
# ---------------------------------------------------------------------------
def _bn_relu_kernel(y_ref, scale_ref, shift_ref, o_ref):
    o_ref[...] = jnp.maximum(y_ref[...] * scale_ref[...] + shift_ref[...], 0.0)


def _bn_relu(y, scale, shift):
    N, HW, CP = y.shape
    return pl.pallas_call(
        _bn_relu_kernel,
        grid=(N,),
        in_specs=[
            pl.BlockSpec((1, HW, CP), lambda n: (n, 0, 0)),
            pl.BlockSpec((1, 1, CP), lambda n: (0, 0, 0)),
            pl.BlockSpec((1, 1, CP), lambda n: (0, 0, 0)),
        ],
        out_specs=pl.BlockSpec((1, HW, CP), lambda n: (n, 0, 0)),
        out_shape=jax.ShapeDtypeStruct((N, HW, CP), jnp.float32),
        compiler_params=pltpu.CompilerParams(
            dimension_semantics=("parallel",),                     # independent per image
            vmem_limit_bytes=32 * 1024 * 1024,
        ),
    )(y, scale, shift)


# ---------------------------------------------------------------------------
# Host-side glue
# ---------------------------------------------------------------------------
def _prep_weight(w_oihw, tap, cout_p):
    """OIHW -> im2col weight matrix (9*tap, cout_p), channels zero-padded."""
    cout, cin, kh, kw = w_oihw.shape
    w = jnp.transpose(w_oihw, (2, 3, 1, 0))                        # HWIO
    w = jnp.pad(w, ((0, 0), (0, 0), (0, tap - cin), (0, cout_p - cout)))
    return w.reshape(kh * kw * tap, cout_p)


def _bn_scale_shift(stats, count, gamma_p, beta_p):
    """Fold training-mode BatchNorm into a per-channel scale/shift."""
    mean = stats[0] / count
    var = stats[1] / count - mean * mean                           # biased variance
    inv = jax.lax.rsqrt(var + EPS)
    scale = gamma_p * inv
    shift = beta_p - mean * scale
    return scale, shift


@jax.jit
def double_conv(x_nchw, w1, g1, b1, w2, g2, b2):
    N, Cin, H, W = x_nchw.shape
    Cout = w1.shape[0]
    CP = _round_up(Cout, LANE)
    tap1 = _round_up(Cin, LANE)
    tap2 = CP                                                      # conv2 input = padded CP
    count = float(N * H * W)

    x = jnp.transpose(x_nchw, (0, 2, 3, 1))                        # NCHW -> NHWC
    wm1 = _prep_weight(w1, tap1, CP)
    wm2 = _prep_weight(w2, tap2, CP)
    g1p = jnp.pad(g1, (0, CP - Cout))
    b1p = jnp.pad(b1, (0, CP - Cout))
    g2p = jnp.pad(g2, (0, CP - Cout))
    b2p = jnp.pad(b2, (0, CP - Cout))

    # Block 1: conv -> raw output + BN stats (no input activation fusion).
    dummy = jnp.zeros((1, 1, Cin), jnp.float32)
    y1, st1 = _conv_bn_stats(x, wm1, dummy, dummy, CP, fuse_input_bn_relu=False)
    s1, h1 = _bn_scale_shift(st1, count, g1p, b1p)

    # Block 2: BN1+ReLU fused into the conv's input load (no extra HBM pass).
    y1_nhwc = y1.reshape(N, H, W, CP)                              # free metadata reshape
    y2, st2 = _conv_bn_stats(y1_nhwc, wm2,
                             s1.reshape(1, 1, CP), h1.reshape(1, 1, CP), CP,
                             fuse_input_bn_relu=True)
    s2, h2 = _bn_scale_shift(st2, count, g2p, b2p)

    # Final BN2 + ReLU.
    out = _bn_relu(y2, s2.reshape(1, 1, CP), h2.reshape(1, 1, CP))
    out = out.reshape(N, H, W, CP)[..., :Cout]                     # drop channel padding
    return jnp.transpose(out, (0, 3, 1, 2))                        # back to NCHW


# ---------------------------------------------------------------------------
# Pure-JAX reference (PyTorch forward semantics: training-mode BatchNorm)
# ---------------------------------------------------------------------------
def _ref_block(x_nchw, w_oihw, gamma, beta):
    y = jax.lax.conv_general_dilated(
        x_nchw, w_oihw, window_strides=(1, 1), padding="SAME",
        dimension_numbers=("NCHW", "OIHW", "NCHW"))
    mean = jnp.mean(y, axis=(0, 2, 3), keepdims=True)
    var = jnp.mean((y - mean) ** 2, axis=(0, 2, 3), keepdims=True)
    y = (y - mean) * jax.lax.rsqrt(var + EPS)
    y = y * gamma.reshape(1, -1, 1, 1) + beta.reshape(1, -1, 1, 1)
    return jnp.maximum(y, 0.0)


def _ref_double_conv(x, w1, g1, b1, w2, g2, b2):
    return _ref_block(_ref_block(x, w1, g1, b1), w2, g2, b2)


if __name__ == "__main__":
    key = jax.random.PRNGKey(0)
    k_x, k_w1, k_w2 = jax.random.split(key, 3)

    N, Cin, Cout, H, W = 2, 4, 8, 16, 16

    x = jax.random.normal(k_x, (N, Cin, H, W), dtype=jnp.float32)

    fan1 = Cin * 9
    fan2 = Cout * 9
    w1 = jax.random.uniform(k_w1, (Cout, Cin, 3, 3), jnp.float32,
                            -1.0 / jnp.sqrt(fan1), 1.0 / jnp.sqrt(fan1))
    w2 = jax.random.uniform(k_w2, (Cout, Cout, 3, 3), jnp.float32,
                            -1.0 / jnp.sqrt(fan2), 1.0 / jnp.sqrt(fan2))
    g1 = jnp.ones((Cout,), jnp.float32)
    b1 = jnp.zeros((Cout,), jnp.float32)
    g2 = jnp.ones((Cout,), jnp.float32)
    b2 = jnp.zeros((Cout,), jnp.float32)

    out = jax.block_until_ready(double_conv(x, w1, g1, b1, w2, g2, b2))

    ref = _ref_double_conv(x, w1, g1, b1, w2, g2, b2)
    assert out.shape == (N, Cout, H, W), out.shape
    max_err = float(jnp.max(jnp.abs(out - ref)))
    assert jnp.allclose(out, ref, rtol=1e-3, atol=1e-3), max_err

    print("KERNEL_OK")
</pallas_src>

<mosaic_0001>
module attributes {stable_mosaic.version = 11 : i64} {
  func.func @_conv_stats_kernel(%arg0: i32, %arg1: memref<1x16x16x4xf32, #tpu.memory_space<vmem>>, %arg2: memref<1152x128xf32, #tpu.memory_space<vmem>>, %arg3: memref<1x1x4xf32, #tpu.memory_space<vmem>>, %arg4: memref<1x1x4xf32, #tpu.memory_space<vmem>>, %arg5: memref<1x256x128xf32, #tpu.memory_space<vmem>>, %arg6: memref<2x128xf32, #tpu.memory_space<vmem>>, %arg7: memref<18x18x4xf32, #tpu.memory_space<vmem>>, %arg8: memref<256x1152xf32, #tpu.memory_space<vmem>>) attributes {dimension_semantics = [#tpu.dimension_semantics<arbitrary>], iteration_bounds = array<i64: 2>, scalar_prefetch = 0 : i64, scratch_operands = 2 : i64, tpu.core_type = #tpu.core_type<tc>, window_params = [{transform_indices = @transform_0, window_bounds = array<i64: 1, 16, 16, 4>}, {pipeline_mode = #tpu.pipeline_mode<synchronous>, transform_indices = @transform_1, window_bounds = array<i64: 1152, 128>}, {pipeline_mode = #tpu.pipeline_mode<synchronous>, transform_indices = @transform_2, window_bounds = array<i64: 1, 1, 4>}, {pipeline_mode = #tpu.pipeline_mode<synchronous>, transform_indices = @transform_3, window_bounds = array<i64: 1, 1, 4>}, {transform_indices = @transform_4, window_bounds = array<i64: 1, 256, 128>}, {pipeline_mode = #tpu.pipeline_mode<synchronous>, transform_indices = @transform_5, window_bounds = array<i64: 2, 128>}]} {
    %c0_i32 = arith.constant 0 : i32
    %0 = arith.cmpi eq, %arg0, %c0_i32 : i32
    %1 = arith.extui %0 : i1 to i32
    %c0_i32_0 = arith.constant 0 : i32
    %2 = arith.cmpi ne, %1, %c0_i32_0 : i32
    scf.if %2 {
      %cst_59 = arith.constant 0.000000e+00 : f32
      %50 = vector.broadcast %cst_59 : f32 to vector<18x18x4xf32>
      %c0_60 = arith.constant 0 : index
      %c0_61 = arith.constant 0 : index
      %c0_62 = arith.constant 0 : index
      %51 = vector.load %arg7[%c0_60, %c0_61, %c0_62] : memref<18x18x4xf32, #tpu.memory_space<vmem>>, vector<18x18x4xf32>
      tpu.vector_store %arg7[%c0_60, %c0_61, %c0_62], %50 {strides = array<i32>} : memref<18x18x4xf32, #tpu.memory_space<vmem>>, vector<18x18x4xf32>,
      %cst_63 = arith.constant 0.000000e+00 : f32
      %52 = vector.broadcast %cst_63 : f32 to vector<256x1152xf32>
      %c0_64 = arith.constant 0 : index
      %c0_65 = arith.constant 0 : index
      %53 = vector.load %arg8[%c0_64, %c0_65] : memref<256x1152xf32, #tpu.memory_space<vmem>>, vector<256x1152xf32>
      tpu.vector_store %arg8[%c0_64, %c0_65], %52 {strides = array<i32>} : memref<256x1152xf32, #tpu.memory_space<vmem>>, vector<256x1152xf32>,
      %cst_66 = arith.constant 0.000000e+00 : f32
      %54 = vector.broadcast %cst_66 : f32 to vector<2x128xf32>
      %c0_67 = arith.constant 0 : index
      %c0_68 = arith.constant 0 : index
      %55 = vector.load %arg6[%c0_67, %c0_68] : memref<2x128xf32, #tpu.memory_space<vmem>>, vector<2x128xf32>
      tpu.vector_store %arg6[%c0_67, %c0_68], %54 {strides = array<i32>} : memref<2x128xf32, #tpu.memory_space<vmem>>, vector<2x128xf32>,
    } else {
    }
    %c0 = arith.constant 0 : index
    %c0_1 = arith.constant 0 : index
    %c0_2 = arith.constant 0 : index
    %c0_3 = arith.constant 0 : index
    %3 = vector.load %arg1[%c0, %c0_1, %c0_2, %c0_3] : memref<1x16x16x4xf32, #tpu.memory_space<vmem>>, vector<1x16x16x4xf32>
    %4 = vector.shape_cast %3 : vector<1x16x16x4xf32> to vector<16x16x4xf32>
    %c1 = arith.constant 1 : index
    %c1_4 = arith.constant 1 : index
    %c0_5 = arith.constant 0 : index
    %5 = vector.load %arg7[%c1, %c1_4, %c0_5] : memref<18x18x4xf32, #tpu.memory_space<vmem>>, vector<16x16x4xf32>
    tpu.vector_store %arg7[%c1, %c1_4, %c0_5], %4 {strides = array<i32>} : memref<18x18x4xf32, #tpu.memory_space<vmem>>, vector<16x16x4xf32>,
    %c0_6 = arith.constant 0 : index
    %c0_7 = arith.constant 0 : index
    %c0_8 = arith.constant 0 : index
    %6 = vector.load %arg7[%c0_6, %c0_7, %c0_8] : memref<18x18x4xf32, #tpu.memory_space<vmem>>, vector<16x16x4xf32>
    %7 = vector.shape_cast %6 : vector<16x16x4xf32> to vector<256x4xf32>
    %c0_9 = arith.constant 0 : index
    %c0_10 = arith.constant 0 : index
    %8 = vector.load %arg8[%c0_9, %c0_10] : memref<256x1152xf32, #tpu.memory_space<vmem>>, vector<256x4xf32>
    tpu.vector_store %arg8[%c0_9, %c0_10], %7 {strides = array<i32>} : memref<256x1152xf32, #tpu.memory_space<vmem>>, vector<256x4xf32>,
    %c0_11 = arith.constant 0 : index
    %c1_12 = arith.constant 1 : index
    %c0_13 = arith.constant 0 : index
    %9 = vector.load %arg7[%c0_11, %c1_12, %c0_13] : memref<18x18x4xf32, #tpu.memory_space<vmem>>, vector<16x16x4xf32>
    %10 = vector.shape_cast %9 : vector<16x16x4xf32> to vector<256x4xf32>
    %c0_14 = arith.constant 0 : index
    %c128 = arith.constant 128 : index
    %11 = vector.load %arg8[%c0_14, %c128] : memref<256x1152xf32, #tpu.memory_space<vmem>>, vector<256x4xf32>
    tpu.vector_store %arg8[%c0_14, %c128], %10 {strides = array<i32>} : memref<256x1152xf32, #tpu.memory_space<vmem>>, vector<256x4xf32>,
    %c0_15 = arith.constant 0 : index
    %c2 = arith.constant 2 : index
    %c0_16 = arith.constant 0 : index
    %12 = vector.load %arg7[%c0_15, %c2, %c0_16] : memref<18x18x4xf32, #tpu.memory_space<vmem>>, vector<16x16x4xf32>
    %13 = vector.shape_cast %12 : vector<16x16x4xf32> to vector<256x4xf32>
    %c0_17 = arith.constant 0 : index
    %c256 = arith.constant 256 : index
    %14 = vector.load %arg8[%c0_17, %c256] : memref<256x1152xf32, #tpu.memory_space<vmem>>, vector<256x4xf32>
    tpu.vector_store %arg8[%c0_17, %c256], %13 {strides = array<i32>} : memref<256x1152xf32, #tpu.memory_space<vmem>>, vector<256x4xf32>,
    %c1_18 = arith.constant 1 : index
    %c0_19 = arith.constant 0 : index
    %c0_20 = arith.constant 0 : index
    %15 = vector.load %arg7[%c1_18, %c0_19, %c0_20] : memref<18x18x4xf32, #tpu.memory_space<vmem>>, vector<16x16x4xf32>
    %16 = vector.shape_cast %15 : vector<16x16x4xf32> to vector<256x4xf32>
    %c0_21 = arith.constant 0 : index
    %c384 = arith.constant 384 : index
    %17 = vector.load %arg8[%c0_21, %c384] : memref<256x1152xf32, #tpu.memory_space<vmem>>, vector<256x4xf32>
    tpu.vector_store %arg8[%c0_21, %c384], %16 {strides = array<i32>} : memref<256x1152xf32, #tpu.memory_space<vmem>>, vector<256x4xf32>,
    %c1_22 = arith.constant 1 : index
    %c1_23 = arith.constant 1 : index
    %c0_24 = arith.constant 0 : index
    %18 = vector.load %arg7[%c1_22, %c1_23, %c0_24] : memref<18x18x4xf32, #tpu.memory_space<vmem>>, vector<16x16x4xf32>
    %19 = vector.shape_cast %18 : vector<16x16x4xf32> to vector<256x4xf32>
    %c0_25 = arith.constant 0 : index
    %c512 = arith.constant 512 : index
    %20 = vector.load %arg8[%c0_25, %c512] : memref<256x1152xf32, #tpu.memory_space<vmem>>, vector<256x4xf32>
    tpu.vector_store %arg8[%c0_25, %c512], %19 {strides = array<i32>} : memref<256x1152xf32, #tpu.memory_space<vmem>>, vector<256x4xf32>,
    %c1_26 = arith.constant 1 : index
    %c2_27 = arith.constant 2 : index
    %c0_28 = arith.constant 0 : index
    %21 = vector.load %arg7[%c1_26, %c2_27, %c0_28] : memref<18x18x4xf32, #tpu.memory_space<vmem>>, vector<16x16x4xf32>
    %22 = vector.shape_cast %21 : vector<16x16x4xf32> to vector<256x4xf32>
    %c0_29 = arith.constant 0 : index
    %c640 = arith.constant 640 : index
    %23 = vector.load %arg8[%c0_29, %c640] : memref<256x1152xf32, #tpu.memory_space<vmem>>, vector<256x4xf32>
    tpu.vector_store %arg8[%c0_29, %c640], %22 {strides = array<i32>} : memref<256x1152xf32, #tpu.memory_space<vmem>>, vector<256x4xf32>,
    %c2_30 = arith.constant 2 : index
    %c0_31 = arith.constant 0 : index
    %c0_32 = arith.constant 0 : index
    %24 = vector.load %arg7[%c2_30, %c0_31, %c0_32] : memref<18x18x4xf32, #tpu.memory_space<vmem>>, vector<16x16x4xf32>
    %25 = vector.shape_cast %24 : vector<16x16x4xf32> to vector<256x4xf32>
    %c0_33 = arith.constant 0 : index
    %c768 = arith.constant 768 : index
    %26 = vector.load %arg8[%c0_33, %c768] : memref<256x1152xf32, #tpu.memory_space<vmem>>, vector<256x4xf32>
    tpu.vector_store %arg8[%c0_33, %c768], %25 {strides = array<i32>} : memref<256x1152xf32, #tpu.memory_space<vmem>>, vector<256x4xf32>,
    %c2_34 = arith.constant 2 : index
    %c1_35 = arith.constant 1 : index
    %c0_36 = arith.constant 0 : index
    %27 = vector.load %arg7[%c2_34, %c1_35, %c0_36] : memref<18x18x4xf32, #tpu.memory_space<vmem>>, vector<16x16x4xf32>
    %28 = vector.shape_cast %27 : vector<16x16x4xf32> to vector<256x4xf32>
    %c0_37 = arith.constant 0 : index
    %c896 = arith.constant 896 : index
    %29 = vector.load %arg8[%c0_37, %c896] : memref<256x1152xf32, #tpu.memory_space<vmem>>, vector<256x4xf32>
    tpu.vector_store %arg8[%c0_37, %c896], %28 {strides = array<i32>} : memref<256x1152xf32, #tpu.memory_space<vmem>>, vector<256x4xf32>,
    %c2_38 = arith.constant 2 : index
    %c2_39 = arith.constant 2 : index
    %c0_40 = arith.constant 0 : index
    %30 = vector.load %arg7[%c2_38, %c2_39, %c0_40] : memref<18x18x4xf32, #tpu.memory_space<vmem>>, vector<16x16x4xf32>
    %31 = vector.shape_cast %30 : vector<16x16x4xf32> to vector<256x4xf32>
    %c0_41 = arith.constant 0 : index
    %c1024 = arith.constant 1024 : index
    %32 = vector.load %arg8[%c0_41, %c1024] : memref<256x1152xf32, #tpu.memory_space<vmem>>, vector<256x4xf32>
    tpu.vector_store %arg8[%c0_41, %c1024], %31 {strides = array<i32>} : memref<256x1152xf32, #tpu.memory_space<vmem>>, vector<256x4xf32>,
    %c0_42 = arith.constant 0 : index
    %c0_43 = arith.constant 0 : index
    %33 = vector.load %arg8[%c0_42, %c0_43] : memref<256x1152xf32, #tpu.memory_space<vmem>>, vector<256x1152xf32>
    %c0_44 = arith.constant 0 : index
    %c0_45 = arith.constant 0 : index
    %34 = vector.load %arg2[%c0_44, %c0_45] : memref<1152x128xf32, #tpu.memory_space<vmem>>, vector<1152x128xf32>
    %cst = arith.constant dense<0.000000e+00> : vector<256x128xf32>
    %35 = tpu.matmul %33, %34, %cst {dimension_numbers = #tpu.dot_dimension_numbers<[1], [0], [0], [1], [0, 0, 1, 1], [], []>} : vector<256x1152xf32>, vector<1152x128xf32>, vector<256x128xf32> -> vector<256x128xf32>
    %c0_46 = arith.constant 0 : index
    %c0_47 = arith.constant 0 : index
    %36 = vector.load %arg6[%c0_46, %c0_47] : memref<2x128xf32, #tpu.memory_space<vmem>>, vector<1x128xf32>
    %cst_48 = arith.constant dense<0.000000e+00> : vector<128xf32>
    %37 = vector.multi_reduction <add>, %35, %cst_48 [0] : vector<256x128xf32> to vector<128xf32>
    %38 = vector.shape_cast %37 : vector<128xf32> to vector<1x128xf32>
    %39 = arith.addf %36, %38 : vector<1x128xf32>
    %c0_49 = arith.constant 0 : index
    %c0_50 = arith.constant 0 : index
    %40 = vector.load %arg6[%c0_49, %c0_50] : memref<2x128xf32, #tpu.memory_space<vmem>>, vector<1x128xf32>
    tpu.vector_store %arg6[%c0_49, %c0_50], %39 {strides = array<i32>} : memref<2x128xf32, #tpu.memory_space<vmem>>, vector<1x128xf32>,
    %c1_51 = arith.constant 1 : index
    %c0_52 = arith.constant 0 : index
    %41 = vector.load %arg6[%c1_51, %c0_52] : memref<2x128xf32, #tpu.memory_space<vmem>>, vector<1x128xf32>
    %42 = arith.mulf %35, %35 : vector<256x128xf32>
    %cst_53 = arith.constant dense<0.000000e+00> : vector<128xf32>
    %43 = vector.multi_reduction <add>, %42, %cst_53 [0] : vector<256x128xf32> to vector<128xf32>
    %44 = vector.shape_cast %43 : vector<128xf32> to vector<1x128xf32>
    %45 = arith.addf %41, %44 : vector<1x128xf32>
    %c1_54 = arith.constant 1 : index
    %c0_55 = arith.constant 0 : index
    %46 = vector.load %arg6[%c1_54, %c0_55] : memref<2x128xf32, #tpu.memory_space<vmem>>, vector<1x128xf32>
    tpu.vector_store %arg6[%c1_54, %c0_55], %45 {strides = array<i32>} : memref<2x128xf32, #tpu.memory_space<vmem>>, vector<1x128xf32>,
    %c0_56 = arith.constant 0 : index
    %c0_57 = arith.constant 0 : index
    %c0_58 = arith.constant 0 : index
    %47 = vector.load %arg5[%c0_56, %c0_57, %c0_58] : memref<1x256x128xf32, #tpu.memory_space<vmem>>, vector<1x256x128xf32>
    %48 = vector.shape_cast %47 : vector<1x256x128xf32> to vector<256x128xf32>
    %49 = vector.shape_cast %35 : vector<256x128xf32> to vector<1x256x128xf32>
    tpu.vector_store %arg5[%c0_56, %c0_57, %c0_58], %49 {strides = array<i32>} : memref<1x256x128xf32, #tpu.memory_space<vmem>>, vector<1x256x128xf32>,
    return
  }
  func.func @transform_0(%arg0: i32) -> (i32, i32, i32, i32) {
    %c0_i32 = arith.constant 0 : i32
    %c0_i32_0 = arith.constant 0 : i32
    %c0_i32_1 = arith.constant 0 : i32
    %c0_i32_2 = arith.constant 0 : i32
    return %arg0, %c0_i32, %c0_i32_0, %c0_i32_1 : i32, i32, i32, i32
  }
  func.func @transform_1(%arg0: i32) -> (i32, i32) {
    %c0_i32 = arith.constant 0 : i32
    %c0_i32_0 = arith.constant 0 : i32
    %c0_i32_1 = arith.constant 0 : i32
    return %c0_i32, %c0_i32_0 : i32, i32
  }
  func.func @transform_2(%arg0: i32) -> (i32, i32, i32) {
    %c0_i32 = arith.constant 0 : i32
    %c0_i32_0 = arith.constant 0 : i32
    %c0_i32_1 = arith.constant 0 : i32
    %c0_i32_2 = arith.constant 0 : i32
    return %c0_i32, %c0_i32_0, %c0_i32_1 : i32, i32, i32
  }
  func.func @transform_3(%arg0: i32) -> (i32, i32, i32) {
    %c0_i32 = arith.constant 0 : i32
    %c0_i32_0 = arith.constant 0 : i32
    %c0_i32_1 = arith.constant 0 : i32
    %c0_i32_2 = arith.constant 0 : i32
    return %c0_i32, %c0_i32_0, %c0_i32_1 : i32, i32, i32
  }
  func.func @transform_4(%arg0: i32) -> (i32, i32, i32) {
    %c0_i32 = arith.constant 0 : i32
    %c0_i32_0 = arith.constant 0 : i32
    %c0_i32_1 = arith.constant 0 : i32
    return %arg0, %c0_i32, %c0_i32_0 : i32, i32, i32
  }
  func.func @transform_5(%arg0: i32) -> (i32, i32) {
    %c0_i32 = arith.constant 0 : i32
    %c0_i32_0 = arith.constant 0 : i32
    %c0_i32_1 = arith.constant 0 : i32
    return %c0_i32, %c0_i32_0 : i32, i32
  }
}

module attributes {stable_mosaic.version = 11 : i64} {
  func.func @_conv_stats_kernel(%arg0: i32, %arg1: memref<1x16x16x128xf32, #tpu.memory_space<vmem>>, %arg2: memref<1152x128xf32, #tpu.memory_space<vmem>>, %arg3: memref<1x1x128xf32, #tpu.memory_space<vmem>>, %arg4: memref<1x1x128xf32, #tpu.memory_space<vmem>>, %arg5: memref<1x256x128xf32, #tpu.memory_space<vmem>>, %arg6: memref<2x128xf32, #tpu.memory_space<vmem>>, %arg7: memref<18x18x128xf32, #tpu.memory_space<vmem>>, %arg8: memref<256x1152xf32, #tpu.memory_space<vmem>>) attributes {dimension_semantics = [#tpu.dimension_semantics<arbitrary>], iteration_bounds = array<i64: 2>, scalar_prefetch = 0 : i64, scratch_operands = 2 : i64, tpu.core_type = #tpu.core_type<tc>, window_params = [{transform_indices = @transform_0, window_bounds = array<i64: 1, 16, 16, 128>}, {pipeline_mode = #tpu.pipeline_mode<synchronous>, transform_indices = @transform_1, window_bounds = array<i64: 1152, 128>}, {pipeline_mode = #tpu.pipeline_mode<synchronous>, transform_indices = @transform_2, window_bounds = array<i64: 1, 1, 128>}, {pipeline_mode = #tpu.pipeline_mode<synchronous>, transform_indices = @transform_3, window_bounds = array<i64: 1, 1, 128>}, {transform_indices = @transform_4, window_bounds = array<i64: 1, 256, 128>}, {pipeline_mode = #tpu.pipeline_mode<synchronous>, transform_indices = @transform_5, window_bounds = array<i64: 2, 128>}]} {
    %c0_i32 = arith.constant 0 : i32
    %0 = arith.cmpi eq, %arg0, %c0_i32 : i32
    %1 = arith.extui %0 : i1 to i32
    %c0_i32_0 = arith.constant 0 : i32
    %2 = arith.cmpi ne, %1, %c0_i32_0 : i32
    scf.if %2 {
      %cst_66 = arith.constant 0.000000e+00 : f32
      %58 = vector.broadcast %cst_66 : f32 to vector<18x18x128xf32>
      %c0_67 = arith.constant 0 : index
      %c0_68 = arith.constant 0 : index
      %c0_69 = arith.constant 0 : index
      %59 = vector.load %arg7[%c0_67, %c0_68, %c0_69] : memref<18x18x128xf32, #tpu.memory_space<vmem>>, vector<18x18x128xf32>
      tpu.vector_store %arg7[%c0_67, %c0_68, %c0_69], %58 {strides = array<i32>} : memref<18x18x128xf32, #tpu.memory_space<vmem>>, vector<18x18x128xf32>,
      %cst_70 = arith.constant 0.000000e+00 : f32
      %60 = vector.broadcast %cst_70 : f32 to vector<256x1152xf32>
      %c0_71 = arith.constant 0 : index
      %c0_72 = arith.constant 0 : index
      %61 = vector.load %arg8[%c0_71, %c0_72] : memref<256x1152xf32, #tpu.memory_space<vmem>>, vector<256x1152xf32>
      tpu.vector_store %arg8[%c0_71, %c0_72], %60 {strides = array<i32>} : memref<256x1152xf32, #tpu.memory_space<vmem>>, vector<256x1152xf32>,
      %cst_73 = arith.constant 0.000000e+00 : f32
      %62 = vector.broadcast %cst_73 : f32 to vector<2x128xf32>
      %c0_74 = arith.constant 0 : index
      %c0_75 = arith.constant 0 : index
      %63 = vector.load %arg6[%c0_74, %c0_75] : memref<2x128xf32, #tpu.memory_space<vmem>>, vector<2x128xf32>
      tpu.vector_store %arg6[%c0_74, %c0_75], %62 {strides = array<i32>} : memref<2x128xf32, #tpu.memory_space<vmem>>, vector<2x128xf32>,
    } else {
    }
    %c0 = arith.constant 0 : index
    %c0_1 = arith.constant 0 : index
    %c0_2 = arith.constant 0 : index
    %c0_3 = arith.constant 0 : index
    %3 = vector.load %arg1[%c0, %c0_1, %c0_2, %c0_3] : memref<1x16x16x128xf32, #tpu.memory_space<vmem>>, vector<1x16x16x128xf32>
    %4 = vector.shape_cast %3 : vector<1x16x16x128xf32> to vector<16x16x128xf32>
    %c0_4 = arith.constant 0 : index
    %c0_5 = arith.constant 0 : index
    %c0_6 = arith.constant 0 : index
    %5 = vector.load %arg3[%c0_4, %c0_5, %c0_6] : memref<1x1x128xf32, #tpu.memory_space<vmem>>, vector<1x1x128xf32>
    %6 = vector.broadcast %5 : vector<1x1x128xf32> to vector<16x16x128xf32>
    %7 = arith.mulf %4, %6 : vector<16x16x128xf32>
    %c0_7 = arith.constant 0 : index
    %c0_8 = arith.constant 0 : index
    %c0_9 = arith.constant 0 : index
    %8 = vector.load %arg4[%c0_7, %c0_8, %c0_9] : memref<1x1x128xf32, #tpu.memory_space<vmem>>, vector<1x1x128xf32>
    %9 = vector.broadcast %8 : vector<1x1x128xf32> to vector<16x16x128xf32>
    %10 = arith.addf %7, %9 : vector<16x16x128xf32>
    %cst = arith.constant 0.000000e+00 : f32
    %11 = vector.broadcast %cst : f32 to vector<16x16x128xf32>
    %12 = arith.maximumf %10, %11 : vector<16x16x128xf32>
    %c1 = arith.constant 1 : index
    %c1_10 = arith.constant 1 : index
    %c0_11 = arith.constant 0 : index
    %13 = vector.load %arg7[%c1, %c1_10, %c0_11] : memref<18x18x128xf32, #tpu.memory_space<vmem>>, vector<16x16x128xf32>
    tpu.vector_store %arg7[%c1, %c1_10, %c0_11], %12 {strides = array<i32>} : memref<18x18x128xf32, #tpu.memory_space<vmem>>, vector<16x16x128xf32>,
    %c0_12 = arith.constant 0 : index
    %c0_13 = arith.constant 0 : index
    %c0_14 = arith.constant 0 : index
    %14 = vector.load %arg7[%c0_12, %c0_13, %c0_14] : memref<18x18x128xf32, #tpu.memory_space<vmem>>, vector<16x16x128xf32>
    %15 = vector.shape_cast %14 : vector<16x16x128xf32> to vector<256x128xf32>
    %c0_15 = arith.constant 0 : index
    %c0_16 = arith.constant 0 : index
    %16 = vector.load %arg8[%c0_15, %c0_16] : memref<256x1152xf32, #tpu.memory_space<vmem>>, vector<256x128xf32>
    tpu.vector_store %arg8[%c0_15, %c0_16], %15 {strides = array<i32>} : memref<256x1152xf32, #tpu.memory_space<vmem>>, vector<256x128xf32>,
    %c0_17 = arith.constant 0 : index
    %c1_18 = arith.constant 1 : index
    %c0_19 = arith.constant 0 : index
    %17 = vector.load %arg7[%c0_17, %c1_18, %c0_19] : memref<18x18x128xf32, #tpu.memory_space<vmem>>, vector<16x16x128xf32>
    %18 = vector.shape_cast %17 : vector<16x16x128xf32> to vector<256x128xf32>
    %c0_20 = arith.constant 0 : index
    %c128 = arith.constant 128 : index
    %19 = vector.load %arg8[%c0_20, %c128] : memref<256x1152xf32, #tpu.memory_space<vmem>>, vector<256x128xf32>
    tpu.vector_store %arg8[%c0_20, %c128], %18 {strides = array<i32>} : memref<256x1152xf32, #tpu.memory_space<vmem>>, vector<256x128xf32>,
    %c0_21 = arith.constant 0 : index
    %c2 = arith.constant 2 : index
    %c0_22 = arith.constant 0 : index
    %20 = vector.load %arg7[%c0_21, %c2, %c0_22] : memref<18x18x128xf32, #tpu.memory_space<vmem>>, vector<16x16x128xf32>
    %21 = vector.shape_cast %20 : vector<16x16x128xf32> to vector<256x128xf32>
    %c0_23 = arith.constant 0 : index
    %c256 = arith.constant 256 : index
    %22 = vector.load %arg8[%c0_23, %c256] : memref<256x1152xf32, #tpu.memory_space<vmem>>, vector<256x128xf32>
    tpu.vector_store %arg8[%c0_23, %c256], %21 {strides = array<i32>} : memref<256x1152xf32, #tpu.memory_space<vmem>>, vector<256x128xf32>,
    %c1_24 = arith.constant 1 : index
    %c0_25 = arith.constant 0 : index
    %c0_26 = arith.constant 0 : index
    %23 = vector.load %arg7[%c1_24, %c0_25, %c0_26] : memref<18x18x128xf32, #tpu.memory_space<vmem>>, vector<16x16x128xf32>
    %24 = vector.shape_cast %23 : vector<16x16x128xf32> to vector<256x128xf32>
    %c0_27 = arith.constant 0 : index
    %c384 = arith.constant 384 : index
    %25 = vector.load %arg8[%c0_27, %c384] : memref<256x1152xf32, #tpu.memory_space<vmem>>, vector<256x128xf32>
    tpu.vector_store %arg8[%c0_27, %c384], %24 {strides = array<i32>} : memref<256x1152xf32, #tpu.memory_space<vmem>>, vector<256x128xf32>,
    %c1_28 = arith.constant 1 : index
    %c1_29 = arith.constant 1 : index
    %c0_30 = arith.constant 0 : index
    %26 = vector.load %arg7[%c1_28, %c1_29, %c0_30] : memref<18x18x128xf32, #tpu.memory_space<vmem>>, vector<16x16x128xf32>
    %27 = vector.shape_cast %26 : vector<16x16x128xf32> to vector<256x128xf32>
    %c0_31 = arith.constant 0 : index
    %c512 = arith.constant 512 : index
    %28 = vector.load %arg8[%c0_31, %c512] : memref<256x1152xf32, #tpu.memory_space<vmem>>, vector<256x128xf32>
    tpu.vector_store %arg8[%c0_31, %c512], %27 {strides = array<i32>} : memref<256x1152xf32, #tpu.memory_space<vmem>>, vector<256x128xf32>,
    %c1_32 = arith.constant 1 : index
    %c2_33 = arith.constant 2 : index
    %c0_34 = arith.constant 0 : index
    %29 = vector.load %arg7[%c1_32, %c2_33, %c0_34] : memref<18x18x128xf32, #tpu.memory_space<vmem>>, vector<16x16x128xf32>
    %30 = vector.shape_cast %29 : vector<16x16x128xf32> to vector<256x128xf32>
    %c0_35 = arith.constant 0 : index
    %c640 = arith.constant 640 : index
    %31 = vector.load %arg8[%c0_35, %c640] : memref<256x1152xf32, #tpu.memory_space<vmem>>, vector<256x128xf32>
    tpu.vector_store %arg8[%c0_35, %c640], %30 {strides = array<i32>} : memref<256x1152xf32, #tpu.memory_space<vmem>>, vector<256x128xf32>,
    %c2_36 = arith.constant 2 : index
    %c0_37 = arith.constant 0 : index
    %c0_38 = arith.constant 0 : index
    %32 = vector.load %arg7[%c2_36, %c0_37, %c0_38] : memref<18x18x128xf32, #tpu.memory_space<vmem>>, vector<16x16x128xf32>
    %33 = vector.shape_cast %32 : vector<16x16x128xf32> to vector<256x128xf32>
    %c0_39 = arith.constant 0 : index
    %c768 = arith.constant 768 : index
    %34 = vector.load %arg8[%c0_39, %c768] : memref<256x1152xf32, #tpu.memory_space<vmem>>, vector<256x128xf32>
    tpu.vector_store %arg8[%c0_39, %c768], %33 {strides = array<i32>} : memref<256x1152xf32, #tpu.memory_space<vmem>>, vector<256x128xf32>,
    %c2_40 = arith.constant 2 : index
    %c1_41 = arith.constant 1 : index
    %c0_42 = arith.constant 0 : index
    %35 = vector.load %arg7[%c2_40, %c1_41, %c0_42] : memref<18x18x128xf32, #tpu.memory_space<vmem>>, vector<16x16x128xf32>
    %36 = vector.shape_cast %35 : vector<16x16x128xf32> to vector<256x128xf32>
    %c0_43 = arith.constant 0 : index
    %c896 = arith.constant 896 : index
    %37 = vector.load %arg8[%c0_43, %c896] : memref<256x1152xf32, #tpu.memory_space<vmem>>, vector<256x128xf32>
    tpu.vector_store %arg8[%c0_43, %c896], %36 {strides = array<i32>} : memref<256x1152xf32, #tpu.memory_space<vmem>>, vector<256x128xf32>,
    %c2_44 = arith.constant 2 : index
    %c2_45 = arith.constant 2 : index
    %c0_46 = arith.constant 0 : index
    %38 = vector.load %arg7[%c2_44, %c2_45, %c0_46] : memref<18x18x128xf32, #tpu.memory_space<vmem>>, vector<16x16x128xf32>
    %39 = vector.shape_cast %38 : vector<16x16x128xf32> to vector<256x128xf32>
    %c0_47 = arith.constant 0 : index
    %c1024 = arith.constant 1024 : index
    %40 = vector.load %arg8[%c0_47, %c1024] : memref<256x1152xf32, #tpu.memory_space<vmem>>, vector<256x128xf32>
    tpu.vector_store %arg8[%c0_47, %c1024], %39 {strides = array<i32>} : memref<256x1152xf32, #tpu.memory_space<vmem>>, vector<256x128xf32>,
    %c0_48 = arith.constant 0 : index
    %c0_49 = arith.constant 0 : index
    %41 = vector.load %arg8[%c0_48, %c0_49] : memref<256x1152xf32, #tpu.memory_space<vmem>>, vector<256x1152xf32>
    %c0_50 = arith.constant 0 : index
    %c0_51 = arith.constant 0 : index
    %42 = vector.load %arg2[%c0_50, %c0_51] : memref<1152x128xf32, #tpu.memory_space<vmem>>, vector<1152x128xf32>
    %cst_52 = arith.constant dense<0.000000e+00> : vector<256x128xf32>
    %43 = tpu.matmul %41, %42, %cst_52 {dimension_numbers = #tpu.dot_dimension_numbers<[1], [0], [0], [1], [0, 0, 1, 1], [], []>} : vector<256x1152xf32>, vector<1152x128xf32>, vector<256x128xf32> -> vector<256x128xf32>
    %c0_53 = arith.constant 0 : index
    %c0_54 = arith.constant 0 : index
    %44 = vector.load %arg6[%c0_53, %c0_54] : memref<2x128xf32, #tpu.memory_space<vmem>>, vector<1x128xf32>
    %cst_55 = arith.constant dense<0.000000e+00> : vector<128xf32>
    %45 = vector.multi_reduction <add>, %43, %cst_55 [0] : vector<256x128xf32> to vector<128xf32>
    %46 = vector.shape_cast %45 : vector<128xf32> to vector<1x128xf32>
    %47 = arith.addf %44, %46 : vector<1x128xf32>
    %c0_56 = arith.constant 0 : index
    %c0_57 = arith.constant 0 : index
    %48 = vector.load %arg6[%c0_56, %c0_57] : memref<2x128xf32, #tpu.memory_space<vmem>>, vector<1x128xf32>
    tpu.vector_store %arg6[%c0_56, %c0_57], %47 {strides = array<i32>} : memref<2x128xf32, #tpu.memory_space<vmem>>, vector<1x128xf32>,
    %c1_58 = arith.constant 1 : index
    %c0_59 = arith.constant 0 : index
    %49 = vector.load %arg6[%c1_58, %c0_59] : memref<2x128xf32, #tpu.memory_space<vmem>>, vector<1x128xf32>
    %50 = arith.mulf %43, %43 : vector<256x128xf32>
    %cst_60 = arith.constant dense<0.000000e+00> : vector<128xf32>
    %51 = vector.multi_reduction <add>, %50, %cst_60 [0] : vector<256x128xf32> to vector<128xf32>
    %52 = vector.shape_cast %51 : vector<128xf32> to vector<1x128xf32>
    %53 = arith.addf %49, %52 : vector<1x128xf32>
    %c1_61 = arith.constant 1 : index
    %c0_62 = arith.constant 0 : index
    %54 = vector.load %arg6[%c1_61, %c0_62] : memref<2x128xf32, #tpu.memory_space<vmem>>, vector<1x128xf32>
    tpu.vector_store %arg6[%c1_61, %c0_62], %53 {strides = array<i32>} : memref<2x128xf32, #tpu.memory_space<vmem>>, vector<1x128xf32>,
    %c0_63 = arith.constant 0 : index
    %c0_64 = arith.constant 0 : index
    %c0_65 = arith.constant 0 : index
    %55 = vector.load %arg5[%c0_63, %c0_64, %c0_65] : memref<1x256x128xf32, #tpu.memory_space<vmem>>, vector<1x256x128xf32>
    %56 = vector.shape_cast %55 : vector<1x256x128xf32> to vector<256x128xf32>
    %57 = vector.shape_cast %43 : vector<256x128xf32> to vector<1x256x128xf32>
    tpu.vector_store %arg5[%c0_63, %c0_64, %c0_65], %57 {strides = array<i32>} : memref<1x256x128xf32, #tpu.memory_space<vmem>>, vector<1x256x128xf32>,
    return
  }
  func.func @transform_0(%arg0: i32) -> (i32, i32, i32, i32) {
    %c0_i32 = arith.constant 0 : i32
    %c0_i32_0 = arith.constant 0 : i32
    %c0_i32_1 = arith.constant 0 : i32
    %c0_i32_2 = arith.constant 0 : i32
    return %arg0, %c0_i32, %c0_i32_0, %c0_i32_1 : i32, i32, i32, i32
  }
  func.func @transform_1(%arg0: i32) -> (i32, i32) {
    %c0_i32 = arith.constant 0 : i32
    %c0_i32_0 = arith.constant 0 : i32
    %c0_i32_1 = arith.constant 0 : i32
    return %c0_i32, %c0_i32_0 : i32, i32
  }
  func.func @transform_2(%arg0: i32) -> (i32, i32, i32) {
    %c0_i32 = arith.constant 0 : i32
    %c0_i32_0 = arith.constant 0 : i32
    %c0_i32_1 = arith.constant 0 : i32
    %c0_i32_2 = arith.constant 0 : i32
    return %c0_i32, %c0_i32_0, %c0_i32_1 : i32, i32, i32
  }
  func.func @transform_3(%arg0: i32) -> (i32, i32, i32) {
    %c0_i32 = arith.constant 0 : i32
    %c0_i32_0 = arith.constant 0 : i32
    %c0_i32_1 = arith.constant 0 : i32
    %c0_i32_2 = arith.constant 0 : i32
    return %c0_i32, %c0_i32_0, %c0_i32_1 : i32, i32, i32
  }
  func.func @transform_4(%arg0: i32) -> (i32, i32, i32) {
    %c0_i32 = arith.constant 0 : i32
    %c0_i32_0 = arith.constant 0 : i32
    %c0_i32_1 = arith.constant 0 : i32
    return %arg0, %c0_i32, %c0_i32_0 : i32, i32, i32
  }
  func.func @transform_5(%arg0: i32) -> (i32, i32) {
    %c0_i32 = arith.constant 0 : i32
    %c0_i32_0 = arith.constant 0 : i32
    %c0_i32_1 = arith.constant 0 : i32
    return %c0_i32, %c0_i32_0 : i32, i32
  }
}

module attributes {stable_mosaic.version = 11 : i64} {
  func.func @_bn_relu_kernel(%arg0: i32, %arg1: memref<1x256x128xf32, #tpu.memory_space<vmem>>, %arg2: memref<1x1x128xf32, #tpu.memory_space<vmem>>, %arg3: memref<1x1x128xf32, #tpu.memory_space<vmem>>, %arg4: memref<1x256x128xf32, #tpu.memory_space<vmem>>) attributes {dimension_semantics = [#tpu.dimension_semantics<parallel>], iteration_bounds = array<i64: 2>, scalar_prefetch = 0 : i64, scratch_operands = 0 : i64, tpu.core_type = #tpu.core_type<tc>, window_params = [{transform_indices = @transform_0, window_bounds = array<i64: 1, 256, 128>}, {pipeline_mode = #tpu.pipeline_mode<synchronous>, transform_indices = @transform_1, window_bounds = array<i64: 1, 1, 128>}, {pipeline_mode = #tpu.pipeline_mode<synchronous>, transform_indices = @transform_2, window_bounds = array<i64: 1, 1, 128>}, {transform_indices = @transform_3, window_bounds = array<i64: 1, 256, 128>}]} {
    %c0 = arith.constant 0 : index
    %c0_0 = arith.constant 0 : index
    %c0_1 = arith.constant 0 : index
    %0 = vector.load %arg1[%c0, %c0_0, %c0_1] : memref<1x256x128xf32, #tpu.memory_space<vmem>>, vector<1x256x128xf32>
    %c0_2 = arith.constant 0 : index
    %c0_3 = arith.constant 0 : index
    %c0_4 = arith.constant 0 : index
    %1 = vector.load %arg2[%c0_2, %c0_3, %c0_4] : memref<1x1x128xf32, #tpu.memory_space<vmem>>, vector<1x1x128xf32>
    %2 = vector.broadcast %1 : vector<1x1x128xf32> to vector<1x256x128xf32>
    %3 = arith.mulf %0, %2 : vector<1x256x128xf32>
    %c0_5 = arith.constant 0 : index
    %c0_6 = arith.constant 0 : index
    %c0_7 = arith.constant 0 : index
    %4 = vector.load %arg3[%c0_5, %c0_6, %c0_7] : memref<1x1x128xf32, #tpu.memory_space<vmem>>, vector<1x1x128xf32>
    %5 = vector.broadcast %4 : vector<1x1x128xf32> to vector<1x256x128xf32>
    %6 = arith.addf %3, %5 : vector<1x256x128xf32>
    %cst = arith.constant 0.000000e+00 : f32
    %7 = vector.broadcast %cst : f32 to vector<1x256x128xf32>
    %8 = arith.maximumf %6, %7 : vector<1x256x128xf32>
    %c0_8 = arith.constant 0 : index
    %c0_9 = arith.constant 0 : index
    %c0_10 = arith.constant 0 : index
    %9 = vector.load %arg4[%c0_8, %c0_9, %c0_10] : memref<1x256x128xf32, #tpu.memory_space<vmem>>, vector<1x256x128xf32>
    tpu.vector_store %arg4[%c0_8, %c0_9, %c0_10], %8 {strides = array<i32>} : memref<1x256x128xf32, #tpu.memory_space<vmem>>, vector<1x256x128xf32>,
    return
  }
  func.func @transform_0(%arg0: i32) -> (i32, i32, i32) {
    %c0_i32 = arith.constant 0 : i32
    %c0_i32_0 = arith.constant 0 : i32
    %c0_i32_1 = arith.constant 0 : i32
    return %arg0, %c0_i32, %c0_i32_0 : i32, i32, i32
  }
  func.func @transform_1(%arg0: i32) -> (i32, i32, i32) {
    %c0_i32 = arith.constant 0 : i32
    %c0_i32_0 = arith.constant 0 : i32
    %c0_i32_1 = arith.constant 0 : i32
    %c0_i32_2 = arith.constant 0 : i32
    return %c0_i32, %c0_i32_0, %c0_i32_1 : i32, i32, i32
  }
  func.func @transform_2(%arg0: i32) -> (i32, i32, i32) {
    %c0_i32 = arith.constant 0 : i32
    %c0_i32_0 = arith.constant 0 : i32
    %c0_i32_1 = arith.constant 0 : i32
    %c0_i32_2 = arith.constant 0 : i32
    return %c0_i32, %c0_i32_0, %c0_i32_1 : i32, i32, i32
  }
  func.func @transform_3(%arg0: i32) -> (i32, i32, i32) {
    %c0_i32 = arith.constant 0 : i32
    %c0_i32_0 = arith.constant 0 : i32
    %c0_i32_1 = arith.constant 0 : i32
    return %arg0, %c0_i32, %c0_i32_0 : i32, i32, i32
  }
}

</mosaic_0001>

<bundles_post_ra>
// kernel: double_conv.5
= control target key start
LH: loop header
LB: loop body
LE: loop exit
PB: predicated region body
PF: predicated region fallthrough
CT: control target
= control target key end

     0   :  { %s451_s12 = smov 0   ;;  %s610_s0 = inlined_call_operand.vmem [shape: f32[2,256,128], index: 0, kind: input, shape index: {}]   ;;  %s611_s1 = inlined_call_operand.vmem [shape: f32[1,1,128], index: 1, kind: input, shape index: {}]   ;;  %s612_s2 = inlined_call_operand.vmem [shape: f32[1,1,128], index: 2, kind: input, shape index: {}]   ;;  %s613_s3 = inlined_call_operand.vmem [shape: f32[2,256,128], index: 3, kind: output, shape index: {}]  }
   0x1 LB: > { %s400_s13 = sadd.s32 4294967295, %s429_s12   ;;  %p404_p0 = scmp.ge.s32.totalorder %s429_s12, 1  ;;  %s429_s12 = sphi %s451_s12, %s13_s12  }
   0x2   : > { %p137_p1 = scmp.lt.s32.totalorder %s429_s12, 3 }
   0x4   : > { %p138_p2 = pnand %p404_p0, %p137_p1 }
   0x5   : > { %p161_p3 = scmp.lt.s32.totalorder (!%p138_p2), %s400_s13, 1 }
   0x6   : > { %141 = sbr.rel (%p138_p2) target bundleno = 44 (0x2c), region = 32 }
   0xb   : > { %s615_s13 = smov (!%p161_p3, %s400_s13), 1  ;;  %v462_v0 = vld [vmem:[%s611_s1] ss:$0 sm:$0xff] }
   0xc   : > { %s413_s14 = sshll.u32 %s615_s13, 8  ;;  %v472_v1 = vld [vmem:[%s612_s2] ss:$0 sm:$0xff] }
   0xd   : > { %s467_s19 = scalar_lea.vmem %s610_s0, %s413_s14  ;;  %s495_s24 = scalar_lea.vmem %s613_s3, %s413_s14 }
   0xe   : > { %v171_v2 = vld [vmem:[%s467_s19] sm:$0xff]  ;;  %v172_v3 = vld [vmem:[%s467_s19 + $0x8] sm:$0xff]  ;;  %v173_v4 = vld [vmem:[%s467_s19 + $0x10] sm:$0xff] }
   0xf   : > { %v210_v5 = vmul.f32 %v462_v0, %v171_v2  ;;  %v211_v6 = vmul.f32 %v462_v0, %v172_v3  ;;  %v212_v7 = vmul.f32 %v462_v0, %v173_v4  ;;  %v174_v8 = vld [vmem:[%s467_s19 + $0x18] sm:$0xff]  ;;  %v175_v9 = vld [vmem:[%s467_s19 + $0x20] sm:$0xff]  ;;  %v176_v10 = vld [vmem:[%s467_s19 + $0x28] sm:$0xff] }
  0x10   : > { %v213_v11 = vmul.f32 %v462_v0, %v174_v8  ;;  %v214_v12 = vmul.f32 %v462_v0, %v175_v9  ;;  %v215_v13 = vmul.f32 %v462_v0, %v176_v10  ;;  %v177_v14 = vld [vmem:[%s467_s19 + $0x30] sm:$0xff]  ;;  %v178_v15 = vld [vmem:[%s467_s19 + $0x38] sm:$0xff]  ;;  %v179_v24 = vld [vmem:[%s467_s19 + $0x40] sm:$0xff] }
  0x11   : > { %v249_v16 = vadd.f32 %v472_v1, %v210_v5  ;;  %v250_v17 = vadd.f32 %v472_v1, %v211_v6  ;;  %v251_v18 = vadd.f32 %v472_v1, %v212_v7  ;;  %v216_v19 = vmul.f32 %v462_v0, %v177_v14  ;;  %v180_v25 = vld [vmem:[%s467_s19 + $0x48] sm:$0xff]  ;;  %v181_v26 = vld [vmem:[%s467_s19 + $0x50] sm:$0xff]  ;;  %v182_v31 = vld [vmem:[%s467_s19 + $0x58] sm:$0xff] }
  0x12   : > { %v252_v20 = vadd.f32 %v472_v1, %v213_v11  ;;  %v253_v21 = vadd.f32 %v472_v1, %v214_v12  ;;  %v254_v22 = vadd.f32 %v472_v1, %v215_v13  ;;  %v217_v23 = vmul.f32 %v462_v0, %v178_v15  ;;  %v183_v32 = vld [vmem:[%s467_s19 + $0x60] sm:$0xff]  ;;  %v184_v33 = vld [vmem:[%s467_s19 + $0x68] sm:$0xff]  ;;  %v185_v38 = vld [vmem:[%s467_s19 + $0x70] sm:$0xff] }
  0x13   : > { %v281_v27 = vmax.f32 %v249_v16, 0.0  ;;  %v282_v28 = vmax.f32 %v250_v17, 0.0  ;;  %v283_v29 = vmax.f32 %v251_v18, 0.0  ;;  %v255_v30 = vadd.f32 %v472_v1, %v216_v19  ;;  %v186_v43 = vld [vmem:[%s467_s19 + $0x78] sm:$0xff]  ;;  %v187_v56 = vld [vmem:[%s467_s19 + $0x80] sm:$0xff]  ;;  %v188_v57 = vld [vmem:[%s467_s19 + $0x88] sm:$0xff] }
  0x14   : > { %v284_v34 = vmax.f32 %v252_v20, 0.0  ;;  %v285_v35 = vmax.f32 %v253_v21, 0.0  ;;  %v286_v36 = vmax.f32 %v254_v22, 0.0  ;;  %v256_v37 = vadd.f32 %v472_v1, %v217_v23  ;;  %v189_v58 = vld [vmem:[%s467_s19 + $0x90] sm:$0xff]  ;;  %v190_v63 = vld [vmem:[%s467_s19 + $0x98] sm:$0xff]  ;;  %v191_v2 = vld [vmem:[%s467_s19 + $0xa0] sm:$0xff] }
  0x15   : > { %313 = vst [vmem:[%s495_s24] sm:$0xff] %v281_v27  ;;  %314 = vst [vmem:[%s495_s24 + $0x8] sm:$0xff] %v282_v28  ;;  %v287_v39 = vmax.f32 %v255_v30, 0.0  ;;  %v218_v40 = vmul.f32 %v462_v0, %v179_v24  ;;  %v219_v41 = vmul.f32 %v462_v0, %v180_v25  ;;  %v220_v42 = vmul.f32 %v462_v0, %v181_v26  ;;  %v192_v3 = vld [vmem:[%s467_s19 + $0xa8] sm:$0xff]  ;;  %v193_v8 = vld [vmem:[%s467_s19 + $0xb0] sm:$0xff] }
  0x16   : > { %315 = vst [vmem:[%s495_s24 + $0x10] sm:$0xff] %v283_v29  ;;  %316 = vst [vmem:[%s495_s24 + $0x18] sm:$0xff] %v284_v34  ;;  %v288_v44 = vmax.f32 %v256_v37, 0.0  ;;  %v221_v45 = vmul.f32 %v462_v0, %v182_v31  ;;  %v222_v46 = vmul.f32 %v462_v0, %v183_v32  ;;  %v223_v47 = vmul.f32 %v462_v0, %v184_v33  ;;  %v194_v13 = vld [vmem:[%s467_s19 + $0xb8] sm:$0xff]  ;;  %v195_v26 = vld [vmem:[%s467_s19 + $0xc0] sm:$0xff] }
  0x17   : > { %317 = vst [vmem:[%s495_s24 + $0x20] sm:$0xff] %v285_v35  ;;  %318 = vst [vmem:[%s495_s24 + $0x28] sm:$0xff] %v286_v36  ;;  %v257_v48 = vadd.f32 %v472_v1, %v218_v40  ;;  %v258_v49 = vadd.f32 %v472_v1, %v219_v41  ;;  %v259_v50 = vadd.f32 %v472_v1, %v220_v42  ;;  %v196_v27 = vld [vmem:[%s467_s19 + $0xc8] sm:$0xff]  ;;  %v197_v28 = vld [vmem:[%s467_s19 + $0xd0] sm:$0xff] }
  0x18   : > { %319 = vst [vmem:[%s495_s24 + $0x30] sm:$0xff] %v287_v39  ;;  %v224_v51 = vmul.f32 %v462_v0, %v185_v38  ;;  %320 = vst [vmem:[%s495_s24 + $0x38] sm:$0xff] %v288_v44  ;;  %v260_v52 = vadd.f32 %v472_v1, %v221_v45  ;;  %v261_v53 = vadd.f32 %v472_v1, %v222_v46  ;;  %v198_v33 = vld [vmem:[%s467_s19 + $0xd8] sm:$0xff]  ;;  %v199_v34 = vld [vmem:[%s467_s19 + $0xe0] sm:$0xff] }
  0x19   : > { %v262_v54 = vadd.f32 %v472_v1, %v223_v47  ;;  %v225_v55 = vmul.f32 %v462_v0, %v186_v43  ;;  %v289_v59 = vmax.f32 %v257_v48, 0.0  ;;  %v290_v60 = vmax.f32 %v258_v49, 0.0  ;;  %v200_v35 = vld [vmem:[%s467_s19 + $0xe8] sm:$0xff]  ;;  %v201_v40 = vld [vmem:[%s467_s19 + $0xf0] sm:$0xff]  ;;  %v202_v45 = vld [vmem:[%s467_s19 + $0xf8] sm:$0xff] }
  0x1a   : > { %v291_v61 = vmax.f32 %v259_v50, 0.0  ;;  %v263_v62 = vadd.f32 %v472_v1, %v224_v51  ;;  %v292_v4 = vmax.f32 %v260_v52, 0.0  ;;  %v293_v5 = vmax.f32 %v261_v53, 0.0 }
  0x1b   : > { %v294_v6 = vmax.f32 %v262_v54, 0.0  ;;  %v264_v7 = vadd.f32 %v472_v1, %v225_v55  ;;  %321 = vst [vmem:[%s495_s24 + $0x40] sm:$0xff] %v289_v59  ;;  %322 = vst [vmem:[%s495_s24 + $0x48] sm:$0xff] %v290_v60  ;;  %v226_v10 = vmul.f32 %v462_v0, %v187_v56  ;;  %v227_v11 = vmul.f32 %v462_v0, %v188_v57 }
  0x1c   : > { %323 = vst [vmem:[%s495_s24 + $0x50] sm:$0xff] %v291_v61  ;;  %v295_v9 = vmax.f32 %v263_v62, 0.0  ;;  %v228_v12 = vmul.f32 %v462_v0, %v189_v58  ;;  %324 = vst [vmem:[%s495_s24 + $0x58] sm:$0xff] %v292_v4  ;;  %v229_v15 = vmul.f32 %v462_v0, %v190_v63  ;;  %v230_v16 = vmul.f32 %v462_v0, %v191_v2 }
  0x1d   : > { %325 = vst [vmem:[%s495_s24 + $0x60] sm:$0xff] %v293_v5  ;;  %326 = vst [vmem:[%s495_s24 + $0x68] sm:$0xff] %v294_v6  ;;  %v296_v14 = vmax.f32 %v264_v7, 0.0  ;;  %v231_v17 = vmul.f32 %v462_v0, %v192_v3  ;;  %v265_v18 = vadd.f32 %v472_v1, %v226_v10  ;;  %v266_v19 = vadd.f32 %v472_v1, %v227_v11 }
  0x1e   : > { %327 = vst [vmem:[%s495_s24 + $0x70] sm:$0xff] %v295_v9  ;;  %v267_v20 = vadd.f32 %v472_v1, %v228_v12  ;;  %v232_v21 = vmul.f32 %v462_v0, %v193_v8  ;;  %v268_v22 = vadd.f32 %v472_v1, %v229_v15  ;;  %v269_v23 = vadd.f32 %v472_v1, %v230_v16 }
  0x1f   : > { %328 = vst [vmem:[%s495_s24 + $0x78] sm:$0xff] %v296_v14  ;;  %v270_v24 = vadd.f32 %v472_v1, %v231_v17  ;;  %v233_v25 = vmul.f32 %v462_v0, %v194_v13  ;;  %v297_v29 = vmax.f32 %v265_v18, 0.0  ;;  %v298_v30 = vmax.f32 %v266_v19, 0.0 }
  0x20   : > { %v299_v31 = vmax.f32 %v267_v20, 0.0  ;;  %v271_v32 = vadd.f32 %v472_v1, %v232_v21  ;;  %v300_v36 = vmax.f32 %v268_v22, 0.0  ;;  %v301_v37 = vmax.f32 %v269_v23, 0.0 }
  0x21   : > { %v302_v38 = vmax.f32 %v270_v24, 0.0  ;;  %v272_v39 = vadd.f32 %v472_v1, %v233_v25  ;;  %329 = vst [vmem:[%s495_s24 + $0x80] sm:$0xff] %v297_v29  ;;  %330 = vst [vmem:[%s495_s24 + $0x88] sm:$0xff] %v298_v30  ;;  %v234_v42 = vmul.f32 %v462_v0, %v195_v26  ;;  %v235_v43 = vmul.f32 %v462_v0, %v196_v27 }
  0x22   : > { %331 = vst [vmem:[%s495_s24 + $0x90] sm:$0xff] %v299_v31  ;;  %v303_v41 = vmax.f32 %v271_v32, 0.0  ;;  %v236_v44 = vmul.f32 %v462_v0, %v197_v28  ;;  %332 = vst [vmem:[%s495_s24 + $0x98] sm:$0xff] %v300_v36  ;;  %v237_v47 = vmul.f32 %v462_v0, %v198_v33  ;;  %v238_v48 = vmul.f32 %v462_v0, %v199_v34 }
  0x23   : > { %333 = vst [vmem:[%s495_s24 + $0xa0] sm:$0xff] %v301_v37  ;;  %334 = vst [vmem:[%s495_s24 + $0xa8] sm:$0xff] %v302_v38  ;;  %v304_v46 = vmax.f32 %v272_v39, 0.0  ;;  %v239_v49 = vmul.f32 %v462_v0, %v200_v35  ;;  %v273_v50 = vadd.f32 %v472_v1, %v234_v42  ;;  %v274_v51 = vadd.f32 %v472_v1, %v235_v43 }
  0x24   : > { %335 = vst [vmem:[%s495_s24 + $0xb0] sm:$0xff] %v303_v41  ;;  %v275_v52 = vadd.f32 %v472_v1, %v236_v44  ;;  %v240_v53 = vmul.f32 %v462_v0, %v201_v40  ;;  %v276_v54 = vadd.f32 %v472_v1, %v237_v47  ;;  %v277_v55 = vadd.f32 %v472_v1, %v238_v48 }
  0x25   : > { %336 = vst [vmem:[%s495_s24 + $0xb8] sm:$0xff] %v304_v46  ;;  %v278_v56 = vadd.f32 %v472_v1, %v239_v49  ;;  %v241_v57 = vmul.f32 %v462_v0, %v202_v45  ;;  %v305_v58 = vmax.f32 %v273_v50, 0.0  ;;  %v306_v59 = vmax.f32 %v274_v51, 0.0 }
  0x26   : > { %v307_v60 = vmax.f32 %v275_v52, 0.0  ;;  %v279_v61 = vadd.f32 %v472_v1, %v240_v53  ;;  %v308_v62 = vmax.f32 %v276_v54, 0.0  ;;  %v309_v63 = vmax.f32 %v277_v55, 0.0 }
  0x27   : > { %v310_v2 = vmax.f32 %v278_v56, 0.0  ;;  %v280_v3 = vadd.f32 %v472_v1, %v241_v57  ;;  %337 = vst [vmem:[%s495_s24 + $0xc0] sm:$0xff] %v305_v58  ;;  %338 = vst [vmem:[%s495_s24 + $0xc8] sm:$0xff] %v306_v59 }
  0x28   : > { %339 = vst [vmem:[%s495_s24 + $0xd0] sm:$0xff] %v307_v60  ;;  %v311_v4 = vmax.f32 %v279_v61, 0.0  ;;  %340 = vst [vmem:[%s495_s24 + $0xd8] sm:$0xff] %v308_v62 }
  0x29   : > { %341 = vst [vmem:[%s495_s24 + $0xe0] sm:$0xff] %v309_v63  ;;  %342 = vst [vmem:[%s495_s24 + $0xe8] sm:$0xff] %v310_v2  ;;  %v312_v0 = vmax.f32 %v280_v3, 0.0 }
  0x2a   : > { %343 = vst [vmem:[%s495_s24 + $0xf0] sm:$0xff] %v311_v4 }
  0x2b   : > { %344 = vst [vmem:[%s495_s24 + $0xf8] sm:$0xff] %v312_v0 }
  0x2c PF: > { %s13_s12 = sadd.s32 1, %s429_s12  }
  0x2d   : > { %p10_p4 = scmp.ge.s32.totalorder %s13_s12, 4  }
  0x2f   :  { %12 = sbr.rel (!%p10_p4) target bundleno = 1 (0x1), region = 62 }

// kernel: double_conv.3
= control target key start
LH: loop header
LB: loop body
LE: loop exit
PB: predicated region body
PF: predicated region fallthrough
CT: control target
= control target key end

     0   :  { %s3201_s18 = smov 0   ;;  %s4902_s0 = inlined_call_operand.vmem [shape: f32[2,16,16,4], index: 0, kind: input, shape index: {}]   ;;  %s4903_s1 = inlined_call_operand.vmem [shape: f32[1152,128], index: 1, kind: input, shape index: {}]   ;;  %s4904_s2 = inlined_call_operand.vmem [shape: f32[1,1,4], index: 2, kind: input, shape index: {}, may-alias: {2,3}]   ;;  %s4905_s3 = inlined_call_operand.vmem [shape: f32[1,1,4], index: 3, kind: input, shape index: {}, may-alias: {2,3}]   ;;  %s4906_s4 = inlined_call_operand.vmem [shape: f32[2,256,128], index: 4, kind: output, shape index: {0}]   ;;  %s4907_s5 = inlined_call_operand.vmem [shape: f32[2,128], index: 5, kind: output, shape index: {1}]  }
   0x1 LB: > { %s2977_s2 = sadd.s32 4294967295, %s3167_s18   ;;  %p2981_p0 = scmp.ge.s32.totalorder %s3167_s18, 1  ;;  %s3167_s18 = sphi %s3201_s18, %s16_s18  }
   0x2   : > { %p185_p1 = scmp.lt.s32.totalorder %s3167_s18, 3 }
   0x4   : > { %p186_p2 = pnand %p2981_p0, %p185_p1 }
   0x6   : > { %189 = sbr.rel (%p186_p2) target bundleno = 795 (0x31b), region = 36 }
   0xb   : > { %p213_p3 = scmp.lt.s32.totalorder %s2977_s2, 1  ;;  %p2986_p4 = scmp.ne.s32.totalorder %s2977_s2, 0 }
   0xd   : > { %s214_s3 = scalar_select %p213_p3, %s2977_s2, 1 }
   0xe   : > { %226 = sbr.rel (%p2986_p4) target bundleno = 192 (0xc0), region = 40 }
   0xf   : > { %s2989_s19 = sshll.u32 %s214_s3, 8 }
  0x10   : > { %s3212_s22 = scalar_lea.vmem %s4902_s0, %s2989_s19  ;;  %s3217_s25 = scalar_lea.vmem %s4906_s4, %s2989_s19 }
  0x13   : > { %vm227_vm0 = vcmask 31744   ;;  %vm230_vm1 = vcmask 25600   ;;  %v3169_v0 = vmov 0.0  }
  0x14   : > { %228 = vst.msk [vmem:[#allocation2] sm:$0xff] %vm227_vm0, %v3169_v0  ;;  %229 = vst.msk [vmem:[#allocation2 + $0x8] sm:$0xff] %vm227_vm0, %v3169_v0 }
  0x15   : > { %232 = vst.msk [vmem:[#allocation2 + $0x18] sm:$0xff] %vm227_vm0, %v3169_v0  ;;  %233 = vst.msk [vmem:[#allocation2 + $0x20] sm:$0xff] %vm227_vm0, %v3169_v0 }
  0x16   : > { %235 = vst.msk [vmem:[#allocation2 + $0x30] sm:$0xff] %vm227_vm0, %v3169_v0  ;;  %236 = vst.msk [vmem:[#allocation2 + $0x38] sm:$0xff] %vm227_vm0, %v3169_v0 }
  0x17   : > { %238 = vst.msk [vmem:[#allocation2 + $0x48] sm:$0xff] %vm227_vm0, %v3169_v0  ;;  %239 = vst.msk [vmem:[#allocation2 + $0x50] sm:$0xff] %vm227_vm0, %v3169_v0 }
  0x18   : > { %241 = vst.msk [vmem:[#allocation2 + $0x60] sm:$0xff] %vm227_vm0, %v3169_v0  ;;  %242 = vst.msk [vmem:[#allocation2 + $0x68] sm:$0xff] %vm227_vm0, %v3169_v0 }
  0x19   : > { %244 = vst.msk [vmem:[#allocation2 + $0x78] sm:$0xff] %vm227_vm0, %v3169_v0  ;;  %245 = vst.msk [vmem:[#allocation2 + $0x80] sm:$0xff] %vm227_vm0, %v3169_v0 }
  0x1a   : > { %247 = vst.msk [vmem:[#allocation2 + $0x90] sm:$0xff] %vm227_vm0, %v3169_v0  ;;  %248 = vst.msk [vmem:[#allocation2 + $0x98] sm:$0xff] %vm227_vm0, %v3169_v0 }
  0x1b   : > { %250 = vst.msk [vmem:[#allocation2 + $0xa8] sm:$0xff] %vm227_vm0, %v3169_v0  ;;  %251 = vst.msk [vmem:[#allocation2 + $0xb0] sm:$0xff] %vm227_vm0, %v3169_v0 }
  0x1c   : > { %253 = vst.msk [vmem:[#allocation2 + $0xc0] sm:$0xff] %vm227_vm0, %v3169_v0  ;;  %254 = vst.msk [vmem:[#allocation2 + $0xc8] sm:$0xff] %vm227_vm0, %v3169_v0 }
  0x1d   : > { %256 = vst.msk [vmem:[#allocation2 + $0xd8] sm:$0xff] %vm227_vm0, %v3169_v0  ;;  %257 = vst.msk [vmem:[#allocation2 + $0xe0] sm:$0xff] %vm227_vm0, %v3169_v0 }
  0x1e   : > { %259 = vst.msk [vmem:[#allocation2 + $0xf0] sm:$0xff] %vm227_vm0, %v3169_v0  ;;  %260 = vst.msk [vmem:[#allocation2 + $0xf8] sm:$0xff] %vm227_vm0, %v3169_v0 }
  0x1f   : > { %262 = vst.msk [vmem:[#allocation2 + $0x108] sm:$0xff] %vm227_vm0, %v3169_v0  ;;  %263 = vst.msk [vmem:[#allocation2 + $0x110] sm:$0xff] %vm227_vm0, %v3169_v0 }
  0x20   : > { %265 = vst.msk [vmem:[#allocation2 + $0x120] sm:$0xff] %vm227_vm0, %v3169_v0  ;;  %266 = vst.msk [vmem:[#allocation2 + $0x128] sm:$0xff] %vm227_vm0, %v3169_v0 }
  0x21   : > { %268 = vst.msk [vmem:[#allocation2 + $0x138] sm:$0xff] %vm227_vm0, %v3169_v0  ;;  %269 = vst.msk [vmem:[#allocation2 + $0x140] sm:$0xff] %vm227_vm0, %v3169_v0 }
  0x22   : > { %271 = vst.msk [vmem:[#allocation2 + $0x150] sm:$0xff] %vm227_vm0, %v3169_v0  ;;  %272 = vst.msk [vmem:[#allocation2 + $0x158] sm:$0xff] %vm227_vm0, %v3169_v0 }
  0x23   : > { %274 = vst.msk [vmem:[#allocation2 + $0x168] sm:$0xff] %vm227_vm0, %v3169_v0  ;;  %275 = vst.msk [vmem:[#allocation2 + $0x170] sm:$0xff] %vm227_vm0, %v3169_v0 }
  0x24   : > { %277 = vst.msk [vmem:[#allocation2 + $0x180] sm:$0xff] %vm227_vm0, %v3169_v0  ;;  %278 = vst.msk [vmem:[#allocation2 + $0x188] sm:$0xff] %vm227_vm0, %v3169_v0 }
  0x25   : > { %280 = vst.msk [vmem:[#allocation2 + $0x198] sm:$0xff] %vm227_vm0, %v3169_v0  ;;  %281 = vst.msk [vmem:[#allocation2 + $0x1a0] sm:$0xff] %vm227_vm0, %v3169_v0 }
  0x26   : > { %283 = vst [vmem:[#allocation3] sm:$0xff] %v3169_v0  ;;  %284 = vst [vmem:[#allocation3 + $0x8] sm:$0xff] %v3169_v0 }
  0x27   : > { %285 = vst [vmem:[#allocation3 + $0x10] sm:$0xff] %v3169_v0  ;;  %286 = vst [vmem:[#allocation3 + $0x18] sm:$0xff] %v3169_v0 }
  0x28   : > { %287 = vst [vmem:[#allocation3 + $0x20] sm:$0xff] %v3169_v0  ;;  %288 = vst [vmem:[#allocation3 + $0x28] sm:$0xff] %v3169_v0 }
  0x29   : > { %289 = vst [vmem:[#allocation3 + $0x30] sm:$0xff] %v3169_v0  ;;  %290 = vst [vmem:[#allocation3 + $0x38] sm:$0xff] %v3169_v0 }
  0x2a   : > { %291 = vst [vmem:[#allocation3 + $0x40] sm:$0xff] %v3169_v0  ;;  %292 = vst [vmem:[#allocation3 + $0x48] sm:$0xff] %v3169_v0 }
  0x2b   : > { %293 = vst [vmem:[#allocation3 + $0x50] sm:$0xff] %v3169_v0  ;;  %294 = vst [vmem:[#allocation3 + $0x58] sm:$0xff] %v3169_v0 }
  0x2c   : > { %295 = vst [vmem:[#allocation3 + $0x60] sm:$0xff] %v3169_v0  ;;  %296 = vst [vmem:[#allocation3 + $0x68] sm:$0xff] %v3169_v0 }
  0x2d   : > { %297 = vst [vmem:[#allocation3 + $0x70] sm:$0xff] %v3169_v0  ;;  %298 = vst [vmem:[#allocation3 + $0x78] sm:$0xff] %v3169_v0 }
  0x2e   : > { %299 = vst [vmem:[#allocation3 + $0x80] sm:$0xff] %v3169_v0  ;;  %300 = vst [vmem:[#allocation3 + $0x88] sm:$0xff] %v3169_v0 }
  0x2f   : > { %301 = vst [vmem:[#allocation3 + $0x90] sm:$0xff] %v3169_v0  ;;  %302 = vst [vmem:[#allocation3 + $0x98] sm:$0xff] %v3169_v0 }
  0x30   : > { %303 = vst [vmem:[#allocation3 + $0xa0] sm:$0xff] %v3169_v0  ;;  %304 = vst [vmem:[#allocation3 + $0xa8] sm:$0xff] %v3169_v0 }
  0x31   : > { %305 = vst [vmem:[#allocation3 + $0xb0] sm:$0xff] %v3169_v0  ;;  %306 = vst [vmem:[#allocation3 + $0xb8] sm:$0xff] %v3169_v0 }
  0x32   : > { %307 = vst [vmem:[#allocation3 + $0xc0] sm:$0xff] %v3169_v0  ;;  %308 = vst [vmem:[#allocation3 + $0xc8] sm:$0xff] %v3169_v0 }
  0x33   : > { %309 = vst [vmem:[#allocation3 + $0xd0] sm:$0xff] %v3169_v0  ;;  %310 = vst [vmem:[#allocation3 + $0xd8] sm:$0xff] %v3169_v0 }
  0x34   : > { %311 = vst [vmem:[#allocation3 + $0xe0] sm:$0xff] %v3169_v0  ;;  %312 = vst [vmem:[#allocation3 + $0xe8] sm:$0xff] %v3169_v0 }
  0x35   : > { %313 = vst [vmem:[#allocation3 + $0xf0] sm:$0xff] %v3169_v0  ;;  %314 = vst [vmem:[#allocation3 + $0xf8] sm:$0xff] %v3169_v0 }
  0x36   : > { %315 = vst [vmem:[#allocation3 + $0x100] sm:$0xff] %v3169_v0  ;;  %316 = vst [vmem:[#allocation3 + $0x108] sm:$0xff] %v3169_v0 }
  0x37   : > { %317 = vst [vmem:[#allocation3 + $0x110] sm:$0xff] %v3169_v0  ;;  %318 = vst [vmem:[#allocation3 + $0x118] sm:$0xff] %v3169_v0 }
  0x38   : > { %319 = vst [vmem:[#allocation3 + $0x120] sm:$0xff] %v3169_v0  ;;  %320 = vst [vmem:[#allocation3 + $0x128] sm:$0xff] %v3169_v0 }
  0x39   : > { %321 = vst [vmem:[#allocation3 + $0x130] sm:$0xff] %v3169_v0  ;;  %322 = vst [vmem:[#allocation3 + $0x138] sm:$0xff] %v3169_v0 }
  0x3a   : > { %323 = vst [vmem:[#allocation3 + $0x140] sm:$0xff] %v3169_v0  ;;  %324 = vst [vmem:[#allocation3 + $0x148] sm:$0xff] %v3169_v0 }
  0x3b   : > { %325 = vst [vmem:[#allocation3 + $0x150] sm:$0xff] %v3169_v0  ;;  %326 = vst [vmem:[#allocation3 + $0x158] sm:$0xff] %v3169_v0 }
  0x3c   : > { %327 = vst [vmem:[#allocation3 + $0x160] sm:$0xff] %v3169_v0  ;;  %328 = vst [vmem:[#allocation3 + $0x168] sm:$0xff] %v3169_v0 }
  0x3d   : > { %329 = vst [vmem:[#allocation3 + $0x170] sm:$0xff] %v3169_v0  ;;  %330 = vst [vmem:[#allocation3 + $0x178] sm:$0xff] %v3169_v0 }
  0x3e   : > { %331 = vst [vmem:[#allocation3 + $0x180] sm:$0xff] %v3169_v0  ;;  %332 = vst [vmem:[#allocation3 + $0x188] sm:$0xff] %v3169_v0 }
  0x3f   : > { %333 = vst [vmem:[#allocation3 + $0x190] sm:$0xff] %v3169_v0  ;;  %334 = vst [vmem:[#allocation3 + $0x198] sm:$0xff] %v3169_v0 }
  0x40   : > { %335 = vst [vmem:[#allocation3 + $0x1a0] sm:$0xff] %v3169_v0  ;;  %336 = vst [vmem:[#allocation3 + $0x1a8] sm:$0xff] %v3169_v0 }
  0x41   : > { %337 = vst [vmem:[#allocation3 + $0x1b0] sm:$0xff] %v3169_v0  ;;  %338 = vst [vmem:[#allocation3 + $0x1b8] sm:$0xff] %v3169_v0 }
  0x42   : > { %339 = vst [vmem:[#allocation3 + $0x1c0] sm:$0xff] %v3169_v0  ;;  %340 = vst [vmem:[#allocation3 + $0x1c8] sm:$0xff] %v3169_v0 }
  0x43   : > { %341 = vst [vmem:[#allocation3 + $0x1d0] sm:$0xff] %v3169_v0  ;;  %342 = vst [vmem:[#allocation3 + $0x1d8] sm:$0xff] %v3169_v0 }
  0x44   : > { %343 = vst [vmem:[#allocation3 + $0x1e0] sm:$0xff] %v3169_v0  ;;  %344 = vst [vmem:[#allocation3 + $0x1e8] sm:$0xff] %v3169_v0 }
  0x45   : > { %345 = vst [vmem:[#allocation3 + $0x1f0] sm:$0xff] %v3169_v0  ;;  %346 = vst [vmem:[#allocation3 + $0x1f8] sm:$0xff] %v3169_v0 }
  0x46   : > { %347 = vst [vmem:[#allocation3 + $0x200] sm:$0xff] %v3169_v0  ;;  %348 = vst [vmem:[#allocation3 + $0x208] sm:$0xff] %v3169_v0 }
  0x47   : > { %349 = vst [vmem:[#allocation3 + $0x210] sm:$0xff] %v3169_v0  ;;  %350 = vst [vmem:[#allocation3 + $0x218] sm:$0xff] %v3169_v0 }
  0x48   : > { %351 = vst [vmem:[#allocation3 + $0x220] sm:$0xff] %v3169_v0  ;;  %352 = vst [vmem:[#allocation3 + $0x228] sm:$0xff] %v3169_v0 }
  0x49   : > { %353 = vst [vmem:[#allocation3 + $0x230] sm:$0xff] %v3169_v0  ;;  %354 = vst [vmem:[#allocation3 + $0x238] sm:$0xff] %v3169_v0 }
  0x4a   : > { %355 = vst [vmem:[#allocation3 + $0x240] sm:$0xff] %v3169_v0  ;;  %356 = vst [vmem:[#allocation3 + $0x248] sm:$0xff] %v3169_v0 }
  0x4b   : > { %357 = vst [vmem:[#allocation3 + $0x250] sm:$0xff] %v3169_v0  ;;  %358 = vst [vmem:[#allocation3 + $0x258] sm:$0xff] %v3169_v0 }
  0x4c   : > { %359 = vst [vmem:[#allocation3 + $0x260] sm:$0xff] %v3169_v0  ;;  %360 = vst [vmem:[#allocation3 + $0x268] sm:$0xff] %v3169_v0 }
  0x4d   : > { %361 = vst [vmem:[#allocation3 + $0x270] sm:$0xff] %v3169_v0  ;;  %362 = vst [vmem:[#allocation3 + $0x278] sm:$0xff] %v3169_v0 }
  0x4e   : > { %363 = vst [vmem:[#allocation3 + $0x280] sm:$0xff] %v3169_v0  ;;  %364 = vst [vmem:[#allocation3 + $0x288] sm:$0xff] %v3169_v0 }
  0x4f   : > { %365 = vst [vmem:[#allocation3 + $0x290] sm:$0xff] %v3169_v0  ;;  %366 = vst [vmem:[#allocation3 + $0x298] sm:$0xff] %v3169_v0 }
  0x50   : > { %367 = vst [vmem:[#allocation3 + $0x2a0] sm:$0xff] %v3169_v0  ;;  %368 = vst [vmem:[#allocation3 + $0x2a8] sm:$0xff] %v3169_v0 }
  0x51   : > { %369 = vst [vmem:[#allocation3 + $0x2b0] sm:$0xff] %v3169_v0  ;;  %370 = vst [vmem:[#allocation3 + $0x2b8] sm:$0xff] %v3169_v0 }
  0x52   : > { %371 = vst [vmem:[#allocation3 + $0x2c0] sm:$0xff] %v3169_v0  ;;  %372 = vst [vmem:[#allocation3 + $0x2c8] sm:$0xff] %v3169_v0 }
  0x53   : > { %373 = vst [vmem:[#allocation3 + $0x2d0] sm:$0xff] %v3169_v0  ;;  %374 = vst [vmem:[#allocation3 + $0x2d8] sm:$0xff] %v3169_v0 }
  0x54   : > { %375 = vst [vmem:[#allocation3 + $0x2e0] sm:$0xff] %v3169_v0  ;;  %376 = vst [vmem:[#allocation3 + $0x2e8] sm:$0xff] %v3169_v0 }
  0x55   : > { %377 = vst [vmem:[#allocation3 + $0x2f0] sm:$0xff] %v3169_v0  ;;  %378 = vst [vmem:[#allocation3 + $0x2f8] sm:$0xff] %v3169_v0 }
  0x56   : > { %379 = vst [vmem:[#allocation3 + $0x300] sm:$0xff] %v3169_v0  ;;  %380 = vst [vmem:[#allocation3 + $0x308] sm:$0xff] %v3169_v0 }
  0x57   : > { %381 = vst [vmem:[#allocation3 + $0x310] sm:$0xff] %v3169_v0  ;;  %382 = vst [vmem:[#allocation3 + $0x318] sm:$0xff] %v3169_v0 }
  0x58   : > { %383 = vst [vmem:[#allocation3 + $0x320] sm:$0xff] %v3169_v0  ;;  %384 = vst [vmem:[#allocation3 + $0x328] sm:$0xff] %v3169_v0 }
  0x59   : > { %385 = vst [vmem:[#allocation3 + $0x330] sm:$0xff] %v3169_v0  ;;  %386 = vst [vmem:[#allocation3 + $0x338] sm:$0xff] %v3169_v0 }
  0x5a   : > { %387 = vst [vmem:[#allocation3 + $0x340] sm:$0xff] %v3169_v0  ;;  %388 = vst [vmem:[#allocation3 + $0x348] sm:$0xff] %v3169_v0 }
  0x5b   : > { %389 = vst [vmem:[#allocation3 + $0x350] sm:$0xff] %v3169_v0  ;;  %390 = vst [vmem:[#allocation3 + $0x358] sm:$0xff] %v3169_v0 }
  0x5c   : > { %391 = vst [vmem:[#allocation3 + $0x360] sm:$0xff] %v3169_v0  ;;  %392 = vst [vmem:[#allocation3 + $0x368] sm:$0xff] %v3169_v0 }
  0x5d   : > { %393 = vst [vmem:[#allocation3 + $0x370] sm:$0xff] %v3169_v0  ;;  %394 = vst [vmem:[#allocation3 + $0x378] sm:$0xff] %v3169_v0 }
  0x5e   : > { %395 = vst [vmem:[#allocation3 + $0x380] sm:$0xff] %v3169_v0  ;;  %396 = vst [vmem:[#allocation3 + $0x388] sm:$0xff] %v3169_v0 }
  0x5f   : > { %397 = vst [vmem:[#allocation3 + $0x390] sm:$0xff] %v3169_v0  ;;  %398 = vst [vmem:[#allocation3 + $0x398] sm:$0xff] %v3169_v0 }
  0x60   : > { %399 = vst [vmem:[#allocation3 + $0x3a0] sm:$0xff] %v3169_v0  ;;  %400 = vst [vmem:[#allocation3 + $0x3a8] sm:$0xff] %v3169_v0 }
  0x61   : > { %401 = vst [vmem:[#allocation3 + $0x3b0] sm:$0xff] %v3169_v0  ;;  %402 = vst [vmem:[#allocation3 + $0x3b8] sm:$0xff] %v3169_v0 }
  0x62   : > { %403 = vst [vmem:[#allocation3 + $0x3c0] sm:$0xff] %v3169_v0  ;;  %404 = vst [vmem:[#allocation3 + $0x3c8] sm:$0xff] %v3169_v0 }
  0x63   : > { %405 = vst [vmem:[#allocation3 + $0x3d0] sm:$0xff] %v3169_v0  ;;  %406 = vst [vmem:[#allocation3 + $0x3d8] sm:$0xff] %v3169_v0 }
  0x64   : > { %407 = vst [vmem:[#allocation3 + $0x3e0] sm:$0xff] %v3169_v0  ;;  %408 = vst [vmem:[#allocation3 + $0x3e8] sm:$0xff] %v3169_v0 }
  0x65   : > { %409 = vst [vmem:[#allocation3 + $0x3f0] sm:$0xff] %v3169_v0  ;;  %410 = vst [vmem:[#allocation3 + $0x3f8] sm:$0xff] %v3169_v0 }
  0x66   : > { %411 = vst [vmem:[#allocation3 + $0x400] sm:$0xff] %v3169_v0  ;;  %412 = vst [vmem:[#allocation3 + $0x408] sm:$0xff] %v3169_v0 }
  0x67   : > { %413 = vst [vmem:[#allocation3 + $0x410] sm:$0xff] %v3169_v0  ;;  %414 = vst [vmem:[#allocation3 + $0x418] sm:$0xff] %v3169_v0 }
  0x68   : > { %415 = vst [vmem:[#allocation3 + $0x420] sm:$0xff] %v3169_v0  ;;  %416 = vst [vmem:[#allocation3 + $0x428] sm:$0xff] %v3169_v0 }
  0x69   : > { %417 = vst [vmem:[#allocation3 + $0x430] sm:$0xff] %v3169_v0  ;;  %418 = vst [vmem:[#allocation3 + $0x438] sm:$0xff] %v3169_v0 }
  0x6a   : > { %419 = vst [vmem:[#allocation3 + $0x440] sm:$0xff] %v3169_v0  ;;  %420 = vst [vmem:[#allocation3 + $0x448] sm:$0xff] %v3169_v0 }
  0x6b   : > { %421 = vst [vmem:[#allocation3 + $0x450] sm:$0xff] %v3169_v0  ;;  %422 = vst [vmem:[#allocation3 + $0x458] sm:$0xff] %v3169_v0 }
  0x6c   : > { %423 = vst [vmem:[#allocation3 + $0x460] sm:$0xff] %v3169_v0  ;;  %424 = vst [vmem:[#allocation3 + $0x468] sm:$0xff] %v3169_v0 }
  0x6d   : > { %425 = vst [vmem:[#allocation3 + $0x470] sm:$0xff] %v3169_v0  ;;  %426 = vst [vmem:[#allocation3 + $0x478] sm:$0xff] %v3169_v0 }
  0x6e   : > { %427 = vst [vmem:[#allocation3 + $0x480] sm:$0xff] %v3169_v0  ;;  %428 = vst [vmem:[#allocation3 + $0x488] sm:$0xff] %v3169_v0 }
  0x6f   : > { %429 = vst [vmem:[#allocation3 + $0x490] sm:$0xff] %v3169_v0  ;;  %430 = vst [vmem:[#allocation3 + $0x498] sm:$0xff] %v3169_v0 }
  0x70   : > { %431 = vst [vmem:[#allocation3 + $0x4a0] sm:$0xff] %v3169_v0  ;;  %432 = vst [vmem:[#allocation3 + $0x4a8] sm:$0xff] %v3169_v0 }
  0x71   : > { %433 = vst [vmem:[#allocation3 + $0x4b0] sm:$0xff] %v3169_v0  ;;  %434 = vst [vmem:[#allocation3 + $0x4b8] sm:$0xff] %v3169_v0 }
  0x72   : > { %435 = vst [vmem:[#allocation3 + $0x4c0] sm:$0xff] %v3169_v0  ;;  %436 = vst [vmem:[#allocation3 + $0x4c8] sm:$0xff] %v3169_v0 }
  0x73   : > { %437 = vst [vmem:[#allocation3 + $0x4d0] sm:$0xff] %v3169_v0  ;;  %438 = vst [vmem:[#allocation3 + $0x4d8] sm:$0xff] %v3169_v0 }
  0x74   : > { %439 = vst [vmem:[#allocation3 + $0x4e0] sm:$0xff] %v3169_v0  ;;  %440 = vst [vmem:[#allocation3 + $0x4e8] sm:$0xff] %v3169_v0 }
  0x75   : > { %441 = vst [vmem:[#allocation3 + $0x4f0] sm:$0xff] %v3169_v0  ;;  %442 = vst [vmem:[#allocation3 + $0x4f8] sm:$0xff] %v3169_v0 }
  0x76   : > { %443 = vst [vmem:[#allocation3 + $0x500] sm:$0xff] %v3169_v0  ;;  %444 = vst [vmem:[#allocation3 + $0x508] sm:$0xff] %v3169_v0 }
  0x77   : > { %445 = vst [vmem:[#allocation3 + $0x510] sm:$0xff] %v3169_v0  ;;  %446 = vst [vmem:[#allocation3 + $0x518] sm:$0xff] %v3169_v0 }
  0x78   : > { %447 = vst [vmem:[#allocation3 + $0x520] sm:$0xff] %v3169_v0  ;;  %448 = vst [vmem:[#allocation3 + $0x528] sm:$0xff] %v3169_v0 }
  0x79   : > { %449 = vst [vmem:[#allocation3 + $0x530] sm:$0xff] %v3169_v0  ;;  %450 = vst [vmem:[#allocation3 + $0x538] sm:$0xff] %v3169_v0 }
  0x7a   : > { %451 = vst [vmem:[#allocation3 + $0x540] sm:$0xff] %v3169_v0  ;;  %452 = vst [vmem:[#allocation3 + $0x548] sm:$0xff] %v3169_v0 }
  0x7b   : > { %453 = vst [vmem:[#allocation3 + $0x550] sm:$0xff] %v3169_v0  ;;  %454 = vst [vmem:[#allocation3 + $0x558] sm:$0xff] %v3169_v0 }
  0x7c   : > { %455 = vst [vmem:[#allocation3 + $0x560] sm:$0xff] %v3169_v0  ;;  %456 = vst [vmem:[#allocation3 + $0x568] sm:$0xff] %v3169_v0 }
  0x7d   : > { %457 = vst [vmem:[#allocation3 + $0x570] sm:$0xff] %v3169_v0  ;;  %458 = vst [vmem:[#allocation3 + $0x578] sm:$0xff] %v3169_v0 }
  0x7e   : > { %459 = vst [vmem:[#allocation3 + $0x580] sm:$0xff] %v3169_v0  ;;  %460 = vst [vmem:[#allocation3 + $0x588] sm:$0xff] %v3169_v0 }
  0x7f   : > { %461 = vst [vmem:[#allocation3 + $0x590] sm:$0xff] %v3169_v0  ;;  %462 = vst [vmem:[#allocation3 + $0x598] sm:$0xff] %v3169_v0 }
  0x80   : > { %463 = vst [vmem:[#allocation3 + $0x5a0] sm:$0xff] %v3169_v0  ;;  %464 = vst [vmem:[#allocation3 + $0x5a8] sm:$0xff] %v3169_v0 }
  0x81   : > { %465 = vst [vmem:[#allocation3 + $0x5b0] sm:$0xff] %v3169_v0  ;;  %466 = vst [vmem:[#allocation3 + $0x5b8] sm:$0xff] %v3169_v0 }
  0x82   : > { %467 = vst [vmem:[#allocation3 + $0x5c0] sm:$0xff] %v3169_v0  ;;  %468 = vst [vmem:[#allocation3 + $0x5c8] sm:$0xff] %v3169_v0 }
  0x83   : > { %469 = vst [vmem:[#allocation3 + $0x5d0] sm:$0xff] %v3169_v0  ;;  %470 = vst [vmem:[#allocation3 + $0x5d8] sm:$0xff] %v3169_v0 }
  0x84   : > { %471 = vst [vmem:[#allocation3 + $0x5e0] sm:$0xff] %v3169_v0  ;;  %472 = vst [vmem:[#allocation3 + $0x5e8] sm:$0xff] %v3169_v0 }
  0x85   : > { %473 = vst [vmem:[#allocation3 + $0x5f0] sm:$0xff] %v3169_v0  ;;  %474 = vst [vmem:[#allocation3 + $0x5f8] sm:$0xff] %v3169_v0 }
  0x86   : > { %475 = vst [vmem:[#allocation3 + $0x600] sm:$0xff] %v3169_v0  ;;  %476 = vst [vmem:[#allocation3 + $0x608] sm:$0xff] %v3169_v0 }
  0x87   : > { %477 = vst [vmem:[#allocation3 + $0x610] sm:$0xff] %v3169_v0  ;;  %478 = vst [vmem:[#allocation3 + $0x618] sm:$0xff] %v3169_v0 }
  0x88   : > { %479 = vst [vmem:[#allocation3 + $0x620] sm:$0xff] %v3169_v0  ;;  %480 = vst [vmem:[#allocation3 + $0x628] sm:$0xff] %v3169_v0 }
  0x89   : > { %481 = vst [vmem:[#allocation3 + $0x630] sm:$0xff] %v3169_v0  ;;  %482 = vst [vmem:[#allocation3 + $0x638] sm:$0xff] %v3169_v0 }
  0x8a   : > { %483 = vst [vmem:[#allocation3 + $0x640] sm:$0xff] %v3169_v0  ;;  %484 = vst [vmem:[#allocation3 + $0x648] sm:$0xff] %v3169_v0 }
  0x8b   : > { %485 = vst [vmem:[#allocation3 + $0x650] sm:$0xff] %v3169_v0  ;;  %486 = vst [vmem:[#allocation3 + $0x658] sm:$0xff] %v3169_v0 }
  0x8c   : > { %487 = vst [vmem:[#allocation3 + $0x660] sm:$0xff] %v3169_v0  ;;  %488 = vst [vmem:[#allocation3 + $0x668] sm:$0xff] %v3169_v0 }
  0x8d   : > { %489 = vst [vmem:[#allocation3 + $0x670] sm:$0xff] %v3169_v0  ;;  %490 = vst [vmem:[#allocation3 + $0x678] sm:$0xff] %v3169_v0 }
  0x8e   : > { %491 = vst [vmem:[#allocation3 + $0x680] sm:$0xff] %v3169_v0  ;;  %492 = vst [vmem:[#allocation3 + $0x688] sm:$0xff] %v3169_v0 }
  0x8f   : > { %493 = vst [vmem:[#allocation3 + $0x690] sm:$0xff] %v3169_v0  ;;  %494 = vst [vmem:[#allocation3 + $0x698] sm:$0xff] %v3169_v0 }
  0x90   : > { %495 = vst [vmem:[#allocation3 + $0x6a0] sm:$0xff] %v3169_v0  ;;  %496 = vst [vmem:[#allocation3 + $0x6a8] sm:$0xff] %v3169_v0 }
  0x91   : > { %497 = vst [vmem:[#allocation3 + $0x6b0] sm:$0xff] %v3169_v0  ;;  %498 = vst [vmem:[#allocation3 + $0x6b8] sm:$0xff] %v3169_v0 }
  0x92   : > { %499 = vst [vmem:[#allocation3 + $0x6c0] sm:$0xff] %v3169_v0  ;;  %500 = vst [vmem:[#allocation3 + $0x6c8] sm:$0xff] %v3169_v0 }
  0x93   : > { %501 = vst [vmem:[#allocation3 + $0x6d0] sm:$0xff] %v3169_v0  ;;  %502 = vst [vmem:[#allocation3 + $0x6d8] sm:$0xff] %v3169_v0 }
  0x94   : > { %503 = vst [vmem:[#allocation3 + $0x6e0] sm:$0xff] %v3169_v0  ;;  %504 = vst [vmem:[#allocation3 + $0x6e8] sm:$0xff] %v3169_v0 }
  0x95   : > { %505 = vst [vmem:[#allocation3 + $0x6f0] sm:$0xff] %v3169_v0  ;;  %506 = vst [vmem:[#allocation3 + $0x6f8] sm:$0xff] %v3169_v0 }
  0x96   : > { %507 = vst [vmem:[#allocation3 + $0x700] sm:$0xff] %v3169_v0  ;;  %508 = vst [vmem:[#allocation3 + $0x708] sm:$0xff] %v3169_v0 }
  0x97   : > { %509 = vst [vmem:[#allocation3 + $0x710] sm:$0xff] %v3169_v0  ;;  %510 = vst [vmem:[#allocation3 + $0x718] sm:$0xff] %v3169_v0 }
  0x98   : > { %511 = vst [vmem:[#allocation3 + $0x720] sm:$0xff] %v3169_v0  ;;  %512 = vst [vmem:[#allocation3 + $0x728] sm:$0xff] %v3169_v0 }
  0x99   : > { %513 = vst [vmem:[#allocation3 + $0x730] sm:$0xff] %v3169_v0  ;;  %514 = vst [vmem:[#allocation3 + $0x738] sm:$0xff] %v3169_v0 }
  0x9a   : > { %515 = vst [vmem:[#allocation3 + $0x740] sm:$0xff] %v3169_v0  ;;  %516 = vst [vmem:[#allocation3 + $0x748] sm:$0xff] %v3169_v0 }
  0x9b   : > { %517 = vst [vmem:[#allocation3 + $0x750] sm:$0xff] %v3169_v0  ;;  %518 = vst [vmem:[#allocation3 + $0x758] sm:$0xff] %v3169_v0 }
  0x9c   : > { %519 = vst [vmem:[#allocation3 + $0x760] sm:$0xff] %v3169_v0  ;;  %520 = vst [vmem:[#allocation3 + $0x768] sm:$0xff] %v3169_v0 }
  0x9d   : > { %521 = vst [vmem:[#allocation3 + $0x770] sm:$0xff] %v3169_v0  ;;  %522 = vst [vmem:[#allocation3 + $0x778] sm:$0xff] %v3169_v0 }
  0x9e   : > { %523 = vst [vmem:[#allocation3 + $0x780] sm:$0xff] %v3169_v0  ;;  %524 = vst [vmem:[#allocation3 + $0x788] sm:$0xff] %v3169_v0 }
  0x9f   : > { %525 = vst [vmem:[#allocation3 + $0x790] sm:$0xff] %v3169_v0  ;;  %526 = vst [vmem:[#allocation3 + $0x798] sm:$0xff] %v3169_v0 }
  0xa0   : > { %527 = vst [vmem:[#allocation3 + $0x7a0] sm:$0xff] %v3169_v0  ;;  %528 = vst [vmem:[#allocation3 + $0x7a8] sm:$0xff] %v3169_v0 }
  0xa1   : > { %529 = vst [vmem:[#allocation3 + $0x7b0] sm:$0xff] %v3169_v0  ;;  %530 = vst [vmem:[#allocation3 + $0x7b8] sm:$0xff] %v3169_v0 }
  0xa2   : > { %531 = vst [vmem:[#allocation3 + $0x7c0] sm:$0xff] %v3169_v0  ;;  %532 = vst [vmem:[#allocation3 + $0x7c8] sm:$0xff] %v3169_v0 }
  0xa3   : > { %533 = vst [vmem:[#allocation3 + $0x7d0] sm:$0xff] %v3169_v0  ;;  %534 = vst [vmem:[#allocation3 + $0x7d8] sm:$0xff] %v3169_v0 }
  0xa4   : > { %535 = vst [vmem:[#allocation3 + $0x7e0] sm:$0xff] %v3169_v0  ;;  %536 = vst [vmem:[#allocation3 + $0x7e8] sm:$0xff] %v3169_v0 }
  0xa5   : > { %537 = vst [vmem:[#allocation3 + $0x7f0] sm:$0xff] %v3169_v0  ;;  %538 = vst [vmem:[#allocation3 + $0x7f8] sm:$0xff] %v3169_v0 }
  0xa6   : > { %539 = vst [vmem:[#allocation3 + $0x800] sm:$0xff] %v3169_v0  ;;  %540 = vst [vmem:[#allocation3 + $0x808] sm:$0xff] %v3169_v0 }
  0xa7   : > { %541 = vst [vmem:[#allocation3 + $0x810] sm:$0xff] %v3169_v0  ;;  %542 = vst [vmem:[#allocation3 + $0x818] sm:$0xff] %v3169_v0 }
  0xa8   : > { %543 = vst [vmem:[#allocation3 + $0x820] sm:$0xff] %v3169_v0  ;;  %544 = vst [vmem:[#allocation3 + $0x828] sm:$0xff] %v3169_v0 }
  0xa9   : > { %545 = vst [vmem:[#allocation3 + $0x830] sm:$0xff] %v3169_v0  ;;  %546 = vst [vmem:[#allocation3 + $0x838] sm:$0xff] %v3169_v0 }
  0xaa   : > { %547 = vst [vmem:[#allocation3 + $0x840] sm:$0xff] %v3169_v0  ;;  %548 = vst [vmem:[#allocation3 + $0x848] sm:$0xff] %v3169_v0 }
  0xab   : > { %549 = vst [vmem:[#allocation3 + $0x850] sm:$0xff] %v3169_v0  ;;  %550 = vst [vmem:[#allocation3 + $0x858] sm:$0xff] %v3169_v0 }
  0xac   : > { %551 = vst [vmem:[#allocation3 + $0x860] sm:$0xff] %v3169_v0  ;;  %552 = vst [vmem:[#allocation3 + $0x868] sm:$0xff] %v3169_v0 }
  0xad   : > { %553 = vst [vmem:[#allocation3 + $0x870] sm:$0xff] %v3169_v0  ;;  %554 = vst [vmem:[#allocation3 + $0x878] sm:$0xff] %v3169_v0 }
  0xae   : > { %555 = vst [vmem:[#allocation3 + $0x880] sm:$0xff] %v3169_v0  ;;  %556 = vst [vmem:[#allocation3 + $0x888] sm:$0xff] %v3169_v0 }
  0xaf   : > { %557 = vst [vmem:[#allocation3 + $0x890] sm:$0xff] %v3169_v0  ;;  %558 = vst [vmem:[#allocation3 + $0x898] sm:$0xff] %v3169_v0 }
  0xb0   : > { %559 = vst [vmem:[#allocation3 + $0x8a0] sm:$0xff] %v3169_v0  ;;  %560 = vst [vmem:[#allocation3 + $0x8a8] sm:$0xff] %v3169_v0 }
  0xb1   : > { %561 = vst [vmem:[#allocation3 + $0x8b0] sm:$0xff] %v3169_v0  ;;  %562 = vst [vmem:[#allocation3 + $0x8b8] sm:$0xff] %v3169_v0 }
  0xb2   : > { %563 = vst [vmem:[#allocation3 + $0x8c0] sm:$0xff] %v3169_v0  ;;  %564 = vst [vmem:[#allocation3 + $0x8c8] sm:$0xff] %v3169_v0 }
  0xb3   : > { %565 = vst [vmem:[#allocation3 + $0x8d0] sm:$0xff] %v3169_v0  ;;  %566 = vst [vmem:[#allocation3 + $0x8d8] sm:$0xff] %v3169_v0 }
  0xb4   : > { %567 = vst [vmem:[#allocation3 + $0x8e0] sm:$0xff] %v3169_v0  ;;  %568 = vst [vmem:[#allocation3 + $0x8e8] sm:$0xff] %v3169_v0 }
  0xb5   : > { %569 = vst [vmem:[#allocation3 + $0x8f0] sm:$0xff] %v3169_v0  ;;  %570 = vst [vmem:[#allocation3 + $0x8f8] sm:$0xff] %v3169_v0 }
  0xb6   : > { %571 = vst [vmem:[%s4907_s5] sm:$0x3] %v3169_v0  ;;  %231 = vst.msk [vmem:[#allocation2 + $0x10] sm:$0x3] %vm230_vm1, %v3169_v0 }
  0xb7   : > { %234 = vst.msk [vmem:[#allocation2 + $0x28] sm:$0x3] %vm230_vm1, %v3169_v0  ;;  %237 = vst.msk [vmem:[#allocation2 + $0x40] sm:$0x3] %vm230_vm1, %v3169_v0 }
  0xb8   : > { %240 = vst.msk [vmem:[#allocation2 + $0x58] sm:$0x3] %vm230_vm1, %v3169_v0  ;;  %243 = vst.msk [vmem:[#allocation2 + $0x70] sm:$0x3] %vm230_vm1, %v3169_v0 }
  0xb9   : > { %246 = vst.msk [vmem:[#allocation2 + $0x88] sm:$0x3] %vm230_vm1, %v3169_v0  ;;  %249 = vst.msk [vmem:[#allocation2 + $0xa0] sm:$0x3] %vm230_vm1, %v3169_v0 }
  0xba   : > { %252 = vst.msk [vmem:[#allocation2 + $0xb8] sm:$0x3] %vm230_vm1, %v3169_v0  ;;  %255 = vst.msk [vmem:[#allocation2 + $0xd0] sm:$0x3] %vm230_vm1, %v3169_v0 }
  0xbb   : > { %258 = vst.msk [vmem:[#allocation2 + $0xe8] sm:$0x3] %vm230_vm1, %v3169_v0  ;;  %261 = vst.msk [vmem:[#allocation2 + $0x100] sm:$0x3] %vm230_vm1, %v3169_v0 }
  0xbc   : > { %264 = vst.msk [vmem:[#allocation2 + $0x118] sm:$0x3] %vm230_vm1, %v3169_v0  ;;  %267 = vst.msk [vmem:[#allocation2 + $0x130] sm:$0x3] %vm230_vm1, %v3169_v0 }
  0xbd   : > { %270 = vst.msk [vmem:[#allocation2 + $0x148] sm:$0x3] %vm230_vm1, %v3169_v0  ;;  %273 = vst.msk [vmem:[#allocation2 + $0x160] sm:$0x3] %vm230_vm1, %v3169_v0 }
  0xbe   : > { %276 = vst.msk [vmem:[#allocation2 + $0x178] sm:$0x3] %vm230_vm1, %v3169_v0  ;;  %279 = vst.msk [vmem:[#allocation2 + $0x190] sm:$0x3] %vm230_vm1, %v3169_v0 }
  0xbf   : > { %282 = vst.msk [vmem:[#allocation2 + $0x1a8] sm:$0x3] %vm230_vm1, %v3169_v0 }
  0xc0 PF: > { %v1518_v1 = vld [vmem:[%s4903_s1 + $0x78] sm:$0xff]  ;;  %v3170_v3 = vmov 0.0   ;;  %v1517_v4 = vld [vmem:[%s4903_s1 + $0x70] sm:$0xff]  ;;  %v1516_v6 = vld [vmem:[%s4903_s1 + $0x68] sm:$0xff]  ;;  %vm605_vm2 = vcmask 31744  }
  0xc1   : > { %v1550_v2 = vld [vmem:[%s4903_s1 + $0x178] sm:$0xff]  ;;  %1647 = vmatprep.subr.mxu0 %v3170_v3  ;;  %1872 = vmatprep.subr.mxu1 %v3170_v3  ;;  %v1549_v5 = vld [vmem:[%s4903_s1 + $0x170] sm:$0xff]  ;;  %v1548_v7 = vld [vmem:[%s4903_s1 + $0x168] sm:$0xff] }
  0xc2   : > { %1648 = vmatpush1.msra.mxu0 %v1518_v1  ;;  %1873 = vmatpush1.msra.mxu1 %v1550_v2  ;;  %v1515_v8 = vld [vmem:[%s4903_s1 + $0x60] sm:$0xff]  ;;  %v1514_v10 = vld [vmem:[%s4903_s1 + $0x58] sm:$0xff]  ;;  %v1513_v12 = vld [vmem:[%s4903_s1 + $0x50] sm:$0xff] }
  0xc3   : > { %1649 = vmatprep.subr.mxu0 %v3170_v3  ;;  %1874 = vmatprep.subr.mxu1 %v3170_v3  ;;  %v1547_v9 = vld [vmem:[%s4903_s1 + $0x160] sm:$0xff]  ;;  %v1546_v11 = vld [vmem:[%s4903_s1 + $0x158] sm:$0xff]  ;;  %v1545_v13 = vld [vmem:[%s4903_s1 + $0x150] sm:$0xff] }
  0xc4   : > { %1650 = vmatpush1.msra.mxu0 %v1517_v4  ;;  %1875 = vmatpush1.msra.mxu1 %v1549_v5  ;;  %v1512_v14 = vld [vmem:[%s4903_s1 + $0x48] sm:$0xff]  ;;  %v1511_v16 = vld [vmem:[%s4903_s1 + $0x40] sm:$0xff]  ;;  %v1510_v18 = vld [vmem:[%s4903_s1 + $0x38] sm:$0xff] }
  0xc5   : > { %1651 = vmatprep.subr.mxu0 %v3170_v3  ;;  %1876 = vmatprep.subr.mxu1 %v3170_v3  ;;  %v1544_v15 = vld [vmem:[%s4903_s1 + $0x148] sm:$0xff]  ;;  %v1543_v17 = vld [vmem:[%s4903_s1 + $0x140] sm:$0xff]  ;;  %v1542_v19 = vld [vmem:[%s4903_s1 + $0x138] sm:$0xff] }
  0xc6   : > { %1652 = vmatpush1.msra.mxu0 %v1516_v6  ;;  %1877 = vmatpush1.msra.mxu1 %v1548_v7  ;;  %v1509_v20 = vld [vmem:[%s4903_s1 + $0x30] sm:$0xff]  ;;  %v1508_v22 = vld [vmem:[%s4903_s1 + $0x28] sm:$0xff]  ;;  %v1507_v24 = vld [vmem:[%s4903_s1 + $0x20] sm:$0xff] }
  0xc7   : > { %1653 = vmatprep.subr.mxu0 %v3170_v3  ;;  %1878 = vmatprep.subr.mxu1 %v3170_v3  ;;  %v1541_v21 = vld [vmem:[%s4903_s1 + $0x130] sm:$0xff]  ;;  %v1540_v23 = vld [vmem:[%s4903_s1 + $0x128] sm:$0xff]  ;;  %v1539_v25 = vld [vmem:[%s4903_s1 + $0x120] sm:$0xff] }
  0xc8   : > { %1654 = vmatpush1.msra.mxu0 %v1515_v8  ;;  %1879 = vmatpush1.msra.mxu1 %v1547_v9  ;;  %v1506_v26 = vld [vmem:[%s4903_s1 + $0x18] sm:$0xff]  ;;  %v702_v27 = vld [vmem:[#allocation2 + $0x1] sm:$0xff]  ;;  %v703_v32 = vld [vmem:[#allocation2 + $0x9] sm:$0xff] }
  0xc9   : > { %1655 = vmatprep.subr.mxu0 %v3170_v3  ;;  %1880 = vmatprep.subr.mxu1 %v3170_v3  ;;  %v572_v28 = vld [vmem:[%s3212_s22] sm:$0xff]  ;;  %v1538_v29 = vld [vmem:[%s4903_s1 + $0x118] sm:$0xff]  ;;  %734 = vst.msk [vmem:[#allocation3 + $0x8] sm:$0xff] %vm605_vm2, %v702_v27  ;;  %v573_v33 = vld [vmem:[%s3212_s22 + $0x8] sm:$0xff] }
  0xca   : > { %1656 = vmatpush1.msra.mxu0 %v1514_v10  ;;  %1881 = vmatpush1.msra.mxu1 %v1546_v11  ;;  %606 = vst.msk [vmem:[#allocation2 + $0x19] sm:$0xff] %vm605_vm2, %v572_v28  ;;  %v638_v30 = vld [vmem:[#allocation2] sm:$0xff]  ;;  %v639_v34 = vld [vmem:[#allocation2 + $0x8] sm:$0xff]  ;;  %735 = vst.msk [vmem:[#allocation3 + $0x50] sm:$0xff] %vm605_vm2, %v703_v32 }
  0xcb   : > { %1657 = vmatprep.subr.mxu0 %v3170_v3  ;;  %1882 = vmatprep.subr.mxu1 %v3170_v3  ;;  %v766_v31 = vld [vmem:[#allocation2 + $0x2] sm:$0xff]  ;;  %670 = vst.msk [vmem:[#allocation3] sm:$0xff] %vm605_vm2, %v638_v30  ;;  %607 = vst.msk [vmem:[#allocation2 + $0x21] sm:$0xff] %vm605_vm2, %v573_v33  ;;  %v767_v35 = vld [vmem:[#allocation2 + $0xa] sm:$0xff] }
  0xcc   : > { %1658 = vmatpush1.msra.mxu0 %v1513_v12  ;;  %1883 = vmatpush1.msra.mxu1 %v1545_v13  ;;  %798 = vst.msk [vmem:[#allocation3 + $0x10] sm:$0xff] %vm605_vm2, %v766_v31  ;;  %671 = vst.msk [vmem:[#allocation3 + $0x48] sm:$0xff] %vm605_vm2, %v639_v34  ;;  %v574_v36 = vld [vmem:[%s3212_s22 + $0x10] sm:$0xff]  ;;  %v575_v39 = vld [vmem:[%s3212_s22 + $0x18] sm:$0xff] }
  0xcd   : > { %1659 = vmatprep.subr.mxu0 %v3170_v3  ;;  %1884 = vmatprep.subr.mxu1 %v3170_v3  ;;  %v1505_v37 = vld [vmem:[%s4903_s1 + $0x10] sm:$0xff]  ;;  %799 = vst.msk [vmem:[#allocation3 + $0x58] sm:$0xff] %vm605_vm2, %v767_v35  ;;  %608 = vst.msk [vmem:[#allocation2 + $0x31] sm:$0xff] %vm605_vm2, %v574_v36  ;;  %v576_v40 = vld [vmem:[%s3212_s22 + $0x20] sm:$0xff] }
  0xce   : > { %1660 = vmatpush1.msra.mxu0 %v1512_v14  ;;  %1885 = vmatpush1.msra.mxu1 %v1544_v15  ;;  %v1537_v38 = vld [vmem:[%s4903_s1 + $0x110] sm:$0xff]  ;;  %609 = vst.msk [vmem:[#allocation2 + $0x39] sm:$0xff] %vm605_vm2, %v575_v39  ;;  %v577_v41 = vld [vmem:[%s3212_s22 + $0x28] sm:$0xff]  ;;  %610 = vst.msk [vmem:[#allocation2 + $0x49] sm:$0xff] %vm605_vm2, %v576_v40 }
  0xcf   : > { %1661 = vmatprep.subr.mxu0 %v3170_v3  ;;  %1886 = vmatprep.subr.mxu1 %v3170_v3  ;;  %v1504_v42 = vld [vmem:[%s4903_s1 + $0x8] sm:$0xff]  ;;  %611 = vst.msk [vmem:[#allocation2 + $0x51] sm:$0xff] %vm605_vm2, %v577_v41  ;;  %v578_v44 = vld [vmem:[%s3212_s22 + $0x30] sm:$0xff]  ;;  %v1503_v45 = vld [vmem:[%s4903_s1] sm:$0xff] }
  0xd0   : > { %1662 = vmatpush1.msra.mxu0 %v1511_v16  ;;  %1887 = vmatpush1.msra.mxu1 %v1543_v17  ;;  %v1536_v43 = vld [vmem:[%s4903_s1 + $0x108] sm:$0xff]  ;;  %612 = vst.msk [vmem:[#allocation2 + $0x61] sm:$0xff] %vm605_vm2, %v578_v44  ;;  %v579_v46 = vld [vmem:[%s3212_s22 + $0x38] sm:$0xff]  ;;  %v580_v47 = vld [vmem:[%s3212_s22 + $0x40] sm:$0xff] }
  0xd1   : > { %1663 = vmatprep.subr.mxu0 %v3170_v3  ;;  %1888 = vmatprep.subr.mxu1 %v3170_v3  ;;  %v1535_v48 = vld [vmem:[%s4903_s1 + $0x100] sm:$0xff]  ;;  %v830_v49 = vld [vmem:[#allocation2 + $0x18] sm:$0xff]  ;;  %613 = vst.msk [vmem:[#allocation2 + $0x69] sm:$0xff] %vm605_vm2, %v579_v46  ;;  %614 = vst.msk [vmem:[#allocation2 + $0x79] sm:$0xff] %vm605_vm2, %v580_v47 }
  0xd2   : > { %1664 = vmatpush1.msra.mxu0 %v1510_v18  ;;  %1889 = vmatpush1.msra.mxu1 %v1542_v19  ;;  %v704_v50 = vld [vmem:[#allocation2 + $0x19] sm:$0xff]  ;;  %862 = vst.msk [vmem:[#allocation3 + $0x18] sm:$0xff] %vm605_vm2, %v830_v49  ;;  %672 = vst.msk [vmem:[#allocation3 + $0x90] sm:$0xff] %vm605_vm2, %v830_v49  ;;  %v1533_v53 = vld [vmem:[%s4903_s1 + $0xf0] sm:$0xff] }
  0xd3   : > { %1665 = vmatprep.subr.mxu0 %v3170_v3  ;;  %1890 = vmatprep.subr.mxu1 %v3170_v3  ;;  %v1534_v51 = vld [vmem:[%s4903_s1 + $0xf8] sm:$0xff]  ;;  %736 = vst.msk [vmem:[#allocation3 + $0x98] sm:$0xff] %vm605_vm2, %v704_v50  ;;  %v831_v54 = vld [vmem:[#allocation2 + $0x20] sm:$0xff]  ;;  %v1565_v55 = vld [vmem:[%s4903_s1 + $0x1f0] sm:$0xff] }
  0xd4   : > { %1666 = vmatpush1.msra.mxu0 %v1509_v20  ;;  %1891 = vmatpush1.msra.mxu1 %v1541_v21  ;;  %v1566_v52 = vld [vmem:[%s4903_s1 + $0x1f8] sm:$0xff]  ;;  %863 = vst.msk [vmem:[#allocation3 + $0x60] sm:$0xff] %vm605_vm2, %v831_v54  ;;  %v832_v56 = vld [vmem:[#allocation2 + $0x30] sm:$0xff]  ;;  %673 = vst.msk [vmem:[#allocation3 + $0xd8] sm:$0xff] %vm605_vm2, %v831_v54 }
  0xd5   : > { %1667 = vmatprep.subr.mxu0 %v3170_v3  ;;  %1892 = vmatprep.subr.mxu1 %v3170_v3  ;;  %v768_v57 = vld [vmem:[#allocation2 + $0x1a] sm:$0xff]  ;;  %v1532_v58 = vld [vmem:[%s4903_s1 + $0xe8] sm:$0xff]  ;;  %864 = vst.msk [vmem:[#allocation3 + $0xa8] sm:$0xff] %vm605_vm2, %v832_v56  ;;  %674 = vst.msk [vmem:[#allocation3 + $0x120] sm:$0xff] %vm605_vm2, %v832_v56 }
  0xd6   : > { %1668 = vmatpush1.msra.mxu0 %v1508_v22  ;;  %1893 = vmatpush1.msra.mxu1 %v1540_v23  ;;  %v1564_v59 = vld [vmem:[%s4903_s1 + $0x1e8] sm:$0xff]  ;;  %800 = vst.msk [vmem:[#allocation3 + $0xa0] sm:$0xff] %vm605_vm2, %v768_v57  ;;  %v833_v61 = vld [vmem:[#allocation2 + $0x38] sm:$0xff]  ;;  %v835_v4 = vld [vmem:[#allocation2 + $0x50] sm:$0xff] }
  0xd7   : > { %1669 = vmatprep.subr.mxu0 %v3170_v3  ;;  %1894 = vmatprep.subr.mxu1 %v3170_v3  ;;  %v705_v60 = vld [vmem:[#allocation2 + $0x21] sm:$0xff]  ;;  %865 = vst.msk [vmem:[#allocation3 + $0xf0] sm:$0xff] %vm605_vm2, %v833_v61  ;;  %v706_v63 = vld [vmem:[#allocation2 + $0x31] sm:$0xff]  ;;  %675 = vst.msk [vmem:[#allocation3 + $0x168] sm:$0xff] %vm605_vm2, %v833_v61 }
  0xd8   : > { %1670 = vmatpush1.msra.mxu0 %v1507_v24  ;;  %1895 = vmatpush1.msra.mxu1 %v1539_v25  ;;  %v769_v62 = vld [vmem:[#allocation2 + $0x22] sm:$0xff]  ;;  %737 = vst.msk [vmem:[#allocation3 + $0xe0] sm:$0xff] %vm605_vm2, %v705_v60  ;;  %v770_v1 = vld [vmem:[#allocation2 + $0x32] sm:$0xff]  ;;  %738 = vst.msk [vmem:[#allocation3 + $0x128] sm:$0xff] %vm605_vm2, %v706_v63 }
  0xd9   : > { %1671 = vmatprep.subr.mxu0 %v3170_v3  ;;  %1896 = vmatprep.subr.mxu1 %v3170_v3  ;;  %801 = vst.msk [vmem:[#allocation3 + $0xe8] sm:$0xff] %vm605_vm2, %v769_v62  ;;  %v834_v0 = vld [vmem:[#allocation2 + $0x48] sm:$0xff]  ;;  %802 = vst.msk [vmem:[#allocation3 + $0x130] sm:$0xff] %vm605_vm2, %v770_v1  ;;  %v707_v2 = vld [vmem:[#allocation2 + $0x39] sm:$0xff] }
  0xda   : > { %1672 = vmatpush1.msra.mxu0 %v1506_v26  ;;  %1897 = vmatpush1.msra.mxu1 %v1538_v29  ;;  %866 = vst.msk [vmem:[#allocation3 + $0x138] sm:$0xff] %vm605_vm2, %v834_v0  ;;  %v771_v5 = vld [vmem:[#allocation2 + $0x3a] sm:$0xff]  ;;  %676 = vst.msk [vmem:[#allocation3 + $0x1b0] sm:$0xff] %vm605_vm2, %v834_v0  ;;  %v708_v6 = vld [vmem:[#allocation2 + $0x49] sm:$0xff] }
  0xdb   : > { %1673 = vmatprep.subr.mxu0 %v3170_v3  ;;  %1898 = vmatprep.subr.mxu1 %v3170_v3  ;;  %739 = vst.msk [vmem:[#allocation3 + $0x170] sm:$0xff] %vm605_vm2, %v707_v2  ;;  %867 = vst.msk [vmem:[#allocation3 + $0x180] sm:$0xff] %vm605_vm2, %v835_v4  ;;  %v836_v7 = vld [vmem:[#allocation2 + $0x60] sm:$0xff]  ;;  %v772_v8 = vld [vmem:[#allocation2 + $0x4a] sm:$0xff] }
  0xdc   : > { %1674 = vmatpush1.msra.mxu0 %v1505_v37  ;;  %1899 = vmatpush1.msra.mxu1 %v1537_v38  ;;  %803 = vst.msk [vmem:[#allocation3 + $0x178] sm:$0xff] %vm605_vm2, %v771_v5  ;;  %677 = vst.msk [vmem:[#allocation3 + $0x1f8] sm:$0xff] %vm605_vm2, %v835_v4  ;;  %v1531_v9 = vld [vmem:[%s4903_s1 + $0xe0] sm:$0xff]  ;;  %v709_v11 = vld [vmem:[#allocation2 + $0x51] sm:$0xff] }
  0xdd   : > { %1675 = vmatprep.subr.mxu0 %v3170_v3  ;;  %1900 = vmatprep.subr.mxu1 %v3170_v3  ;;  %v1563_v10 = vld [vmem:[%s4903_s1 + $0x1e0] sm:$0xff]  ;;  %740 = vst.msk [vmem:[#allocation3 + $0x1b8] sm:$0xff] %vm605_vm2, %v708_v6  ;;  %868 = vst.msk [vmem:[#allocation3 + $0x1c8] sm:$0xff] %vm605_vm2, %v836_v7  ;;  %v837_v12 = vld [vmem:[#allocation2 + $0x68] sm:$0xff] }
  0xde   : > { %1676 = vmatpush1.msra.mxu0 %v1504_v42  ;;  %1901 = vmatpush1.msra.mxu1 %v1536_v43  ;;  %804 = vst.msk [vmem:[#allocation3 + $0x1c0] sm:$0xff] %vm605_vm2, %v772_v8  ;;  %678 = vst.msk [vmem:[#allocation3 + $0x240] sm:$0xff] %vm605_vm2, %v836_v7  ;;  %v773_v13 = vld [vmem:[#allocation2 + $0x52] sm:$0xff]  ;;  %v710_v16 = vld [vmem:[#allocation2 + $0x61] sm:$0xff] }
  0xdf   : > { %1677 = vmatprep.subr.mxu0 %v3170_v3  ;;  %1902 = vmatprep.subr.mxu1 %v3170_v3  ;;  %v1530_v14 = vld [vmem:[%s4903_s1 + $0xd8] sm:$0xff]  ;;  %741 = vst.msk [vmem:[#allocation3 + $0x200] sm:$0xff] %vm605_vm2, %v709_v11  ;;  %869 = vst.msk [vmem:[#allocation3 + $0x210] sm:$0xff] %vm605_vm2, %v837_v12  ;;  %v1529_v17 = vld [vmem:[%s4903_s1 + $0xd0] sm:$0xff] }
  0xe0   : > { %1678 = vmatpush1.msra.mxu0 %v1503_v45  ;;  %1903 = vmatpush1.msra.mxu1 %v1535_v48  ;;  %v1562_v15 = vld [vmem:[%s4903_s1 + $0x1d8] sm:$0xff]  ;;  %805 = vst.msk [vmem:[#allocation3 + $0x208] sm:$0xff] %vm605_vm2, %v773_v13  ;;  %679 = vst.msk [vmem:[#allocation3 + $0x288] sm:$0xff] %vm605_vm2, %v837_v12  ;;  %v1561_v18 = vld [vmem:[%s4903_s1 + $0x1d0] sm:$0xff] }
  0xe1   : > { %1679 = vmatprep.subr.mxu0 %v3170_v3  ;;  %1904 = vmatprep.subr.mxu1 %v3170_v3  ;;  %742 = vst.msk [vmem:[#allocation3 + $0x248] sm:$0xff] %vm605_vm2, %v710_v16  ;;  %v1528_v19 = vld [vmem:[%s4903_s1 + $0xc8] sm:$0xff]  ;;  %v1527_v21 = vld [vmem:[%s4903_s1 + $0xc0] sm:$0xff]  ;;  %v1526_v23 = vld [vmem:[%s4903_s1 + $0xb8] sm:$0xff] }
  0xe2   : > { %1680 = vmatpush2.msra.mxu0 %v1534_v51  ;;  %1905 = vmatpush2.msra.mxu1 %v1566_v52  ;;  %v1560_v20 = vld [vmem:[%s4903_s1 + $0x1c8] sm:$0xff]  ;;  %v1559_v22 = vld [vmem:[%s4903_s1 + $0x1c0] sm:$0xff]  ;;  %v1558_v24 = vld [vmem:[%s4903_s1 + $0x1b8] sm:$0xff] }
  0xe3   : > { %1681 = vmatprep.subr.mxu0 %v3170_v3  ;;  %1906 = vmatprep.subr.mxu1 %v3170_v3  ;;  %v838_v25 = vld [vmem:[#allocation2 + $0x78] sm:$0xff]  ;;  %v1525_v26 = vld [vmem:[%s4903_s1 + $0xb0] sm:$0xff]  ;;  %v774_v27 = vld [vmem:[#allocation2 + $0x62] sm:$0xff] }
  0xe4   : > { %1682 = vmatpush2.msra.mxu0 %v1533_v53  ;;  %1907 = vmatpush2.msra.mxu1 %v1565_v55  ;;  %870 = vst.msk [vmem:[#allocation3 + $0x258] sm:$0xff] %vm605_vm2, %v838_v25  ;;  %v711_v28 = vld [vmem:[#allocation2 + $0x69] sm:$0xff]  ;;  %680 = vst.msk [vmem:[#allocation3 + $0x2d0] sm:$0xff] %vm605_vm2, %v838_v25  ;;  %v712_v32 = vld [vmem:[#allocation2 + $0x79] sm:$0xff] }
  0xe5   : > { %1683 = vmatprep.subr.mxu0 %v3170_v3  ;;  %1908 = vmatprep.subr.mxu1 %v3170_v3  ;;  %v1557_v29 = vld [vmem:[%s4903_s1 + $0x1b0] sm:$0xff]  ;;  %806 = vst.msk [vmem:[#allocation3 + $0x250] sm:$0xff] %vm605_vm2, %v774_v27  ;;  %743 = vst.msk [vmem:[#allocation3 + $0x290] sm:$0xff] %vm605_vm2, %v711_v28  ;;  %v581_v30 = vld [vmem:[%s3212_s22 + $0x48] sm:$0xff] }
  0xe6   : > { %1684 = vmatpush2.msra.mxu0 %v1532_v58  ;;  %1909 = vmatpush2.msra.mxu1 %v1564_v59  ;;  %v775_v31 = vld [vmem:[#allocation2 + $0x6a] sm:$0xff]  ;;  %615 = vst.msk [vmem:[#allocation2 + $0x81] sm:$0xff] %vm605_vm2, %v581_v30  ;;  %744 = vst.msk [vmem:[#allocation3 + $0x2d8] sm:$0xff] %vm605_vm2, %v712_v32  ;;  %v583_v36 = vld [vmem:[%s3212_s22 + $0x58] sm:$0xff] }
  0xe7   : > { %1685 = vmatprep.subr.mxu0 %v3170_v3  ;;  %1910 = vmatprep.subr.mxu1 %v3170_v3  ;;  %807 = vst.msk [vmem:[#allocation3 + $0x298] sm:$0xff] %vm605_vm2, %v775_v31  ;;  %v1524_v33 = vld [vmem:[%s4903_s1 + $0xa8] sm:$0xff]  ;;  %v582_v35 = vld [vmem:[%s3212_s22 + $0x50] sm:$0xff]  ;;  %v1523_v37 = vld [vmem:[%s4903_s1 + $0xa0] sm:$0xff] }
  0xe8   : > { %1686 = vmatpush2.msra.mxu0 %v1531_v9  ;;  %1911 = vmatpush2.msra.mxu1 %v1563_v10  ;;  %v1556_v34 = vld [vmem:[%s4903_s1 + $0x1a8] sm:$0xff]  ;;  %616 = vst.msk [vmem:[#allocation2 + $0x91] sm:$0xff] %vm605_vm2, %v582_v35  ;;  %v1555_v38 = vld [vmem:[%s4903_s1 + $0x1a0] sm:$0xff]  ;;  %617 = vst.msk [vmem:[#allocation2 + $0x99] sm:$0xff] %vm605_vm2, %v583_v36 }
  0xe9   : > { %1687 = vmatprep.subr.mxu0 %v3170_v3  ;;  %1912 = vmatprep.subr.mxu1 %v3170_v3  ;;  %v584_v39 = vld [vmem:[%s3212_s22 + $0x60] sm:$0xff]  ;;  %v585_v40 = vld [vmem:[%s3212_s22 + $0x68] sm:$0xff]  ;;  %v1522_v41 = vld [vmem:[%s4903_s1 + $0x98] sm:$0xff] }
  0xea   : > { %1688 = vmatpush2.msra.mxu0 %v1530_v14  ;;  %1913 = vmatpush2.msra.mxu1 %v1562_v15  ;;  %618 = vst.msk [vmem:[#allocation2 + $0xa9] sm:$0xff] %vm605_vm2, %v584_v39  ;;  %v1554_v42 = vld [vmem:[%s4903_s1 + $0x198] sm:$0xff]  ;;  %619 = vst.msk [vmem:[#allocation2 + $0xb1] sm:$0xff] %vm605_vm2, %v585_v40  ;;  %v586_v43 = vld [vmem:[%s3212_s22 + $0x70] sm:$0xff] }
  0xeb   : > { %1689 = vmatprep.subr.mxu0 %v3170_v3  ;;  %1914 = vmatprep.subr.mxu1 %v3170_v3  ;;  %v1521_v44 = vld [vmem:[%s4903_s1 + $0x90] sm:$0xff]  ;;  %620 = vst.msk [vmem:[#allocation2 + $0xc1] sm:$0xff] %vm605_vm2, %v586_v43  ;;  %v1520_v46 = vld [vmem:[%s4903_s1 + $0x88] sm:$0xff]  ;;  %v1519_v52 = vld [vmem:[%s4903_s1 + $0x80] sm:$0xff] }
  0xec   : > { %1690 = vmatpush2.msra.mxu0 %v1529_v17  ;;  %1915 = vmatpush2.msra.mxu1 %v1561_v18  ;;  %v1553_v45 = vld [vmem:[%s4903_s1 + $0x190] sm:$0xff]  ;;  %v1552_v49 = vld [vmem:[%s4903_s1 + $0x188] sm:$0xff]  ;;  %v1216_v53 = vld [vmem:[#allocation3 + $0x8] sm:$0xff] }
  0xed   : > { %1691 = vmatprep.subr.mxu0 %v3170_v3  ;;  %1916 = vmatprep.subr.mxu1 %v3170_v3  ;;  %v839_v47 = vld [vmem:[#allocation2 + $0x80] sm:$0xff]  ;;  %v1218_v57 = vld [vmem:[#allocation3 + $0x18] sm:$0xff]  ;;  %v1215_v61 = vld [vmem:[#allocation3] sm:$0xff] }
  0xee   : > { %1692 = vmatpush2.msra.mxu0 %v1528_v19  ;;  %1917 = vmatpush2.msra.mxu1 %v1560_v20  ;;  %v776_v48 = vld [vmem:[#allocation2 + $0x7a] sm:$0xff]  ;;  %871 = vst.msk [vmem:[#allocation3 + $0x2a0] sm:$0xff] %vm605_vm2, %v839_v47  ;;  %681 = vst.msk [vmem:[#allocation3 + $0x318] sm:$0xff] %vm605_vm2, %v839_v47  ;;  %v777_v51 = vld [vmem:[#allocation2 + $0x82] sm:$0xff] }
  0xef   : > { %1693 = vmatprep.subr.mxu0 %v3170_v3  ;;  %1918 = vmatprep.subr.mxu1 %v3170_v3  ;;  %808 = vst.msk [vmem:[#allocation3 + $0x2e0] sm:$0xff] %vm605_vm2, %v776_v48  ;;  %v713_v50 = vld [vmem:[#allocation2 + $0x81] sm:$0xff]  ;;  %v840_v54 = vld [vmem:[#allocation2 + $0x90] sm:$0xff]  ;;  %809 = vst.msk [vmem:[#allocation3 + $0x328] sm:$0xff] %vm605_vm2, %v777_v51 }
  0xf0   : > { %1694 = vmatpush2.msra.mxu0 %v1527_v21  ;;  %1919 = vmatpush2.msra.mxu1 %v1559_v22  ;;  %745 = vst.msk [vmem:[#allocation3 + $0x320] sm:$0xff] %vm605_vm2, %v713_v50  ;;  %v714_v55 = vld [vmem:[#allocation2 + $0x91] sm:$0xff]  ;;  %v1551_v56 = vld [vmem:[%s4903_s1 + $0x180] sm:$0xff]  ;;  %872 = vst.msk [vmem:[#allocation3 + $0x2e8] sm:$0xff] %vm605_vm2, %v840_v54 }
  0xf1   : > { %1695 = vmatprep.subr.mxu0 %v3170_v3  ;;  %1920 = vmatprep.subr.mxu1 %v3170_v3  ;;  %v841_v58 = vld [vmem:[#allocation2 + $0x98] sm:$0xff]  ;;  %746 = vst.msk [vmem:[#allocation3 + $0x368] sm:$0xff] %vm605_vm2, %v714_v55  ;;  %682 = vst.msk [vmem:[#allocation3 + $0x360] sm:$0xff] %vm605_vm2, %v840_v54  ;;  %v1217_v62 = vld [vmem:[#allocation3 + $0x10] sm:$0xff] }
  0xf2   : > { %1696 = vmatpush2.msra.mxu0 %v1526_v23  ;;  %1921 = vmatpush2.msra.mxu1 %v1558_v24  ;;  %v778_v59 = vld [vmem:[#allocation2 + $0x92] sm:$0xff]  ;;  %873 = vst.msk [vmem:[#allocation3 + $0x330] sm:$0xff] %vm605_vm2, %v841_v58  ;;  %v842_v63 = vld [vmem:[#allocation2 + $0xa8] sm:$0xff]  ;;  %683 = vst.msk [vmem:[#allocation3 + $0x3a8] sm:$0xff] %vm605_vm2, %v841_v58 }
  0xf3   : > { %1697 = vmatprep.subr.mxu0 %v3170_v3  ;;  %1922 = vmatprep.subr.mxu1 %v3170_v3  ;;  %v715_v60 = vld [vmem:[#allocation2 + $0x99] sm:$0xff]  ;;  %810 = vst.msk [vmem:[#allocation3 + $0x370] sm:$0xff] %vm605_vm2, %v778_v59  ;;  %v716_v1 = vld [vmem:[#allocation2 + $0xa9] sm:$0xff]  ;;  %874 = vst.msk [vmem:[#allocation3 + $0x378] sm:$0xff] %vm605_vm2, %v842_v63 }
  0xf4   : > { %1698 = vmatpush2.msra.mxu0 %v1525_v26  ;;  %1923 = vmatpush2.msra.mxu1 %v1557_v29  ;;  %747 = vst.msk [vmem:[#allocation3 + $0x3b0] sm:$0xff] %vm605_vm2, %v715_v60  ;;  %v779_v0 = vld [vmem:[#allocation2 + $0x9a] sm:$0xff]  ;;  %v843_v2 = vld [vmem:[#allocation2 + $0xb0] sm:$0xff]  ;;  %748 = vst.msk [vmem:[#allocation3 + $0x3f8] sm:$0xff] %vm605_vm2, %v716_v1 }
  0xf5   : > { %1699 = vmatprep.subr.mxu0 %v3170_v3  ;;  %1924 = vmatprep.subr.mxu1 %v3170_v3  ;;  %811 = vst.msk [vmem:[#allocation3 + $0x3b8] sm:$0xff] %vm605_vm2, %v779_v0  ;;  %684 = vst.msk [vmem:[#allocation3 + $0x3f0] sm:$0xff] %vm605_vm2, %v842_v63  ;;  %v780_v4 = vld [vmem:[#allocation2 + $0xaa] sm:$0xff]  ;;  %v844_v6 = vld [vmem:[#allocation2 + $0xc0] sm:$0xff] }
  0xf6   : > { %1700 = vmatpush2.msra.mxu0 %v1524_v33  ;;  %1925 = vmatpush2.msra.mxu1 %v1556_v34  ;;  %v717_v5 = vld [vmem:[#allocation2 + $0xb1] sm:$0xff]  ;;  %875 = vst.msk [vmem:[#allocation3 + $0x3c0] sm:$0xff] %vm605_vm2, %v843_v2  ;;  %812 = vst.msk [vmem:[#allocation3 + $0x400] sm:$0xff] %vm605_vm2, %v780_v4  ;;  %v1225_v9 = vld [vmem:[#allocation3 + $0x50] sm:$0xff] }
  0xf7   : > { %1701 = vmatprep.subr.mxu0 %v3170_v3  ;;  %1926 = vmatprep.subr.mxu1 %v3170_v3  ;;  %749 = vst.msk [vmem:[#allocation3 + $0x440] sm:$0xff] %vm605_vm2, %v717_v5  ;;  %v587_v7 = vld [vmem:[%s3212_s22 + $0x78] sm:$0xff]  ;;  %685 = vst.msk [vmem:[#allocation3 + $0x438] sm:$0xff] %vm605_vm2, %v843_v2  ;;  %v718_v10 = vld [vmem:[#allocation2 + $0xc1] sm:$0xff] }
  0xf8   : > { %1702 = vmatpush2.msra.mxu0 %v1523_v37  ;;  %1927 = vmatpush2.msra.mxu1 %v1555_v38  ;;  %v781_v8 = vld [vmem:[#allocation2 + $0xb2] sm:$0xff]  ;;  %876 = vst.msk [vmem:[#allocation3 + $0x408] sm:$0xff] %vm605_vm2, %v844_v6  ;;  %621 = vst.msk [vmem:[#allocation2 + $0xc9] sm:$0xff] %vm605_vm2, %v587_v7  ;;  %v588_v13 = vld [vmem:[%s3212_s22 + $0x80] sm:$0xff] }
  0xf9   : > { %1703 = vmatprep.subr.mxu0 %v3170_v3  ;;  %1928 = vmatprep.subr.mxu1 %v3170_v3  ;;  %813 = vst.msk [vmem:[#allocation3 + $0x448] sm:$0xff] %vm605_vm2, %v781_v8  ;;  %686 = vst.msk [vmem:[#allocation3 + $0x480] sm:$0xff] %vm605_vm2, %v844_v6  ;;  %v1582_v11 = vld [vmem:[%s4903_s1 + $0x278] sm:$0xff]  ;;  %v1227_v12 = vld [vmem:[#allocation3 + $0x60] sm:$0xff] }
  0xfa   : > { %1704 = vmatpush2.msra.mxu0 %v1522_v41  ;;  %1929 = vmatpush2.msra.mxu1 %v1554_v42  ;;  %750 = vst.msk [vmem:[#allocation3 + $0x488] sm:$0xff] %vm605_vm2, %v718_v10  ;;  %v1224_v14 = vld [vmem:[#allocation3 + $0x48] sm:$0xff]  ;;  %v1226_v15 = vld [vmem:[#allocation3 + $0x58] sm:$0xff]  ;;  %622 = vst.msk [vmem:[#allocation2 + $0xd9] sm:$0xff] %vm605_vm2, %v588_v13 }
  0xfb   : > { %1705 = vmatprep.subr.mxu0 %v3170_v3  ;;  %1930 = vmatprep.subr.mxu1 %v3170_v3  ;;  %v1581_v16 = vld [vmem:[%s4903_s1 + $0x270] sm:$0xff]  ;;  %v1234_v17 = vld [vmem:[#allocation3 + $0x98] sm:$0xff]  ;;  %v1236_v18 = vld [vmem:[#allocation3 + $0xa8] sm:$0xff] }
  0xfc   : > { %1706 = vmatpush2.msra.mxu0 %v1521_v44  ;;  %1931 = vmatpush2.msra.mxu1 %v1553_v45  ;;  %v1580_v19 = vld [vmem:[%s4903_s1 + $0x268] sm:$0xff]  ;;  %v1614_v20 = vld [vmem:[%s4903_s1 + $0x378] sm:$0xff]  ;;  %v1233_v21 = vld [vmem:[#allocation3 + $0x90] sm:$0xff] }
  0xfd   : > { %1707 = vmatprep.subr.mxu0 %v3170_v3  ;;  %1932 = vmatprep.subr.mxu1 %v3170_v3  ;;  %v1235_v22 = vld [vmem:[#allocation3 + $0xa0] sm:$0xff]  ;;  %v1245_v24 = vld [vmem:[#allocation3 + $0xf0] sm:$0xff]  ;;  %v1242_v26 = vld [vmem:[#allocation3 + $0xd8] sm:$0xff] }
  0xfe   : > { %1708 = vmatpush2.msra.mxu0 %v1520_v46  ;;  %1933 = vmatpush2.msra.mxu1 %v1552_v49  ;;  %v1243_v23 = vld [vmem:[#allocation3 + $0xe0] sm:$0xff]  ;;  %v1579_v27 = vld [vmem:[%s4903_s1 + $0x260] sm:$0xff]  ;;  %v1244_v29 = vld [vmem:[#allocation3 + $0xe8] sm:$0xff] }
  0xff   : > { %1709 = vmatprep.subr.mxu0 %v3170_v3  ;;  %1934 = vmatprep.subr.mxu1 %v3170_v3  ;;  %v845_v25 = vld [vmem:[#allocation2 + $0xc8] sm:$0xff]  ;;  %v1613_v30 = vld [vmem:[%s4903_s1 + $0x370] sm:$0xff]  ;;  %v1252_v35 = vld [vmem:[#allocation3 + $0x128] sm:$0xff] }
 0x100   : > { %1710 = vmatpush2.msra.mxu0 %v1519_v52  ;;  %1711 = vmatprep.mubr.f32.mxu0 %v1216_v53  ;;  %877 = vst.msk [vmem:[#allocation3 + $0x450] sm:$0xff] %vm605_vm2, %v845_v25  ;;  %v782_v28 = vld [vmem:[#allocation2 + $0xc2] sm:$0xff]  ;;  %687 = vst.msk [vmem:[#allocation3 + $0x4c8] sm:$0xff] %vm605_vm2, %v845_v25  ;;  %v783_v34 = vld [vmem:[#allocation2 + $0xca] sm:$0xff] }
 0x101   : > { %1935 = vmatpush2.msra.mxu1 %v1551_v56  ;;  %1936 = vmatprep.mubr.f32.mxu1 %v1218_v57  ;;  %v846_v31 = vld [vmem:[#allocation2 + $0xd8] sm:$0xff]  ;;  %814 = vst.msk [vmem:[#allocation3 + $0x490] sm:$0xff] %vm605_vm2, %v782_v28  ;;  %v719_v32 = vld [vmem:[#allocation2 + $0xc9] sm:$0xff]  ;;  %815 = vst.msk [vmem:[#allocation3 + $0x4d8] sm:$0xff] %vm605_vm2, %v783_v34 }
 0x102   : > { %1712 = vmatmul.mubr.f32.vlgmr.msra.gmra.mxu0 %v1215_v61  ;;  %1937 = vmatmul.mubr.f32.vlgmr.msra.gmra.mxu1 %v1217_v62  ;;  %878 = vst.msk [vmem:[#allocation3 + $0x498] sm:$0xff] %vm605_vm2, %v846_v31  ;;  %v589_v33 = vld [vmem:[%s3212_s22 + $0x88] sm:$0xff]  ;;  %688 = vst.msk [vmem:[#allocation3 + $0x510] sm:$0xff] %vm605_vm2, %v846_v31  ;;  %v720_v37 = vld [vmem:[#allocation2 + $0xd9] sm:$0xff] }
 0x103   : > { %2097 = vmatprep.subr.mxu0 %v3170_v3  ;;  %1716 = vmatprep.mubr.f32.mxu0 %v1225_v9  ;;  %v1254_v36 = vld [vmem:[#allocation3 + $0x138] sm:$0xff]  ;;  %751 = vst.msk [vmem:[#allocation3 + $0x4d0] sm:$0xff] %vm605_vm2, %v719_v32  ;;  %623 = vst.msk [vmem:[#allocation2 + $0xe1] sm:$0xff] %vm605_vm2, %v589_v33  ;;  %v590_v38 = vld [vmem:[%s3212_s22 + $0x90] sm:$0xff] }
 0x104   : > { %2098 = vmatpush1.msra.mxu0 %v1582_v11  ;;  %1941 = vmatprep.mubr.f32.mxu1 %v1227_v12  ;;  %752 = vst.msk [vmem:[#allocation3 + $0x518] sm:$0xff] %vm605_vm2, %v720_v37  ;;  %v1578_v39 = vld [vmem:[%s4903_s1 + $0x258] sm:$0xff]  ;;  %v1612_v40 = vld [vmem:[%s4903_s1 + $0x368] sm:$0xff]  ;;  %624 = vst.msk [vmem:[#allocation2 + $0xf1] sm:$0xff] %vm605_vm2, %v590_v38 }
 0x105   : > { %2099 = vmatprep.subr.mxu0 %v3170_v3  ;;  %2322 = vmatprep.subr.mxu1 %v3170_v3  ;;  %v591_v41 = vld [vmem:[%s3212_s22 + $0x98] sm:$0xff]  ;;  %v1251_v42 = vld [vmem:[#allocation3 + $0x120] sm:$0xff]  ;;  %v1253_v43 = vld [vmem:[#allocation3 + $0x130] sm:$0xff] }
 0x106   : > { %1717 = vmatmul.mubr.f32.gmra.mxu0 %v1224_v14  ;;  %1942 = vmatmul.mubr.f32.gmra.mxu1 %v1226_v15  ;;  %625 = vst.msk [vmem:[#allocation2 + $0xf9] sm:$0xff] %vm605_vm2, %v591_v41  ;;  %v592_v44 = vld [vmem:[%s3212_s22 + $0xa0] sm:$0xff]  ;;  %v1263_v46 = vld [vmem:[#allocation3 + $0x180] sm:$0xff]  ;;  %v593_v47 = vld [vmem:[%s3212_s22 + $0xa8] sm:$0xff] }
 0x107   : > { %2100 = vmatpush1.msra.mxu0 %v1581_v16  ;;  %1721 = vmatprep.mubr.f32.mxu0 %v1234_v17  ;;  %v1261_v45 = vld [vmem:[#allocation3 + $0x170] sm:$0xff]  ;;  %626 = vst.msk [vmem:[#allocation2 + $0x109] sm:$0xff] %vm605_vm2, %v592_v44  ;;  %v1260_v48 = vld [vmem:[#allocation3 + $0x168] sm:$0xff]  ;;  %v1577_v49 = vld [vmem:[%s4903_s1 + $0x250] sm:$0xff] }
 0x108   : > { %1946 = vmatprep.mubr.f32.mxu1 %v1236_v18  ;;  %2101 = vmatprep.subr.mxu0 %v3170_v3  ;;  %627 = vst.msk [vmem:[#allocation2 + $0x111] sm:$0xff] %vm605_vm2, %v593_v47  ;;  %v1262_v50 = vld [vmem:[#allocation3 + $0x178] sm:$0xff]  ;;  %v1611_v51 = vld [vmem:[%s4903_s1 + $0x360] sm:$0xff]  ;;  %v594_v52 = vld [vmem:[%s3212_s22 + $0xb0] sm:$0xff] }
 0x109   : > { %2102 = vmatpush1.msra.mxu0 %v1580_v19  ;;  %2323 = vmatpush1.msra.mxu1 %v1614_v20  ;;  %v1270_v53 = vld [vmem:[#allocation3 + $0x1b8] sm:$0xff]  ;;  %v1272_v54 = vld [vmem:[#allocation3 + $0x1c8] sm:$0xff]  ;;  %628 = vst.msk [vmem:[#allocation2 + $0x121] sm:$0xff] %vm605_vm2, %v594_v52  ;;  %v1269_v60 = vld [vmem:[#allocation3 + $0x1b0] sm:$0xff] }
 0x10a   : > { %1722 = vmatmul.mubr.f32.gmra.mxu0 %v1233_v21  ;;  %1947 = vmatmul.mubr.f32.gmra.mxu1 %v1235_v22  ;;  %v847_v55 = vld [vmem:[#allocation2 + $0xe0] sm:$0xff]  ;;  %v1576_v56 = vld [vmem:[%s4903_s1 + $0x248] sm:$0xff]  ;;  %v1610_v57 = vld [vmem:[%s4903_s1 + $0x358] sm:$0xff] }
 0x10b   : > { %1726 = vmatprep.mubr.f32.mxu0 %v1243_v23  ;;  %1951 = vmatprep.mubr.f32.mxu1 %v1245_v24  ;;  %879 = vst.msk [vmem:[#allocation3 + $0x4e0] sm:$0xff] %vm605_vm2, %v847_v55  ;;  %v784_v58 = vld [vmem:[#allocation2 + $0xda] sm:$0xff]  ;;  %689 = vst.msk [vmem:[#allocation3 + $0x558] sm:$0xff] %vm605_vm2, %v847_v55  ;;  %v1271_v61 = vld [vmem:[#allocation3 + $0x1c0] sm:$0xff] }
 0x10c   : > { %2103 = vmatprep.subr.mxu0 %v3170_v3  ;;  %2324 = vmatprep.subr.mxu1 %v3170_v3  ;;  %v721_v59 = vld [vmem:[#allocation2 + $0xe1] sm:$0xff]  ;;  %v848_v62 = vld [vmem:[#allocation2 + $0xf0] sm:$0xff]  ;;  %816 = vst.msk [vmem:[#allocation3 + $0x520] sm:$0xff] %vm605_vm2, %v784_v58  ;;  %v595_v14 = vld [vmem:[%s3212_s22 + $0xb8] sm:$0xff] }
 0x10d   : > { %2104 = vmatpush1.msra.mxu0 %v1579_v27  ;;  %2325 = vmatpush1.msra.mxu1 %v1613_v30  ;;  %753 = vst.msk [vmem:[#allocation3 + $0x560] sm:$0xff] %vm605_vm2, %v721_v59  ;;  %v785_v63 = vld [vmem:[#allocation2 + $0xe2] sm:$0xff]  ;;  %v722_v0 = vld [vmem:[#allocation2 + $0xf1] sm:$0xff]  ;;  %880 = vst.msk [vmem:[#allocation3 + $0x528] sm:$0xff] %vm605_vm2, %v848_v62 }
 0x10e   : > { %1727 = vmatmul.mubr.f32.gmra.mxu0 %v1242_v26  ;;  %1952 = vmatmul.mubr.f32.gmra.mxu1 %v1244_v29  ;;  %v1279_v1 = vld [vmem:[#allocation3 + $0x200] sm:$0xff]  ;;  %v849_v2 = vld [vmem:[#allocation2 + $0xf8] sm:$0xff]  ;;  %817 = vst.msk [vmem:[#allocation3 + $0x568] sm:$0xff] %vm605_vm2, %v785_v63  ;;  %754 = vst.msk [vmem:[#allocation3 + $0x5a8] sm:$0xff] %vm605_vm2, %v722_v0 }
 0x10f   : > { %1731 = vmatprep.mubr.f32.mxu0 %v1252_v35  ;;  %1956 = vmatprep.mubr.f32.mxu1 %v1254_v36  ;;  %690 = vst.msk [vmem:[#allocation3 + $0x5a0] sm:$0xff] %vm605_vm2, %v848_v62  ;;  %v786_v4 = vld [vmem:[#allocation2 + $0xf2] sm:$0xff]  ;;  %881 = vst.msk [vmem:[#allocation3 + $0x570] sm:$0xff] %vm605_vm2, %v849_v2  ;;  %v850_v6 = vld [vmem:[#allocation2 + $0x108] sm:$0xff] }
 0x110   : > { %2105 = vmatprep.subr.mxu0 %v3170_v3  ;;  %2326 = vmatprep.subr.mxu1 %v3170_v3  ;;  %v723_v5 = vld [vmem:[#allocation2 + $0xf9] sm:$0xff]  ;;  %818 = vst.msk [vmem:[#allocation3 + $0x5b0] sm:$0xff] %vm605_vm2, %v786_v4  ;;  %691 = vst.msk [vmem:[#allocation3 + $0x5e8] sm:$0xff] %vm605_vm2, %v849_v2  ;;  %v724_v8 = vld [vmem:[#allocation2 + $0x109] sm:$0xff] }
 0x111   : > { %2106 = vmatpush1.msra.mxu0 %v1578_v39  ;;  %2327 = vmatpush1.msra.mxu1 %v1612_v40  ;;  %755 = vst.msk [vmem:[#allocation3 + $0x5f0] sm:$0xff] %vm605_vm2, %v723_v5  ;;  %v787_v7 = vld [vmem:[#allocation2 + $0xfa] sm:$0xff]  ;;  %882 = vst.msk [vmem:[#allocation3 + $0x5b8] sm:$0xff] %vm605_vm2, %v850_v6  ;;  %v851_v10 = vld [vmem:[#allocation2 + $0x110] sm:$0xff] }
 0x112   : > { %1732 = vmatmul.mubr.f32.gmra.mxu0 %v1251_v42  ;;  %1957 = vmatmul.mubr.f32.gmra.mxu1 %v1253_v43  ;;  %v1281_v9 = vld [vmem:[#allocation3 + $0x210] sm:$0xff]  ;;  %819 = vst.msk [vmem:[#allocation3 + $0x5f8] sm:$0xff] %vm605_vm2, %v787_v7  ;;  %756 = vst.msk [vmem:[#allocation3 + $0x638] sm:$0xff] %vm605_vm2, %v724_v8  ;;  %v788_v11 = vld [vmem:[#allocation2 + $0x10a] sm:$0xff] }
 0x113   : > { %1736 = vmatprep.mubr.f32.mxu0 %v1261_v45  ;;  %1961 = vmatprep.mubr.f32.mxu1 %v1263_v46  ;;  %692 = vst.msk [vmem:[#allocation3 + $0x630] sm:$0xff] %vm605_vm2, %v850_v6  ;;  %v1575_v12 = vld [vmem:[%s4903_s1 + $0x240] sm:$0xff]  ;;  %883 = vst.msk [vmem:[#allocation3 + $0x600] sm:$0xff] %vm605_vm2, %v851_v10  ;;  %v725_v13 = vld [vmem:[#allocation2 + $0x111] sm:$0xff] }
 0x114   : > { %2107 = vmatprep.subr.mxu0 %v3170_v3  ;;  %2328 = vmatprep.subr.mxu1 %v3170_v3  ;;  %820 = vst.msk [vmem:[#allocation3 + $0x640] sm:$0xff] %vm605_vm2, %v788_v11  ;;  %693 = vst.msk [vmem:[#allocation3 + $0x678] sm:$0xff] %vm605_vm2, %v851_v10  ;;  %v1609_v15 = vld [vmem:[%s4903_s1 + $0x350] sm:$0xff]  ;;  %v852_v16 = vld [vmem:[#allocation2 + $0x120] sm:$0xff] }
 0x115   : > { %2108 = vmatpush1.msra.mxu0 %v1577_v49  ;;  %2329 = vmatpush1.msra.mxu1 %v1611_v51  ;;  %757 = vst.msk [vmem:[#allocation3 + $0x680] sm:$0xff] %vm605_vm2, %v725_v13  ;;  %629 = vst.msk [vmem:[#allocation2 + $0x129] sm:$0xff] %vm605_vm2, %v595_v14  ;;  %v789_v17 = vld [vmem:[#allocation2 + $0x112] sm:$0xff]  ;;  %v1278_v18 = vld [vmem:[#allocation3 + $0x1f8] sm:$0xff] }
 0x116   : > { %1737 = vmatmul.mubr.f32.gmra.mxu0 %v1260_v48  ;;  %1962 = vmatmul.mubr.f32.gmra.mxu1 %v1262_v50  ;;  %v1280_v19 = vld [vmem:[#allocation3 + $0x208] sm:$0xff]  ;;  %884 = vst.msk [vmem:[#allocation3 + $0x648] sm:$0xff] %vm605_vm2, %v852_v16  ;;  %821 = vst.msk [vmem:[#allocation3 + $0x688] sm:$0xff] %vm605_vm2, %v789_v17  ;;  %v1290_v21 = vld [vmem:[#allocation3 + $0x258] sm:$0xff] }
 0x117   : > { %1741 = vmatprep.mubr.f32.mxu0 %v1270_v53  ;;  %1966 = vmatprep.mubr.f32.mxu1 %v1272_v54  ;;  %694 = vst.msk [vmem:[#allocation3 + $0x6c0] sm:$0xff] %vm605_vm2, %v852_v16  ;;  %v1288_v20 = vld [vmem:[#allocation3 + $0x248] sm:$0xff]  ;;  %v726_v22 = vld [vmem:[#allocation2 + $0x121] sm:$0xff]  ;;  %v1287_v25 = vld [vmem:[#allocation3 + $0x240] sm:$0xff] }
 0x118   : > { %2109 = vmatprep.subr.mxu0 %v3170_v3  ;;  %2330 = vmatprep.subr.mxu1 %v3170_v3  ;;  %758 = vst.msk [vmem:[#allocation3 + $0x6c8] sm:$0xff] %vm605_vm2, %v726_v22  ;;  %v1574_v23 = vld [vmem:[%s4903_s1 + $0x238] sm:$0xff]  ;;  %v1608_v24 = vld [vmem:[%s4903_s1 + $0x348] sm:$0xff]  ;;  %v1289_v26 = vld [vmem:[#allocation3 + $0x250] sm:$0xff] }
 0x119   : > { %2110 = vmatpush1.msra.mxu0 %v1576_v56  ;;  %2331 = vmatpush1.msra.mxu1 %v1610_v57  ;;  %v1297_v27 = vld [vmem:[#allocation3 + $0x290] sm:$0xff]  ;;  %v1299_v28 = vld [vmem:[#allocation3 + $0x2a0] sm:$0xff]  ;;  %v1296_v32 = vld [vmem:[#allocation3 + $0x288] sm:$0xff] }
 0x11a   : > { %1742 = vmatmul.mubr.f32.gmra.mxu0 %v1269_v60  ;;  %1967 = vmatmul.mubr.f32.gmra.mxu1 %v1271_v61  ;;  %v1573_v29 = vld [vmem:[%s4903_s1 + $0x230] sm:$0xff]  ;;  %v1607_v30 = vld [vmem:[%s4903_s1 + $0x340] sm:$0xff]  ;;  %v1298_v33 = vld [vmem:[#allocation3 + $0x298] sm:$0xff] }
 0x11b   : > { %1746 = vmatprep.mubr.f32.mxu0 %v1279_v1  ;;  %1971 = vmatprep.mubr.f32.mxu1 %v1281_v9  ;;  %v596_v34 = vld [vmem:[%s3212_s22 + $0xc0] sm:$0xff]  ;;  %v1306_v35 = vld [vmem:[#allocation3 + $0x2d8] sm:$0xff]  ;;  %v1308_v36 = vld [vmem:[#allocation3 + $0x2e8] sm:$0xff] }
 0x11c   : > { %2111 = vmatprep.subr.mxu0 %v3170_v3  ;;  %2332 = vmatprep.subr.mxu1 %v3170_v3  ;;  %v853_v31 = vld [vmem:[#allocation2 + $0x128] sm:$0xff]  ;;  %630 = vst.msk [vmem:[#allocation2 + $0x139] sm:$0xff] %vm605_vm2, %v596_v34  ;;  %v1606_v41 = vld [vmem:[%s4903_s1 + $0x338] sm:$0xff]  ;;  %v1305_v43 = vld [vmem:[#allocation3 + $0x2d0] sm:$0xff] }
 0x11d   : > { %2112 = vmatpush1.msra.mxu0 %v1575_v12  ;;  %2333 = vmatpush1.msra.mxu1 %v1609_v15  ;;  %885 = vst.msk [vmem:[#allocation3 + $0x690] sm:$0xff] %vm605_vm2, %v853_v31  ;;  %695 = vst.msk [vmem:[#allocation3 + $0x708] sm:$0xff] %vm605_vm2, %v853_v31  ;;  %v790_v37 = vld [vmem:[#allocation2 + $0x122] sm:$0xff]  ;;  %v791_v42 = vld [vmem:[#allocation2 + $0x12a] sm:$0xff] }
 0x11e   : > { %1747 = vmatmul.mubr.f32.gmra.mxu0 %v1278_v18  ;;  %1972 = vmatmul.mubr.f32.gmra.mxu1 %v1280_v19  ;;  %822 = vst.msk [vmem:[#allocation3 + $0x6d0] sm:$0xff] %vm605_vm2, %v790_v37  ;;  %v727_v38 = vld [vmem:[#allocation2 + $0x129] sm:$0xff]  ;;  %823 = vst.msk [vmem:[#allocation3 + $0x718] sm:$0xff] %vm605_vm2, %v791_v42  ;;  %v1317_v47 = vld [vmem:[#allocation3 + $0x330] sm:$0xff] }
 0x11f   : > { %1751 = vmatprep.mubr.f32.mxu0 %v1288_v20  ;;  %1976 = vmatprep.mubr.f32.mxu1 %v1290_v21  ;;  %v597_v39 = vld [vmem:[%s3212_s22 + $0xc8] sm:$0xff]  ;;  %759 = vst.msk [vmem:[#allocation3 + $0x710] sm:$0xff] %vm605_vm2, %v727_v38  ;;  %v1307_v44 = vld [vmem:[#allocation3 + $0x2e0] sm:$0xff]  ;;  %v599_v48 = vld [vmem:[%s3212_s22 + $0xd8] sm:$0xff] }
 0x120   : > { %2113 = vmatprep.subr.mxu0 %v3170_v3  ;;  %2334 = vmatprep.subr.mxu1 %v3170_v3  ;;  %v1572_v40 = vld [vmem:[%s4903_s1 + $0x228] sm:$0xff]  ;;  %631 = vst.msk [vmem:[#allocation2 + $0x141] sm:$0xff] %vm605_vm2, %v597_v39  ;;  %v598_v45 = vld [vmem:[%s3212_s22 + $0xd0] sm:$0xff]  ;;  %v1571_v49 = vld [vmem:[%s4903_s1 + $0x220] sm:$0xff] }
 0x121   : > { %2114 = vmatpush1.msra.mxu0 %v1574_v23  ;;  %2335 = vmatpush1.msra.mxu1 %v1608_v24  ;;  %v1315_v46 = vld [vmem:[#allocation3 + $0x320] sm:$0xff]  ;;  %632 = vst.msk [vmem:[#allocation2 + $0x151] sm:$0xff] %vm605_vm2, %v598_v45  ;;  %633 = vst.msk [vmem:[#allocation2 + $0x159] sm:$0xff] %vm605_vm2, %v599_v48  ;;  %v1314_v50 = vld [vmem:[#allocation3 + $0x318] sm:$0xff] }
 0x122   : > { %1752 = vmatmul.mubr.f32.gmra.mxu0 %v1287_v25  ;;  %1977 = vmatmul.mubr.f32.gmra.mxu1 %v1289_v26  ;;  %v1605_v51 = vld [vmem:[%s4903_s1 + $0x330] sm:$0xff]  ;;  %v600_v52 = vld [vmem:[%s3212_s22 + $0xe0] sm:$0xff]  ;;  %v1316_v53 = vld [vmem:[#allocation3 + $0x328] sm:$0xff] }
 0x123   : > { %1756 = vmatprep.mubr.f32.mxu0 %v1297_v27  ;;  %1981 = vmatprep.mubr.f32.mxu1 %v1299_v28  ;;  %v854_v54 = vld [vmem:[#allocation2 + $0x138] sm:$0xff]  ;;  %634 = vst.msk [vmem:[#allocation2 + $0x169] sm:$0xff] %vm605_vm2, %v600_v52  ;;  %v1326_v57 = vld [vmem:[#allocation3 + $0x378] sm:$0xff]  ;;  %v1323_v59 = vld [vmem:[#allocation3 + $0x360] sm:$0xff] }
 0x124   : > { %2115 = vmatprep.subr.mxu0 %v3170_v3  ;;  %2336 = vmatprep.subr.mxu1 %v3170_v3  ;;  %v728_v55 = vld [vmem:[#allocation2 + $0x139] sm:$0xff]  ;;  %886 = vst.msk [vmem:[#allocation3 + $0x6d8] sm:$0xff] %vm605_vm2, %v854_v54  ;;  %696 = vst.msk [vmem:[#allocation3 + $0x750] sm:$0xff] %vm605_vm2, %v854_v54  ;;  %v1335_v0 = vld [vmem:[#allocation3 + $0x3c0] sm:$0xff] }
 0x125   : > { %2116 = vmatpush1.msra.mxu0 %v1573_v29  ;;  %2337 = vmatpush1.msra.mxu1 %v1607_v30  ;;  %v1324_v56 = vld [vmem:[#allocation3 + $0x368] sm:$0xff]  ;;  %760 = vst.msk [vmem:[#allocation3 + $0x758] sm:$0xff] %vm605_vm2, %v728_v55  ;;  %v1325_v60 = vld [vmem:[#allocation3 + $0x370] sm:$0xff]  ;;  %v1604_v1 = vld [vmem:[%s4903_s1 + $0x328] sm:$0xff] }
 0x126   : > { %1757 = vmatmul.mubr.f32.gmra.mxu0 %v1296_v32  ;;  %1982 = vmatmul.mubr.f32.gmra.mxu1 %v1298_v33  ;;  %v1570_v58 = vld [vmem:[%s4903_s1 + $0x218] sm:$0xff]  ;;  %v1333_v63 = vld [vmem:[#allocation3 + $0x3b0] sm:$0xff]  ;;  %v601_v7 = vld [vmem:[%s3212_s22 + $0xe8] sm:$0xff] }
 0x127   : > { %1761 = vmatprep.mubr.f32.mxu0 %v1306_v35  ;;  %1986 = vmatprep.mubr.f32.mxu1 %v1308_v36  ;;  %v855_v61 = vld [vmem:[#allocation2 + $0x140] sm:$0xff]  ;;  %635 = vst.msk [vmem:[#allocation2 + $0x171] sm:$0xff] %vm605_vm2, %v601_v7  ;;  %v1569_v11 = vld [vmem:[%s4903_s1 + $0x210] sm:$0xff]  ;;  %v1332_v16 = vld [vmem:[#allocation3 + $0x3a8] sm:$0xff] }
 0x128   : > { %2117 = vmatprep.subr.mxu0 %v3170_v3  ;;  %2338 = vmatprep.subr.mxu1 %v3170_v3  ;;  %v792_v62 = vld [vmem:[#allocation2 + $0x13a] sm:$0xff]  ;;  %887 = vst.msk [vmem:[#allocation3 + $0x720] sm:$0xff] %vm605_vm2, %v855_v61  ;;  %697 = vst.msk [vmem:[#allocation3 + $0x798] sm:$0xff] %vm605_vm2, %v855_v61  ;;  %v793_v4 = vld [vmem:[#allocation2 + $0x142] sm:$0xff] }
 0x129   : > { %2118 = vmatpush1.msra.mxu0 %v1572_v40  ;;  %2339 = vmatpush1.msra.mxu1 %v1606_v41  ;;  %824 = vst.msk [vmem:[#allocation3 + $0x760] sm:$0xff] %vm605_vm2, %v792_v62  ;;  %v729_v2 = vld [vmem:[#allocation2 + $0x141] sm:$0xff]  ;;  %v856_v5 = vld [vmem:[#allocation2 + $0x150] sm:$0xff]  ;;  %825 = vst.msk [vmem:[#allocation3 + $0x7a8] sm:$0xff] %vm605_vm2, %v793_v4 }
 0x12a   : > { %1762 = vmatmul.mubr.f32.gmra.mxu0 %v1305_v43  ;;  %1987 = vmatmul.mubr.f32.gmra.mxu1 %v1307_v44  ;;  %761 = vst.msk [vmem:[#allocation3 + $0x7a0] sm:$0xff] %vm605_vm2, %v729_v2  ;;  %v730_v6 = vld [vmem:[#allocation2 + $0x151] sm:$0xff]  ;;  %888 = vst.msk [vmem:[#allocation3 + $0x768] sm:$0xff] %vm605_vm2, %v856_v5  ;;  %v731_v10 = vld [vmem:[#allocation2 + $0x159] sm:$0xff] }
 0x12b   : > { %1766 = vmatprep.mubr.f32.mxu0 %v1315_v46  ;;  %1991 = vmatprep.mubr.f32.mxu1 %v1317_v47  ;;  %v857_v8 = vld [vmem:[#allocation2 + $0x158] sm:$0xff]  ;;  %762 = vst.msk [vmem:[#allocation3 + $0x7e8] sm:$0xff] %vm605_vm2, %v730_v6  ;;  %698 = vst.msk [vmem:[#allocation3 + $0x7e0] sm:$0xff] %vm605_vm2, %v856_v5  ;;  %v1603_v13 = vld [vmem:[%s4903_s1 + $0x320] sm:$0xff] }
 0x12c   : > { %2119 = vmatprep.subr.mxu0 %v3170_v3  ;;  %2340 = vmatprep.subr.mxu1 %v3170_v3  ;;  %v794_v9 = vld [vmem:[#allocation2 + $0x152] sm:$0xff]  ;;  %889 = vst.msk [vmem:[#allocation3 + $0x7b0] sm:$0xff] %vm605_vm2, %v857_v8  ;;  %763 = vst.msk [vmem:[#allocation3 + $0x830] sm:$0xff] %vm605_vm2, %v731_v10  ;;  %v795_v12 = vld [vmem:[#allocation2 + $0x15a] sm:$0xff] }
 0x12d   : > { %2120 = vmatpush1.msra.mxu0 %v1571_v49  ;;  %2341 = vmatpush1.msra.mxu1 %v1605_v51  ;;  %826 = vst.msk [vmem:[#allocation3 + $0x7f0] sm:$0xff] %vm605_vm2, %v794_v9  ;;  %699 = vst.msk [vmem:[#allocation3 + $0x828] sm:$0xff] %vm605_vm2, %v857_v8  ;;  %v858_v14 = vld [vmem:[#allocation2 + $0x168] sm:$0xff]  ;;  %v1344_v19 = vld [vmem:[#allocation3 + $0x408] sm:$0xff] }
 0x12e   : > { %1767 = vmatmul.mubr.f32.gmra.mxu0 %v1314_v50  ;;  %1992 = vmatmul.mubr.f32.gmra.mxu1 %v1316_v53  ;;  %827 = vst.msk [vmem:[#allocation3 + $0x838] sm:$0xff] %vm605_vm2, %v795_v12  ;;  %v732_v15 = vld [vmem:[#allocation2 + $0x169] sm:$0xff]  ;;  %890 = vst.msk [vmem:[#allocation3 + $0x7f8] sm:$0xff] %vm605_vm2, %v858_v14  ;;  %v1602_v22 = vld [vmem:[%s4903_s1 + $0x318] sm:$0xff] }
 0x12f   : > { %1771 = vmatprep.mubr.f32.mxu0 %v1324_v56  ;;  %1996 = vmatprep.mubr.f32.mxu1 %v1326_v57  ;;  %v1334_v17 = vld [vmem:[#allocation3 + $0x3b8] sm:$0xff]  ;;  %764 = vst.msk [vmem:[#allocation3 + $0x878] sm:$0xff] %vm605_vm2, %v732_v15  ;;  %700 = vst.msk [vmem:[#allocation3 + $0x870] sm:$0xff] %vm605_vm2, %v858_v14  ;;  %v602_v20 = vld [vmem:[%s3212_s22 + $0xf0] sm:$0xff] }
 0x130   : > { %2121 = vmatprep.subr.mxu0 %v3170_v3  ;;  %2342 = vmatprep.subr.mxu1 %v3170_v3  ;;  %v1342_v18 = vld [vmem:[#allocation3 + $0x3f8] sm:$0xff]  ;;  %636 = vst.msk [vmem:[#allocation2 + $0x181] sm:$0xff] %vm605_vm2, %v602_v20  ;;  %v1341_v23 = vld [vmem:[#allocation3 + $0x3f0] sm:$0xff]  ;;  %v1343_v24 = vld [vmem:[#allocation3 + $0x400] sm:$0xff] }
 0x131   : > { %2122 = vmatpush1.msra.mxu0 %v1570_v58  ;;  %2343 = vmatpush1.msra.mxu1 %v1604_v1  ;;  %v1568_v21 = vld [vmem:[%s4903_s1 + $0x208] sm:$0xff]  ;;  %v1351_v25 = vld [vmem:[#allocation3 + $0x440] sm:$0xff]  ;;  %v1353_v26 = vld [vmem:[#allocation3 + $0x450] sm:$0xff] }
 0x132   : > { %1772 = vmatmul.mubr.f32.gmra.mxu0 %v1323_v59  ;;  %1997 = vmatmul.mubr.f32.gmra.mxu1 %v1325_v60  ;;  %v1350_v27 = vld [vmem:[#allocation3 + $0x438] sm:$0xff]  ;;  %v1567_v28 = vld [vmem:[%s4903_s1 + $0x200] sm:$0xff]  ;;  %v859_v29 = vld [vmem:[#allocation2 + $0x170] sm:$0xff] }
 0x133   : > { %1776 = vmatprep.mubr.f32.mxu0 %v1333_v63  ;;  %2001 = vmatprep.mubr.f32.mxu1 %v1335_v0  ;;  %v1352_v30 = vld [vmem:[#allocation3 + $0x448] sm:$0xff]  ;;  %v1601_v32 = vld [vmem:[%s4903_s1 + $0x310] sm:$0xff]  ;;  %891 = vst.msk [vmem:[#allocation3 + $0x840] sm:$0xff] %vm605_vm2, %v859_v29  ;;  %701 = vst.msk [vmem:[#allocation3 + $0x8b8] sm:$0xff] %vm605_vm2, %v859_v29 }
 0x134   : > { %2123 = vmatprep.subr.mxu0 %v3170_v3  ;;  %2344 = vmatprep.subr.mxu1 %v3170_v3  ;;  %v1360_v31 = vld [vmem:[#allocation3 + $0x488] sm:$0xff]  ;;  %v796_v33 = vld [vmem:[#allocation2 + $0x16a] sm:$0xff]  ;;  %v1361_v40 = vld [vmem:[#allocation3 + $0x490] sm:$0xff] }
 0x135   : > { %2124 = vmatpush1.msra.mxu0 %v1569_v11  ;;  %2345 = vmatpush1.msra.mxu1 %v1603_v13  ;;  %v733_v34 = vld [vmem:[#allocation2 + $0x171] sm:$0xff]  ;;  %v1362_v36 = vld [vmem:[#allocation3 + $0x498] sm:$0xff]  ;;  %828 = vst.msk [vmem:[#allocation3 + $0x880] sm:$0xff] %vm605_vm2, %v796_v33  ;;  %v958_v42 = vld [vmem:[#allocation2 + $0x1a] sm:$0xff] }
 0x136   : > { %1777 = vmatmul.mubr.f32.gmra.mxu0 %v1332_v16  ;;  %2002 = vmatmul.mubr.f32.gmra.mxu1 %v1334_v17  ;;  %v603_v35 = vld [vmem:[%s3212_s22 + $0xf8] sm:$0xff]  ;;  %765 = vst.msk [vmem:[#allocation3 + $0x8c0] sm:$0xff] %vm605_vm2, %v733_v34  ;;  %v1359_v39 = vld [vmem:[#allocation3 + $0x480] sm:$0xff]  ;;  %v1369_v43 = vld [vmem:[#allocation3 + $0x4d0] sm:$0xff] }
 0x137   : > { %1781 = vmatprep.mubr.f32.mxu0 %v1342_v18  ;;  %2006 = vmatprep.mubr.f32.mxu1 %v1344_v19  ;;  %v860_v37 = vld [vmem:[#allocation2 + $0x180] sm:$0xff]  ;;  %637 = vst.msk [vmem:[#allocation2 + $0x189] sm:$0xff] %vm605_vm2, %v603_v35  ;;  %v797_v38 = vld [vmem:[#allocation2 + $0x172] sm:$0xff]  ;;  %v1600_v44 = vld [vmem:[%s4903_s1 + $0x308] sm:$0xff] }
 0x138   : > { %2125 = vmatprep.subr.mxu0 %v3170_v3  ;;  %2346 = vmatprep.subr.mxu1 %v3170_v3  ;;  %v1598_v41 = vld [vmem:[%s4903_s1 + $0x2f8] sm:$0xff]  ;;  %892 = vst.msk [vmem:[#allocation3 + $0x888] sm:$0xff] %vm605_vm2, %v860_v37  ;;  %829 = vst.msk [vmem:[#allocation3 + $0x8c8] sm:$0xff] %vm605_vm2, %v797_v38  ;;  %v1371_v47 = vld [vmem:[#allocation3 + $0x4e0] sm:$0xff] }
 0x139   : > { %2126 = vmatpush1.msra.mxu0 %v1568_v21  ;;  %2347 = vmatpush1.msra.mxu1 %v1602_v22  ;;  %990 = vst.msk [vmem:[#allocation3 + $0x28] sm:$0xff] %vm605_vm2, %v958_v42  ;;  %v1087_v45 = vld [vmem:[#allocation2 + $0x31] sm:$0xff]  ;;  %v894_v46 = vld [vmem:[#allocation2 + $0x19] sm:$0xff]  ;;  %v959_v49 = vld [vmem:[#allocation2 + $0x22] sm:$0xff] }
 0x13a   : > { %1782 = vmatmul.mubr.f32.gmra.mxu0 %v1341_v23  ;;  %2007 = vmatmul.mubr.f32.gmra.mxu1 %v1343_v24  ;;  %1119 = vst.msk [vmem:[#allocation3 + $0x38] sm:$0xff] %vm605_vm2, %v1087_v45  ;;  %926 = vst.msk [vmem:[#allocation3 + $0x20] sm:$0xff] %vm605_vm2, %v894_v46  ;;  %v1023_v48 = vld [vmem:[#allocation2 + $0x30] sm:$0xff]  ;;  %v1088_v50 = vld [vmem:[#allocation2 + $0x39] sm:$0xff] }
 0x13b   : > { %1786 = vmatprep.mubr.f32.mxu0 %v1351_v25  ;;  %2011 = vmatprep.mubr.f32.mxu1 %v1353_v26  ;;  %928 = vst.msk [vmem:[#allocation3 + $0xb0] sm:$0xff] %vm605_vm2, %v1087_v45  ;;  %1055 = vst.msk [vmem:[#allocation3 + $0x30] sm:$0xff] %vm605_vm2, %v1023_v48  ;;  %v895_v51 = vld [vmem:[#allocation2 + $0x21] sm:$0xff]  ;;  %v1024_v52 = vld [vmem:[#allocation2 + $0x38] sm:$0xff] }
 0x13c   : > { %2127 = vmatprep.subr.mxu0 %v3170_v3  ;;  %2348 = vmatprep.subr.mxu1 %v3170_v3  ;;  %991 = vst.msk [vmem:[#allocation3 + $0x70] sm:$0xff] %vm605_vm2, %v959_v49  ;;  %v1597_v53 = vld [vmem:[%s4903_s1 + $0x2f0] sm:$0xff]  ;;  %1120 = vst.msk [vmem:[#allocation3 + $0x80] sm:$0xff] %vm605_vm2, %v1088_v50  ;;  %v1599_v55 = vld [vmem:[%s4903_s1 + $0x300] sm:$0xff] }
 0x13d   : > { %2128 = vmatpush1.msra.mxu0 %v1567_v28  ;;  %2349 = vmatpush1.msra.mxu1 %v1601_v32  ;;  %927 = vst.msk [vmem:[#allocation3 + $0x68] sm:$0xff] %vm605_vm2, %v895_v51  ;;  %1056 = vst.msk [vmem:[#allocation3 + $0x78] sm:$0xff] %vm605_vm2, %v1024_v52  ;;  %v960_v54 = vld [vmem:[#allocation2 + $0x32] sm:$0xff]  ;;  %v1089_v56 = vld [vmem:[#allocation2 + $0x49] sm:$0xff] }
 0x13e   : > { %1787 = vmatmul.mubr.f32.gmra.mxu0 %v1350_v27  ;;  %2012 = vmatmul.mubr.f32.gmra.mxu1 %v1352_v30  ;;  %929 = vst.msk [vmem:[#allocation3 + $0xf8] sm:$0xff] %vm605_vm2, %v1088_v50  ;;  %992 = vst.msk [vmem:[#allocation3 + $0xb8] sm:$0xff] %vm605_vm2, %v960_v54  ;;  %v1025_v57 = vld [vmem:[#allocation2 + $0x48] sm:$0xff]  ;;  %v1368_v58 = vld [vmem:[#allocation3 + $0x4c8] sm:$0xff] }
 0x13f   : > { %1791 = vmatprep.mubr.f32.mxu0 %v1360_v31  ;;  %2016 = vmatprep.mubr.f32.mxu1 %v1362_v36  ;;  %v1370_v59 = vld [vmem:[#allocation3 + $0x4d8] sm:$0xff]  ;;  %1121 = vst.msk [vmem:[#allocation3 + $0xc8] sm:$0xff] %vm605_vm2, %v1089_v56  ;;  %1057 = vst.msk [vmem:[#allocation3 + $0xc0] sm:$0xff] %vm605_vm2, %v1025_v57  ;;  %v1380_v62 = vld [vmem:[#allocation3 + $0x528] sm:$0xff] }
 0x140   : > { %2129 = vmatprep.subr.mxu0 %v3170_v3  ;;  %2350 = vmatprep.subr.mxu1 %v3170_v3  ;;  %v861_v60 = vld [vmem:[#allocation2 + $0x188] sm:$0xff]  ;;  %930 = vst.msk [vmem:[#allocation3 + $0x140] sm:$0xff] %vm605_vm2, %v1089_v56  ;;  %v961_v63 = vld [vmem:[#allocation2 + $0x3a] sm:$0xff]  ;;  %v1090_v0 = vld [vmem:[#allocation2 + $0x51] sm:$0xff] }
 0x141   : > { %2130 = vmatpush2.msra.mxu0 %v1598_v41  ;;  %2351 = vmatpush1.msra.mxu1 %v1600_v44  ;;  %v1378_v61 = vld [vmem:[#allocation3 + $0x518] sm:$0xff]  ;;  %893 = vst.msk [vmem:[#allocation3 + $0x8d0] sm:$0xff] %vm605_vm2, %v861_v60  ;;  %993 = vst.msk [vmem:[#allocation3 + $0x100] sm:$0xff] %vm605_vm2, %v961_v63  ;;  %v1026_v1 = vld [vmem:[#allocation2 + $0x50] sm:$0xff] }
 0x142   : > { %1792 = vmatmul.mubr.f32.gmra.mxu0 %v1359_v39  ;;  %2017 = vmatmul.mubr.f32.gmra.mxu1 %v1361_v40  ;;  %v1596_v2 = vld [vmem:[%s4903_s1 + $0x2e8] sm:$0xff]  ;;  %v1630_v4 = vld [vmem:[%s4903_s1 + $0x3f8] sm:$0xff]  ;;  %1122 = vst.msk [vmem:[#allocation3 + $0x110] sm:$0xff] %vm605_vm2, %v1090_v0  ;;  %1058 = vst.msk [vmem:[#allocation3 + $0x108] sm:$0xff] %vm605_vm2, %v1026_v1 }
 0x143   : > { %1796 = vmatprep.mubr.f32.mxu0 %v1369_v43  ;;  %2021 = vmatprep.mubr.f32.mxu1 %v1371_v47  ;;  %931 = vst.msk [vmem:[#allocation3 + $0x188] sm:$0xff] %vm605_vm2, %v1090_v0  ;;  %v1377_v5 = vld [vmem:[#allocation3 + $0x510] sm:$0xff]  ;;  %v1379_v6 = vld [vmem:[#allocation3 + $0x520] sm:$0xff]  ;;  %v1386_v11 = vld [vmem:[#allocation3 + $0x558] sm:$0xff] }
 0x144   : > { %2131 = vmatprep.subr.mxu0 %v3170_v3  ;;  %2352 = vmatprep.subr.mxu1 %v3170_v3  ;;  %v962_v7 = vld [vmem:[#allocation2 + $0x4a] sm:$0xff]  ;;  %v1389_v9 = vld [vmem:[#allocation3 + $0x570] sm:$0xff]  ;;  %v1388_v14 = vld [vmem:[#allocation3 + $0x568] sm:$0xff] }
 0x145   : > { %2132 = vmatpush2.msra.mxu0 %v1597_v53  ;;  %2353 = vmatpush1.msra.mxu1 %v1599_v55  ;;  %v1387_v8 = vld [vmem:[#allocation3 + $0x560] sm:$0xff]  ;;  %994 = vst.msk [vmem:[#allocation3 + $0x148] sm:$0xff] %vm605_vm2, %v962_v7  ;;  %v1091_v10 = vld [vmem:[#allocation2 + $0x61] sm:$0xff]  ;;  %v1396_v15 = vld [vmem:[#allocation3 + $0x5a8] sm:$0xff] }
 0x146   : > { %1797 = vmatmul.mubr.f32.gmra.mxu0 %v1368_v58  ;;  %2022 = vmatmul.mubr.f32.gmra.mxu1 %v1370_v59  ;;  %v1595_v12 = vld [vmem:[%s4903_s1 + $0x2e0] sm:$0xff]  ;;  %v1629_v13 = vld [vmem:[%s4903_s1 + $0x3f0] sm:$0xff]  ;;  %1123 = vst.msk [vmem:[#allocation3 + $0x158] sm:$0xff] %vm605_vm2, %v1091_v10  ;;  %932 = vst.msk [vmem:[#allocation3 + $0x1d0] sm:$0xff] %vm605_vm2, %v1091_v10 }
 0x147   : > { %1801 = vmatprep.mubr.f32.mxu0 %v1378_v61  ;;  %2026 = vmatprep.mubr.f32.mxu1 %v1380_v62  ;;  %v1027_v16 = vld [vmem:[#allocation2 + $0x60] sm:$0xff]  ;;  %v1398_v17 = vld [vmem:[#allocation3 + $0x5b8] sm:$0xff]  ;;  %v1594_v18 = vld [vmem:[%s4903_s1 + $0x2d8] sm:$0xff] }
 0x148   : > { %2133 = vmatprep.subr.mxu0 %v3170_v3  ;;  %2354 = vmatprep.subr.mxu1 %v3170_v3  ;;  %1059 = vst.msk [vmem:[#allocation3 + $0x150] sm:$0xff] %vm605_vm2, %v1027_v16  ;;  %v963_v19 = vld [vmem:[#allocation2 + $0x52] sm:$0xff]  ;;  %v1092_v20 = vld [vmem:[#allocation2 + $0x69] sm:$0xff]  ;;  %v1397_v22 = vld [vmem:[#allocation3 + $0x5b0] sm:$0xff] }
 0x149   : > { %2134 = vmatpush2.msra.mxu0 %v1596_v2  ;;  %2355 = vmatpush2.msra.mxu1 %v1630_v4  ;;  %v1395_v21 = vld [vmem:[#allocation3 + $0x5a0] sm:$0xff]  ;;  %v1628_v23 = vld [vmem:[%s4903_s1 + $0x3e8] sm:$0xff]  ;;  %995 = vst.msk [vmem:[#allocation3 + $0x190] sm:$0xff] %vm605_vm2, %v963_v19  ;;  %1124 = vst.msk [vmem:[#allocation3 + $0x1a0] sm:$0xff] %vm605_vm2, %v1092_v20 }
 0x14a   : > { %1802 = vmatmul.mubr.f32.gmra.mxu0 %v1377_v5  ;;  %2027 = vmatmul.mubr.f32.gmra.mxu1 %v1379_v6  ;;  %933 = vst.msk [vmem:[#allocation3 + $0x218] sm:$0xff] %vm605_vm2, %v1092_v20  ;;  %v1028_v24 = vld [vmem:[#allocation2 + $0x68] sm:$0xff]  ;;  %v1093_v26 = vld [vmem:[#allocation2 + $0x79] sm:$0xff]  ;;  %v1407_v28 = vld [vmem:[#allocation3 + $0x600] sm:$0xff] }
 0x14b   : > { %1806 = vmatprep.mubr.f32.mxu0 %v1387_v8  ;;  %2031 = vmatprep.mubr.f32.mxu1 %v1389_v9  ;;  %v964_v25 = vld [vmem:[#allocation2 + $0x62] sm:$0xff]  ;;  %1060 = vst.msk [vmem:[#allocation3 + $0x198] sm:$0xff] %vm605_vm2, %v1028_v24  ;;  %1125 = vst.msk [vmem:[#allocation3 + $0x1e8] sm:$0xff] %vm605_vm2, %v1093_v26  ;;  %v1029_v29 = vld [vmem:[#allocation2 + $0x78] sm:$0xff] }
 0x14c   : > { %2135 = vmatprep.subr.mxu0 %v3170_v3  ;;  %2356 = vmatprep.subr.mxu1 %v3170_v3  ;;  %v1405_v27 = vld [vmem:[#allocation3 + $0x5f0] sm:$0xff]  ;;  %996 = vst.msk [vmem:[#allocation3 + $0x1d8] sm:$0xff] %vm605_vm2, %v964_v25  ;;  %934 = vst.msk [vmem:[#allocation3 + $0x260] sm:$0xff] %vm605_vm2, %v1093_v26  ;;  %v965_v30 = vld [vmem:[#allocation2 + $0x6a] sm:$0xff] }
 0x14d   : > { %2136 = vmatpush2.msra.mxu0 %v1595_v12  ;;  %2357 = vmatpush2.msra.mxu1 %v1629_v13  ;;  %1061 = vst.msk [vmem:[#allocation3 + $0x1e0] sm:$0xff] %vm605_vm2, %v1029_v29  ;;  %v1094_v31 = vld [vmem:[#allocation2 + $0x81] sm:$0xff]  ;;  %v1404_v33 = vld [vmem:[#allocation3 + $0x5e8] sm:$0xff]  ;;  %v1593_v34 = vld [vmem:[%s4903_s1 + $0x2d0] sm:$0xff] }
 0x14e   : > { %1807 = vmatmul.mubr.f32.gmra.mxu0 %v1386_v11  ;;  %2032 = vmatmul.mubr.f32.gmra.mxu1 %v1388_v14  ;;  %v1030_v32 = vld [vmem:[#allocation2 + $0x80] sm:$0xff]  ;;  %997 = vst.msk [vmem:[#allocation3 + $0x220] sm:$0xff] %vm605_vm2, %v965_v30  ;;  %1126 = vst.msk [vmem:[#allocation3 + $0x230] sm:$0xff] %vm605_vm2, %v1094_v31  ;;  %v1095_v37 = vld [vmem:[#allocation2 + $0x91] sm:$0xff] }
 0x14f   : > { %1811 = vmatprep.mubr.f32.mxu0 %v1396_v15  ;;  %2036 = vmatprep.mubr.f32.mxu1 %v1398_v17  ;;  %1062 = vst.msk [vmem:[#allocation3 + $0x228] sm:$0xff] %vm605_vm2, %v1030_v32  ;;  %v966_v35 = vld [vmem:[#allocation2 + $0x7a] sm:$0xff]  ;;  %935 = vst.msk [vmem:[#allocation3 + $0x2a8] sm:$0xff] %vm605_vm2, %v1094_v31  ;;  %v1031_v38 = vld [vmem:[#allocation2 + $0x90] sm:$0xff] }
 0x150   : > { %2137 = vmatprep.subr.mxu0 %v3170_v3  ;;  %2358 = vmatprep.subr.mxu1 %v3170_v3  ;;  %v1627_v36 = vld [vmem:[%s4903_s1 + $0x3e0] sm:$0xff]  ;;  %998 = vst.msk [vmem:[#allocation3 + $0x268] sm:$0xff] %vm605_vm2, %v966_v35  ;;  %v1406_v39 = vld [vmem:[#allocation3 + $0x5f8] sm:$0xff]  ;;  %1127 = vst.msk [vmem:[#allocation3 + $0x278] sm:$0xff] %vm605_vm2, %v1095_v37 }
 0x151   : > { %2138 = vmatpush2.msra.mxu0 %v1594_v18  ;;  %2359 = vmatpush2.msra.mxu1 %v1628_v23  ;;  %1063 = vst.msk [vmem:[#allocation3 + $0x270] sm:$0xff] %vm605_vm2, %v1031_v38  ;;  %v967_v40 = vld [vmem:[#allocation2 + $0x82] sm:$0xff]  ;;  %v1096_v41 = vld [vmem:[#allocation2 + $0x99] sm:$0xff]  ;;  %936 = vst.msk [vmem:[#allocation3 + $0x2f0] sm:$0xff] %vm605_vm2, %v1095_v37 }
 0x152   : > { %1812 = vmatmul.mubr.f32.gmra.mxu0 %v1395_v21  ;;  %2037 = vmatmul.mubr.f32.gmra.mxu1 %v1397_v22  ;;  %v1414_v42 = vld [vmem:[#allocation3 + $0x638] sm:$0xff]  ;;  %v1416_v43 = vld [vmem:[#allocation3 + $0x648] sm:$0xff]  ;;  %999 = vst.msk [vmem:[#allocation3 + $0x2b0] sm:$0xff] %vm605_vm2, %v967_v40  ;;  %1128 = vst.msk [vmem:[#allocation3 + $0x2c0] sm:$0xff] %vm605_vm2, %v1096_v41 }
 0x153   : > { %1816 = vmatprep.mubr.f32.mxu0 %v1405_v27  ;;  %2041 = vmatprep.mubr.f32.mxu1 %v1407_v28  ;;  %937 = vst.msk [vmem:[#allocation3 + $0x338] sm:$0xff] %vm605_vm2, %v1096_v41  ;;  %v1032_v44 = vld [vmem:[#allocation2 + $0x98] sm:$0xff]  ;;  %v1097_v46 = vld [vmem:[#allocation2 + $0xa9] sm:$0xff]  ;;  %v1413_v49 = vld [vmem:[#allocation3 + $0x630] sm:$0xff] }
 0x154   : > { %2139 = vmatprep.subr.mxu0 %v3170_v3  ;;  %2360 = vmatprep.subr.mxu1 %v3170_v3  ;;  %v968_v45 = vld [vmem:[#allocation2 + $0x92] sm:$0xff]  ;;  %v1592_v47 = vld [vmem:[%s4903_s1 + $0x2c8] sm:$0xff]  ;;  %1064 = vst.msk [vmem:[#allocation3 + $0x2b8] sm:$0xff] %vm605_vm2, %v1032_v44  ;;  %1129 = vst.msk [vmem:[#allocation3 + $0x308] sm:$0xff] %vm605_vm2, %v1097_v46 }
 0x155   : > { %2140 = vmatpush2.msra.mxu0 %v1593_v34  ;;  %2361 = vmatpush2.msra.mxu1 %v1627_v36  ;;  %v1626_v48 = vld [vmem:[%s4903_s1 + $0x3d8] sm:$0xff]  ;;  %1000 = vst.msk [vmem:[#allocation3 + $0x2f8] sm:$0xff] %vm605_vm2, %v968_v45  ;;  %938 = vst.msk [vmem:[#allocation3 + $0x380] sm:$0xff] %vm605_vm2, %v1097_v46  ;;  %v1415_v50 = vld [vmem:[#allocation3 + $0x640] sm:$0xff] }
 0x156   : > { %1817 = vmatmul.mubr.f32.gmra.mxu0 %v1404_v33  ;;  %2042 = vmatmul.mubr.f32.gmra.mxu1 %v1406_v39  ;;  %v1033_v51 = vld [vmem:[#allocation2 + $0xa8] sm:$0xff]  ;;  %v1423_v52 = vld [vmem:[#allocation3 + $0x680] sm:$0xff]  ;;  %v1425_v53 = vld [vmem:[#allocation3 + $0x690] sm:$0xff] }
 0x157   : > { %1821 = vmatprep.mubr.f32.mxu0 %v1414_v42  ;;  %2046 = vmatprep.mubr.f32.mxu1 %v1416_v43  ;;  %1065 = vst.msk [vmem:[#allocation3 + $0x300] sm:$0xff] %vm605_vm2, %v1033_v51  ;;  %v1422_v54 = vld [vmem:[#allocation3 + $0x678] sm:$0xff]  ;;  %v1591_v55 = vld [vmem:[%s4903_s1 + $0x2c0] sm:$0xff]  ;;  %v1625_v56 = vld [vmem:[%s4903_s1 + $0x3d0] sm:$0xff] }
 0x158   : > { %2141 = vmatprep.subr.mxu0 %v3170_v3  ;;  %2362 = vmatprep.subr.mxu1 %v3170_v3  ;;  %v1424_v57 = vld [vmem:[#allocation3 + $0x688] sm:$0xff]  ;;  %v1434_v60 = vld [vmem:[#allocation3 + $0x6d8] sm:$0xff]  ;;  %v1034_v62 = vld [vmem:[#allocation2 + $0xb0] sm:$0xff] }
 0x159   : > { %2142 = vmatpush2.msra.mxu0 %v1592_v47  ;;  %2363 = vmatpush2.msra.mxu1 %v1626_v48  ;;  %v1432_v58 = vld [vmem:[#allocation3 + $0x6c8] sm:$0xff]  ;;  %v1431_v63 = vld [vmem:[#allocation3 + $0x6c0] sm:$0xff]  ;;  %v1624_v1 = vld [vmem:[%s4903_s1 + $0x3c8] sm:$0xff]  ;;  %1066 = vst.msk [vmem:[#allocation3 + $0x348] sm:$0xff] %vm605_vm2, %v1034_v62 }
 0x15a   : > { %1822 = vmatmul.mubr.f32.gmra.mxu0 %v1413_v49  ;;  %2047 = vmatmul.mubr.f32.gmra.mxu1 %v1415_v50  ;;  %v969_v59 = vld [vmem:[#allocation2 + $0x9a] sm:$0xff]  ;;  %v1098_v61 = vld [vmem:[#allocation2 + $0xb1] sm:$0xff]  ;;  %v1100_v11 = vld [vmem:[#allocation2 + $0xc9] sm:$0xff] }
 0x15b   : > { %1826 = vmatprep.mubr.f32.mxu0 %v1423_v52  ;;  %2051 = vmatprep.mubr.f32.mxu1 %v1425_v53  ;;  %1001 = vst.msk [vmem:[#allocation3 + $0x340] sm:$0xff] %vm605_vm2, %v969_v59  ;;  %v1590_v0 = vld [vmem:[%s4903_s1 + $0x2b8] sm:$0xff]  ;;  %1130 = vst.msk [vmem:[#allocation3 + $0x350] sm:$0xff] %vm605_vm2, %v1098_v61  ;;  %v1433_v2 = vld [vmem:[#allocation3 + $0x6d0] sm:$0xff] }
 0x15c   : > { %2143 = vmatprep.subr.mxu0 %v3170_v3  ;;  %2364 = vmatprep.subr.mxu1 %v3170_v3  ;;  %939 = vst.msk [vmem:[#allocation3 + $0x3c8] sm:$0xff] %vm605_vm2, %v1098_v61  ;;  %v970_v4 = vld [vmem:[#allocation2 + $0xaa] sm:$0xff]  ;;  %v1099_v5 = vld [vmem:[#allocation2 + $0xc1] sm:$0xff]  ;;  %v971_v10 = vld [vmem:[#allocation2 + $0xb2] sm:$0xff] }
 0x15d   : > { %2144 = vmatpush2.msra.mxu0 %v1591_v55  ;;  %2365 = vmatpush2.msra.mxu1 %v1625_v56  ;;  %v1441_v6 = vld [vmem:[#allocation3 + $0x710] sm:$0xff]  ;;  %v1443_v7 = vld [vmem:[#allocation3 + $0x720] sm:$0xff]  ;;  %1002 = vst.msk [vmem:[#allocation3 + $0x388] sm:$0xff] %vm605_vm2, %v970_v4  ;;  %1131 = vst.msk [vmem:[#allocation3 + $0x398] sm:$0xff] %vm605_vm2, %v1099_v5 }
 0x15e   : > { %1827 = vmatmul.mubr.f32.gmra.mxu0 %v1422_v54  ;;  %2052 = vmatmul.mubr.f32.gmra.mxu1 %v1424_v57  ;;  %v1035_v8 = vld [vmem:[#allocation2 + $0xc0] sm:$0xff]  ;;  %940 = vst.msk [vmem:[#allocation3 + $0x410] sm:$0xff] %vm605_vm2, %v1099_v5  ;;  %v1589_v9 = vld [vmem:[%s4903_s1 + $0x2b0] sm:$0xff]  ;;  %v1036_v12 = vld [vmem:[#allocation2 + $0xc8] sm:$0xff] }
 0x15f   : > { %1831 = vmatprep.mubr.f32.mxu0 %v1432_v58  ;;  %2056 = vmatprep.mubr.f32.mxu1 %v1434_v60  ;;  %1067 = vst.msk [vmem:[#allocation3 + $0x390] sm:$0xff] %vm605_vm2, %v1035_v8  ;;  %v1440_v13 = vld [vmem:[#allocation3 + $0x708] sm:$0xff]  ;;  %1003 = vst.msk [vmem:[#allocation3 + $0x3d0] sm:$0xff] %vm605_vm2, %v971_v10  ;;  %v972_v14 = vld [vmem:[#allocation2 + $0xc2] sm:$0xff] }
 0x160   : > { %2145 = vmatprep.subr.mxu0 %v3170_v3  ;;  %2366 = vmatprep.subr.mxu1 %v3170_v3  ;;  %1132 = vst.msk [vmem:[#allocation3 + $0x3e0] sm:$0xff] %vm605_vm2, %v1100_v11  ;;  %1068 = vst.msk [vmem:[#allocation3 + $0x3d8] sm:$0xff] %vm605_vm2, %v1036_v12  ;;  %v1101_v15 = vld [vmem:[#allocation2 + $0xd9] sm:$0xff]  ;;  %v973_v18 = vld [vmem:[#allocation2 + $0xca] sm:$0xff] }
 0x161   : > { %2146 = vmatpush2.msra.mxu0 %v1590_v0  ;;  %2367 = vmatpush2.msra.mxu1 %v1624_v1  ;;  %v1037_v16 = vld [vmem:[#allocation2 + $0xd8] sm:$0xff]  ;;  %941 = vst.msk [vmem:[#allocation3 + $0x458] sm:$0xff] %vm605_vm2, %v1100_v11  ;;  %v1623_v17 = vld [vmem:[%s4903_s1 + $0x3c0] sm:$0xff]  ;;  %1004 = vst.msk [vmem:[#allocation3 + $0x418] sm:$0xff] %vm605_vm2, %v972_v14 }
 0x162   : > { %1832 = vmatmul.mubr.f32.gmra.mxu0 %v1431_v63  ;;  %2057 = vmatmul.mubr.f32.gmra.mxu1 %v1433_v2  ;;  %1133 = vst.msk [vmem:[#allocation3 + $0x428] sm:$0xff] %vm605_vm2, %v1101_v15  ;;  %1069 = vst.msk [vmem:[#allocation3 + $0x420] sm:$0xff] %vm605_vm2, %v1037_v16  ;;  %v1102_v19 = vld [vmem:[#allocation2 + $0xe1] sm:$0xff]  ;;  %v1452_v24 = vld [vmem:[#allocation3 + $0x768] sm:$0xff] }
 0x163   : > { %942 = vst.msk [vmem:[#allocation3 + $0x4a0] sm:$0xff] %vm605_vm2, %v1101_v15  ;;  %1836 = vmatprep.mubr.f32.mxu0 %v1441_v6  ;;  %2061 = vmatprep.mubr.f32.mxu1 %v1443_v7  ;;  %v1442_v20 = vld [vmem:[#allocation3 + $0x718] sm:$0xff]  ;;  %1005 = vst.msk [vmem:[#allocation3 + $0x460] sm:$0xff] %vm605_vm2, %v973_v18  ;;  %v1038_v21 = vld [vmem:[#allocation2 + $0xe0] sm:$0xff] }
 0x164   : > { %1134 = vst.msk [vmem:[#allocation3 + $0x470] sm:$0xff] %vm605_vm2, %v1102_v19  ;;  %v974_v22 = vld [vmem:[#allocation2 + $0xda] sm:$0xff]  ;;  %943 = vst.msk [vmem:[#allocation3 + $0x4e8] sm:$0xff] %vm605_vm2, %v1102_v19  ;;  %2147 = vmatprep.subr.mxu0 %v3170_v3  ;;  %v1450_v23 = vld [vmem:[#allocation3 + $0x758] sm:$0xff]  ;;  %2368 = vmatprep.subr.mxu1 %v3170_v3 }
 0x165   : > { %1070 = vst.msk [vmem:[#allocation3 + $0x468] sm:$0xff] %vm605_vm2, %v1038_v21  ;;  %1006 = vst.msk [vmem:[#allocation3 + $0x4a8] sm:$0xff] %vm605_vm2, %v974_v22  ;;  %2148 = vmatpush2.msra.mxu0 %v1589_v9  ;;  %2369 = vmatpush2.msra.mxu1 %v1623_v17  ;;  %v1103_v25 = vld [vmem:[#allocation2 + $0xf1] sm:$0xff]  ;;  %v1449_v27 = vld [vmem:[#allocation3 + $0x750] sm:$0xff] }
 0x166   : > { %v1039_v26 = vld [vmem:[#allocation2 + $0xf0] sm:$0xff]  ;;  %1837 = vmatmul.mubr.f32.gmra.mxu0 %v1440_v13  ;;  %2062 = vmatmul.mubr.f32.gmra.mxu1 %v1442_v20  ;;  %v1588_v28 = vld [vmem:[%s4903_s1 + $0x2a8] sm:$0xff]  ;;  %v1622_v29 = vld [vmem:[%s4903_s1 + $0x3b8] sm:$0xff]  ;;  %1135 = vst.msk [vmem:[#allocation3 + $0x4b8] sm:$0xff] %vm605_vm2, %v1103_v25 }
 0x167   : > { %1071 = vst.msk [vmem:[#allocation3 + $0x4b0] sm:$0xff] %vm605_vm2, %v1039_v26  ;;  %944 = vst.msk [vmem:[#allocation3 + $0x530] sm:$0xff] %vm605_vm2, %v1103_v25  ;;  %1841 = vmatprep.mubr.f32.mxu0 %v1450_v23  ;;  %2066 = vmatprep.mubr.f32.mxu1 %v1452_v24  ;;  %v1451_v30 = vld [vmem:[#allocation3 + $0x760] sm:$0xff]  ;;  %v975_v31 = vld [vmem:[#allocation2 + $0xe2] sm:$0xff] }
 0x168   : > { %v1104_v32 = vld [vmem:[#allocation2 + $0xf9] sm:$0xff]  ;;  %2149 = vmatprep.subr.mxu0 %v3170_v3  ;;  %v1459_v33 = vld [vmem:[#allocation3 + $0x7a0] sm:$0xff]  ;;  %2370 = vmatprep.subr.mxu1 %v3170_v3  ;;  %1007 = vst.msk [vmem:[#allocation3 + $0x4f0] sm:$0xff] %vm605_vm2, %v975_v31  ;;  %v1458_v37 = vld [vmem:[#allocation3 + $0x798] sm:$0xff] }
 0x169   : > { %v1461_v34 = vld [vmem:[#allocation3 + $0x7b0] sm:$0xff]  ;;  %1136 = vst.msk [vmem:[#allocation3 + $0x500] sm:$0xff] %vm605_vm2, %v1104_v32  ;;  %945 = vst.msk [vmem:[#allocation3 + $0x578] sm:$0xff] %vm605_vm2, %v1104_v32  ;;  %2150 = vmatpush2.msra.mxu0 %v1588_v28  ;;  %2371 = vmatpush2.msra.mxu1 %v1622_v29  ;;  %v1621_v36 = vld [vmem:[%s4903_s1 + $0x3b0] sm:$0xff] }
 0x16a   : > { %1842 = vmatmul.mubr.f32.gmra.mxu0 %v1449_v27  ;;  %2067 = vmatmul.mubr.f32.gmra.mxu1 %v1451_v30  ;;  %v1587_v35 = vld [vmem:[%s4903_s1 + $0x2a0] sm:$0xff]  ;;  %v1460_v38 = vld [vmem:[#allocation3 + $0x7a8] sm:$0xff]  ;;  %v1470_v40 = vld [vmem:[#allocation3 + $0x7f8] sm:$0xff] }
 0x16b   : > { %1846 = vmatprep.mubr.f32.mxu0 %v1459_v33  ;;  %2071 = vmatprep.mubr.f32.mxu1 %v1461_v34  ;;  %v1468_v39 = vld [vmem:[#allocation3 + $0x7e8] sm:$0xff]  ;;  %v1105_v44 = vld [vmem:[#allocation2 + $0x109] sm:$0xff]  ;;  %v1469_v48 = vld [vmem:[#allocation3 + $0x7f0] sm:$0xff] }
 0x16c   : > { %2151 = vmatprep.subr.mxu0 %v3170_v3  ;;  %2372 = vmatprep.subr.mxu1 %v3170_v3  ;;  %v1040_v41 = vld [vmem:[#allocation2 + $0xf8] sm:$0xff]  ;;  %v1467_v45 = vld [vmem:[#allocation3 + $0x7e0] sm:$0xff]  ;;  %v1620_v46 = vld [vmem:[%s4903_s1 + $0x3a8] sm:$0xff]  ;;  %1137 = vst.msk [vmem:[#allocation3 + $0x548] sm:$0xff] %vm605_vm2, %v1105_v44 }
 0x16d   : > { %v976_v42 = vld [vmem:[#allocation2 + $0xf2] sm:$0xff]  ;;  %2152 = vmatpush2.msra.mxu0 %v1587_v35  ;;  %2373 = vmatpush2.msra.mxu1 %v1621_v36  ;;  %1072 = vst.msk [vmem:[#allocation3 + $0x4f8] sm:$0xff] %vm605_vm2, %v1040_v41  ;;  %v1041_v47 = vld [vmem:[#allocation2 + $0x108] sm:$0xff]  ;;  %946 = vst.msk [vmem:[#allocation3 + $0x5c0] sm:$0xff] %vm605_vm2, %v1105_v44 }
 0x16e   : > { %v1586_v43 = vld [vmem:[%s4903_s1 + $0x298] sm:$0xff]  ;;  %1008 = vst.msk [vmem:[#allocation3 + $0x538] sm:$0xff] %vm605_vm2, %v976_v42  ;;  %1199 = vst.msk [vmem:[#allocation3 + $0x4c0] sm:$0xff] %vm605_vm2, %v976_v42  ;;  %1847 = vmatmul.mubr.f32.gmra.mxu0 %v1458_v37  ;;  %2072 = vmatmul.mubr.f32.gmra.mxu1 %v1460_v38  ;;  %v1477_v49 = vld [vmem:[#allocation3 + $0x830] sm:$0xff] }
 0x16f   : > { %1851 = vmatprep.mubr.f32.mxu0 %v1468_v39  ;;  %2076 = vmatprep.mubr.f32.mxu1 %v1470_v40  ;;  %1073 = vst.msk [vmem:[#allocation3 + $0x540] sm:$0xff] %vm605_vm2, %v1041_v47  ;;  %v977_v50 = vld [vmem:[#allocation2 + $0xfa] sm:$0xff]  ;;  %v1479_v51 = vld [vmem:[#allocation3 + $0x840] sm:$0xff]  ;;  %v1478_v60 = vld [vmem:[#allocation3 + $0x838] sm:$0xff] }
 0x170   : > { %2153 = vmatprep.subr.mxu0 %v3170_v3  ;;  %2374 = vmatprep.subr.mxu1 %v3170_v3  ;;  %v1585_v52 = vld [vmem:[%s4903_s1 + $0x290] sm:$0xff]  ;;  %v1619_v53 = vld [vmem:[%s4903_s1 + $0x3a0] sm:$0xff]  ;;  %1009 = vst.msk [vmem:[#allocation3 + $0x580] sm:$0xff] %vm605_vm2, %v977_v50  ;;  %1200 = vst.msk [vmem:[#allocation3 + $0x508] sm:$0xff] %vm605_vm2, %v977_v50 }
 0x171   : > { %v1106_v54 = vld [vmem:[#allocation2 + $0x111] sm:$0xff]  ;;  %2154 = vmatpush2.msra.mxu0 %v1586_v43  ;;  %2375 = vmatpush2.msra.mxu1 %v1620_v46  ;;  %v1107_v58 = vld [vmem:[#allocation2 + $0x121] sm:$0xff]  ;;  %v1108_v62 = vld [vmem:[#allocation2 + $0x129] sm:$0xff] }
 0x172   : > { %v1042_v55 = vld [vmem:[#allocation2 + $0x110] sm:$0xff]  ;;  %v1476_v56 = vld [vmem:[#allocation3 + $0x828] sm:$0xff]  ;;  %1138 = vst.msk [vmem:[#allocation3 + $0x590] sm:$0xff] %vm605_vm2, %v1106_v54  ;;  %v1043_v59 = vld [vmem:[#allocation2 + $0x120] sm:$0xff]  ;;  %1852 = vmatmul.mubr.f32.gmra.mxu0 %v1467_v45  ;;  %2077 = vmatmul.mubr.f32.gmra.mxu1 %v1469_v48 }
 0x173   : > { %1074 = vst.msk [vmem:[#allocation3 + $0x588] sm:$0xff] %vm605_vm2, %v1042_v55  ;;  %v978_v57 = vld [vmem:[#allocation2 + $0x10a] sm:$0xff]  ;;  %947 = vst.msk [vmem:[#allocation3 + $0x608] sm:$0xff] %vm605_vm2, %v1106_v54  ;;  %v979_v61 = vld [vmem:[#allocation2 + $0x112] sm:$0xff]  ;;  %1856 = vmatprep.mubr.f32.mxu0 %v1477_v49  ;;  %2081 = vmatprep.mubr.f32.mxu1 %v1479_v51 }
 0x174   : > { %1010 = vst.msk [vmem:[#allocation3 + $0x5c8] sm:$0xff] %vm605_vm2, %v978_v57  ;;  %1139 = vst.msk [vmem:[#allocation3 + $0x5d8] sm:$0xff] %vm605_vm2, %v1107_v58  ;;  %v1044_v63 = vld [vmem:[#allocation2 + $0x128] sm:$0xff]  ;;  %v1109_v1 = vld [vmem:[#allocation2 + $0x139] sm:$0xff]  ;;  %2155 = vmatprep.subr.mxu0 %v3170_v3  ;;  %2376 = vmatprep.subr.mxu1 %v3170_v3 }
 0x175   : > { %1075 = vst.msk [vmem:[#allocation3 + $0x5d0] sm:$0xff] %vm605_vm2, %v1043_v59  ;;  %948 = vst.msk [vmem:[#allocation3 + $0x650] sm:$0xff] %vm605_vm2, %v1107_v58  ;;  %v980_v0 = vld [vmem:[#allocation2 + $0x122] sm:$0xff]  ;;  %v1488_v4 = vld [vmem:[#allocation3 + $0x888] sm:$0xff]  ;;  %2156 = vmatpush2.msra.mxu0 %v1585_v52  ;;  %2377 = vmatpush2.msra.mxu1 %v1619_v53 }
 0x176   : > { %1201 = vst.msk [vmem:[#allocation3 + $0x550] sm:$0xff] %vm605_vm2, %v978_v57  ;;  %1011 = vst.msk [vmem:[#allocation3 + $0x610] sm:$0xff] %vm605_vm2, %v979_v61  ;;  %v1486_v2 = vld [vmem:[#allocation3 + $0x878] sm:$0xff]  ;;  %v1045_v5 = vld [vmem:[#allocation2 + $0x138] sm:$0xff]  ;;  %1857 = vmatmul.mubr.f32.gmra.mxu0 %v1476_v56  ;;  %2082 = vmatmul.mubr.f32.gmra.mxu1 %v1478_v60 }
 0x177   : > { %1140 = vst.msk [vmem:[#allocation3 + $0x620] sm:$0xff] %vm605_vm2, %v1108_v62  ;;  %949 = vst.msk [vmem:[#allocation3 + $0x698] sm:$0xff] %vm605_vm2, %v1108_v62  ;;  %v1584_v6 = vld [vmem:[%s4903_s1 + $0x288] sm:$0xff]  ;;  %v1618_v7 = vld [vmem:[%s4903_s1 + $0x398] sm:$0xff]  ;;  %1861 = vmatprep.mubr.f32.mxu0 %v1486_v2  ;;  %2086 = vmatprep.mubr.f32.mxu1 %v1488_v4 }
 0x178   : > { %1202 = vst.msk [vmem:[#allocation3 + $0x598] sm:$0xff] %vm605_vm2, %v979_v61  ;;  %1076 = vst.msk [vmem:[#allocation3 + $0x618] sm:$0xff] %vm605_vm2, %v1044_v63  ;;  %v1485_v8 = vld [vmem:[#allocation3 + $0x870] sm:$0xff]  ;;  %v981_v9 = vld [vmem:[#allocation2 + $0x12a] sm:$0xff]  ;;  %2157 = vmatprep.subr.mxu0 %v3170_v3  ;;  %2378 = vmatprep.subr.mxu1 %v3170_v3 }
 0x179   : > { %1012 = vst.msk [vmem:[#allocation3 + $0x658] sm:$0xff] %vm605_vm2, %v980_v0  ;;  %1141 = vst.msk [vmem:[#allocation3 + $0x668] sm:$0xff] %vm605_vm2, %v1109_v1  ;;  %v1110_v10 = vld [vmem:[#allocation2 + $0x141] sm:$0xff]  ;;  %v1487_v11 = vld [vmem:[#allocation3 + $0x880] sm:$0xff]  ;;  %2158 = vmatpush2.msra.mxu0 %v1584_v6  ;;  %2379 = vmatpush2.msra.mxu1 %v1618_v7 }
 0x17a   : > { %950 = vst.msk [vmem:[#allocation3 + $0x6e0] sm:$0xff] %vm605_vm2, %v1109_v1  ;;  %1203 = vst.msk [vmem:[#allocation3 + $0x5e0] sm:$0xff] %vm605_vm2, %v980_v0  ;;  %v1046_v12 = vld [vmem:[#allocation2 + $0x140] sm:$0xff]  ;;  %v1495_v14 = vld [vmem:[#allocation3 + $0x8c0] sm:$0xff]  ;;  %1862 = vmatmul.mubr.f32.gmra.mxu0 %v1485_v8  ;;  %2087 = vmatmul.mubr.f32.gmra.mxu1 %v1487_v11 }
 0x17b   : > { %1077 = vst.msk [vmem:[#allocation3 + $0x660] sm:$0xff] %vm605_vm2, %v1045_v5  ;;  %1013 = vst.msk [vmem:[#allocation3 + $0x6a0] sm:$0xff] %vm605_vm2, %v981_v9  ;;  %v982_v13 = vld [vmem:[#allocation2 + $0x13a] sm:$0xff]  ;;  %v1617_v16 = vld [vmem:[%s4903_s1 + $0x390] sm:$0xff]  ;;  %2380 = vmatprep.subr.mxu1 %v3170_v3  ;;  %1866 = vmatprep.mubr.f32.mxu0 %v1495_v14 }
 0x17c   : > { %1142 = vst.msk [vmem:[#allocation3 + $0x6b0] sm:$0xff] %vm605_vm2, %v1110_v10  ;;  %951 = vst.msk [vmem:[#allocation3 + $0x728] sm:$0xff] %vm605_vm2, %v1110_v10  ;;  %v1497_v15 = vld [vmem:[#allocation3 + $0x8d0] sm:$0xff]  ;;  %v1494_v17 = vld [vmem:[#allocation3 + $0x8b8] sm:$0xff]  ;;  %2381 = vmatpush2.msra.mxu1 %v1617_v16  ;;  %2159 = vmatprep.subr.mxu0 %v3170_v3 }
 0x17d   : > { %1204 = vst.msk [vmem:[#allocation3 + $0x628] sm:$0xff] %vm605_vm2, %v981_v9  ;;  %1078 = vst.msk [vmem:[#allocation3 + $0x6a8] sm:$0xff] %vm605_vm2, %v1046_v12  ;;  %v1496_v18 = vld [vmem:[#allocation3 + $0x8c8] sm:$0xff]  ;;  %2091 = vmatprep.mubr.f32.mxu1 %v1497_v15  ;;  %v1583_v19 = vld [vmem:[%s4903_s1 + $0x280] sm:$0xff]  ;;  %2382 = vmatprep.subr.mxu1 %v3170_v3 }
 0x17e   : > { %1014 = vst.msk [vmem:[#allocation3 + $0x6e8] sm:$0xff] %vm605_vm2, %v982_v13  ;;  %1205 = vst.msk [vmem:[#allocation3 + $0x670] sm:$0xff] %vm605_vm2, %v982_v13  ;;  %v1616_v20 = vld [vmem:[%s4903_s1 + $0x388] sm:$0xff]  ;;  %v1111_v21 = vld [vmem:[#allocation2 + $0x151] sm:$0xff]  ;;  %1867 = vmatmul.mubr.f32.gmra.mxu0 %v1494_v17  ;;  %2092 = vmatmul.mubr.f32.gmra.mxu1 %v1496_v18 }
 0x17f   : > { %v1220_v22 = vld [vmem:[#allocation3 + $0x28] sm:$0xff]  ;;  %v1615_v23 = vld [vmem:[%s4903_s1 + $0x380] sm:$0xff]  ;;  %1143 = vst.msk [vmem:[#allocation3 + $0x6f8] sm:$0xff] %vm605_vm2, %v1111_v21  ;;  %v1047_v24 = vld [vmem:[#allocation2 + $0x150] sm:$0xff]  ;;  %2160 = vmatpush2.msra.mxu0 %v1583_v19  ;;  %2383 = vmatpush2.msra.mxu1 %v1616_v20 }
 0x180   : > { %952 = vst.msk [vmem:[#allocation3 + $0x770] sm:$0xff] %vm605_vm2, %v1111_v21  ;;  %v1222_v25 = vld [vmem:[#allocation3 + $0x38] sm:$0xff]  ;;  %v1219_v26 = vld [vmem:[#allocation3 + $0x20] sm:$0xff]  ;;  %v4433_v27 = vld [vmem:[%s4903_s1 + $0x478] sm:$0xff]  ;;  %2384 = vmatprep.subr.mxu1 %v3170_v3  ;;  %2161 = vmatprep.mubr.f32.mxu0 %v1220_v22 }
 0x181   : > { %1079 = vst.msk [vmem:[#allocation3 + $0x6f0] sm:$0xff] %vm605_vm2, %v1047_v24  ;;  %v983_v28 = vld [vmem:[#allocation2 + $0x142] sm:$0xff]  ;;  %v1112_v31 = vld [vmem:[#allocation2 + $0x159] sm:$0xff]  ;;  %v1231_v32 = vld [vmem:[#allocation3 + $0x80] sm:$0xff]  ;;  %2385 = vmatpush2.msra.mxu1 %v1615_v23  ;;  %2386 = vmatprep.mubr.f32.mxu1 %v1222_v25 }
 0x182   : > { %v1221_v29 = vld [vmem:[#allocation3 + $0x30] sm:$0xff]  ;;  %1015 = vst.msk [vmem:[#allocation3 + $0x730] sm:$0xff] %vm605_vm2, %v983_v28  ;;  %1206 = vst.msk [vmem:[#allocation3 + $0x6b8] sm:$0xff] %vm605_vm2, %v983_v28  ;;  %v4442_v33 = vld [vmem:[%s4903_s1 + $0x470] sm:$0xff]  ;;  %2162 = vmatmul.mubr.f32.vlgmr.msra.gmra.mxu0 %v1219_v26  ;;  %3039 = vmatprep.subr.mxu0 %v4433_v27 }
 0x183   : > { %v1229_v30 = vld [vmem:[#allocation3 + $0x70] sm:$0xff]  ;;  %1144 = vst.msk [vmem:[#allocation3 + $0x740] sm:$0xff] %vm605_vm2, %v1112_v31  ;;  %v1048_v34 = vld [vmem:[#allocation2 + $0x158] sm:$0xff]  ;;  %953 = vst.msk [vmem:[#allocation3 + $0x7b8] sm:$0xff] %vm605_vm2, %v1112_v31  ;;  %2387 = vmatmul.mubr.f32.vlgmr.msra.gmra.mxu1 %v1221_v29  ;;  %3040 = vmatpush3.msra.mxu0 %v4433_v27 }
 0x184   : > { %v984_v35 = vld [vmem:[#allocation2 + $0x152] sm:$0xff]  ;;  %v1230_v37 = vld [vmem:[#allocation3 + $0x78] sm:$0xff]  ;;  %1080 = vst.msk [vmem:[#allocation3 + $0x738] sm:$0xff] %vm605_vm2, %v1048_v34  ;;  %v985_v39 = vld [vmem:[#allocation2 + $0x15a] sm:$0xff]  ;;  %2166 = vmatprep.mubr.f32.mxu0 %v1229_v30  ;;  %2391 = vmatprep.mubr.f32.mxu1 %v1231_v32 }
 0x185   : > { %v1228_v36 = vld [vmem:[#allocation3 + $0x68] sm:$0xff]  ;;  %1016 = vst.msk [vmem:[#allocation3 + $0x778] sm:$0xff] %vm605_vm2, %v984_v35  ;;  %v1113_v3 = vld [vmem:[#allocation2 + $0x169] sm:$0xff]  ;;  %1207 = vst.msk [vmem:[#allocation3 + $0x700] sm:$0xff] %vm605_vm2, %v984_v35  ;;  %3041 = vmatprep.subr.mxu0 %v4442_v33  ;;  %3119 = vmatprep.subr.mxu1 %v4433_v27 }
 0x186   : > { %v1049_v38 = vld [vmem:[#allocation2 + $0x168] sm:$0xff]  ;;  %1145 = vst.msk [vmem:[#allocation3 + $0x788] sm:$0xff] %vm605_vm2, %v1113_v3  ;;  %v1114_v40 = vld [vmem:[#allocation2 + $0x171] sm:$0xff]  ;;  %954 = vst.msk [vmem:[#allocation3 + $0x800] sm:$0xff] %vm605_vm2, %v1113_v3  ;;  %2167 = vmatmul.mubr.f32.gmra.mxu0 %v1228_v36  ;;  %3135 = vmatpush3.msra.mxu1 %v4433_v27 }
 0x187   : > { %1081 = vst.msk [vmem:[#allocation3 + $0x780] sm:$0xff] %vm605_vm2, %v1049_v38  ;;  %v1050_v41 = vld [vmem:[#allocation2 + $0x170] sm:$0xff]  ;;  %1017 = vst.msk [vmem:[#allocation3 + $0x7c0] sm:$0xff] %vm605_vm2, %v985_v39  ;;  %v1115_v43 = vld [vmem:[#allocation2 + $0x181] sm:$0xff]  ;;  %2392 = vmatmul.mubr.f32.gmra.mxu1 %v1230_v37  ;;  %3042 = vmatpush3.msra.mxu0 %v4442_v33 }
 0x188   : > { %1146 = vst.msk [vmem:[#allocation3 + $0x7d0] sm:$0xff] %vm605_vm2, %v1114_v40  ;;  %1082 = vst.msk [vmem:[#allocation3 + $0x7c8] sm:$0xff] %vm605_vm2, %v1050_v41  ;;  %v986_v42 = vld [vmem:[#allocation2 + $0x16a] sm:$0xff]  ;;  %v1051_v44 = vld [vmem:[#allocation2 + $0x180] sm:$0xff]  ;;  %3120 = vmatprep.subr.mxu1 %v4442_v33 }
 0x189   : > { %955 = vst.msk [vmem:[#allocation3 + $0x848] sm:$0xff] %vm605_vm2, %v1114_v40  ;;  %1208 = vst.msk [vmem:[#allocation3 + $0x748] sm:$0xff] %vm605_vm2, %v985_v39  ;;  %v1238_v45 = vld [vmem:[#allocation3 + $0xb8] sm:$0xff]  ;;  %v1240_v46 = vld [vmem:[#allocation3 + $0xc8] sm:$0xff]  ;;  %3136 = vmatpush3.msra.mxu1 %v4442_v33 }
 0x18a   : > { %1018 = vst.msk [vmem:[#allocation3 + $0x808] sm:$0xff] %vm605_vm2, %v986_v42  ;;  %1147 = vst.msk [vmem:[#allocation3 + $0x818] sm:$0xff] %vm605_vm2, %v1115_v43  ;;  %v987_v47 = vld [vmem:[#allocation2 + $0x172] sm:$0xff]  ;;  %v1116_v48 = vld [vmem:[#allocation2 + $0x189] sm:$0xff]  ;;  %2171 = vmatprep.mubr.f32.mxu0 %v1238_v45  ;;  %2396 = vmatprep.mubr.f32.mxu1 %v1240_v46 }
 0x18b   : > { %1083 = vst.msk [vmem:[#allocation3 + $0x810] sm:$0xff] %vm605_vm2, %v1051_v44  ;;  %956 = vst.msk [vmem:[#allocation3 + $0x890] sm:$0xff] %vm605_vm2, %v1115_v43  ;;  %v1644_v49 = vld [vmem:[%s4903_s1 + $0x468] sm:$0xff]  ;;  %v1237_v52 = vld [vmem:[#allocation3 + $0xb0] sm:$0xff] }
 0x18c   : > { %1209 = vst.msk [vmem:[#allocation3 + $0x790] sm:$0xff] %vm605_vm2, %v986_v42  ;;  %1019 = vst.msk [vmem:[#allocation3 + $0x850] sm:$0xff] %vm605_vm2, %v987_v47  ;;  %v1052_v50 = vld [vmem:[#allocation2 + $0x188] sm:$0xff]  ;;  %v1239_v53 = vld [vmem:[#allocation3 + $0xc0] sm:$0xff]  ;;  %3043 = vmatprep.subr.mxu0 %v1644_v49  ;;  %2172 = vmatmul.mubr.f32.gmra.mxu0 %v1237_v52 }
 0x18d   : > { %1148 = vst.msk [vmem:[#allocation3 + $0x860] sm:$0xff] %vm605_vm2, %v1116_v48  ;;  %v988_v51 = vld [vmem:[#allocation2 + $0x182] sm:$0xff]  ;;  %957 = vst.msk [vmem:[#allocation3 + $0x8d8] sm:$0xff] %vm605_vm2, %v1116_v48  ;;  %v1117_v54 = vld [vmem:[#allocation2 + $0x199] sm:$0xff]  ;;  %2397 = vmatmul.mubr.f32.gmra.mxu1 %v1239_v53  ;;  %3044 = vmatpush3.msra.mxu0 %v1644_v49 }
 0x18e   : > { %1210 = vst.msk [vmem:[#allocation3 + $0x7d8] sm:$0xff] %vm605_vm2, %v987_v47  ;;  %1084 = vst.msk [vmem:[#allocation3 + $0x858] sm:$0xff] %vm605_vm2, %v1052_v50  ;;  %v1247_v55 = vld [vmem:[#allocation3 + $0x100] sm:$0xff]  ;;  %v1249_v56 = vld [vmem:[#allocation3 + $0x110] sm:$0xff]  ;;  %3121 = vmatprep.subr.mxu1 %v1644_v49 }
 0x18f   : > { %1020 = vst.msk [vmem:[#allocation3 + $0x898] sm:$0xff] %vm605_vm2, %v988_v51  ;;  %1211 = vst.msk [vmem:[#allocation3 + $0x820] sm:$0xff] %vm605_vm2, %v988_v51  ;;  %v1053_v57 = vld [vmem:[#allocation2 + $0x198] sm:$0xff]  ;;  %v1643_v58 = vld [vmem:[%s4903_s1 + $0x460] sm:$0xff]  ;;  %2176 = vmatprep.mubr.f32.mxu0 %v1247_v55  ;;  %2401 = vmatprep.mubr.f32.mxu1 %v1249_v56 }
 0x190   : > { %1149 = vst.msk [vmem:[#allocation3 + $0x8a8] sm:$0xff] %vm605_vm2, %v1117_v54  ;;  %1085 = vst.msk [vmem:[#allocation3 + $0x8a0] sm:$0xff] %vm605_vm2, %v1053_v57  ;;  %v1246_v59 = vld [vmem:[#allocation3 + $0xf8] sm:$0xff]  ;;  %v1248_v60 = vld [vmem:[#allocation3 + $0x108] sm:$0xff]  ;;  %3045 = vmatprep.subr.mxu0 %v1643_v58  ;;  %3137 = vmatpush3.msra.mxu1 %v1644_v49 }
 0x191   : > { %v1256_v61 = vld [vmem:[#allocation3 + $0x148] sm:$0xff]  ;;  %v1258_v62 = vld [vmem:[#allocation3 + $0x158] sm:$0xff]  ;;  %2177 = vmatmul.mubr.f32.gmra.mxu0 %v1246_v59  ;;  %2402 = vmatmul.mubr.f32.gmra.mxu1 %v1248_v60  ;;  %v1255_v2 = vld [vmem:[#allocation3 + $0x140] sm:$0xff] }
 0x192   : > { %v989_v63 = vld [vmem:[#allocation2 + $0x18a] sm:$0xff]  ;;  %v1642_v0 = vld [vmem:[%s4903_s1 + $0x458] sm:$0xff]  ;;  %v1118_v1 = vld [vmem:[#allocation2 + $0x1a1] sm:$0xff]  ;;  %2181 = vmatprep.mubr.f32.mxu0 %v1256_v61  ;;  %2406 = vmatprep.mubr.f32.mxu1 %v1258_v62 }
 0x193   : > { %1021 = vst.msk [vmem:[#allocation3 + $0x8e0] sm:$0xff] %vm605_vm2, %v989_v63  ;;  %1212 = vst.msk [vmem:[#allocation3 + $0x868] sm:$0xff] %vm605_vm2, %v989_v63  ;;  %v1257_v4 = vld [vmem:[#allocation3 + $0x150] sm:$0xff]  ;;  %v1267_v7 = vld [vmem:[#allocation3 + $0x1a0] sm:$0xff]  ;;  %3046 = vmatpush3.msra.mxu0 %v1643_v58  ;;  %3122 = vmatprep.subr.mxu1 %v1643_v58 }
 0x194   : > { %1150 = vst.msk [vmem:[#allocation3 + $0x8f0] sm:$0xff] %vm605_vm2, %v1118_v1  ;;  %v1054_v5 = vld [vmem:[#allocation2 + $0x1a0] sm:$0xff]  ;;  %v1151_v8 = vld [vmem:[#allocation2 + $0x32] sm:$0xff]  ;;  %3047 = vmatprep.subr.mxu0 %v1642_v0  ;;  %v1153_v10 = vld [vmem:[#allocation2 + $0x4a] sm:$0xff]  ;;  %3138 = vmatpush3.msra.mxu1 %v1643_v58 }
 0x195   : > { %v1265_v6 = vld [vmem:[#allocation3 + $0x190] sm:$0xff]  ;;  %1086 = vst.msk [vmem:[#allocation3 + $0x8e8] sm:$0xff] %vm605_vm2, %v1054_v5  ;;  %1183 = vst.msk [vmem:[#allocation3 + $0x40] sm:$0xff] %vm605_vm2, %v1151_v8  ;;  %2182 = vmatmul.mubr.f32.gmra.mxu0 %v1255_v2  ;;  %2407 = vmatmul.mubr.f32.gmra.mxu1 %v1257_v4  ;;  %v1264_v11 = vld [vmem:[#allocation3 + $0x188] sm:$0xff] }
 0x196   : > { %v1152_v9 = vld [vmem:[#allocation2 + $0x3a] sm:$0xff]  ;;  %v1641_v12 = vld [vmem:[%s4903_s1 + $0x450] sm:$0xff]  ;;  %1185 = vst.msk [vmem:[#allocation3 + $0xd0] sm:$0xff] %vm605_vm2, %v1153_v10  ;;  %2186 = vmatprep.mubr.f32.mxu0 %v1265_v6  ;;  %2411 = vmatprep.mubr.f32.mxu1 %v1267_v7  ;;  %v1266_v14 = vld [vmem:[#allocation3 + $0x198] sm:$0xff] }
 0x197   : > { %1184 = vst.msk [vmem:[#allocation3 + $0x88] sm:$0xff] %vm605_vm2, %v1152_v9  ;;  %v1154_v13 = vld [vmem:[#allocation2 + $0x52] sm:$0xff]  ;;  %v1155_v15 = vld [vmem:[#allocation2 + $0x62] sm:$0xff]  ;;  %v1156_v16 = vld [vmem:[#allocation2 + $0x6a] sm:$0xff]  ;;  %3048 = vmatpush3.msra.mxu0 %v1642_v0  ;;  %3123 = vmatprep.subr.mxu1 %v1642_v0 }
 0x198   : > { %1186 = vst.msk [vmem:[#allocation3 + $0x118] sm:$0xff] %vm605_vm2, %v1154_v13  ;;  %v1274_v17 = vld [vmem:[#allocation3 + $0x1d8] sm:$0xff]  ;;  %v1276_v18 = vld [vmem:[#allocation3 + $0x1e8] sm:$0xff]  ;;  %1187 = vst.msk [vmem:[#allocation3 + $0x160] sm:$0xff] %vm605_vm2, %v1155_v15  ;;  %3049 = vmatprep.subr.mxu0 %v1641_v12  ;;  %3139 = vmatpush3.msra.mxu1 %v1642_v0 }
 0x199   : > { %1188 = vst.msk [vmem:[#allocation3 + $0x1a8] sm:$0xff] %vm605_vm2, %v1156_v16  ;;  %v1157_v19 = vld [vmem:[#allocation2 + $0x7a] sm:$0xff]  ;;  %v1158_v20 = vld [vmem:[#allocation2 + $0x82] sm:$0xff]  ;;  %2187 = vmatmul.mubr.f32.gmra.mxu0 %v1264_v11  ;;  %2412 = vmatmul.mubr.f32.gmra.mxu1 %v1266_v14  ;;  %v1159_v22 = vld [vmem:[#allocation2 + $0x92] sm:$0xff] }
 0x19a   : > { %1189 = vst.msk [vmem:[#allocation3 + $0x1f0] sm:$0xff] %vm605_vm2, %v1157_v19  ;;  %v1640_v21 = vld [vmem:[%s4903_s1 + $0x448] sm:$0xff]  ;;  %1190 = vst.msk [vmem:[#allocation3 + $0x238] sm:$0xff] %vm605_vm2, %v1158_v20  ;;  %2191 = vmatprep.mubr.f32.mxu0 %v1274_v17  ;;  %2416 = vmatprep.mubr.f32.mxu1 %v1276_v18  ;;  %v1273_v23 = vld [vmem:[#allocation3 + $0x1d0] sm:$0xff] }
 0x19b   : > { %v1275_v24 = vld [vmem:[#allocation3 + $0x1e0] sm:$0xff]  ;;  %1191 = vst.msk [vmem:[#allocation3 + $0x280] sm:$0xff] %vm605_vm2, %v1159_v22  ;;  %v1160_v25 = vld [vmem:[#allocation2 + $0x9a] sm:$0xff]  ;;  %3050 = vmatpush3.msra.mxu0 %v1641_v12  ;;  %3124 = vmatprep.subr.mxu1 %v1641_v12  ;;  %v1163_v31 = vld [vmem:[#allocation2 + $0xc2] sm:$0xff] }
 0x19c   : > { %v1283_v26 = vld [vmem:[#allocation3 + $0x220] sm:$0xff]  ;;  %v1285_v27 = vld [vmem:[#allocation3 + $0x230] sm:$0xff]  ;;  %1192 = vst.msk [vmem:[#allocation3 + $0x2c8] sm:$0xff] %vm605_vm2, %v1160_v25  ;;  %3051 = vmatprep.subr.mxu0 %v1640_v21  ;;  %v1282_v32 = vld [vmem:[#allocation3 + $0x218] sm:$0xff]  ;;  %3140 = vmatpush3.msra.mxu1 %v1641_v12 }
 0x19d   : > { %v1161_v28 = vld [vmem:[#allocation2 + $0xaa] sm:$0xff]  ;;  %v1162_v29 = vld [vmem:[#allocation2 + $0xb2] sm:$0xff]  ;;  %2192 = vmatmul.mubr.f32.gmra.mxu0 %v1273_v23  ;;  %2417 = vmatmul.mubr.f32.gmra.mxu1 %v1275_v24  ;;  %v1639_v30 = vld [vmem:[%s4903_s1 + $0x440] sm:$0xff]  ;;  %1195 = vst.msk [vmem:[#allocation3 + $0x3a0] sm:$0xff] %vm605_vm2, %v1163_v31 }
 0x19e   : > { %1193 = vst.msk [vmem:[#allocation3 + $0x310] sm:$0xff] %vm605_vm2, %v1161_v28  ;;  %1194 = vst.msk [vmem:[#allocation3 + $0x358] sm:$0xff] %vm605_vm2, %v1162_v29  ;;  %2196 = vmatprep.mubr.f32.mxu0 %v1283_v26  ;;  %2421 = vmatprep.mubr.f32.mxu1 %v1285_v27  ;;  %v1284_v33 = vld [vmem:[#allocation3 + $0x228] sm:$0xff]  ;;  %v1294_v35 = vld [vmem:[#allocation3 + $0x278] sm:$0xff] }
 0x19f   : > { %v1292_v34 = vld [vmem:[#allocation3 + $0x268] sm:$0xff]  ;;  %3052 = vmatpush3.msra.mxu0 %v1640_v21  ;;  %v1164_v36 = vld [vmem:[#allocation2 + $0xca] sm:$0xff]  ;;  %3125 = vmatprep.subr.mxu1 %v1640_v21  ;;  %v1166_v39 = vld [vmem:[#allocation2 + $0xe2] sm:$0xff] }
 0x1a0   : > { %3053 = vmatprep.subr.mxu0 %v1639_v30  ;;  %1196 = vst.msk [vmem:[#allocation3 + $0x3e8] sm:$0xff] %vm605_vm2, %v1164_v36  ;;  %v1165_v37 = vld [vmem:[#allocation2 + $0xda] sm:$0xff]  ;;  %v1182_v40 = vld [vmem:[#allocation2 + $0x1a2] sm:$0xff]  ;;  %v1291_v41 = vld [vmem:[#allocation3 + $0x260] sm:$0xff]  ;;  %3141 = vmatpush3.msra.mxu1 %v1640_v21 }
 0x1a1   : > { %v1181_v3 = vld [vmem:[#allocation2 + $0x19a] sm:$0xff]  ;;  %2197 = vmatmul.mubr.f32.gmra.mxu0 %v1282_v32  ;;  %2422 = vmatmul.mubr.f32.gmra.mxu1 %v1284_v33  ;;  %1197 = vst.msk [vmem:[#allocation3 + $0x430] sm:$0xff] %vm605_vm2, %v1165_v37  ;;  %1198 = vst.msk [vmem:[#allocation3 + $0x478] sm:$0xff] %vm605_vm2, %v1166_v39  ;;  %v1303_v44 = vld [vmem:[#allocation3 + $0x2c0] sm:$0xff] }
 0x1a2   : > { %v1638_v38 = vld [vmem:[%s4903_s1 + $0x438] sm:$0xff]  ;;  %1213 = vst.msk [vmem:[#allocation3 + $0x8b0] sm:$0xff] %vm605_vm2, %v1181_v3  ;;  %2201 = vmatprep.mubr.f32.mxu0 %v1292_v34  ;;  %2426 = vmatprep.mubr.f32.mxu1 %v1294_v35  ;;  %v1293_v42 = vld [vmem:[#allocation3 + $0x270] sm:$0xff]  ;;  %1214 = vst.msk [vmem:[#allocation3 + $0x8f8] sm:$0xff] %vm605_vm2, %v1182_v40 }
 0x1a3   : > { %v1301_v43 = vld [vmem:[#allocation3 + $0x2b0] sm:$0xff]  ;;  %3054 = vmatpush3.msra.mxu0 %v1639_v30  ;;  %3126 = vmatprep.subr.mxu1 %v1639_v30  ;;  %v1637_v45 = vld [vmem:[%s4903_s1 + $0x430] sm:$0xff]  ;;  %v1300_v46 = vld [vmem:[#allocation3 + $0x2a8] sm:$0xff] }
 0x1a4   : > { %3055 = vmatprep.subr.mxu0 %v1638_v38  ;;  %v1302_v47 = vld [vmem:[#allocation3 + $0x2b8] sm:$0xff]  ;;  %v1312_v49 = vld [vmem:[#allocation3 + $0x308] sm:$0xff]  ;;  %3142 = vmatpush3.msra.mxu1 %v1639_v30  ;;  %v1309_v51 = vld [vmem:[#allocation3 + $0x2f0] sm:$0xff] }
 0x1a5   : > { %2202 = vmatmul.mubr.f32.gmra.mxu0 %v1291_v41  ;;  %2427 = vmatmul.mubr.f32.gmra.mxu1 %v1293_v42  ;;  %v1310_v48 = vld [vmem:[#allocation3 + $0x2f8] sm:$0xff]  ;;  %v1311_v52 = vld [vmem:[#allocation3 + $0x300] sm:$0xff]  ;;  %v1321_v54 = vld [vmem:[#allocation3 + $0x350] sm:$0xff] }
 0x1a6   : > { %2206 = vmatprep.mubr.f32.mxu0 %v1301_v43  ;;  %2431 = vmatprep.mubr.f32.mxu1 %v1303_v44  ;;  %v1636_v50 = vld [vmem:[%s4903_s1 + $0x428] sm:$0xff]  ;;  %v1319_v53 = vld [vmem:[#allocation3 + $0x340] sm:$0xff]  ;;  %v1635_v55 = vld [vmem:[%s4903_s1 + $0x420] sm:$0xff] }
 0x1a7   : > { %3056 = vmatpush3.msra.mxu0 %v1638_v38  ;;  %3127 = vmatprep.subr.mxu1 %v1638_v38  ;;  %v1318_v56 = vld [vmem:[#allocation3 + $0x338] sm:$0xff]  ;;  %v1320_v57 = vld [vmem:[#allocation3 + $0x348] sm:$0xff]  ;;  %v1327_v61 = vld [vmem:[#allocation3 + $0x380] sm:$0xff] }
 0x1a8   : > { %3057 = vmatprep.subr.mxu0 %v1637_v45  ;;  %3143 = vmatpush3.msra.mxu1 %v1638_v38  ;;  %v1328_v58 = vld [vmem:[#allocation3 + $0x388] sm:$0xff]  ;;  %v1330_v59 = vld [vmem:[#allocation3 + $0x398] sm:$0xff]  ;;  %v1329_v62 = vld [vmem:[#allocation3 + $0x390] sm:$0xff] }
 0x1a9   : > { %2207 = vmatmul.mubr.f32.gmra.mxu0 %v1300_v46  ;;  %2432 = vmatmul.mubr.f32.gmra.mxu1 %v1302_v47  ;;  %v1634_v60 = vld [vmem:[%s4903_s1 + $0x418] sm:$0xff]  ;;  %v1337_v63 = vld [vmem:[#allocation3 + $0x3d0] sm:$0xff]  ;;  %v1339_v0 = vld [vmem:[#allocation3 + $0x3e0] sm:$0xff] }
 0x1aa   : > { %2211 = vmatprep.mubr.f32.mxu0 %v1310_v48  ;;  %2436 = vmatprep.mubr.f32.mxu1 %v1312_v49  ;;  %v1633_v1 = vld [vmem:[%s4903_s1 + $0x410] sm:$0xff]  ;;  %v1336_v2 = vld [vmem:[#allocation3 + $0x3c8] sm:$0xff]  ;;  %v1338_v4 = vld [vmem:[#allocation3 + $0x3d8] sm:$0xff] }
 0x1ab   : > { %3058 = vmatpush3.msra.mxu0 %v1637_v45  ;;  %3128 = vmatprep.subr.mxu1 %v1637_v45  ;;  %v1346_v5 = vld [vmem:[#allocation3 + $0x418] sm:$0xff]  ;;  %v1348_v6 = vld [vmem:[#allocation3 + $0x428] sm:$0xff]  ;;  %v1345_v8 = vld [vmem:[#allocation3 + $0x410] sm:$0xff] }
 0x1ac   : > { %3059 = vmatprep.subr.mxu0 %v1636_v50  ;;  %3144 = vmatpush3.msra.mxu1 %v1637_v45  ;;  %v1632_v7 = vld [vmem:[%s4903_s1 + $0x408] sm:$0xff]  ;;  %v1347_v9 = vld [vmem:[#allocation3 + $0x420] sm:$0xff]  ;;  %v1357_v11 = vld [vmem:[#allocation3 + $0x470] sm:$0xff] }
 0x1ad   : > { %2212 = vmatmul.mubr.f32.gmra.mxu0 %v1309_v51  ;;  %2437 = vmatmul.mubr.f32.gmra.mxu1 %v1311_v52  ;;  %v1355_v10 = vld [vmem:[#allocation3 + $0x460] sm:$0xff]  ;;  %v1631_v12 = vld [vmem:[%s4903_s1 + $0x400] sm:$0xff]  ;;  %v1354_v13 = vld [vmem:[#allocation3 + $0x458] sm:$0xff] }
 0x1ae   : > { %2216 = vmatprep.mubr.f32.mxu0 %v1319_v53  ;;  %2441 = vmatprep.mubr.f32.mxu1 %v1321_v54  ;;  %v1356_v14 = vld [vmem:[#allocation3 + $0x468] sm:$0xff]  ;;  %v1366_v16 = vld [vmem:[#allocation3 + $0x4b8] sm:$0xff]  ;;  %v1363_v17 = vld [vmem:[#allocation3 + $0x4a0] sm:$0xff] }
 0x1af   : > { %3060 = vmatpush3.msra.mxu0 %v1636_v50  ;;  %3129 = vmatprep.subr.mxu1 %v1636_v50  ;;  %v1364_v15 = vld [vmem:[#allocation3 + $0x4a8] sm:$0xff]  ;;  %v1365_v18 = vld [vmem:[#allocation3 + $0x4b0] sm:$0xff]  ;;  %v1375_v20 = vld [vmem:[#allocation3 + $0x500] sm:$0xff] }
 0x1b0   : > { %3061 = vmatprep.subr.mxu0 %v1635_v55  ;;  %3145 = vmatpush3.msra.mxu1 %v1636_v50  ;;  %v1373_v19 = vld [vmem:[#allocation3 + $0x4f0] sm:$0xff]  ;;  %v1372_v24 = vld [vmem:[#allocation3 + $0x4e8] sm:$0xff]  ;;  %v1374_v25 = vld [vmem:[#allocation3 + $0x4f8] sm:$0xff] }
 0x1b1   : > { %2217 = vmatmul.mubr.f32.gmra.mxu0 %v1318_v56  ;;  %2442 = vmatmul.mubr.f32.gmra.mxu1 %v1320_v57  ;;  %v1382_v28 = vld [vmem:[#allocation3 + $0x538] sm:$0xff]  ;;  %v1384_v29 = vld [vmem:[#allocation3 + $0x548] sm:$0xff]  ;;  %v1381_v33 = vld [vmem:[#allocation3 + $0x530] sm:$0xff] }
 0x1b2   : > { %2221 = vmatprep.mubr.f32.mxu0 %v1328_v58  ;;  %2446 = vmatprep.mubr.f32.mxu1 %v1330_v59  ;;  %v1383_v34 = vld [vmem:[#allocation3 + $0x540] sm:$0xff]  ;;  %v1393_v3 = vld [vmem:[#allocation3 + $0x590] sm:$0xff]  ;;  %v1390_v41 = vld [vmem:[#allocation3 + $0x578] sm:$0xff] }
 0x1b3   : > { %3062 = vmatpush3.msra.mxu0 %v1635_v55  ;;  %3130 = vmatprep.subr.mxu1 %v1635_v55  ;;  %v1391_v37 = vld [vmem:[#allocation3 + $0x580] sm:$0xff]  ;;  %v1392_v42 = vld [vmem:[#allocation3 + $0x588] sm:$0xff]  ;;  %v1402_v46 = vld [vmem:[#allocation3 + $0x5d8] sm:$0xff] }
 0x1b4   : > { %3063 = vmatprep.subr.mxu0 %v1634_v60  ;;  %3146 = vmatpush3.msra.mxu1 %v1635_v55  ;;  %v1400_v45 = vld [vmem:[#allocation3 + $0x5c8] sm:$0xff]  ;;  %v1399_v50 = vld [vmem:[#allocation3 + $0x5c0] sm:$0xff]  ;;  %v1401_v51 = vld [vmem:[#allocation3 + $0x5d0] sm:$0xff] }
 0x1b5   : > { %2222 = vmatmul.mubr.f32.gmra.mxu0 %v1327_v61  ;;  %2447 = vmatmul.mubr.f32.gmra.mxu1 %v1329_v62  ;;  %v1409_v54 = vld [vmem:[#allocation3 + $0x610] sm:$0xff]  ;;  %v1411_v55 = vld [vmem:[#allocation3 + $0x620] sm:$0xff]  ;;  %v1408_v59 = vld [vmem:[#allocation3 + $0x608] sm:$0xff] }
 0x1b6   : > { %2226 = vmatprep.mubr.f32.mxu0 %v1337_v63  ;;  %2451 = vmatprep.mubr.f32.mxu1 %v1339_v0  ;;  %v1418_v63 = vld [vmem:[#allocation3 + $0x658] sm:$0xff]  ;;  %v1420_v0 = vld [vmem:[#allocation3 + $0x668] sm:$0xff] }
 0x1b7   : > { %3064 = vmatpush3.msra.mxu0 %v1634_v60  ;;  %3131 = vmatprep.subr.mxu1 %v1634_v60 }
 0x1b8   : > { %3065 = vmatprep.subr.mxu0 %v1633_v1  ;;  %3147 = vmatpush3.msra.mxu1 %v1634_v60  ;;  %v1410_v60 = vld [vmem:[#allocation3 + $0x618] sm:$0xff] }
 0x1b9   : > { %2227 = vmatmul.mubr.f32.gmra.mxu0 %v1336_v2  ;;  %2452 = vmatmul.mubr.f32.gmra.mxu1 %v1338_v4 }
 0x1ba   : > { %2231 = vmatprep.mubr.f32.mxu0 %v1346_v5  ;;  %2456 = vmatprep.mubr.f32.mxu1 %v1348_v6  ;;  %v1417_v5 = vld [vmem:[#allocation3 + $0x650] sm:$0xff]  ;;  %v1419_v6 = vld [vmem:[#allocation3 + $0x660] sm:$0xff] }
 0x1bb   : > { %3066 = vmatpush3.msra.mxu0 %v1633_v1  ;;  %3132 = vmatprep.subr.mxu1 %v1633_v1 }
 0x1bc   : > { %3067 = vmatprep.subr.mxu0 %v1632_v7  ;;  %3148 = vmatpush3.msra.mxu1 %v1633_v1 }
 0x1bd   : > { %2232 = vmatmul.mubr.f32.gmra.mxu0 %v1345_v8  ;;  %2457 = vmatmul.mubr.f32.gmra.mxu1 %v1347_v9  ;;  %v1427_v9 = vld [vmem:[#allocation3 + $0x6a0] sm:$0xff] }
 0x1be   : > { %2236 = vmatprep.mubr.f32.mxu0 %v1355_v10  ;;  %2461 = vmatprep.mubr.f32.mxu1 %v1357_v11  ;;  %v1429_v10 = vld [vmem:[#allocation3 + $0x6b0] sm:$0xff] }
 0x1bf   : > { %3068 = vmatpush3.msra.mxu0 %v1632_v7  ;;  %3133 = vmatprep.subr.mxu1 %v1632_v7 }
 0x1c0   : > { %3069 = vmatprep.subr.mxu0 %v1631_v12  ;;  %3149 = vmatpush3.msra.mxu1 %v1632_v7 }
 0x1c1   : > { %2237 = vmatmul.mubr.f32.gmra.mxu0 %v1354_v13  ;;  %2462 = vmatmul.mubr.f32.gmra.mxu1 %v1356_v14  ;;  %v1426_v14 = vld [vmem:[#allocation3 + $0x698] sm:$0xff] }
 0x1c2   : > { %2241 = vmatprep.mubr.f32.mxu0 %v1364_v15  ;;  %2466 = vmatprep.mubr.f32.mxu1 %v1366_v16  ;;  %v1713_v21 = vpop.f32.mrf.mxu0  ;;  %v1938_v22 = vpop.f32.mrf.mxu1  ;;  %v1428_v15 = vld [vmem:[#allocation3 + $0x6a8] sm:$0xff] }
 0x1c3   : > { %3070 = vmatpush3.msra.mxu0 %v1631_v12  ;;  %3134 = vmatprep.subr.mxu1 %v1631_v12  ;;  %v4543_v23 = vadd.f32 %v1938_v22, %v1713_v21 }
 0x1c4   : > { %v1715_v26 = vpop.f32.mrf.mxu0  ;;  %v1940_v27 = vpop.f32.mrf.mxu1  ;;  %3150 = vmatpush3.msra.mxu1 %v1631_v12 }
 0x1c5   : > { %2242 = vmatmul.mubr.f32.gmra.mxu0 %v1363_v17  ;;  %2467 = vmatmul.mubr.f32.gmra.mxu1 %v1365_v18  ;;  %v1436_v18 = vld [vmem:[#allocation3 + $0x6e8] sm:$0xff] }
 0x1c6   : > { %2246 = vmatprep.mubr.f32.mxu0 %v1373_v19  ;;  %2471 = vmatprep.mubr.f32.mxu1 %v1375_v20  ;;  %v1718_v30 = vpop.f32.mrf.mxu0  ;;  %v1943_v31 = vpop.f32.mrf.mxu1  ;;  %v1438_v19 = vld [vmem:[#allocation3 + $0x6f8] sm:$0xff] }
 0x1c7   : > { %v4545_v32 = vadd.f32 %v1943_v31, %v1718_v30 }
 0x1c8   : > { %v1720_v35 = vpop.f32.mrf.mxu0  ;;  %v1945_v36 = vpop.f32.mrf.mxu1 }
 0x1c9   : > { %2247 = vmatmul.mubr.f32.gmra.mxu0 %v1372_v24  ;;  %2472 = vmatmul.mubr.f32.gmra.mxu1 %v1374_v25  ;;  %v1435_v24 = vld [vmem:[#allocation3 + $0x6e0] sm:$0xff]  ;;  %v1437_v25 = vld [vmem:[#allocation3 + $0x6f0] sm:$0xff]  ;;  %v1446_v35 = vld [vmem:[#allocation3 + $0x738] sm:$0xff] }
 0x1ca   : > { %2251 = vmatprep.mubr.f32.mxu0 %v1382_v28  ;;  %2476 = vmatprep.mubr.f32.mxu1 %v1384_v29  ;;  %v1723_v38 = vpop.f32.mrf.mxu0  ;;  %v1948_v39 = vpop.f32.mrf.mxu1  ;;  %v1445_v28 = vld [vmem:[#allocation3 + $0x730] sm:$0xff]  ;;  %v1447_v29 = vld [vmem:[#allocation3 + $0x740] sm:$0xff] }
 0x1cb   : > { %v4547_v40 = vadd.f32 %v1948_v39, %v1723_v38  ;;  %v1456_v38 = vld [vmem:[#allocation3 + $0x788] sm:$0xff] }
 0x1cc   : > { %v1725_v43 = vpop.f32.mrf.mxu0  ;;  %v1950_v44 = vpop.f32.mrf.mxu1 }
 0x1cd   : > { %2252 = vmatmul.mubr.f32.gmra.mxu0 %v1381_v33  ;;  %2477 = vmatmul.mubr.f32.gmra.mxu1 %v1383_v34  ;;  %v1444_v34 = vld [vmem:[#allocation3 + $0x728] sm:$0xff]  ;;  %v1453_v43 = vld [vmem:[#allocation3 + $0x770] sm:$0xff]  ;;  %v1455_v44 = vld [vmem:[#allocation3 + $0x780] sm:$0xff] }
 0x1ce   : > { %2256 = vmatprep.mubr.f32.mxu0 %v1391_v37  ;;  %2481 = vmatprep.mubr.f32.mxu1 %v1393_v3  ;;  %v1728_v47 = vpop.f32.mrf.mxu0  ;;  %v1953_v48 = vpop.f32.mrf.mxu1  ;;  %v1454_v3 = vld [vmem:[#allocation3 + $0x778] sm:$0xff] }
 0x1cf   : > { %v4549_v49 = vadd.f32 %v1953_v48, %v1728_v47  ;;  %v1463_v47 = vld [vmem:[#allocation3 + $0x7c0] sm:$0xff]  ;;  %v1465_v48 = vld [vmem:[#allocation3 + $0x7d0] sm:$0xff] }
 0x1d0   : > { %v1730_v52 = vpop.f32.mrf.mxu0  ;;  %v1955_v53 = vpop.f32.mrf.mxu1 }
 0x1d1   : > { %2257 = vmatmul.mubr.f32.gmra.mxu0 %v1390_v41  ;;  %2482 = vmatmul.mubr.f32.gmra.mxu1 %v1392_v42  ;;  %v1462_v53 = vld [vmem:[#allocation3 + $0x7b8] sm:$0xff] }
 0x1d2   : > { %2261 = vmatprep.mubr.f32.mxu0 %v1400_v45  ;;  %2486 = vmatprep.mubr.f32.mxu1 %v1402_v46  ;;  %v1733_v56 = vpop.f32.mrf.mxu0  ;;  %v1958_v57 = vpop.f32.mrf.mxu1 }
 0x1d3   : > { %v4551_v58 = vadd.f32 %v1958_v57, %v1733_v56  ;;  %v1472_v57 = vld [vmem:[#allocation3 + $0x808] sm:$0xff] }
 0x1d4   : > { %v1735_v61 = vpop.f32.mrf.mxu0  ;;  %v1960_v62 = vpop.f32.mrf.mxu1 }
 0x1d5   : > { %2262 = vmatmul.mubr.f32.gmra.mxu0 %v1399_v50  ;;  %2487 = vmatmul.mubr.f32.gmra.mxu1 %v1401_v51 }
 0x1d6   : > { %2266 = vmatprep.mubr.f32.mxu0 %v1409_v54  ;;  %2491 = vmatprep.mubr.f32.mxu1 %v1411_v55  ;;  %v1738_v1 = vpop.f32.mrf.mxu0  ;;  %v1963_v2 = vpop.f32.mrf.mxu1  ;;  %v1464_v54 = vld [vmem:[#allocation3 + $0x7c8] sm:$0xff] }
 0x1d7   : > { %v4553_v4 = vadd.f32 %v1963_v2, %v1738_v1 }
 0x1d8   : > { %v1740_v7 = vpop.f32.mrf.mxu0  ;;  %v1965_v8 = vpop.f32.mrf.mxu1 }
 0x1d9   : > { %2267 = vmatmul.mubr.f32.gmra.mxu0 %v1408_v59  ;;  %2492 = vmatmul.mubr.f32.gmra.mxu1 %v1410_v60  ;;  %v1474_v59 = vld [vmem:[#allocation3 + $0x818] sm:$0xff] }
 0x1da   : > { %2271 = vmatprep.mubr.f32.mxu0 %v1418_v63  ;;  %2496 = vmatprep.mubr.f32.mxu1 %v1420_v0  ;;  %v1743_v11 = vpop.f32.mrf.mxu0  ;;  %v1968_v12 = vpop.f32.mrf.mxu1  ;;  %v1471_v63 = vld [vmem:[#allocation3 + $0x800] sm:$0xff]  ;;  %v1473_v0 = vld [vmem:[#allocation3 + $0x810] sm:$0xff] }
 0x1db   : > { %v4555_v13 = vadd.f32 %v1968_v12, %v1743_v11  ;;  %v1482_v11 = vld [vmem:[#allocation3 + $0x858] sm:$0xff] }
 0x1dc   : > { %v1745_v16 = vpop.f32.mrf.mxu0  ;;  %v1970_v17 = vpop.f32.mrf.mxu1 }
 0x1dd   : > { %2272 = vmatmul.mubr.f32.gmra.mxu0 %v1417_v5  ;;  %2497 = vmatmul.mubr.f32.gmra.mxu1 %v1419_v6  ;;  %v1481_v5 = vld [vmem:[#allocation3 + $0x850] sm:$0xff]  ;;  %v1483_v6 = vld [vmem:[#allocation3 + $0x860] sm:$0xff]  ;;  %v1492_v16 = vld [vmem:[#allocation3 + $0x8a8] sm:$0xff] }
 0x1de   : > { %2276 = vmatprep.mubr.f32.mxu0 %v1427_v9  ;;  %2501 = vmatprep.mubr.f32.mxu1 %v1429_v10  ;;  %v1748_v20 = vpop.f32.mrf.mxu0  ;;  %v1973_v21 = vpop.f32.mrf.mxu1  ;;  %v1480_v10 = vld [vmem:[#allocation3 + $0x848] sm:$0xff] }
 0x1df   : > { %v4557_v22 = vadd.f32 %v1973_v21, %v1748_v20  ;;  %v1489_v20 = vld [vmem:[#allocation3 + $0x890] sm:$0xff]  ;;  %v1491_v21 = vld [vmem:[#allocation3 + $0x8a0] sm:$0xff] }
 0x1e0   : > { %v1750_v26 = vpop.f32.mrf.mxu0  ;;  %v1975_v27 = vpop.f32.mrf.mxu1 }
 0x1e1   : > { %2277 = vmatmul.mubr.f32.gmra.mxu0 %v1426_v14  ;;  %2502 = vmatmul.mubr.f32.gmra.mxu1 %v1428_v15  ;;  %v1490_v15 = vld [vmem:[#allocation3 + $0x898] sm:$0xff]  ;;  %v1499_v26 = vld [vmem:[#allocation3 + $0x8e0] sm:$0xff]  ;;  %v1501_v27 = vld [vmem:[#allocation3 + $0x8f0] sm:$0xff] }
 0x1e2   : > { %2281 = vmatprep.mubr.f32.mxu0 %v1436_v18  ;;  %2506 = vmatprep.mubr.f32.mxu1 %v1438_v19  ;;  %v1753_v30 = vpop.f32.mrf.mxu0  ;;  %v1978_v31 = vpop.f32.mrf.mxu1 }
 0x1e3   : > { %v4559_v33 = vadd.f32 %v1978_v31, %v1753_v30  ;;  %v1498_v31 = vld [vmem:[#allocation3 + $0x8d8] sm:$0xff] }
 0x1e4   : > { %v1755_v36 = vpop.f32.mrf.mxu0  ;;  %v1980_v37 = vpop.f32.mrf.mxu1 }
 0x1e5   : > { %2282 = vmatmul.mubr.f32.gmra.mxu0 %v1435_v24  ;;  %2507 = vmatmul.mubr.f32.gmra.mxu1 %v1437_v25  ;;  %v1223_v37 = vld [vmem:[#allocation3 + $0x40] sm:$0xff] }
 0x1e6   : > { %2286 = vmatprep.mubr.f32.mxu0 %v1445_v28  ;;  %2511 = vmatprep.mubr.f32.mxu1 %v1447_v29  ;;  %v1758_v39 = vpop.f32.mrf.mxu0  ;;  %v1983_v41 = vpop.f32.mrf.mxu1 }
 0x1e7   : > { %v4561_v42 = vadd.f32 %v1983_v41, %v1758_v39 }
 0x1e8   : > { %v1760_v45 = vpop.f32.mrf.mxu0  ;;  %v1985_v46 = vpop.f32.mrf.mxu1 }
 0x1e9   : > { %2287 = vmatmul.mubr.f32.gmra.mxu0 %v1444_v34  ;;  %2512 = vmatmul.mubr.f32.gmra.mxu1 %v1446_v35  ;;  %v1500_v34 = vld [vmem:[#allocation3 + $0x8e8] sm:$0xff] }
 0x1ea   : > { %2291 = vmatprep.mubr.f32.mxu0 %v1454_v3  ;;  %2516 = vmatprep.mubr.f32.mxu1 %v1456_v38  ;;  %v1763_v50 = vpop.f32.mrf.mxu0  ;;  %v1988_v51 = vpop.f32.mrf.mxu1  ;;  %v1367_v3 = vld [vmem:[#allocation3 + $0x4c0] sm:$0xff] }
 0x1eb   : > { %v4563_v52 = vadd.f32 %v1988_v51, %v1763_v50 }
 0x1ec   : > { %v1765_v55 = vpop.f32.mrf.mxu0  ;;  %v1990_v56 = vpop.f32.mrf.mxu1 }
 0x1ed   : > { %2292 = vmatmul.mubr.f32.gmra.mxu0 %v1453_v43  ;;  %2517 = vmatmul.mubr.f32.gmra.mxu1 %v1455_v44  ;;  %v1232_v43 = vld [vmem:[#allocation3 + $0x88] sm:$0xff]  ;;  %v1394_v55 = vld [vmem:[#allocation3 + $0x598] sm:$0xff] }
 0x1ee   : > { %2296 = vmatprep.mubr.f32.mxu0 %v1463_v47  ;;  %2521 = vmatprep.mubr.f32.mxu1 %v1465_v48  ;;  %v1768_v60 = vpop.f32.mrf.mxu0  ;;  %v1993_v61 = vpop.f32.mrf.mxu1  ;;  %v1376_v44 = vld [vmem:[#allocation3 + $0x508] sm:$0xff]  ;;  %v1241_v47 = vld [vmem:[#allocation3 + $0xd0] sm:$0xff] }
 0x1ef   : > { %v4565_v62 = vadd.f32 %v1993_v61, %v1768_v60  ;;  %v1385_v48 = vld [vmem:[#allocation3 + $0x550] sm:$0xff]  ;;  %v1403_v60 = vld [vmem:[#allocation3 + $0x5e0] sm:$0xff] }
 0x1f0   : > { %v1770_v1 = vpop.f32.mrf.mxu0  ;;  %v1995_v2 = vpop.f32.mrf.mxu1 }
 0x1f1   : > { %2297 = vmatmul.mubr.f32.gmra.mxu0 %v1462_v53  ;;  %2522 = vmatmul.mubr.f32.gmra.mxu1 %v1464_v54  ;;  %v1250_v54 = vld [vmem:[#allocation3 + $0x118] sm:$0xff]  ;;  %v1268_v1 = vld [vmem:[#allocation3 + $0x1a8] sm:$0xff] }
 0x1f2   : > { %2301 = vmatprep.mubr.f32.mxu0 %v1472_v57  ;;  %2526 = vmatprep.mubr.f32.mxu1 %v1474_v59  ;;  %v1773_v7 = vpop.f32.mrf.mxu0  ;;  %v1998_v8 = vpop.f32.mrf.mxu1  ;;  %v1259_v59 = vld [vmem:[#allocation3 + $0x160] sm:$0xff]  ;;  %v1412_v2 = vld [vmem:[#allocation3 + $0x628] sm:$0xff] }
 0x1f3   : > { %v4567_v9 = vadd.f32 %v1998_v8, %v1773_v7  ;;  %v1277_v7 = vld [vmem:[#allocation3 + $0x1f0] sm:$0xff] }
 0x1f4   : > { %v1775_v12 = vpop.f32.mrf.mxu0  ;;  %v2000_v14 = vpop.f32.mrf.mxu1  ;;  %v1421_v8 = vld [vmem:[#allocation3 + $0x670] sm:$0xff] }
 0x1f5   : > { %2302 = vmatmul.mubr.f32.gmra.mxu0 %v1471_v63  ;;  %2527 = vmatmul.mubr.f32.gmra.mxu1 %v1473_v0  ;;  %v1286_v14 = vld [vmem:[#allocation3 + $0x238] sm:$0xff] }
 0x1f6   : > { %2306 = vmatprep.mubr.f32.mxu0 %v1481_v5  ;;  %2531 = vmatprep.mubr.f32.mxu1 %v1483_v6  ;;  %v1778_v17 = vpop.f32.mrf.mxu0  ;;  %v2003_v18 = vpop.f32.mrf.mxu1 }
 0x1f7   : > { %v4569_v19 = vadd.f32 %v2003_v18, %v1778_v17  ;;  %v1295_v18 = vld [vmem:[#allocation3 + $0x280] sm:$0xff] }
 0x1f8   : > { %v1780_v24 = vpop.f32.mrf.mxu0  ;;  %v2005_v25 = vpop.f32.mrf.mxu1 }
 0x1f9   : > { %2307 = vmatmul.mubr.f32.gmra.mxu0 %v1480_v10  ;;  %2532 = vmatmul.mubr.f32.gmra.mxu1 %v1482_v11 }
 0x1fa   : > { %2311 = vmatprep.mubr.f32.mxu0 %v1490_v15  ;;  %2536 = vmatprep.mubr.f32.mxu1 %v1492_v16  ;;  %v1783_v28 = vpop.f32.mrf.mxu0  ;;  %v2008_v29 = vpop.f32.mrf.mxu1  ;;  %v1430_v15 = vld [vmem:[#allocation3 + $0x6b8] sm:$0xff] }
 0x1fb   : > { %v4571_v30 = vadd.f32 %v2008_v29, %v1783_v28 }
 0x1fc   : > { %v1785_v35 = vpop.f32.mrf.mxu0  ;;  %v2010_v36 = vpop.f32.mrf.mxu1 }
 0x1fd   : > { %2312 = vmatmul.mubr.f32.gmra.mxu0 %v1489_v20  ;;  %2537 = vmatmul.mubr.f32.gmra.mxu1 %v1491_v21  ;;  %v1439_v20 = vld [vmem:[#allocation3 + $0x700] sm:$0xff] }
 0x1fe   : > { %2316 = vmatprep.mubr.f32.mxu0 %v1499_v26  ;;  %2541 = vmatprep.mubr.f32.mxu1 %v1501_v27  ;;  %v1788_v38 = vpop.f32.mrf.mxu0  ;;  %v2013_v39 = vpop.f32.mrf.mxu1  ;;  %v1304_v26 = vld [vmem:[#allocation3 + $0x2c8] sm:$0xff] }
 0x1ff   : > { %v4573_v41 = vadd.f32 %v2013_v39, %v1788_v38  ;;  %v1448_v27 = vld [vmem:[#allocation3 + $0x748] sm:$0xff]  ;;  %v1466_v38 = vld [vmem:[#allocation3 + $0x7d8] sm:$0xff] }
 0x200   : > { %v1790_v45 = vpop.f32.mrf.mxu0  ;;  %v2015_v46 = vpop.f32.mrf.mxu1 }
 0x201   : > { %2317 = vmatmul.mubr.f32.gmra.mxu0 %v1498_v31  ;;  %2542 = vmatmul.mubr.f32.gmra.mxu1 %v1500_v34  ;;  %v1313_v31 = vld [vmem:[#allocation3 + $0x310] sm:$0xff]  ;;  %v1475_v45 = vld [vmem:[#allocation3 + $0x820] sm:$0xff] }
 0x202   : > { %3071 = vmatprep.mubr.f32.mxu0 %v1223_v37  ;;  %3095 = vmatprep.mubr.f32.mxu1 %v1367_v3  ;;  %v1793_v50 = vpop.f32.mrf.mxu0  ;;  %v2018_v51 = vpop.f32.mrf.mxu1  ;;  %v1457_v34 = vld [vmem:[#allocation3 + $0x790] sm:$0xff]  ;;  %v1322_v3 = vld [vmem:[#allocation3 + $0x358] sm:$0xff] }
 0x203   : > { %v4575_v53 = vadd.f32 %v2018_v51, %v1793_v50  ;;  %v1340_v50 = vld [vmem:[#allocation3 + $0x3e8] sm:$0xff] }
 0x204   : > { %v1795_v56 = vpop.f32.mrf.mxu0  ;;  %v2020_v57 = vpop.f32.mrf.mxu1  ;;  %v1484_v51 = vld [vmem:[#allocation3 + $0x868] sm:$0xff] }
 0x205   : > { %3072 = vmatmul.mubr.f32.vlgmr.msra.gmra.mxu0 %v1232_v43  ;;  %3096 = vmatmul.mubr.f32.vlgmr.msra.gmra.mxu1 %v1376_v44  ;;  %v1331_v44 = vld [vmem:[#allocation3 + $0x3a0] sm:$0xff]  ;;  %v1349_v56 = vld [vmem:[#allocation3 + $0x430] sm:$0xff] }
 0x206   : > { %3074 = vmatprep.mubr.f32.mxu0 %v1241_v47  ;;  %3098 = vmatprep.mubr.f32.mxu1 %v1385_v48  ;;  %v1798_v61 = vpop.f32.mrf.mxu0  ;;  %v2023_v63 = vpop.f32.mrf.mxu1  ;;  %v1493_v57 = vld [vmem:[#allocation3 + $0x8b0] sm:$0xff] }
 0x207   : > { %v4577_v0 = vadd.f32 %v2023_v63, %v1798_v61  ;;  %v1358_v63 = vld [vmem:[#allocation3 + $0x478] sm:$0xff] }
 0x208   : > { %v1800_v5 = vpop.f32.mrf.mxu0  ;;  %v2025_v6 = vpop.f32.mrf.mxu1 }
 0x209   : > { %3075 = vmatmul.mubr.f32.gmra.mxu0 %v1250_v54  ;;  %3099 = vmatmul.mubr.f32.gmra.mxu1 %v1394_v55 }
 0x20a   : > { %3077 = vmatprep.mubr.f32.mxu0 %v1259_v59  ;;  %3101 = vmatprep.mubr.f32.mxu1 %v1403_v60  ;;  %v1803_v10 = vpop.f32.mrf.mxu0  ;;  %v2028_v11 = vpop.f32.mrf.mxu1 }
 0x20b   : > { %v4579_v12 = vadd.f32 %v2028_v11, %v1803_v10 }
 0x20c   : > { %v1805_v16 = vpop.f32.mrf.mxu0  ;;  %v2030_v17 = vpop.f32.mrf.mxu1 }
 0x20d   : > { %3078 = vmatmul.mubr.f32.gmra.mxu0 %v1268_v1  ;;  %3102 = vmatmul.mubr.f32.gmra.mxu1 %v1412_v2  ;;  %v1502_v1 = vld [vmem:[#allocation3 + $0x8f8] sm:$0xff] }
 0x20e   : > { %3080 = vmatprep.mubr.f32.mxu0 %v1277_v7  ;;  %3104 = vmatprep.mubr.f32.mxu1 %v1421_v8  ;;  %v1808_v21 = vpop.f32.mrf.mxu0  ;;  %v2033_v24 = vpop.f32.mrf.mxu1 }
 0x20f   : > { %v4581_v25 = vadd.f32 %v2033_v24, %v1808_v21 }
 0x210   : > { %v1810_v28 = vpop.f32.mrf.mxu0  ;;  %v2035_v29 = vpop.f32.mrf.mxu1 }
 0x211   : > { %3081 = vmatmul.mubr.f32.gmra.mxu0 %v1286_v14  ;;  %3105 = vmatmul.mubr.f32.gmra.mxu1 %v1430_v15 }
 0x212   : > { %3083 = vmatprep.mubr.f32.mxu0 %v1295_v18  ;;  %3107 = vmatprep.mubr.f32.mxu1 %v1439_v20  ;;  %v1813_v35 = vpop.f32.mrf.mxu0  ;;  %v2038_v36 = vpop.f32.mrf.mxu1 }
 0x213   : > { %v4583_v37 = vadd.f32 %v2038_v36, %v1813_v35 }
 0x214   : > { %v1815_v39 = vpop.f32.mrf.mxu0  ;;  %v2040_v43 = vpop.f32.mrf.mxu1 }
 0x215   : > { %3084 = vmatmul.mubr.f32.gmra.mxu0 %v1304_v26  ;;  %3108 = vmatmul.mubr.f32.gmra.mxu1 %v1448_v27 }
 0x216   : > { %3086 = vmatprep.mubr.f32.mxu0 %v1313_v31  ;;  %3110 = vmatprep.mubr.f32.mxu1 %v1457_v34  ;;  %v1818_v46 = vpop.f32.mrf.mxu0  ;;  %v2043_v47 = vpop.f32.mrf.mxu1 }
 0x217   : > { %v4585_v48 = vadd.f32 %v2043_v47, %v1818_v46 }
 0x218   : > { %v1820_v54 = vpop.f32.mrf.mxu0  ;;  %v2045_v55 = vpop.f32.mrf.mxu1 }
 0x219   : > { %3087 = vmatmul.mubr.f32.gmra.mxu0 %v1322_v3  ;;  %3111 = vmatmul.mubr.f32.gmra.mxu1 %v1466_v38 }
 0x21a   : > { %3089 = vmatprep.mubr.f32.mxu0 %v1331_v44  ;;  %3113 = vmatprep.mubr.f32.mxu1 %v1475_v45  ;;  %v1823_v59 = vpop.f32.mrf.mxu0  ;;  %v2048_v60 = vpop.f32.mrf.mxu1 }
 0x21b   : > { %v4587_v61 = vadd.f32 %v2048_v60, %v1823_v59 }
 0x21c   : > { %v1825_v2 = vpop.f32.mrf.mxu0  ;;  %v2050_v5 = vpop.f32.mrf.mxu1 }
 0x21d   : > { %3090 = vmatmul.mubr.f32.gmra.mxu0 %v1340_v50  ;;  %3114 = vmatmul.mubr.f32.gmra.mxu1 %v1484_v51 }
 0x21e   : > { %3092 = vmatprep.mubr.f32.mxu0 %v1349_v56  ;;  %3116 = vmatprep.mubr.f32.mxu1 %v1493_v57  ;;  %v1828_v6 = vpop.f32.mrf.mxu0  ;;  %v2053_v7 = vpop.f32.mrf.mxu1 }
 0x21f   : > { %v4589_v8 = vadd.f32 %v2053_v7, %v1828_v6 }
 0x220   : > { %v1830_v10 = vpop.f32.mrf.mxu0  ;;  %v2055_v11 = vpop.f32.mrf.mxu1 }
 0x221   : > { %3093 = vmatmul.mubr.f32.gmra.mxu0 %v1358_v63  ;;  %3117 = vmatmul.mubr.f32.gmra.mxu1 %v1502_v1 }
 0x222   : > { %v1833_v14 = vpop.f32.mrf.mxu0  ;;  %v2058_v15 = vpop.f32.mrf.mxu1 }
 0x223   : > { %v4591_v16 = vadd.f32 %v2058_v15, %v1833_v14 }
 0x224   : > { %v1835_v17 = vpop.f32.mrf.mxu0  ;;  %v2060_v18 = vpop.f32.mrf.mxu1 }
 0x226   : > { %v1838_v20 = vpop.f32.mrf.mxu0  ;;  %v2063_v21 = vpop.f32.mrf.mxu1 }
 0x227   : > { %v4593_v24 = vadd.f32 %v2063_v21, %v1838_v20 }
 0x228   : > { %v1840_v26 = vpop.f32.mrf.mxu0  ;;  %v2065_v27 = vpop.f32.mrf.mxu1 }
 0x22a   : > { %v1843_v28 = vpop.f32.mrf.mxu0  ;;  %v2068_v29 = vpop.f32.mrf.mxu1 }
 0x22b   : > { %v4595_v31 = vadd.f32 %v2068_v29, %v1843_v28 }
 0x22c   : > { %v1845_v34 = vpop.f32.mrf.mxu0  ;;  %v2070_v35 = vpop.f32.mrf.mxu1 }
 0x22e   : > { %v1848_v36 = vpop.f32.mrf.mxu0  ;;  %v2073_v3 = vpop.f32.mrf.mxu1 }
 0x22f   : > { %v4597_v38 = vadd.f32 %v2073_v3, %v1848_v36 }
 0x230   : > { %v1850_v39 = vpop.f32.mrf.mxu0  ;;  %v2075_v43 = vpop.f32.mrf.mxu1 }
 0x232   : > { %v1853_v44 = vpop.f32.mrf.mxu0  ;;  %v2078_v45 = vpop.f32.mrf.mxu1 }
 0x233   : > { %v4599_v46 = vadd.f32 %v2078_v45, %v1853_v44 }
 0x234   : > { %v1855_v47 = vpop.f32.mrf.mxu0  ;;  %v2080_v50 = vpop.f32.mrf.mxu1 }
 0x236   : > { %v1858_v51 = vpop.f32.mrf.mxu0  ;;  %v2083_v54 = vpop.f32.mrf.mxu1 }
 0x237   : > { %v4601_v55 = vadd.f32 %v2083_v54, %v1858_v51 }
 0x238   : > { %v1860_v56 = vpop.f32.mrf.mxu0  ;;  %v2085_v57 = vpop.f32.mrf.mxu1 }
 0x23a   : > { %v1863_v59 = vpop.f32.mrf.mxu0  ;;  %v2088_v60 = vpop.f32.mrf.mxu1 }
 0x23b   : > { %v4603_v63 = vadd.f32 %v2088_v60, %v1863_v59 }
 0x23c   : > { %v1865_v1 = vpop.f32.mrf.mxu0  ;;  %v2090_v2 = vpop.f32.mrf.mxu1 }
 0x23d   : > { %4908 = vst [vmem:[#allocation4_spill] sm:$0xff] %v4603_v63 }
 0x23e   : > { %v1868_v5 = vpop.f32.mrf.mxu0  ;;  %v2093_v6 = vpop.f32.mrf.mxu1 }
 0x23f   : > { %v4605_v7 = vadd.f32 %v2093_v6, %v1868_v5 }
 0x240   : > { %v1870_v10 = vpop.f32.mrf.mxu0  ;;  %v2095_v11 = vpop.f32.mrf.mxu1 }
 0x241   : > { %4909 = vst [vmem:[#allocation5_spill] sm:$0xff] %v4605_v7 }
 0x242   : > { %v2163_v14 = vpop.f32.mrf.mxu0 }
 0x243   : > { %v2388_v15 = vpop.f32.mrf.mxu1  ;;  %v2164_v17 = vadd.f32 %v2163_v14, %v4543_v23 }
 0x244   : > { %v2165_v18 = vpop.f32.mrf.mxu0 }
 0x245   : > { %v2390_v20 = vpop.f32.mrf.mxu1  ;;  %v4608_v21 = vadd.f32 %v2388_v15, %v2164_v17 }
 0x246   : > { %v2168_v26 = vpop.f32.mrf.mxu0 }
 0x247   : > { %v2393_v27 = vpop.f32.mrf.mxu1  ;;  %v2169_v28 = vadd.f32 %v2168_v26, %v4545_v32 }
 0x248   : > { %v2170_v29 = vpop.f32.mrf.mxu0 }
 0x249   : > { %v2395_v34 = vpop.f32.mrf.mxu1  ;;  %v4611_v35 = vadd.f32 %v2393_v27, %v2169_v28 }
 0x24c   : > { %v2173_v36 = vpop.f32.mrf.mxu0 }
 0x24d   : > { %v2398_v3 = vpop.f32.mrf.mxu1  ;;  %v2174_v39 = vadd.f32 %v2173_v36, %v4547_v40 }
 0x24e   : > { %v2175_v43 = vpop.f32.mrf.mxu0 }
 0x24f   : > { %v2400_v44 = vpop.f32.mrf.mxu1  ;;  %v4614_v45 = vadd.f32 %v2398_v3, %v2174_v39 }
 0x251   : > { %v2178_v23 = vpop.f32.mrf.mxu0  ;;  %v2403_v47 = vpop.f32.mrf.mxu1 }
 0x252   : > { %v2179_v50 = vadd.f32 %v2178_v23, %v4549_v49 }
 0x253   : > { %v2180_v51 = vpop.f32.mrf.mxu0  ;;  %v2405_v54 = vpop.f32.mrf.mxu1 }
 0x254   : > { %v4617_v56 = vadd.f32 %v2403_v47, %v2179_v50 }
 0x255   : > { %v2183_v32 = vpop.f32.mrf.mxu0  ;;  %v2408_v57 = vpop.f32.mrf.mxu1 }
 0x256   : > { %v2184_v59 = vadd.f32 %v2183_v32, %v4551_v58 }
 0x257   : > { %v2185_v60 = vpop.f32.mrf.mxu0  ;;  %v2410_v1 = vpop.f32.mrf.mxu1 }
 0x258   : > { %v4620_v2 = vadd.f32 %v2408_v57, %v2184_v59 }
 0x259   : > { %v2188_v40 = vpop.f32.mrf.mxu0  ;;  %v2413_v5 = vpop.f32.mrf.mxu1 }
 0x25a   : > { %v2189_v6 = vadd.f32 %v2188_v40, %v4553_v4 }
 0x25b   : > { %v2190_v10 = vpop.f32.mrf.mxu0  ;;  %v2415_v11 = vpop.f32.mrf.mxu1 }
 0x25c   : > { %v4623_v14 = vadd.f32 %v2413_v5, %v2189_v6 }
 0x25d   : > { %v2193_v49 = vpop.f32.mrf.mxu0  ;;  %v2418_v15 = vpop.f32.mrf.mxu1 }
 0x25e   : > { %v2194_v17 = vadd.f32 %v2193_v49, %v4555_v13 }
 0x25f   : > { %v2195_v18 = vpop.f32.mrf.mxu0  ;;  %v2420_v20 = vpop.f32.mrf.mxu1 }
 0x260   : > { %v4626_v26 = vadd.f32 %v2418_v15, %v2194_v17 }
 0x261   : > { %v2198_v58 = vpop.f32.mrf.mxu0  ;;  %v2423_v27 = vpop.f32.mrf.mxu1 }
 0x262   : > { %v2199_v28 = vadd.f32 %v2198_v58, %v4557_v22 }
 0x263   : > { %v2200_v29 = vpop.f32.mrf.mxu0  ;;  %v2425_v34 = vpop.f32.mrf.mxu1 }
 0x264   : > { %v4629_v36 = vadd.f32 %v2423_v27, %v2199_v28 }
 0x265   : > { %v2203_v4 = vpop.f32.mrf.mxu0  ;;  %v2428_v3 = vpop.f32.mrf.mxu1 }
 0x266   : > { %v2204_v39 = vadd.f32 %v2203_v4, %v4559_v33 }
 0x267   : > { %v2205_v43 = vpop.f32.mrf.mxu0  ;;  %v2430_v44 = vpop.f32.mrf.mxu1 }
 0x268   : > { %v4632_v23 = vadd.f32 %v2428_v3, %v2204_v39 }
 0x269   : > { %v2208_v13 = vpop.f32.mrf.mxu0  ;;  %v2433_v47 = vpop.f32.mrf.mxu1 }
 0x26a   : > { %v2209_v50 = vadd.f32 %v2208_v13, %v4561_v42 }
 0x26b   : > { %v2210_v51 = vpop.f32.mrf.mxu0  ;;  %v2435_v54 = vpop.f32.mrf.mxu1 }
 0x26c   : > { %v4635_v32 = vadd.f32 %v2433_v47, %v2209_v50 }
 0x26d   : > { %v2213_v22 = vpop.f32.mrf.mxu0  ;;  %v2438_v57 = vpop.f32.mrf.mxu1 }
 0x26e   : > { %v2214_v59 = vadd.f32 %v2213_v22, %v4563_v52 }
 0x26f   : > { %v2215_v60 = vpop.f32.mrf.mxu0  ;;  %v2440_v1 = vpop.f32.mrf.mxu1 }
 0x270   : > { %v4638_v40 = vadd.f32 %v2438_v57, %v2214_v59 }
 0x271   : > { %v2218_v33 = vpop.f32.mrf.mxu0  ;;  %v2443_v5 = vpop.f32.mrf.mxu1 }
 0x272   : > { %v2219_v6 = vadd.f32 %v2218_v33, %v4565_v62 }
 0x273   : > { %v2220_v10 = vpop.f32.mrf.mxu0  ;;  %v2445_v11 = vpop.f32.mrf.mxu1 }
 0x274   : > { %v4641_v49 = vadd.f32 %v2443_v5, %v2219_v6 }
 0x275   : > { %v2223_v42 = vpop.f32.mrf.mxu0  ;;  %v2448_v15 = vpop.f32.mrf.mxu1 }
 0x276   : > { %v2224_v17 = vadd.f32 %v2223_v42, %v4567_v9 }
 0x277   : > { %v2225_v18 = vpop.f32.mrf.mxu0  ;;  %v2450_v20 = vpop.f32.mrf.mxu1 }
 0x278   : > { %v4644_v58 = vadd.f32 %v2448_v15, %v2224_v17 }
 0x279   : > { %v2228_v52 = vpop.f32.mrf.mxu0  ;;  %v2453_v27 = vpop.f32.mrf.mxu1 }
 0x27a   : > { %4910 = vst [vmem:[#allocation6_spill] sm:$0xff] %v4644_v58  ;;  %v2229_v28 = vadd.f32 %v2228_v52, %v4569_v19 }
 0x27b   : > { %v2230_v29 = vpop.f32.mrf.mxu0  ;;  %v2455_v34 = vpop.f32.mrf.mxu1 }
 0x27c   : > { %v4647_v4 = vadd.f32 %v2453_v27, %v2229_v28 }
 0x27d   : > { %v2233_v62 = vpop.f32.mrf.mxu0  ;;  %v2458_v3 = vpop.f32.mrf.mxu1 }
 0x27e   : > { %4911 = vst [vmem:[#allocation7_spill] sm:$0xff] %v4647_v4  ;;  %v2234_v39 = vadd.f32 %v2233_v62, %v4571_v30 }
 0x27f   : > { %v2235_v43 = vpop.f32.mrf.mxu0  ;;  %v2460_v44 = vpop.f32.mrf.mxu1 }
 0x280   : > { %v4650_v13 = vadd.f32 %v2458_v3, %v2234_v39 }
 0x281   : > { %v2238_v9 = vpop.f32.mrf.mxu0  ;;  %v2463_v47 = vpop.f32.mrf.mxu1 }
 0x282   : > { %4912 = vst [vmem:[#allocation8_spill] sm:$0xff] %v4650_v13  ;;  %v2239_v50 = vadd.f32 %v2238_v9, %v4573_v41 }
 0x283   : > { %v2240_v51 = vpop.f32.mrf.mxu0  ;;  %v2465_v54 = vpop.f32.mrf.mxu1 }
 0x284   : > { %v4653_v22 = vadd.f32 %v2463_v47, %v2239_v50 }
 0x285   : > { %v2243_v19 = vpop.f32.mrf.mxu0  ;;  %v2468_v57 = vpop.f32.mrf.mxu1 }
 0x286   : > { %4913 = vst [vmem:[#allocation9_spill] sm:$0xff] %v4653_v22  ;;  %v2244_v59 = vadd.f32 %v2243_v19, %v4575_v53 }
 0x287   : > { %v2245_v60 = vpop.f32.mrf.mxu0  ;;  %v2470_v1 = vpop.f32.mrf.mxu1 }
 0x288   : > { %v4656_v33 = vadd.f32 %v2468_v57, %v2244_v59 }
 0x289   : > { %v2248_v30 = vpop.f32.mrf.mxu0  ;;  %v2473_v5 = vpop.f32.mrf.mxu1 }
 0x28b   : > { %v2250_v6 = vpop.f32.mrf.mxu0  ;;  %v2475_v10 = vpop.f32.mrf.mxu1 }
 0x28d   : > { %v2253_v11 = vpop.f32.mrf.mxu0  ;;  %v4658_v42 = vpop.f32.mrf.mxu1 }
 0x28f   : > { %v2255_v41 = vpop.f32.mrf.mxu0  ;;  %v2480_v15 = vpop.f32.mrf.mxu1 }
 0x291   : > { %v2258_v17 = vpop.f32.mrf.mxu0  ;;  %v4660_v18 = vpop.f32.mrf.mxu1 }
 0x293   : > { %v2260_v20 = vpop.f32.mrf.mxu0  ;;  %v2485_v52 = vpop.f32.mrf.mxu1 }
 0x295   : > { %v4662_v27 = vpop.f32.mrf.mxu0  ;;  %v4664_v53 = vpop.f32.mrf.mxu1 }
 0x297   : > { %v2265_v28 = vpop.f32.mrf.mxu0  ;;  %v2490_v29 = vpop.f32.mrf.mxu1 }
 0x299   : > { %v2268_v34 = vpop.f32.mrf.mxu0  ;;  %v4666_v62 = vpop.f32.mrf.mxu1 }
 0x29b   : > { %v2270_v3 = vpop.f32.mrf.mxu0  ;;  %v2495_v39 = vpop.f32.mrf.mxu1 }
 0x29d   : > { %v4668_v43 = vpop.f32.mrf.mxu0  ;;  %v4670_v44 = vpop.f32.mrf.mxu1 }
 0x29f   : > { %v2275_v9 = vpop.f32.mrf.mxu0  ;;  %v2500_v47 = vpop.f32.mrf.mxu1 }
 0x2a1   : > { %v4672_v50 = vpop.f32.mrf.mxu0  ;;  %v4674_v51 = vpop.f32.mrf.mxu1 }
 0x2a3   : > { %v2280_v54 = vpop.f32.mrf.mxu0  ;;  %v2505_v19 = vpop.f32.mrf.mxu1 }
 0x2a5   : > { %v4676_v57 = vpop.f32.mrf.mxu0  ;;  %v4678_v59 = vpop.f32.mrf.mxu1 }
 0x2a7   : > { %v2285_v60 = vpop.f32.mrf.mxu0  ;;  %v2510_v1 = vpop.f32.mrf.mxu1 }
 0x2a9   : > { %v4680_v6 = vpop.f32.mrf.mxu0  ;;  %v4682_v10 = vpop.f32.mrf.mxu1 }
 0x2ab   : > { %v2290_v41 = vpop.f32.mrf.mxu0  ;;  %v2515_v15 = vpop.f32.mrf.mxu1 }
 0x2ad   : > { %v4684_v20 = vpop.f32.mrf.mxu0  ;;  %v4686_v52 = vpop.f32.mrf.mxu1 }
 0x2af   : > { %v2295_v28 = vpop.f32.mrf.mxu0  ;;  %v2520_v29 = vpop.f32.mrf.mxu1 }
 0x2b1   : > { %v4688_v3 = vpop.f32.mrf.mxu0  ;;  %v4690_v39 = vpop.f32.mrf.mxu1 }
 0x2b3   : > { %v2300_v9 = vpop.f32.mrf.mxu0  ;;  %v2525_v47 = vpop.f32.mrf.mxu1 }
 0x2b4   : > { %v2249_v47 = vadd.f32 %v2248_v30, %v4577_v0 }
 0x2b5   : > { %v4692_v54 = vpop.f32.mrf.mxu0  ;;  %v4694_v19 = vpop.f32.mrf.mxu1 }
 0x2b6   : > { %4914 = vst [vmem:[#allocation10_spill] sm:$0xff] %v4694_v19  ;;  %v2474_v4 = vadd.f32 %v2473_v5, %v2249_v47 }
 0x2b7   : > { %v2305_v60 = vpop.f32.mrf.mxu0  ;;  %v2530_v1 = vpop.f32.mrf.mxu1 }
 0x2b9   : > { %v4696_v41 = vpop.f32.mrf.mxu0  ;;  %v4698_v15 = vpop.f32.mrf.mxu1 }
 0x2bb   : > { %v2310_v13 = vpop.f32.mrf.mxu0  ;;  %v2535_v22 = vpop.f32.mrf.mxu1 }
 0x2bc   : > { %v2254_v13 = vadd.f32 %v2253_v11, %v4579_v12  ;;  %v2259_v22 = vadd.f32 %v2258_v17, %v4581_v25 }
 0x2bd   : > { %v4700_v28 = vpop.f32.mrf.mxu0  ;;  %v4702_v29 = vpop.f32.mrf.mxu1 }
 0x2be   : > { %4915 = vst [vmem:[#allocation11_spill] sm:$0xff] %v4700_v28  ;;  %v2479_v12 = vadd.f32 %v4658_v42, %v2254_v13  ;;  %v2484_v25 = vadd.f32 %v4660_v18, %v2259_v22 }
 0x2bf   : > { %v2315_v58 = vpop.f32.mrf.mxu0  ;;  %v2540_v9 = vpop.f32.mrf.mxu1 }
 0x2c1   : > { %v4705_v63 = vpop.f32.mrf.mxu0  ;;  %v4707_v60 = vpop.f32.mrf.mxu1 }
 0x2c3   : > { %v2320_v1 = vpop.f32.mrf.mxu0  ;;  %v2545_v19 = vpop.f32.mrf.mxu1 }
 0x2c5   : > { %v3073_v28 = vpop.f32.mrf.mxu0  ;;  %v3097_v7 = vpop.f32.mrf.mxu1 }
 0x2c6   : > { %v2619_v58 = vadd.f32 %v3073_v28, %v4611_v35  ;;  %v4712_v9 = vadd.f32 %v3097_v7, %v2474_v4  ;;  %v2269_v35 = vadd.f32 %v2268_v34, %v4585_v48 }
 0x2c7   : > { %v2613_v0 = vpop.f32.mrf.mxu0  ;;  %v2693_v30 = vpop.f32.mrf.mxu1 }
 0x2c8   : > { %2885 = vst [vmem:[%s3217_s25 + $0x8] sm:$0xff] %v2619_v58  ;;  %2901 = vst [vmem:[%s3217_s25 + $0x88] sm:$0xff] %v4712_v9  ;;  %v2614_v19 = vadd.f32 %v2613_v0, %v4608_v21  ;;  %v4719_v5 = vadd.f32 %v2693_v30, %v4656_v33  ;;  %v2814_v11 = vmul.f32 %v2619_v58, %v2619_v58 }
 0x2c9   : > { %v3076_v7 = vpop.f32.mrf.mxu0  ;;  %v3100_v4 = vpop.f32.mrf.mxu1  ;;  %v2264_v33 = vadd.f32 %v4662_v27, %v4583_v37  ;;  %v2494_v13 = vadd.f32 %v4666_v62, %v2269_v35  ;;  %v2274_v62 = vadd.f32 %v4668_v43, %v4587_v61 }
 0x2ca   : > { %v2773_v17 = vadd.f32 %v2619_v58, %v2614_v19  ;;  %v2813_v28 = vmul.f32 %v2614_v19, %v2614_v19  ;;  %2884 = vst [vmem:[%s3217_s25] sm:$0xff] %v2614_v19  ;;  %2900 = vst [vmem:[%s3217_s25 + $0x80] sm:$0xff] %v4719_v5  ;;  %v2629_v21 = vadd.f32 %v3076_v7, %v4617_v56 }
 0x2cb   : > { %v4730_v42 = vadd.f32 %v3100_v4, %v2484_v25  ;;  %v2623_v18 = vpop.f32.mrf.mxu0  ;;  %v2703_v48 = vpop.f32.mrf.mxu1  ;;  %v2279_v56 = vadd.f32 %v4672_v50, %v4589_v8  ;;  %v2489_v0 = vadd.f32 %v4664_v53, %v2264_v33 }
 0x2cc   : > { %v2845_v34 = vadd.f32 %v2814_v11, %v2813_v28  ;;  %2887 = vst [vmem:[%s3217_s25 + $0x18] sm:$0xff] %v2629_v21  ;;  %v2624_v47 = vadd.f32 %v2623_v18, %v4614_v45  ;;  %v4734_v1 = vadd.f32 %v2703_v48, %v2479_v12  ;;  %v2816_v19 = vmul.f32 %v2629_v21, %v2629_v21 }
 0x2cd   : > { %2903 = vst [vmem:[%s3217_s25 + $0x98] sm:$0xff] %v4730_v42  ;;  %v3079_v37 = vpop.f32.mrf.mxu0  ;;  %v3103_v27 = vpop.f32.mrf.mxu1  ;;  %v2504_v7 = vadd.f32 %v4674_v51, %v2279_v56  ;;  %v2499_v28 = vadd.f32 %v4670_v44, %v2274_v62  ;;  %v2284_v51 = vadd.f32 %v4676_v57, %v4591_v16  ;;  %v2299_v44 = vadd.f32 %v4688_v3, %v4597_v38 }
 0x2ce   : > { %v2774_v22 = vadd.f32 %v2773_v17, %v2624_v47  ;;  %v2815_v58 = vmul.f32 %v2624_v47, %v2624_v47  ;;  %2886 = vst [vmem:[%s3217_s25 + $0x10] sm:$0xff] %v2624_v47  ;;  %2902 = vst [vmem:[%s3217_s25 + $0x90] sm:$0xff] %v4734_v1  ;;  %v2639_v45 = vadd.f32 %v3079_v37, %v4623_v14 }
 0x2cf   : > { %v4748_v30 = vadd.f32 %v3103_v27, %v2494_v13  ;;  %v2633_v8 = vpop.f32.mrf.mxu0  ;;  %v2713_v50 = vpop.f32.mrf.mxu1  ;;  %v2289_v14 = vadd.f32 %v4680_v6, %v4593_v24  ;;  %v2509_v27 = vadd.f32 %v4678_v59, %v2284_v51  ;;  %v2309_v59 = vadd.f32 %v4696_v41, %v4601_v55  ;;  %v4917_v51 = vld [vmem:[#allocation7_spill] sm:$0xff] }
 0x2d0   : > { %v2846_v12 = vadd.f32 %v2845_v34, %v2815_v58  ;;  %2889 = vst [vmem:[%s3217_s25 + $0x28] sm:$0xff] %v2639_v45  ;;  %v2634_v25 = vadd.f32 %v2633_v8, %v4620_v2  ;;  %v2775_v35 = vadd.f32 %v2774_v22, %v2629_v21  ;;  %v4757_v61 = vadd.f32 %v2713_v50, %v2489_v0 }
 0x2d1   : > { %2905 = vst [vmem:[%s3217_s25 + $0xa8] sm:$0xff] %v4748_v30  ;;  %v3082_v53 = vpop.f32.mrf.mxu0  ;;  %v3106_v43 = vpop.f32.mrf.mxu1  ;;  %v2818_v33 = vmul.f32 %v2639_v45, %v2639_v45 }
 0x2d2   : > { %v2776_v4 = vadd.f32 %v2775_v35, %v2634_v25  ;;  %v2817_v11 = vmul.f32 %v2634_v25, %v2634_v25  ;;  %v2847_v17 = vadd.f32 %v2846_v12, %v2816_v19  ;;  %2888 = vst [vmem:[%s3217_s25 + $0x20] sm:$0xff] %v2634_v25  ;;  %v2649_v2 = vadd.f32 %v3082_v53, %v4629_v36 }
 0x2d3   : > { %2904 = vst [vmem:[%s3217_s25 + $0xa0] sm:$0xff] %v4757_v61  ;;  %v4766_v24 = vadd.f32 %v3106_v43, %v2504_v7  ;;  %v2643_v6 = vpop.f32.mrf.mxu0  ;;  %v2723_v21 = vpop.f32.mrf.mxu1  ;;  %v2514_v36 = vadd.f32 %v4682_v10, %v2289_v14  ;;  %v2294_v10 = vadd.f32 %v4684_v20, %v4595_v31 }
 0x2d4   : > { %v2848_v18 = vadd.f32 %v2847_v17, %v2817_v11  ;;  %2891 = vst [vmem:[%s3217_s25 + $0x38] sm:$0xff] %v2649_v2  ;;  %v2644_v48 = vadd.f32 %v2643_v6, %v4626_v26  ;;  %v2777_v34 = vadd.f32 %v2776_v4, %v2639_v45  ;;  %v4775_v16 = vadd.f32 %v2723_v21, %v2499_v28  ;;  %v4918_v6 = vld [vmem:[#allocation10_spill] sm:$0xff] }
 0x2d5   : > { %2907 = vst [vmem:[%s3217_s25 + $0xb8] sm:$0xff] %v4766_v24  ;;  %v3085_v57 = vpop.f32.mrf.mxu0  ;;  %v3109_v47 = vpop.f32.mrf.mxu1  ;;  %v2820_v58 = vmul.f32 %v2649_v2, %v2649_v2  ;;  %v2519_v25 = vadd.f32 %v4686_v52, %v2294_v10  ;;  %v4916_v52 = vld [vmem:[#allocation5_spill] sm:$0xff] }
 0x2d6   : > { %v2778_v13 = vadd.f32 %v2777_v34, %v2644_v48  ;;  %v2819_v56 = vmul.f32 %v2644_v48, %v2644_v48  ;;  %v2849_v37 = vadd.f32 %v2848_v18, %v2818_v33  ;;  %2890 = vst [vmem:[%s3217_s25 + $0x30] sm:$0xff] %v2644_v48  ;;  %v2659_v26 = vadd.f32 %v3085_v57, %v4635_v32  ;;  %v4920_v33 = vld [vmem:[#allocation11_spill] sm:$0xff]  ;;  %v4921_v57 = vld [vmem:[#allocation6_spill] sm:$0xff] }
 0x2d7   : > { %2906 = vst [vmem:[%s3217_s25 + $0xb0] sm:$0xff] %v4775_v16  ;;  %v4784_v38 = vadd.f32 %v3109_v47, %v2514_v36  ;;  %v2653_v3 = vpop.f32.mrf.mxu0  ;;  %v2733_v22 = vpop.f32.mrf.mxu1  ;;  %v2524_v32 = vadd.f32 %v4690_v39, %v2299_v44  ;;  %v2304_v39 = vadd.f32 %v4692_v54, %v4599_v46  ;;  %v2319_v4 = vadd.f32 %v4705_v63, %v4916_v52 }
 0x2d8   : > { %v2850_v45 = vadd.f32 %v2849_v37, %v2819_v56  ;;  %2893 = vst [vmem:[%s3217_s25 + $0x48] sm:$0xff] %v2659_v26  ;;  %v2654_v0 = vadd.f32 %v2653_v3, %v4632_v23  ;;  %v2779_v62 = vadd.f32 %v2778_v13, %v2649_v2  ;;  %v4793_v31 = vadd.f32 %v2733_v22, %v2509_v27 }
 0x2d9   : > { %2909 = vst [vmem:[%s3217_s25 + $0xc8] sm:$0xff] %v4784_v38  ;;  %v3088_v20 = vpop.f32.mrf.mxu0  ;;  %v3112_v8 = vpop.f32.mrf.mxu1  ;;  %v2822_v7 = vmul.f32 %v2659_v26, %v2659_v26  ;;  %v2529_v21 = vadd.f32 %v4918_v6, %v2304_v39  ;;  %v2544_v56 = vadd.f32 %v4707_v60, %v2319_v4  ;;  %v2831_v4 = vmul.f32 %v4734_v1, %v4734_v1 }
 0x2da   : > { %v2780_v50 = vadd.f32 %v2779_v62, %v2654_v0  ;;  %v2821_v19 = vmul.f32 %v2654_v0, %v2654_v0  ;;  %v2851_v12 = vadd.f32 %v2850_v45, %v2820_v58  ;;  %2892 = vst [vmem:[%s3217_s25 + $0x40] sm:$0xff] %v2654_v0  ;;  %v2669_v23 = vadd.f32 %v3088_v20, %v4641_v49  ;;  %v4922_v58 = vld [vmem:[#allocation9_spill] sm:$0xff] }
 0x2db   : > { %2908 = vst [vmem:[%s3217_s25 + $0xc0] sm:$0xff] %v4793_v31  ;;  %v4802_v55 = vadd.f32 %v3112_v8, %v2524_v32  ;;  %v2663_v41 = vpop.f32.mrf.mxu0  ;;  %v2743_v35 = vpop.f32.mrf.mxu1  ;;  %v2534_v49 = vadd.f32 %v4698_v15, %v2309_v59  ;;  %v4919_v15 = vld [vmem:[#allocation4_spill] sm:$0xff] }
 0x2dc   : > { %v2852_v14 = vadd.f32 %v2851_v12, %v2821_v19  ;;  %2895 = vst [vmem:[%s3217_s25 + $0x58] sm:$0xff] %v2669_v23  ;;  %v2664_v53 = vadd.f32 %v2663_v41, %v4638_v40  ;;  %v2781_v43 = vadd.f32 %v2780_v50, %v2659_v26  ;;  %v4811_v46 = vadd.f32 %v2743_v35, %v2519_v25  ;;  %v4923_v8 = vld [vmem:[#allocation8_spill] sm:$0xff] }
 0x2dd   : > { %2911 = vst [vmem:[%s3217_s25 + $0xd8] sm:$0xff] %v4802_v55  ;;  %v3091_v54 = vpop.f32.mrf.mxu0  ;;  %v3115_v11 = vpop.f32.mrf.mxu1  ;;  %v2314_v18 = vadd.f32 %v4920_v33, %v4919_v15  ;;  %v2824_v36 = vmul.f32 %v2669_v23, %v2669_v23 }
 0x2de   : > { %v2782_v17 = vadd.f32 %v2781_v43, %v2664_v53  ;;  %v2823_v2 = vmul.f32 %v2664_v53, %v2664_v53  ;;  %v2853_v28 = vadd.f32 %v2852_v14, %v2822_v7  ;;  %2894 = vst [vmem:[%s3217_s25 + $0x50] sm:$0xff] %v2664_v53  ;;  %v2679_v40 = vadd.f32 %v3091_v54, %v4917_v51 }
 0x2df   : > { %2910 = vst [vmem:[%s3217_s25 + $0xd0] sm:$0xff] %v4811_v46  ;;  %v4820_v63 = vadd.f32 %v3115_v11, %v2534_v49  ;;  %v2673_v48 = vpop.f32.mrf.mxu0  ;;  %v2753_v34 = vpop.f32.mrf.mxu1  ;;  %v2539_v0 = vadd.f32 %v4702_v29, %v2314_v18  ;;  %v2829_v7 = vmul.f32 %v4719_v5, %v4719_v5  ;;  %v2830_v43 = vmul.f32 %v4712_v9, %v4712_v9 }
 0x2e0   : > { %v2854_v44 = vadd.f32 %v2853_v28, %v2823_v2  ;;  %2897 = vst [vmem:[%s3217_s25 + $0x68] sm:$0xff] %v2679_v40  ;;  %v2674_v47 = vadd.f32 %v2673_v48, %v4921_v57  ;;  %v2783_v13 = vadd.f32 %v2782_v17, %v2669_v23  ;;  %v4827_v37 = vadd.f32 %v2753_v34, %v2529_v21 }
 0x2e1   : > { %2913 = vst [vmem:[%s3217_s25 + $0xe8] sm:$0xff] %v4820_v63  ;;  %v3094_v26 = vpop.f32.mrf.mxu0  ;;  %v3118_v27 = vpop.f32.mrf.mxu1  ;;  %v2826_v59 = vmul.f32 %v2679_v40, %v2679_v40  ;;  %v2832_v17 = vmul.f32 %v4730_v42, %v4730_v42 }
 0x2e2   : > { %v2784_v10 = vadd.f32 %v2783_v13, %v2674_v47  ;;  %v2825_v3 = vmul.f32 %v2674_v47, %v2674_v47  ;;  %v2855_v22 = vadd.f32 %v2854_v44, %v2824_v36  ;;  %2896 = vst [vmem:[%s3217_s25 + $0x60] sm:$0xff] %v2674_v47  ;;  %v2689_v45 = vadd.f32 %v3094_v26, %v4922_v58 }
 0x2e3   : > { %2912 = vst [vmem:[%s3217_s25 + $0xe0] sm:$0xff] %v4827_v37  ;;  %v4834_v60 = vadd.f32 %v3118_v27, %v2544_v56  ;;  %v2683_v62 = vpop.f32.mrf.mxu0  ;;  %v2763_v32 = vpop.f32.mrf.mxu1 }
 0x2e4   : > { %v2856_v20 = vadd.f32 %v2855_v22, %v2825_v3  ;;  %2899 = vst [vmem:[%s3217_s25 + $0x78] sm:$0xff] %v2689_v45  ;;  %v2684_v50 = vadd.f32 %v2683_v62, %v4923_v8  ;;  %v2785_v19 = vadd.f32 %v2784_v10, %v2679_v40  ;;  %v2764_v12 = vadd.f32 %v2763_v32, %v2539_v0 }
 0x2e5   : > { %2915 = vst [vmem:[%s3217_s25 + $0xf8] sm:$0xff] %v4834_v60  ;;  %v2828_v29 = vmul.f32 %v2689_v45, %v2689_v45  ;;  %v2844_v0 = vmul.f32 %v4834_v60, %v4834_v60 }
 0x2e6   : > { %v2786_v23 = vadd.f32 %v2785_v19, %v2684_v50  ;;  %v2827_v25 = vmul.f32 %v2684_v50, %v2684_v50  ;;  %v2857_v39 = vadd.f32 %v2856_v20, %v2826_v59  ;;  %2898 = vst [vmem:[%s3217_s25 + $0x70] sm:$0xff] %v2684_v50  ;;  %2914 = vst [vmem:[%s3217_s25 + $0xf0] sm:$0xff] %v2764_v12 }
 0x2e7   : > { %v2843_v58 = vmul.f32 %v2764_v12, %v2764_v12 }
 0x2e8   : > { %v2787_v41 = vadd.f32 %v2786_v23, %v2689_v45  ;;  %v2858_v35 = vadd.f32 %v2857_v39, %v2827_v25 }
 0x2ea   : > { %v2788_v14 = vadd.f32 %v2787_v41, %v4719_v5  ;;  %v2859_v53 = vadd.f32 %v2858_v35, %v2828_v29  ;;  %v2833_v5 = vmul.f32 %v4757_v61, %v4757_v61 }
 0x2ec   : > { %v2789_v49 = vadd.f32 %v2788_v14, %v4712_v9  ;;  %v2860_v52 = vadd.f32 %v2859_v53, %v2829_v7  ;;  %v2834_v9 = vmul.f32 %v4748_v30, %v4748_v30 }
 0x2ee   : > { %v2790_v54 = vadd.f32 %v2789_v49, %v4734_v1  ;;  %v2861_v11 = vadd.f32 %v2860_v52, %v2830_v43  ;;  %v2835_v1 = vmul.f32 %v4775_v16, %v4775_v16 }
 0x2f0   : > { %v2791_v2 = vadd.f32 %v2790_v54, %v4730_v42  ;;  %v2862_v28 = vadd.f32 %v2861_v11, %v2831_v4  ;;  %v2836_v42 = vmul.f32 %v4766_v24, %v4766_v24 }
 0x2f2   : > { %v2792_v51 = vadd.f32 %v2791_v2, %v4757_v61  ;;  %v2863_v40 = vadd.f32 %v2862_v28, %v2832_v17  ;;  %v2837_v61 = vmul.f32 %v4793_v31, %v4793_v31 }
 0x2f4   : > { %v2793_v6 = vadd.f32 %v2792_v51, %v4748_v30  ;;  %v2864_v21 = vadd.f32 %v2863_v40, %v2833_v5  ;;  %v2838_v30 = vmul.f32 %v4784_v38, %v4784_v38 }
 0x2f6   : > { %v2865_v15 = vadd.f32 %v2864_v21, %v2834_v9  ;;  %v2794_v33 = vadd.f32 %v2793_v6, %v4775_v16  ;;  %v2839_v16 = vmul.f32 %v4811_v46, %v4811_v46 }
 0x2f8   : > { %v2795_v18 = vadd.f32 %v2794_v33, %v4766_v24  ;;  %v2866_v48 = vadd.f32 %v2865_v15, %v2835_v1  ;;  %v2840_v24 = vmul.f32 %v4802_v55, %v4802_v55 }
 0x2fa   : > { %v2796_v34 = vadd.f32 %v2795_v18, %v4793_v31  ;;  %v2867_v36 = vadd.f32 %v2866_v48, %v2836_v42  ;;  %v2841_v31 = vmul.f32 %v4827_v37, %v4827_v37 }
 0x2fc   : > { %v2797_v44 = vadd.f32 %v2796_v34, %v4784_v38  ;;  %v2868_v57 = vadd.f32 %v2867_v36, %v2837_v61  ;;  %v2842_v38 = vmul.f32 %v4820_v63, %v4820_v63 }
 0x2fe   : > { %v2798_v47 = vadd.f32 %v2797_v44, %v4811_v46  ;;  %v2869_v13 = vadd.f32 %v2868_v57, %v2838_v30 }
 0x300   : > { %v2799_v56 = vadd.f32 %v2798_v47, %v4802_v55  ;;  %v2870_v26 = vadd.f32 %v2869_v13, %v2839_v16 }
 0x302   : > { %v2800_v27 = vadd.f32 %v2799_v56, %v4827_v37  ;;  %v2871_v10 = vadd.f32 %v2870_v26, %v2840_v24 }
 0x304   : > { %v2801_v3 = vadd.f32 %v2800_v27, %v4820_v63  ;;  %v2872_v22 = vadd.f32 %v2871_v10, %v2841_v31 }
 0x306   : > { %v2802_v46 = vadd.f32 %v2801_v3, %v2764_v12  ;;  %v2873_v45 = vadd.f32 %v2872_v22, %v2842_v38  ;;  %v2772_v12 = vld [vmem:[%s4907_s5] sm:$0x1] }
 0x308   : > { %v2803_v55 = vadd.f32 %v2802_v46, %v4834_v60  ;;  %v2874_v62 = vadd.f32 %v2873_v45, %v2843_v58  ;;  %v2812_v60 = vld [vmem:[%s4907_s5 + $0x1] sm:$0x1] }
 0x30a   : > { %v2804_v32 = vrot.slane %v2803_v55, 4  ;;  %v2875_v59 = vadd.f32 %v2874_v62, %v2844_v0 }
 0x30c   : > { %v2805_v20 = vadd.f32 %v2804_v32, %v2803_v55  ;;  %v2876_v37 = vrot.slane %v2875_v59, 4 }
 0x30e   : > { %v2806_v8 = vrot.slane %v2805_v20, 2  ;;  %v2877_v50 = vadd.f32 %v2876_v37, %v2875_v59 }
 0x310   : > { %v2807_v19 = vadd.f32 %v2806_v8, %v2805_v20  ;;  %v2878_v23 = vrot.slane %v2877_v50, 2 }
 0x312   : > { %v2808_v25 = vrot.slane %v2807_v19, 1  ;;  %v2879_v63 = vadd.f32 %v2878_v23, %v2877_v50 }
 0x314   : > { %v2809_v39 = vadd.f32 %v2808_v25, %v2807_v19  ;;  %v2880_v29 = vrot.slane %v2879_v63, 1 }
 0x316   : > { %v2810_v41 = vadd.f32 %v2809_v39, %v2772_v12  ;;  %v2881_v35 = vadd.f32 %v2880_v29, %v2879_v63 }
 0x318   : > { %2811 = vst [vmem:[%s4907_s5] sm:$0x1] %v2810_v41  ;;  %v2882_v7 = vadd.f32 %v2881_v35, %v2812_v60 }
 0x31a   : > { %2883 = vst [vmem:[%s4907_s5 + $0x1] sm:$0x1] %v2882_v7 }
 0x31b PF: > { %s16_s18 = sadd.s32 1, %s3167_s18  }
 0x31c   : > { %p13_p5 = scmp.ge.s32.totalorder %s16_s18, 4  }
 0x31e   :  { %15 = sbr.rel (!%p13_p5) target bundleno = 1 (0x1), region = 80 }

// kernel: double_conv.4
= control target key start
LH: loop header
LB: loop body
LE: loop exit
PB: predicated region body
PF: predicated region fallthrough
CT: control target
= control target key end

     0   :  { %s3371_s18 = smov 0   ;;  %s5095_s0 = inlined_call_operand.vmem [shape: f32[2,16,16,128], index: 0, kind: input, shape index: {}]   ;;  %s5096_s1 = inlined_call_operand.vmem [shape: f32[1152,128], index: 1, kind: input, shape index: {}]   ;;  %s5097_s2 = inlined_call_operand.vmem [shape: f32[1,1,128], index: 2, kind: input, shape index: {}]   ;;  %s5098_s3 = inlined_call_operand.vmem [shape: f32[1,1,128], index: 3, kind: input, shape index: {}]   ;;  %s5099_s4 = inlined_call_operand.vmem [shape: f32[2,256,128], index: 4, kind: output, shape index: {0}]   ;;  %s5100_s5 = inlined_call_operand.vmem [shape: f32[2,128], index: 5, kind: output, shape index: {1}]  }
   0x1 LB: > { %s3084_s19 = sadd.s32 4294967295, %s3337_s18   ;;  %p3088_p0 = scmp.ge.s32.totalorder %s3337_s18, 1  ;;  %s3337_s18 = sphi %s3371_s18, %s16_s18  }
   0x2   : > { %p185_p1 = scmp.lt.s32.totalorder %s3337_s18, 3 }
   0x4   : > { %p186_p2 = pnand %p3088_p0, %p185_p1 }
   0x6   : > { %189 = sbr.rel (%p186_p2) target bundleno = 668 (0x29c), region = 36 }
   0xb   : > { %p213_p3 = scmp.lt.s32.totalorder %s3084_s19, 1  ;;  %p3093_p4 = scmp.ne.s32.totalorder %s3084_s19, 0 }
   0xd   : > { %s214_s20 = scalar_select %p213_p3, %s3084_s19, 1 }
   0xe   : > { %226 = sbr.rel (%p3093_p4) target bundleno = 68 (0x44), region = 40 }
   0xf   : > { %s3098_s21 = sshll.u32 %s214_s20, 8 }
  0x10   : > { %s3382_s24 = scalar_lea.vmem %s5095_s0, %s3098_s21  ;;  %s3387_s27 = scalar_lea.vmem %s5099_s4, %s3098_s21 }
  0x13   : > { %v3339_v0 = vmov 0.0  }
  0x14   : > { %227 = vst [vmem:[#allocation2] sm:$0xff] %v3339_v0  ;;  %228 = vst [vmem:[#allocation2 + $0x8] sm:$0xff] %v3339_v0 }
  0x15   : > { %229 = vst [vmem:[#allocation2 + $0x10] sm:$0x3] %v3339_v0  ;;  %230 = vst [vmem:[#allocation2 + $0x18] sm:$0xff] %v3339_v0 }
  0x16   : > { %231 = vst [vmem:[#allocation2 + $0x20] sm:$0xff] %v3339_v0  ;;  %232 = vst [vmem:[#allocation2 + $0x28] sm:$0x3] %v3339_v0 }
  0x17   : > { %233 = vst [vmem:[#allocation2 + $0x30] sm:$0xff] %v3339_v0  ;;  %234 = vst [vmem:[#allocation2 + $0x38] sm:$0xff] %v3339_v0 }
  0x18   : > { %235 = vst [vmem:[#allocation2 + $0x40] sm:$0x3] %v3339_v0  ;;  %236 = vst [vmem:[#allocation2 + $0x48] sm:$0xff] %v3339_v0 }
  0x19   : > { %237 = vst [vmem:[#allocation2 + $0x50] sm:$0xff] %v3339_v0  ;;  %238 = vst [vmem:[#allocation2 + $0x58] sm:$0x3] %v3339_v0 }
  0x1a   : > { %239 = vst [vmem:[#allocation2 + $0x60] sm:$0xff] %v3339_v0  ;;  %240 = vst [vmem:[#allocation2 + $0x68] sm:$0xff] %v3339_v0 }
  0x1b   : > { %241 = vst [vmem:[#allocation2 + $0x70] sm:$0x3] %v3339_v0  ;;  %242 = vst [vmem:[#allocation2 + $0x78] sm:$0xff] %v3339_v0 }
  0x1c   : > { %243 = vst [vmem:[#allocation2 + $0x80] sm:$0xff] %v3339_v0  ;;  %244 = vst [vmem:[#allocation2 + $0x88] sm:$0x3] %v3339_v0 }
  0x1d   : > { %245 = vst [vmem:[#allocation2 + $0x90] sm:$0xff] %v3339_v0  ;;  %246 = vst [vmem:[#allocation2 + $0x98] sm:$0xff] %v3339_v0 }
  0x1e   : > { %247 = vst [vmem:[#allocation2 + $0xa0] sm:$0x3] %v3339_v0  ;;  %248 = vst [vmem:[#allocation2 + $0xa8] sm:$0xff] %v3339_v0 }
  0x1f   : > { %249 = vst [vmem:[#allocation2 + $0xb0] sm:$0xff] %v3339_v0  ;;  %250 = vst [vmem:[#allocation2 + $0xb8] sm:$0x3] %v3339_v0 }
  0x20   : > { %251 = vst [vmem:[#allocation2 + $0xc0] sm:$0xff] %v3339_v0  ;;  %252 = vst [vmem:[#allocation2 + $0xc8] sm:$0xff] %v3339_v0 }
  0x21   : > { %253 = vst [vmem:[#allocation2 + $0xd0] sm:$0x3] %v3339_v0  ;;  %254 = vst [vmem:[#allocation2 + $0xd8] sm:$0xff] %v3339_v0 }
  0x22   : > { %255 = vst [vmem:[#allocation2 + $0xe0] sm:$0xff] %v3339_v0  ;;  %256 = vst [vmem:[#allocation2 + $0xe8] sm:$0x3] %v3339_v0 }
  0x23   : > { %257 = vst [vmem:[#allocation2 + $0xf0] sm:$0xff] %v3339_v0  ;;  %258 = vst [vmem:[#allocation2 + $0xf8] sm:$0xff] %v3339_v0 }
  0x24   : > { %259 = vst [vmem:[#allocation2 + $0x100] sm:$0x3] %v3339_v0  ;;  %260 = vst [vmem:[#allocation2 + $0x108] sm:$0xff] %v3339_v0 }
  0x25   : > { %261 = vst [vmem:[#allocation2 + $0x110] sm:$0xff] %v3339_v0  ;;  %262 = vst [vmem:[#allocation2 + $0x118] sm:$0x3] %v3339_v0 }
  0x26   : > { %263 = vst [vmem:[#allocation2 + $0x120] sm:$0xff] %v3339_v0  ;;  %264 = vst [vmem:[#allocation2 + $0x128] sm:$0xff] %v3339_v0 }
  0x27   : > { %265 = vst [vmem:[#allocation2 + $0x130] sm:$0x3] %v3339_v0  ;;  %266 = vst [vmem:[#allocation2 + $0x138] sm:$0xff] %v3339_v0 }
  0x28   : > { %267 = vst [vmem:[#allocation2 + $0x140] sm:$0xff] %v3339_v0  ;;  %268 = vst [vmem:[#allocation2 + $0x148] sm:$0x3] %v3339_v0 }
  0x29   : > { %269 = vst [vmem:[#allocation2 + $0x150] sm:$0xff] %v3339_v0  ;;  %270 = vst [vmem:[#allocation2 + $0x158] sm:$0xff] %v3339_v0 }
  0x2a   : > { %271 = vst [vmem:[#allocation2 + $0x160] sm:$0x3] %v3339_v0  ;;  %272 = vst [vmem:[#allocation2 + $0x168] sm:$0xff] %v3339_v0 }
  0x2b   : > { %273 = vst [vmem:[#allocation2 + $0x170] sm:$0xff] %v3339_v0  ;;  %274 = vst [vmem:[#allocation2 + $0x178] sm:$0x3] %v3339_v0 }
  0x2c   : > { %275 = vst [vmem:[#allocation2 + $0x180] sm:$0xff] %v3339_v0  ;;  %276 = vst [vmem:[#allocation2 + $0x188] sm:$0xff] %v3339_v0 }
  0x2d   : > { %277 = vst [vmem:[#allocation2 + $0x190] sm:$0x3] %v3339_v0  ;;  %278 = vst [vmem:[#allocation2 + $0x198] sm:$0xff] %v3339_v0 }
  0x2e   : > { %279 = vst [vmem:[#allocation2 + $0x1a0] sm:$0xff] %v3339_v0  ;;  %280 = vst [vmem:[#allocation2 + $0x1a8] sm:$0x3] %v3339_v0 }
  0x2f   : > { %285 = vst [vmem:[#allocation3 + $0x320] sm:$0xff] %v3339_v0  ;;  %286 = vst [vmem:[#allocation3 + $0x438] sm:$0xff] %v3339_v0 }
  0x30   : > { %287 = vst [vmem:[#allocation3 + $0x8f8] sm:$0xff] %v3339_v0  ;;  %288 = vst [vmem:[#allocation3 + $0x4d0] sm:$0xff] %v3339_v0 }
  0x31   : > { %294 = vst [vmem:[#allocation3 + $0x7f0] sm:$0xff] %v3339_v0  ;;  %295 = vst [vmem:[#allocation3 + $0x570] sm:$0xff] %v3339_v0 }
  0x32   : > { %296 = vst [vmem:[#allocation3 + $0x580] sm:$0xff] %v3339_v0  ;;  %297 = vst [vmem:[#allocation3 + $0x3a8] sm:$0xff] %v3339_v0 }
  0x33   : > { %304 = vst [vmem:[#allocation3 + $0x90] sm:$0xff] %v3339_v0  ;;  %305 = vst [vmem:[#allocation3 + $0x368] sm:$0xff] %v3339_v0 }
  0x34   : > { %306 = vst [vmem:[#allocation3 + $0x830] sm:$0xff] %v3339_v0  ;;  %313 = vst [vmem:[#allocation3 + $0x6f0] sm:$0xff] %v3339_v0 }
  0x35   : > { %314 = vst [vmem:[#allocation3 + $0x4a0] sm:$0xff] %v3339_v0  ;;  %315 = vst [vmem:[#allocation3 + $0x5c0] sm:$0xff] %v3339_v0 }
  0x36   : > { %322 = vst [vmem:[#allocation3 + $0x630] sm:$0xff] %v3339_v0  ;;  %323 = vst [vmem:[#allocation3 + $0x328] sm:$0xff] %v3339_v0 }
  0x37   : > { %324 = vst [vmem:[#allocation3 + $0x470] sm:$0xff] %v3339_v0  ;;  %331 = vst [vmem:[#allocation3] sm:$0xff] %v3339_v0 }
  0x38   : > { %332 = vst [vmem:[#allocation3 + $0x638] sm:$0xff] %v3339_v0  ;;  %333 = vst [vmem:[#allocation3 + $0x720] sm:$0xff] %v3339_v0 }
  0x39   : > { %340 = vst [vmem:[#allocation3 + $0x288] sm:$0xff] %v3339_v0  ;;  %341 = vst [vmem:[#allocation3 + $0x40] sm:$0xff] %v3339_v0 }
  0x3a   : > { %342 = vst [vmem:[#allocation3 + $0x68] sm:$0xff] %v3339_v0  ;;  %349 = vst [vmem:[#allocation3 + $0x788] sm:$0xff] %v3339_v0 }
  0x3b   : > { %350 = vst [vmem:[#allocation3 + $0x688] sm:$0xff] %v3339_v0  ;;  %351 = vst [vmem:[#allocation3 + $0x218] sm:$0xff] %v3339_v0 }
  0x3c   : > { %358 = vst [vmem:[#allocation3 + $0x5a0] sm:$0xff] %v3339_v0  ;;  %359 = vst [vmem:[#allocation3 + $0x5d8] sm:$0xff] %v3339_v0 }
  0x3d   : > { %360 = vst [vmem:[#allocation3 + $0xe0] sm:$0xff] %v3339_v0  ;;  %367 = vst [vmem:[#allocation3 + $0x800] sm:$0xff] %v3339_v0 }
  0x3e   : > { %368 = vst [vmem:[#allocation3 + $0x450] sm:$0xff] %v3339_v0  ;;  %369 = vst [vmem:[#allocation3 + $0x600] sm:$0xff] %v3339_v0 }
  0x3f   : > { %378 = vst [vmem:[#allocation3 + $0x8b8] sm:$0xff] %v3339_v0  ;;  %387 = vst [vmem:[#allocation3 + $0x2b0] sm:$0xff] %v3339_v0 }
  0x40   : > { %396 = vst [vmem:[#allocation3 + $0x388] sm:$0xff] %v3339_v0  ;;  %448 = vst [vmem:[#allocation3 + $0x650] sm:$0xff] %v3339_v0 }
  0x41   : > { %457 = vst [vmem:[#allocation3 + $0x5b8] sm:$0xff] %v3339_v0  ;;  %466 = vst [vmem:[#allocation3 + $0x6c8] sm:$0xff] %v3339_v0 }
  0x42   : > { %475 = vst [vmem:[#allocation3 + $0x670] sm:$0xff] %v3339_v0  ;;  %484 = vst [vmem:[#allocation3 + $0x1f8] sm:$0xff] %v3339_v0 }
  0x43   : > { %569 = vst [vmem:[%s5100_s5] sm:$0x3] %v3339_v0 }
  0x44 PF: > { %v1625_v1 = vld [vmem:[%s5096_s1 + $0x78] sm:$0xff]  ;;  %v5108_v3 = vmov 0.0   ;;  %v1624_v4 = vld [vmem:[%s5096_s1 + $0x70] sm:$0xff]  ;;  %v1623_v6 = vld [vmem:[%s5096_s1 + $0x68] sm:$0xff] }
  0x45   : > { %v1657_v2 = vld [vmem:[%s5096_s1 + $0x178] sm:$0xff]  ;;  %1754 = vmatprep.subr.mxu0 %v5108_v3  ;;  %1979 = vmatprep.subr.mxu1 %v5108_v3  ;;  %v1656_v5 = vld [vmem:[%s5096_s1 + $0x170] sm:$0xff]  ;;  %v1655_v7 = vld [vmem:[%s5096_s1 + $0x168] sm:$0xff] }
  0x46   : > { %1755 = vmatpush1.msra.mxu0 %v1625_v1  ;;  %1980 = vmatpush1.msra.mxu1 %v1657_v2  ;;  %v1622_v8 = vld [vmem:[%s5096_s1 + $0x60] sm:$0xff]  ;;  %v1621_v10 = vld [vmem:[%s5096_s1 + $0x58] sm:$0xff]  ;;  %v1620_v12 = vld [vmem:[%s5096_s1 + $0x50] sm:$0xff] }
  0x47   : > { %1756 = vmatprep.subr.mxu0 %v5108_v3  ;;  %1981 = vmatprep.subr.mxu1 %v5108_v3  ;;  %v1654_v9 = vld [vmem:[%s5096_s1 + $0x160] sm:$0xff]  ;;  %v1653_v11 = vld [vmem:[%s5096_s1 + $0x158] sm:$0xff]  ;;  %v1652_v13 = vld [vmem:[%s5096_s1 + $0x150] sm:$0xff] }
  0x48   : > { %1757 = vmatpush1.msra.mxu0 %v1624_v4  ;;  %1982 = vmatpush1.msra.mxu1 %v1656_v5  ;;  %v1619_v14 = vld [vmem:[%s5096_s1 + $0x48] sm:$0xff]  ;;  %v1618_v16 = vld [vmem:[%s5096_s1 + $0x40] sm:$0xff]  ;;  %v1617_v18 = vld [vmem:[%s5096_s1 + $0x38] sm:$0xff] }
  0x49   : > { %1758 = vmatprep.subr.mxu0 %v5108_v3  ;;  %1983 = vmatprep.subr.mxu1 %v5108_v3  ;;  %v1651_v15 = vld [vmem:[%s5096_s1 + $0x148] sm:$0xff]  ;;  %v1650_v17 = vld [vmem:[%s5096_s1 + $0x140] sm:$0xff]  ;;  %v1649_v19 = vld [vmem:[%s5096_s1 + $0x138] sm:$0xff] }
  0x4a   : > { %1759 = vmatpush1.msra.mxu0 %v1623_v6  ;;  %1984 = vmatpush1.msra.mxu1 %v1655_v7  ;;  %v1616_v20 = vld [vmem:[%s5096_s1 + $0x30] sm:$0xff]  ;;  %v1615_v22 = vld [vmem:[%s5096_s1 + $0x28] sm:$0xff]  ;;  %v1614_v24 = vld [vmem:[%s5096_s1 + $0x20] sm:$0xff] }
  0x4b   : > { %1760 = vmatprep.subr.mxu0 %v5108_v3  ;;  %1985 = vmatprep.subr.mxu1 %v5108_v3  ;;  %v1648_v21 = vld [vmem:[%s5096_s1 + $0x130] sm:$0xff]  ;;  %v1647_v23 = vld [vmem:[%s5096_s1 + $0x128] sm:$0xff]  ;;  %v1646_v25 = vld [vmem:[%s5096_s1 + $0x120] sm:$0xff] }
  0x4c   : > { %1761 = vmatpush1.msra.mxu0 %v1622_v8  ;;  %1986 = vmatpush1.msra.mxu1 %v1654_v9  ;;  %v1613_v26 = vld [vmem:[%s5096_s1 + $0x18] sm:$0xff]  ;;  %v3584_v27 = vld [vmem:[#allocation2 + $0x1] sm:$0xff]  ;;  %v3590_v29 = vld [vmem:[%s5097_s2] ss:$0 sm:$0xff] }
  0x4d   : > { %1762 = vmatprep.subr.mxu0 %v5108_v3  ;;  %1987 = vmatprep.subr.mxu1 %v5108_v3  ;;  %v570_v28 = vld [vmem:[%s3382_s24] sm:$0xff]  ;;  %v1645_v32 = vld [vmem:[%s5096_s1 + $0x118] sm:$0xff]  ;;  %v3607_v35 = vld [vmem:[#allocation2 + $0x9] sm:$0xff] }
  0x4e   : > { %1763 = vmatpush1.msra.mxu0 %v1621_v10  ;;  %1988 = vmatpush1.msra.mxu1 %v1653_v11  ;;  %v3595_v30 = vld [vmem:[%s5098_s3] ss:$0 sm:$0xff]  ;;  %v609_v33 = vmul.f32 %v3590_v29, %v570_v28  ;;  %v3605_v34 = vld [vmem:[#allocation2 + $0x2] sm:$0xff]  ;;  %v3612_v38 = vld [vmem:[#allocation2 + $0xa] sm:$0xff] }
  0x4f   : > { %1764 = vmatprep.subr.mxu0 %v5108_v3  ;;  %1989 = vmatprep.subr.mxu1 %v5108_v3  ;;  %v3597_v31 = vld [vmem:[#allocation2] sm:$0xff]  ;;  %v571_v36 = vld [vmem:[%s3382_s24 + $0x8] sm:$0xff]  ;;  %v1612_v39 = vld [vmem:[%s5096_s1 + $0x10] sm:$0xff] }
  0x50   : > { %1765 = vmatpush1.msra.mxu0 %v1620_v12  ;;  %1990 = vmatpush1.msra.mxu1 %v1652_v13  ;;  %v3610_v37 = vld [vmem:[#allocation2 + $0x8] sm:$0xff]  ;;  %v1644_v40 = vld [vmem:[%s5096_s1 + $0x110] sm:$0xff]  ;;  %v3623_v41 = vadd.f32 %v3595_v30, %v609_v33  ;;  %v610_v42 = vmul.f32 %v3590_v29, %v571_v36  ;;  %v573_v45 = vld [vmem:[%s3382_s24 + $0x18] sm:$0xff] }
  0x51   : > { %1766 = vmatprep.subr.mxu0 %v5108_v3  ;;  %1991 = vmatprep.subr.mxu1 %v5108_v3  ;;  %v572_v43 = vld [vmem:[%s3382_s24 + $0x10] sm:$0xff]  ;;  %v574_v46 = vld [vmem:[%s3382_s24 + $0x20] sm:$0xff]  ;;  %v1611_v47 = vld [vmem:[%s5096_s1 + $0x8] sm:$0xff]  ;;  %v612_v51 = vmul.f32 %v3590_v29, %v573_v45 }
  0x52   : > { %1767 = vmatpush1.msra.mxu0 %v1619_v14  ;;  %1992 = vmatpush1.msra.mxu1 %v1651_v15  ;;  %v611_v44 = vmul.f32 %v3590_v29, %v572_v43  ;;  %v1643_v48 = vld [vmem:[%s5096_s1 + $0x108] sm:$0xff]  ;;  %v5107_v49 = vmax.f32 %v3623_v41, 0.0  ;;  %v3640_v50 = vadd.f32 %v3595_v30, %v610_v42  ;;  %v613_v52 = vmul.f32 %v3590_v29, %v574_v46  ;;  %v576_v56 = vld [vmem:[%s3382_s24 + $0x30] sm:$0xff]  ;;  %v577_v57 = vld [vmem:[%s3382_s24 + $0x38] sm:$0xff] }
  0x53   : > { %1768 = vmatprep.subr.mxu0 %v5108_v3  ;;  %1993 = vmatprep.subr.mxu1 %v5108_v3  ;;  %v575_v53 = vld [vmem:[%s3382_s24 + $0x28] sm:$0xff]  ;;  %v1610_v58 = vld [vmem:[%s5096_s1] sm:$0xff]  ;;  %v3663_v61 = vadd.f32 %v3595_v30, %v612_v51  ;;  %v615_v63 = vmul.f32 %v3590_v29, %v576_v56  ;;  %v616_v4 = vmul.f32 %v3590_v29, %v577_v57  ;;  %v1641_v7 = vld [vmem:[%s5096_s1 + $0xf8] sm:$0xff] }
  0x54   : > { %1769 = vmatpush1.msra.mxu0 %v1618_v16  ;;  %1994 = vmatpush1.msra.mxu1 %v1650_v17  ;;  %v3646_v54 = vadd.f32 %v3595_v30, %v611_v44  ;;  %v614_v55 = vmul.f32 %v3590_v29, %v575_v53  ;;  %v1642_v59 = vld [vmem:[%s5096_s1 + $0x100] sm:$0xff]  ;;  %713 = vst [vmem:[#allocation2 + $0x19] sm:$0xff] %v5107_v49  ;;  %v5106_v60 = vmax.f32 %v3640_v50, 0.0  ;;  %v579_v6 = vld [vmem:[%s3382_s24 + $0x48] sm:$0xff]  ;;  %v1673_v8 = vld [vmem:[%s5096_s1 + $0x1f8] sm:$0xff] }
  0x55   : > { %1770 = vmatprep.subr.mxu0 %v5108_v3  ;;  %1995 = vmatprep.subr.mxu1 %v5108_v3  ;;  %v3666_v62 = vadd.f32 %v3595_v30, %v613_v52  ;;  %v578_v0 = vld [vmem:[%s3382_s24 + $0x40] sm:$0xff]  ;;  %v5104_v9 = vmax.f32 %v3663_v61, 0.0  ;;  %v3690_v11 = vadd.f32 %v3595_v30, %v615_v63  ;;  %v618_v12 = vmul.f32 %v3590_v29, %v579_v6  ;;  %v580_v13 = vld [vmem:[%s3382_s24 + $0x50] sm:$0xff]  ;;  %v583_v36 = vld [vmem:[%s3382_s24 + $0x68] sm:$0xff] }
  0x56   : > { %1771 = vmatpush1.msra.mxu0 %v1617_v18  ;;  %1996 = vmatpush1.msra.mxu1 %v1649_v19  ;;  %v5105_v1 = vmax.f32 %v3646_v54, 0.0  ;;  %v3672_v2 = vadd.f32 %v3595_v30, %v614_v55  ;;  %v617_v5 = vmul.f32 %v3590_v29, %v578_v0  ;;  %714 = vst [vmem:[#allocation2 + $0x21] sm:$0xff] %v5106_v60  ;;  %v581_v18 = vld [vmem:[%s3382_s24 + $0x58] sm:$0xff]  ;;  %v1640_v19 = vld [vmem:[%s5096_s1 + $0xf0] sm:$0xff]  ;;  %v1670_v46 = vld [vmem:[%s5096_s1 + $0x1e0] sm:$0xff] }
  0x57   : > { %1772 = vmatprep.subr.mxu0 %v5108_v3  ;;  %1997 = vmatprep.subr.mxu1 %v5108_v3  ;;  %v5103_v10 = vmax.f32 %v3666_v62, 0.0  ;;  %v655_v15 = vadd.f32 %v3595_v30, %v616_v4  ;;  %v619_v17 = vmul.f32 %v3590_v29, %v580_v13  ;;  %716 = vst [vmem:[#allocation2 + $0x39] sm:$0xff] %v5104_v9  ;;  %v584_v45 = vld [vmem:[%s3382_s24 + $0x70] sm:$0xff]  ;;  %v585_v53 = vld [vmem:[%s3382_s24 + $0x78] sm:$0xff]  ;;  %v586_v63 = vld [vmem:[%s3382_s24 + $0x80] sm:$0xff] }
  0x58   : > { %1773 = vmatpush1.msra.mxu0 %v1616_v20  ;;  %1998 = vmatpush1.msra.mxu1 %v1648_v21  ;;  %715 = vst [vmem:[#allocation2 + $0x31] sm:$0xff] %v5105_v1  ;;  %v5102_v14 = vmax.f32 %v3672_v2, 0.0  ;;  %v656_v16 = vadd.f32 %v3595_v30, %v617_v5  ;;  %v1672_v20 = vld [vmem:[%s5096_s1 + $0x1f0] sm:$0xff]  ;;  %v5101_v21 = vmax.f32 %v3690_v11, 0.0  ;;  %v622_v44 = vmul.f32 %v3590_v29, %v583_v36  ;;  %v1637_v55 = vld [vmem:[%s5096_s1 + $0xd8] sm:$0xff] }
  0x59   : > { %1774 = vmatprep.subr.mxu0 %v5108_v3  ;;  %1999 = vmatprep.subr.mxu1 %v5108_v3  ;;  %717 = vst [vmem:[#allocation2 + $0x49] sm:$0xff] %v5103_v10  ;;  %v623_v52 = vmul.f32 %v3590_v29, %v584_v45  ;;  %v1669_v56 = vld [vmem:[%s5096_s1 + $0x1d8] sm:$0xff]  ;;  %v1668_v13 = vld [vmem:[%s5096_s1 + $0x1d0] sm:$0xff]  ;;  %v1662_v10 = vld [vmem:[%s5096_s1 + $0x1a0] sm:$0xff] }
  0x5a   : > { %1775 = vmatpush1.msra.mxu0 %v1615_v22  ;;  %2000 = vmatpush1.msra.mxu1 %v1647_v23  ;;  %v657_v22 = vadd.f32 %v3595_v30, %v618_v12  ;;  %v620_v23 = vmul.f32 %v3590_v29, %v581_v18  ;;  %718 = vst [vmem:[#allocation2 + $0x51] sm:$0xff] %v5102_v14  ;;  %v688_v28 = vmax.f32 %v656_v16, 0.0  ;;  %719 = vst [vmem:[#allocation2 + $0x61] sm:$0xff] %v5101_v21  ;;  %v1636_v12 = vld [vmem:[%s5096_s1 + $0xd0] sm:$0xff]  ;;  %v590_v14 = vld [vmem:[%s3382_s24 + $0xa0] sm:$0xff] }
  0x5b   : > { %1776 = vmatprep.subr.mxu0 %v5108_v3  ;;  %2001 = vmatprep.subr.mxu1 %v5108_v3  ;;  %v592_v9 = vld [vmem:[%s3382_s24 + $0xb0] sm:$0xff]  ;;  %v1629_v1 = vld [vmem:[%s5096_s1 + $0x98] sm:$0xff] }
  0x5c   : > { %1777 = vmatpush1.msra.mxu0 %v1614_v24  ;;  %2002 = vmatpush1.msra.mxu1 %v1646_v25  ;;  %v582_v24 = vld [vmem:[%s3382_s24 + $0x60] sm:$0xff]  ;;  %v1639_v25 = vld [vmem:[%s5096_s1 + $0xe8] sm:$0xff]  ;;  %v689_v42 = vmax.f32 %v657_v22, 0.0  ;;  %v659_v43 = vadd.f32 %v3595_v30, %v620_v23  ;;  %721 = vst [vmem:[#allocation2 + $0x79] sm:$0xff] %v688_v28 }
  0x5d   : > { %1778 = vmatprep.subr.mxu0 %v5108_v3  ;;  %2003 = vmatprep.subr.mxu1 %v5108_v3  ;;  %v621_v33 = vmul.f32 %v3590_v29, %v582_v24  ;;  %v3757_v0 = vld [vmem:[#allocation2 + $0x20] sm:$0xff]  ;;  %v1635_v24 = vld [vmem:[%s5096_s1 + $0xc8] sm:$0xff] }
  0x5e   : > { %1779 = vmatpush1.msra.mxu0 %v1613_v26  ;;  %2004 = vmatpush1.msra.mxu1 %v1645_v32  ;;  %v687_v26 = vmax.f32 %v655_v15, 0.0  ;;  %v658_v32 = vadd.f32 %v3595_v30, %v619_v17  ;;  %722 = vst [vmem:[#allocation2 + $0x81] sm:$0xff] %v689_v42  ;;  %v691_v57 = vmax.f32 %v659_v43, 0.0  ;;  %v3759_v4 = vld [vmem:[#allocation2 + $0x1a] sm:$0xff]  ;;  %v3761_v5 = vld [vmem:[#allocation2 + $0x22] sm:$0xff] }
  0x5f   : > { %1780 = vmatprep.subr.mxu0 %v5108_v3  ;;  %2005 = vmatprep.subr.mxu1 %v5108_v3  ;;  %v660_v51 = vadd.f32 %v3595_v30, %v621_v33  ;;  %v3773_v15 = vld [vmem:[#allocation2 + $0x30] sm:$0xff]  ;;  %v3776_v18 = vld [vmem:[#allocation2 + $0x38] sm:$0xff]  ;;  %v587_v42 = vld [vmem:[%s3382_s24 + $0x88] sm:$0xff] }
  0x60   : > { %1781 = vmatpush1.msra.mxu0 %v1612_v39  ;;  %2006 = vmatpush1.msra.mxu1 %v1644_v40  ;;  %v1671_v39 = vld [vmem:[%s5096_s1 + $0x1e8] sm:$0xff]  ;;  %v1638_v40 = vld [vmem:[%s5096_s1 + $0xe0] sm:$0xff]  ;;  %720 = vst [vmem:[#allocation2 + $0x69] sm:$0xff] %v687_v26  ;;  %724 = vst [vmem:[#allocation2 + $0x99] sm:$0xff] %v691_v57 }
  0x61   : > { %1782 = vmatprep.subr.mxu0 %v5108_v3  ;;  %2007 = vmatprep.subr.mxu1 %v5108_v3  ;;  %v692_v6 = vmax.f32 %v660_v51, 0.0  ;;  %v3791_v26 = vld [vmem:[#allocation2 + $0x50] sm:$0xff]  ;;  %v3793_v28 = vld [vmem:[#allocation2 + $0x3a] sm:$0xff]  ;;  %v626_v51 = vmul.f32 %v3590_v29, %v587_v42 }
  0x62   : > { %1783 = vmatpush1.msra.mxu0 %v1611_v47  ;;  %2008 = vmatpush1.msra.mxu1 %v1643_v48  ;;  %v3741_v47 = vld [vmem:[#allocation2 + $0x18] sm:$0xff]  ;;  %v690_v48 = vmax.f32 %v658_v32, 0.0  ;;  %v3795_v32 = vld [vmem:[#allocation2 + $0x4a] sm:$0xff]  ;;  %v3797_v36 = vld [vmem:[#allocation2 + $0x60] sm:$0xff] }
  0x63   : > { %1784 = vmatprep.subr.mxu0 %v5108_v3  ;;  %2009 = vmatprep.subr.mxu1 %v5108_v3  ;;  %725 = vst [vmem:[#allocation2 + $0xa9] sm:$0xff] %v692_v6  ;;  %v1634_v43 = vld [vmem:[%s5096_s1 + $0xc0] sm:$0xff]  ;;  %v1665_v57 = vld [vmem:[%s5096_s1 + $0x1b8] sm:$0xff] }
  0x64   : > { %1785 = vmatpush1.msra.mxu0 %v1610_v58  ;;  %2010 = vmatpush1.msra.mxu1 %v1642_v59  ;;  %v661_v58 = vadd.f32 %v3595_v30, %v622_v44  ;;  %v624_v59 = vmul.f32 %v3590_v29, %v585_v53  ;;  %723 = vst [vmem:[#allocation2 + $0x91] sm:$0xff] %v690_v48  ;;  %v1666_v44 = vld [vmem:[%s5096_s1 + $0x1c0] sm:$0xff] }
  0x65   : > { %1786 = vmatprep.subr.mxu0 %v5108_v3  ;;  %2011 = vmatprep.subr.mxu1 %v5108_v3 }
  0x66   : > { %1787 = vmatpush2.msra.mxu0 %v1641_v7  ;;  %2012 = vmatpush2.msra.mxu1 %v1673_v8  ;;  %v662_v7 = vadd.f32 %v3595_v30, %v623_v52  ;;  %v625_v8 = vmul.f32 %v3590_v29, %v586_v63  ;;  %v693_v16 = vmax.f32 %v661_v58, 0.0  ;;  %v663_v17 = vadd.f32 %v3595_v30, %v624_v59  ;;  %v3817_v52 = vld [vmem:[#allocation2 + $0x80] sm:$0xff] }
  0x67   : > { %1788 = vmatprep.subr.mxu0 %v5108_v3  ;;  %2013 = vmatprep.subr.mxu1 %v5108_v3  ;;  %v3810_v45 = vld [vmem:[#allocation2 + $0x68] sm:$0xff]  ;;  %v665_v63 = vadd.f32 %v3595_v30, %v626_v51 }
  0x68   : > { %1789 = vmatpush2.msra.mxu0 %v1640_v19  ;;  %2014 = vmatpush2.msra.mxu1 %v1672_v20  ;;  %v3778_v19 = vld [vmem:[#allocation2 + $0x48] sm:$0xff]  ;;  %v3780_v20 = vld [vmem:[#allocation2 + $0x32] sm:$0xff]  ;;  %v694_v22 = vmax.f32 %v662_v7, 0.0  ;;  %v664_v23 = vadd.f32 %v3595_v30, %v625_v8  ;;  %726 = vst [vmem:[#allocation2 + $0xb1] sm:$0xff] %v693_v16  ;;  %v695_v33 = vmax.f32 %v663_v17, 0.0  ;;  %v3840_v8 = vld [vmem:[#allocation2 + $0x9a] sm:$0xff] }
  0x69   : > { %1790 = vmatprep.subr.mxu0 %v5108_v3  ;;  %2015 = vmatprep.subr.mxu1 %v5108_v3  ;;  %v3814_v48 = vld [vmem:[#allocation2 + $0x62] sm:$0xff]  ;;  %v3819_v53 = vld [vmem:[#allocation2 + $0x6a] sm:$0xff]  ;;  %v697_v16 = vmax.f32 %v665_v63, 0.0 }
  0x6a   : > { %1791 = vmatpush2.msra.mxu0 %v1639_v25  ;;  %2016 = vmatpush2.msra.mxu1 %v1671_v39  ;;  %v1667_v25 = vld [vmem:[%s5096_s1 + $0x1c8] sm:$0xff]  ;;  %v3799_v39 = vld [vmem:[#allocation2 + $0x52] sm:$0xff]  ;;  %727 = vst [vmem:[#allocation2 + $0xc1] sm:$0xff] %v694_v22  ;;  %728 = vst [vmem:[#allocation2 + $0xc9] sm:$0xff] %v695_v33 }
  0x6b   : > { %1792 = vmatprep.subr.mxu0 %v5108_v3  ;;  %2017 = vmatprep.subr.mxu1 %v5108_v3  ;;  %v3831_v58 = vld [vmem:[#allocation2 + $0x90] sm:$0xff]  ;;  %v3833_v59 = vld [vmem:[#allocation2 + $0x82] sm:$0xff]  ;;  %v3836_v6 = vld [vmem:[#allocation2 + $0x98] sm:$0xff]  ;;  %730 = vst [vmem:[#allocation2 + $0xe1] sm:$0xff] %v697_v16 }
  0x6c   : > { %1793 = vmatpush2.msra.mxu0 %v1638_v40  ;;  %2018 = vmatpush2.msra.mxu1 %v1670_v46  ;;  %v696_v40 = vmax.f32 %v664_v23, 0.0  ;;  %v3812_v46 = vld [vmem:[#allocation2 + $0x78] sm:$0xff]  ;;  %v588_v17 = vld [vmem:[%s3382_s24 + $0x90] sm:$0xff]  ;;  %v1663_v16 = vld [vmem:[%s5096_s1 + $0x1a8] sm:$0xff] }
  0x6d   : > { %1794 = vmatprep.subr.mxu0 %v5108_v3  ;;  %2019 = vmatprep.subr.mxu1 %v5108_v3  ;;  %v3838_v7 = vld [vmem:[#allocation2 + $0x92] sm:$0xff] }
  0x6e   : > { %1795 = vmatpush2.msra.mxu0 %v1637_v55  ;;  %2020 = vmatpush2.msra.mxu1 %v1669_v56  ;;  %v3821_v55 = vld [vmem:[#allocation2 + $0x7a] sm:$0xff]  ;;  %729 = vst [vmem:[#allocation2 + $0xd9] sm:$0xff] %v696_v40  ;;  %v1664_v33 = vld [vmem:[%s5096_s1 + $0x1b0] sm:$0xff]  ;;  %v1631_v40 = vld [vmem:[%s5096_s1 + $0xa8] sm:$0xff] }
  0x6f   : > { %1796 = vmatprep.subr.mxu0 %v5108_v3  ;;  %2021 = vmatprep.subr.mxu1 %v5108_v3  ;;  %v1633_v56 = vld [vmem:[%s5096_s1 + $0xb8] sm:$0xff]  ;;  %v3850_v22 = vld [vmem:[#allocation2 + $0xb0] sm:$0xff] }
  0x70   : > { %1797 = vmatpush2.msra.mxu0 %v1636_v12  ;;  %2022 = vmatpush2.msra.mxu1 %v1668_v13  ;;  %v1632_v12 = vld [vmem:[%s5096_s1 + $0xb0] sm:$0xff]  ;;  %v3847_v13 = vld [vmem:[#allocation2 + $0xa8] sm:$0xff] }
  0x71   : > { %1798 = vmatprep.subr.mxu0 %v5108_v3  ;;  %2023 = vmatprep.subr.mxu1 %v5108_v3  ;;  %v3852_v23 = vld [vmem:[#allocation2 + $0xaa] sm:$0xff]  ;;  %v3865_v42 = vld [vmem:[#allocation2 + $0xc0] sm:$0xff] }
  0x72   : > { %1799 = vmatpush2.msra.mxu0 %v1635_v24  ;;  %2024 = vmatpush2.msra.mxu1 %v1667_v25  ;;  %v3854_v24 = vld [vmem:[#allocation2 + $0xb2] sm:$0xff]  ;;  %v627_v25 = vmul.f32 %v3590_v29, %v588_v17  ;;  %v3871_v51 = vld [vmem:[#allocation2 + $0xca] sm:$0xff]  ;;  %v3917_v49 = vld [vmem:[#allocation2 + $0xe2] sm:$0xff] }
  0x73   : > { %1800 = vmatprep.subr.mxu0 %v5108_v3  ;;  %2025 = vmatprep.subr.mxu1 %v5108_v3  ;;  %5120 = vst [vmem:[#allocation5_spill] sm:$0xff] %v3871_v51  ;;  %5124 = vst [vmem:[#allocation9_spill] sm:$0xff] %v3917_v49  ;;  %v5125_v51 = vmov 0.0  }
  0x74   : > { %1801 = vmatpush2.msra.mxu0 %v1634_v43  ;;  %2026 = vmatpush2.msra.mxu1 %v1666_v44  ;;  %v3867_v43 = vld [vmem:[#allocation2 + $0xc8] sm:$0xff]  ;;  %v666_v63 = vadd.f32 %v3595_v30, %v627_v25  ;;  %v1630_v25 = vld [vmem:[%s5096_s1 + $0xa0] sm:$0xff] }
  0x75   : > { %1802 = vmatprep.subr.mxu0 %v5108_v3  ;;  %2027 = vmatprep.subr.mxu1 %v5108_v3  ;;  %v3869_v44 = vld [vmem:[#allocation2 + $0xc2] sm:$0xff]  ;;  %v3879_v17 = vld [vmem:[#allocation2 + $0xd8] sm:$0xff] }
  0x76   : > { %1803 = vmatpush2.msra.mxu0 %v1633_v56  ;;  %2028 = vmatpush2.msra.mxu1 %v1665_v57  ;;  %5119 = vst [vmem:[#allocation4_spill] sm:$0xff] %v3869_v44  ;;  %v589_v56 = vld [vmem:[%s3382_s24 + $0x98] sm:$0xff]  ;;  %v698_v57 = vmax.f32 %v666_v63, 0.0  ;;  %v595_v44 = vld [vmem:[%s3382_s24 + $0xc8] sm:$0xff] }
  0x77   : > { %1804 = vmatprep.subr.mxu0 %v5108_v3  ;;  %2029 = vmatprep.subr.mxu1 %v5108_v3  ;;  %v628_v21 = vmul.f32 %v3590_v29, %v589_v56 }
  0x78   : > { %1805 = vmatpush2.msra.mxu0 %v1632_v12  ;;  %2030 = vmatpush2.msra.mxu1 %v1664_v33  ;;  %v629_v12 = vmul.f32 %v3590_v29, %v590_v14  ;;  %v591_v33 = vld [vmem:[%s3382_s24 + $0xa8] sm:$0xff]  ;;  %731 = vst [vmem:[#allocation2 + $0xf1] sm:$0xff] %v698_v57  ;;  %v1661_v14 = vld [vmem:[%s5096_s1 + $0x198] sm:$0xff]  ;;  %v3912_v57 = vld [vmem:[#allocation2 + $0xe0] sm:$0xff] }
  0x79   : > { %1806 = vmatprep.subr.mxu0 %v5108_v3  ;;  %2031 = vmatprep.subr.mxu1 %v5108_v3  ;;  %v3895_v63 = vadd.f32 %v3595_v30, %v628_v21  ;;  %v630_v56 = vmul.f32 %v3590_v29, %v591_v33  ;;  %v631_v21 = vmul.f32 %v3590_v29, %v592_v9  ;;  %v3914_v33 = vld [vmem:[#allocation2 + $0xda] sm:$0xff]  ;;  %v1628_v9 = vld [vmem:[%s5096_s1 + $0x90] sm:$0xff] }
  0x7a   : > { %1807 = vmatpush2.msra.mxu0 %v1631_v40  ;;  %2032 = vmatpush2.msra.mxu1 %v1663_v16  ;;  %v3908_v40 = vadd.f32 %v3595_v30, %v629_v12  ;;  %v593_v16 = vld [vmem:[%s3382_s24 + $0xb8] sm:$0xff]  ;;  %5122 = vst [vmem:[#allocation7_spill] sm:$0xff] %v3912_v57  ;;  %5123 = vst [vmem:[#allocation8_spill] sm:$0xff] %v3914_v33 }
  0x7b   : > { %5121 = vst [vmem:[#allocation6_spill] sm:$0xff] %v3895_v63  ;;  %1808 = vmatprep.subr.mxu0 %v5108_v3  ;;  %2033 = vmatprep.subr.mxu1 %v5108_v3  ;;  %v669_v3 = vadd.f32 %v3595_v30, %v630_v56  ;;  %v632_v12 = vmul.f32 %v3590_v29, %v593_v16  ;;  %v594_v56 = vld [vmem:[%s3382_s24 + $0xc0] sm:$0xff]  ;;  %v5126_v16 = vmax.f32 %v3895_v63, 0.0 }
  0x7c   : > { %1809 = vmatpush2.msra.mxu0 %v1630_v25  ;;  %2034 = vmatpush2.msra.mxu1 %v1662_v10  ;;  %v1660_v10 = vld [vmem:[%s5096_s1 + $0x190] sm:$0xff]  ;;  %v5112_v25 = vmax.f32 %v3908_v40, 0.0  ;;  %v670_v60 = vadd.f32 %v3595_v30, %v631_v21  ;;  %v633_v57 = vmul.f32 %v3590_v29, %v594_v56  ;;  %v1627_v21 = vld [vmem:[%s5096_s1 + $0x88] sm:$0xff] }
  0x7d   : > { %1810 = vmatprep.subr.mxu0 %v5125_v51  ;;  %2035 = vmatprep.subr.mxu1 %v5125_v51  ;;  %732 = vst [vmem:[#allocation2 + $0xf9] sm:$0xff] %v5126_v16  ;;  %v701_v49 = vmax.f32 %v669_v3, 0.0  ;;  %v671_v33 = vadd.f32 %v3595_v30, %v632_v12  ;;  %v596_v12 = vld [vmem:[%s3382_s24 + $0xd0] sm:$0xff] }
  0x7e   : > { %1811 = vmatpush2.msra.mxu0 %v1629_v1  ;;  %2036 = vmatpush2.msra.mxu1 %v1661_v14  ;;  %v1659_v1 = vld [vmem:[%s5096_s1 + $0x188] sm:$0xff]  ;;  %733 = vst [vmem:[#allocation2 + $0x109] sm:$0xff] %v5112_v25  ;;  %v702_v3 = vmax.f32 %v670_v60, 0.0  ;;  %v634_v14 = vmul.f32 %v3590_v29, %v595_v44  ;;  %v672_v16 = vadd.f32 %v3595_v30, %v633_v57  ;;  %v1626_v60 = vld [vmem:[%s5096_s1 + $0x80] sm:$0xff] }
  0x7f   : > { %1812 = vmatprep.subr.mxu0 %v5125_v51  ;;  %2037 = vmatprep.subr.mxu1 %v5125_v51  ;;  %734 = vst [vmem:[#allocation2 + $0x111] sm:$0xff] %v701_v49  ;;  %v703_v56 = vmax.f32 %v671_v33, 0.0  ;;  %v635_v63 = vmul.f32 %v3590_v29, %v596_v12  ;;  %v3956_v25 = vld [vmem:[#allocation2 + $0xf0] sm:$0xff]  ;;  %v597_v49 = vld [vmem:[%s3382_s24 + $0xd8] sm:$0xff]  ;;  %v1658_v57 = vld [vmem:[%s5096_s1 + $0x180] sm:$0xff] }
  0x80   : > { %1813 = vmatpush2.msra.mxu0 %v1628_v9  ;;  %2038 = vmatpush2.msra.mxu1 %v1660_v10  ;;  %735 = vst [vmem:[#allocation2 + $0x121] sm:$0xff] %v702_v3  ;;  %v673_v44 = vadd.f32 %v3595_v30, %v634_v14  ;;  %v704_v33 = vmax.f32 %v672_v16, 0.0  ;;  %v636_v10 = vmul.f32 %v3590_v29, %v597_v49  ;;  %v598_v12 = vld [vmem:[%s3382_s24 + $0xe0] sm:$0xff] }
  0x81   : > { %1814 = vmatprep.subr.mxu0 %v5125_v51  ;;  %2039 = vmatprep.subr.mxu1 %v5125_v51  ;;  %736 = vst [vmem:[#allocation2 + $0x129] sm:$0xff] %v703_v56  ;;  %v674_v9 = vadd.f32 %v3595_v30, %v635_v63  ;;  %v599_v56 = vld [vmem:[%s3382_s24 + $0xe8] sm:$0xff] }
  0x82   : > { %1815 = vmatpush2.msra.mxu0 %v1627_v21  ;;  %2040 = vmatpush2.msra.mxu1 %v1659_v1  ;;  %v705_v3 = vmax.f32 %v673_v44, 0.0  ;;  %v637_v21 = vmul.f32 %v3590_v29, %v598_v12  ;;  %v1689_v1 = vld [vmem:[%s5096_s1 + $0x278] sm:$0xff]  ;;  %737 = vst [vmem:[#allocation2 + $0x139] sm:$0xff] %v704_v33  ;;  %v675_v63 = vadd.f32 %v3595_v30, %v636_v10 }
  0x83   : > { %1816 = vmatprep.subr.mxu0 %v5125_v51  ;;  %2041 = vmatprep.subr.mxu1 %v5125_v51  ;;  %v706_v14 = vmax.f32 %v674_v9, 0.0  ;;  %v638_v49 = vmul.f32 %v3590_v29, %v599_v56  ;;  %v600_v9 = vld [vmem:[%s3382_s24 + $0xf0] sm:$0xff] }
  0x84   : > { %1817 = vmatpush2.msra.mxu0 %v1626_v60  ;;  %1818 = vmatprep.mubr.f32.mxu0 %v3584_v27  ;;  %v3976_v16 = vld [vmem:[#allocation2 + $0xf8] sm:$0xff]  ;;  %738 = vst [vmem:[#allocation2 + $0x141] sm:$0xff] %v705_v3  ;;  %v676_v27 = vadd.f32 %v3595_v30, %v637_v21 }
  0x85   : > { %2042 = vmatpush2.msra.mxu1 %v1658_v57  ;;  %2043 = vmatprep.mubr.f32.mxu1 %v3741_v47  ;;  %v3978_v44 = vld [vmem:[#allocation2 + $0xf2] sm:$0xff]  ;;  %v3980_v60 = vld [vmem:[#allocation2 + $0xfa] sm:$0xff]  ;;  %v3986_v33 = vld [vmem:[#allocation2 + $0x108] sm:$0xff]  ;;  %739 = vst [vmem:[#allocation2 + $0x151] sm:$0xff] %v706_v14  ;;  %v707_v57 = vmax.f32 %v675_v63, 0.0 }
  0x86   : > { %1819 = vmatmul.mubr.f32.vlgmr.msra.gmra.mxu0 %v3597_v31  ;;  %2044 = vmatmul.mubr.f32.vlgmr.msra.gmra.mxu1 %v3605_v34  ;;  %v3991_v10 = vld [vmem:[#allocation2 + $0x110] sm:$0xff]  ;;  %v708_v21 = vmax.f32 %v676_v27, 0.0  ;;  %v677_v31 = vadd.f32 %v3595_v30, %v638_v49  ;;  %v639_v34 = vmul.f32 %v3590_v29, %v600_v9  ;;  %v1721_v9 = vld [vmem:[%s5096_s1 + $0x378] sm:$0xff] }
  0x87   : > { %2204 = vmatprep.subr.mxu0 %v5125_v51  ;;  %1823 = vmatprep.mubr.f32.mxu0 %v3607_v35  ;;  %v3993_v12 = vld [vmem:[#allocation2 + $0x10a] sm:$0xff]  ;;  %v3995_v3 = vld [vmem:[#allocation2 + $0x112] sm:$0xff]  ;;  %v4003_v35 = vld [vmem:[#allocation2 + $0x120] sm:$0xff]  ;;  %740 = vst [vmem:[#allocation2 + $0x159] sm:$0xff] %v707_v57 }
  0x88   : > { %5127 = vst [vmem:[#allocation10_spill] sm:$0xff] %v3995_v3  ;;  %2205 = vmatpush1.msra.mxu0 %v1689_v1  ;;  %2048 = vmatprep.mubr.f32.mxu1 %v3757_v0  ;;  %v1688_v14 = vld [vmem:[%s5096_s1 + $0x270] sm:$0xff]  ;;  %v4007_v63 = vld [vmem:[#allocation2 + $0x128] sm:$0xff]  ;;  %741 = vst [vmem:[#allocation2 + $0x169] sm:$0xff] %v708_v21  ;;  %v709_v1 = vmax.f32 %v677_v31, 0.0  ;;  %v678_v49 = vadd.f32 %v3595_v30, %v639_v34 }
  0x89   : > { %2206 = vmatprep.subr.mxu0 %v5125_v51  ;;  %2429 = vmatprep.subr.mxu1 %v5125_v51  ;;  %v4009_v56 = vld [vmem:[#allocation2 + $0x122] sm:$0xff]  ;;  %v4011_v27 = vld [vmem:[#allocation2 + $0x12a] sm:$0xff]  ;;  %v601_v3 = vld [vmem:[%s3382_s24 + $0xf8] sm:$0xff] }
  0x8a   : > { %5128 = vst [vmem:[#allocation11_spill] sm:$0xff] %v4011_v27  ;;  %1824 = vmatmul.mubr.f32.gmra.mxu0 %v3610_v37  ;;  %2049 = vmatmul.mubr.f32.gmra.mxu1 %v3612_v38  ;;  %v1687_v57 = vld [vmem:[%s5096_s1 + $0x268] sm:$0xff]  ;;  %v5129_v27 = vmax.f32 %v3623_v41, 0.0  ;;  %v4025_v21 = vld [vmem:[#allocation2 + $0x138] sm:$0xff]  ;;  %742 = vst [vmem:[#allocation2 + $0x171] sm:$0xff] %v709_v1  ;;  %v710_v31 = vmax.f32 %v678_v49, 0.0  ;;  %v640_v37 = vmul.f32 %v3590_v29, %v601_v3 }
  0x8b   : > { %2207 = vmatpush1.msra.mxu0 %v1688_v14  ;;  %2053 = vmatprep.mubr.f32.mxu1 %v3773_v15  ;;  %v1686_v38 = vld [vmem:[%s5096_s1 + $0x260] sm:$0xff]  ;;  %v1720_v29 = vld [vmem:[%s5096_s1 + $0x370] sm:$0xff] }
  0x8c   : > { %1828 = vmatprep.mubr.f32.mxu0 %v5129_v27  ;;  %2208 = vmatprep.subr.mxu0 %v5125_v51  ;;  %v4033_v34 = vld [vmem:[#allocation2 + $0x140] sm:$0xff]  ;;  %v4042_v3 = vld [vmem:[#allocation2 + $0x150] sm:$0xff]  ;;  %743 = vst [vmem:[#allocation2 + $0x181] sm:$0xff] %v710_v31  ;;  %v679_v27 = vadd.f32 %v3595_v30, %v640_v37 }
  0x8d   : > { %v4035_v14 = vld [vmem:[#allocation2 + $0x13a] sm:$0xff]  ;;  %v4037_v41 = vld [vmem:[#allocation2 + $0x142] sm:$0xff]  ;;  %2209 = vmatpush1.msra.mxu0 %v1687_v57  ;;  %2430 = vmatpush1.msra.mxu1 %v1721_v9  ;;  %5132 = vst [vmem:[#allocation14_spill] sm:$0xff] %v4042_v3  ;;  %v1194_v49 = vld [vmem:[#allocation2 + $0x31] sm:$0xff]  ;;  %v5133_v57 = vmax.f32 %v3640_v50, 0.0 }
  0x8e   : > { %5130 = vst [vmem:[#allocation12_spill] sm:$0xff] %v4035_v14  ;;  %5131 = vst [vmem:[#allocation13_spill] sm:$0xff] %v4037_v41  ;;  %v1065_v1 = vld [vmem:[#allocation2 + $0x1a] sm:$0xff]  ;;  %1829 = vmatmul.mubr.f32.gmra.mxu0 %v3741_v47  ;;  %2054 = vmatmul.mubr.f32.gmra.mxu1 %v3759_v4  ;;  %v1130_v41 = vld [vmem:[#allocation2 + $0x30] sm:$0xff]  ;;  %v711_v30 = vmax.f32 %v679_v27, 0.0 }
  0x8f   : > { %1097 = vst [vmem:[#allocation3 + $0x438] sm:$0xff] %v1065_v1  ;;  %v1001_v14 = vld [vmem:[#allocation2 + $0x19] sm:$0xff]  ;;  %1833 = vmatprep.mubr.f32.mxu0 %v5133_v57  ;;  %2058 = vmatprep.mubr.f32.mxu1 %v3776_v18  ;;  %1226 = vst [vmem:[#allocation3 + $0x4d0] sm:$0xff] %v1194_v49  ;;  %v1719_v50 = vld [vmem:[%s5096_s1 + $0x368] sm:$0xff] }
  0x90   : > { %v4050_v9 = vld [vmem:[#allocation2 + $0x158] sm:$0xff]  ;;  %1033 = vst [vmem:[#allocation3 + $0x320] sm:$0xff] %v1001_v14  ;;  %1162 = vst [vmem:[#allocation3 + $0x8f8] sm:$0xff] %v1130_v41  ;;  %2210 = vmatprep.subr.mxu0 %v5125_v51  ;;  %2431 = vmatprep.subr.mxu1 %v5125_v51  ;;  %v4064_v4 = vld [vmem:[#allocation2 + $0x168] sm:$0xff] }
  0x91   : > { %v4052_v3 = vld [vmem:[#allocation2 + $0x152] sm:$0xff]  ;;  %v4054_v31 = vld [vmem:[#allocation2 + $0x15a] sm:$0xff]  ;;  %v1066_v37 = vld [vmem:[#allocation2 + $0x22] sm:$0xff]  ;;  %2211 = vmatpush1.msra.mxu0 %v1686_v38  ;;  %2432 = vmatpush1.msra.mxu1 %v1720_v29  ;;  %744 = vst [vmem:[#allocation2 + $0x189] sm:$0xff] %v711_v30  ;;  %v5134_v38 = vmax.f32 %v3646_v54, 0.0 }
  0x92   : > { %v1685_v47 = vld [vmem:[%s5096_s1 + $0x258] sm:$0xff]  ;;  %1098 = vst [vmem:[#allocation3 + $0x570] sm:$0xff] %v1066_v37  ;;  %v1002_v41 = vld [vmem:[#allocation2 + $0x21] sm:$0xff]  ;;  %1834 = vmatmul.mubr.f32.gmra.mxu0 %v3757_v0  ;;  %2059 = vmatmul.mubr.f32.gmra.mxu1 %v3761_v5  ;;  %v4068_v1 = vld [vmem:[#allocation2 + $0x170] sm:$0xff] }
  0x93   : > { %v1195_v14 = vld [vmem:[#allocation2 + $0x39] sm:$0xff]  ;;  %v4070_v49 = vld [vmem:[#allocation2 + $0x16a] sm:$0xff]  ;;  %1034 = vst [vmem:[#allocation3 + $0x7f0] sm:$0xff] %v1002_v41  ;;  %1838 = vmatprep.mubr.f32.mxu0 %v5134_v38  ;;  %2063 = vmatprep.mubr.f32.mxu1 %v3778_v19 }
  0x94   : > { %v1131_v27 = vld [vmem:[#allocation2 + $0x38] sm:$0xff]  ;;  %1227 = vst [vmem:[#allocation3 + $0x3a8] sm:$0xff] %v1195_v14  ;;  %v1196_v30 = vld [vmem:[#allocation2 + $0x49] sm:$0xff]  ;;  %2212 = vmatprep.subr.mxu0 %v5125_v51  ;;  %2433 = vmatprep.subr.mxu1 %v5125_v51  ;;  %v4082_v5 = vld [vmem:[#allocation2 + $0x180] sm:$0xff] }
  0x95   : > { %v4072_v57 = vld [vmem:[#allocation2 + $0x172] sm:$0xff]  ;;  %1163 = vst [vmem:[#allocation3 + $0x580] sm:$0xff] %v1131_v27  ;;  %v1132_v37 = vld [vmem:[#allocation2 + $0x48] sm:$0xff]  ;;  %1228 = vst [vmem:[#allocation3 + $0x830] sm:$0xff] %v1196_v30  ;;  %2213 = vmatpush1.msra.mxu0 %v1685_v47  ;;  %2434 = vmatpush1.msra.mxu1 %v1719_v50  ;;  %v5135_v47 = vmax.f32 %v3663_v61, 0.0 }
  0x96   : > { %v1067_v29 = vld [vmem:[#allocation2 + $0x32] sm:$0xff]  ;;  %1164 = vst [vmem:[#allocation3 + $0x368] sm:$0xff] %v1132_v37  ;;  %v1068_v54 = vld [vmem:[#allocation2 + $0x3a] sm:$0xff]  ;;  %v1069_v27 = vld [vmem:[#allocation2 + $0x4a] sm:$0xff]  ;;  %1839 = vmatmul.mubr.f32.gmra.mxu0 %v3773_v15  ;;  %2064 = vmatmul.mubr.f32.gmra.mxu1 %v3780_v20 }
  0x97   : > { %v1684_v0 = vld [vmem:[%s5096_s1 + $0x250] sm:$0xff]  ;;  %1099 = vst [vmem:[#allocation3 + $0x90] sm:$0xff] %v1067_v29  ;;  %1100 = vst [vmem:[#allocation3 + $0x6f0] sm:$0xff] %v1068_v54  ;;  %v1718_v38 = vld [vmem:[%s5096_s1 + $0x360] sm:$0xff]  ;;  %1843 = vmatprep.mubr.f32.mxu0 %v5135_v47  ;;  %2068 = vmatprep.mubr.f32.mxu1 %v3791_v26  ;;  %v5138_v47 = vmax.f32 %v3690_v11, 0.0 }
  0x98   : > { %v1197_v14 = vld [vmem:[#allocation2 + $0x51] sm:$0xff]  ;;  %1101 = vst [vmem:[#allocation3 + $0x630] sm:$0xff] %v1069_v27  ;;  %v1198_v29 = vld [vmem:[#allocation2 + $0x61] sm:$0xff]  ;;  %v1199_v15 = vld [vmem:[#allocation2 + $0x69] sm:$0xff]  ;;  %2214 = vmatprep.subr.mxu0 %v5125_v51  ;;  %2435 = vmatprep.subr.mxu1 %v5125_v51 }
  0x99   : > { %v1133_v41 = vld [vmem:[#allocation2 + $0x50] sm:$0xff]  ;;  %1229 = vst [vmem:[#allocation3 + $0x5c0] sm:$0xff] %v1197_v14  ;;  %v1134_v30 = vld [vmem:[#allocation2 + $0x60] sm:$0xff]  ;;  %1230 = vst [vmem:[#allocation3 + $0x470] sm:$0xff] %v1198_v29  ;;  %2215 = vmatpush1.msra.mxu0 %v1684_v0  ;;  %2436 = vmatpush1.msra.mxu1 %v1718_v38  ;;  %v5137_v38 = vmax.f32 %v3672_v2, 0.0 }
  0x9a   : > { %1165 = vst [vmem:[#allocation3 + $0x4a0] sm:$0xff] %v1133_v41  ;;  %1166 = vst [vmem:[#allocation3 + $0x328] sm:$0xff] %v1134_v30  ;;  %v1070_v50 = vld [vmem:[#allocation2 + $0x52] sm:$0xff]  ;;  %v4094_v20 = vld [vmem:[#allocation2 + $0x188] sm:$0xff]  ;;  %1844 = vmatmul.mubr.f32.gmra.mxu0 %v3776_v18  ;;  %2069 = vmatmul.mubr.f32.gmra.mxu1 %v3793_v28  ;;  %v5136_v41 = vmax.f32 %v3666_v62, 0.0 }
  0x9b   : > { %1102 = vst [vmem:[#allocation3] sm:$0xff] %v1070_v50  ;;  %1231 = vst [vmem:[#allocation3 + $0x720] sm:$0xff] %v1199_v15  ;;  %v1135_v37 = vld [vmem:[#allocation2 + $0x68] sm:$0xff]  ;;  %v1717_v54 = vld [vmem:[%s5096_s1 + $0x358] sm:$0xff]  ;;  %2073 = vmatprep.mubr.f32.mxu1 %v3797_v36  ;;  %2216 = vmatprep.subr.mxu0 %v5125_v51 }
  0x9c   : > { %v1683_v61 = vld [vmem:[%s5096_s1 + $0x248] sm:$0xff]  ;;  %1167 = vst [vmem:[#allocation3 + $0x638] sm:$0xff] %v1135_v37  ;;  %1848 = vmatprep.mubr.f32.mxu0 %v5136_v41  ;;  %v1200_v0 = vld [vmem:[#allocation2 + $0x79] sm:$0xff]  ;;  %2437 = vmatprep.subr.mxu1 %v5125_v51  ;;  %v1716_v28 = vld [vmem:[%s5096_s1 + $0x350] sm:$0xff] }
  0x9d   : > { %v1071_v14 = vld [vmem:[#allocation2 + $0x62] sm:$0xff]  ;;  %1232 = vst [vmem:[#allocation3 + $0x68] sm:$0xff] %v1200_v0  ;;  %2217 = vmatpush1.msra.mxu0 %v1683_v61  ;;  %2438 = vmatpush1.msra.mxu1 %v1717_v54  ;;  %v1136_v18 = vld [vmem:[#allocation2 + $0x78] sm:$0xff]  ;;  %v1072_v27 = vld [vmem:[#allocation2 + $0x6a] sm:$0xff] }
  0x9e   : > { %1103 = vst [vmem:[#allocation3 + $0x288] sm:$0xff] %v1071_v14  ;;  %1849 = vmatmul.mubr.f32.gmra.mxu0 %v3778_v19  ;;  %2074 = vmatmul.mubr.f32.gmra.mxu1 %v3795_v32  ;;  %v1682_v62 = vld [vmem:[%s5096_s1 + $0x240] sm:$0xff]  ;;  %1168 = vst [vmem:[#allocation3 + $0x40] sm:$0xff] %v1136_v18  ;;  %v1681_v2 = vld [vmem:[%s5096_s1 + $0x238] sm:$0xff] }
  0x9f   : > { %1853 = vmatprep.mubr.f32.mxu0 %v5137_v38  ;;  %2078 = vmatprep.mubr.f32.mxu1 %v3810_v45  ;;  %1104 = vst [vmem:[#allocation3 + $0x788] sm:$0xff] %v1072_v27  ;;  %v1201_v29 = vld [vmem:[#allocation2 + $0x81] sm:$0xff]  ;;  %v1202_v50 = vld [vmem:[#allocation2 + $0x91] sm:$0xff]  ;;  %v3270_v37 = vld [vmem:[#allocation2 + $0x69] sm:$0xff] }
  0xa0   : > { %2218 = vmatprep.subr.mxu0 %v5125_v51  ;;  %2439 = vmatprep.subr.mxu1 %v5125_v51  ;;  %1233 = vst [vmem:[#allocation3 + $0x218] sm:$0xff] %v1201_v29  ;;  %v1137_v19 = vld [vmem:[#allocation2 + $0x80] sm:$0xff]  ;;  %v1715_v32 = vld [vmem:[%s5096_s1 + $0x348] sm:$0xff]  ;;  %1234 = vst [vmem:[#allocation3 + $0xe0] sm:$0xff] %v1202_v50 }
  0xa1   : > { %2219 = vmatpush1.msra.mxu0 %v1682_v62  ;;  %2440 = vmatpush1.msra.mxu1 %v1716_v28  ;;  %1169 = vst [vmem:[#allocation3 + $0x688] sm:$0xff] %v1137_v19  ;;  %v1073_v30 = vld [vmem:[#allocation2 + $0x7a] sm:$0xff]  ;;  %v1680_v11 = vld [vmem:[%s5096_s1 + $0x230] sm:$0xff]  ;;  %v1074_v15 = vld [vmem:[#allocation2 + $0x82] sm:$0xff] }
  0xa2   : > { %1854 = vmatmul.mubr.f32.gmra.mxu0 %v3791_v26  ;;  %2079 = vmatmul.mubr.f32.gmra.mxu1 %v3799_v39  ;;  %1105 = vst [vmem:[#allocation3 + $0x5a0] sm:$0xff] %v1073_v30  ;;  %v1138_v26 = vld [vmem:[#allocation2 + $0x90] sm:$0xff]  ;;  %v1714_v39 = vld [vmem:[%s5096_s1 + $0x340] sm:$0xff]  ;;  %1106 = vst [vmem:[#allocation3 + $0x800] sm:$0xff] %v1074_v15 }
  0xa3   : > { %1858 = vmatprep.mubr.f32.mxu0 %v5138_v47  ;;  %2083 = vmatprep.mubr.f32.mxu1 %v3812_v46  ;;  %1170 = vst [vmem:[#allocation3 + $0x5d8] sm:$0xff] %v1138_v26  ;;  %v1203_v61 = vld [vmem:[#allocation2 + $0x99] sm:$0xff]  ;;  %v4157_v0 = vld [vmem:[#allocation2 + $0xa9] sm:$0xff]  ;;  %v3272_v28 = vld [vmem:[#allocation2 + $0x81] sm:$0xff] }
  0xa4   : > { %2220 = vmatprep.subr.mxu0 %v5125_v51  ;;  %2441 = vmatprep.subr.mxu1 %v5125_v51  ;;  %1235 = vst [vmem:[#allocation3 + $0x600] sm:$0xff] %v1203_v61  ;;  %v1713_v54 = vld [vmem:[%s5096_s1 + $0x338] sm:$0xff]  ;;  %1236 = vst [vmem:[#allocation3 + $0x8b8] sm:$0xff] %v4157_v0  ;;  %v1712_v18 = vld [vmem:[%s5096_s1 + $0x330] sm:$0xff] }
  0xa5   : > { %2221 = vmatpush1.msra.mxu0 %v1681_v2  ;;  %2442 = vmatpush1.msra.mxu1 %v1715_v32  ;;  %v4154_v14 = vld [vmem:[#allocation2 + $0x92] sm:$0xff]  ;;  %v4172_v62 = vld [vmem:[#allocation2 + $0x9a] sm:$0xff]  ;;  %v1711_v38 = vld [vmem:[%s5096_s1 + $0x328] sm:$0xff] }
  0xa6   : > { %1859 = vmatmul.mubr.f32.gmra.mxu0 %v3797_v36  ;;  %2084 = vmatmul.mubr.f32.gmra.mxu1 %v3814_v48  ;;  %v1139_v36 = vld [vmem:[#allocation2 + $0x98] sm:$0xff]  ;;  %v1679_v48 = vld [vmem:[%s5096_s1 + $0x228] sm:$0xff]  ;;  %v1710_v32 = vld [vmem:[%s5096_s1 + $0x320] sm:$0xff] }
  0xa7   : > { %1863 = vmatprep.mubr.f32.mxu0 %v3270_v37  ;;  %2088 = vmatprep.mubr.f32.mxu1 %v3817_v52  ;;  %1171 = vst [vmem:[#allocation3 + $0x450] sm:$0xff] %v1139_v36  ;;  %v3271_v41 = vld [vmem:[#allocation2 + $0x79] sm:$0xff]  ;;  %v4175_v27 = vld [vmem:[#allocation2 + $0xb1] sm:$0xff]  ;;  %v4193_v2 = vld [vmem:[#allocation2 + $0xc1] sm:$0xff] }
  0xa8   : > { %2222 = vmatprep.subr.mxu0 %v5125_v51  ;;  %2443 = vmatprep.subr.mxu1 %v5125_v51  ;;  %1237 = vst [vmem:[#allocation3 + $0x2b0] sm:$0xff] %v4175_v27  ;;  %v4190_v29 = vld [vmem:[#allocation2 + $0xaa] sm:$0xff]  ;;  %1238 = vst [vmem:[#allocation3 + $0x388] sm:$0xff] %v4193_v2  ;;  %v4208_v30 = vld [vmem:[#allocation2 + $0xb2] sm:$0xff] }
  0xa9   : > { %2223 = vmatpush1.msra.mxu0 %v1680_v11  ;;  %2444 = vmatpush1.msra.mxu1 %v1714_v39  ;;  %v3273_v19 = vld [vmem:[#allocation2 + $0x91] sm:$0xff]  ;;  %v3274_v47 = vld [vmem:[#allocation2 + $0x99] sm:$0xff]  ;;  %v4211_v50 = vld [vmem:[#allocation2 + $0xc9] sm:$0xff] }
  0xaa   : > { %1864 = vmatmul.mubr.f32.gmra.mxu0 %v3810_v45  ;;  %2089 = vmatmul.mubr.f32.gmra.mxu1 %v3819_v53  ;;  %v4162_v45 = vld [vmem:[#allocation2 + $0xa8] sm:$0xff]  ;;  %v1678_v53 = vld [vmem:[%s5096_s1 + $0x220] sm:$0xff]  ;;  %v1709_v26 = vld [vmem:[%s5096_s1 + $0x318] sm:$0xff] }
  0xab   : > { %1868 = vmatprep.mubr.f32.mxu0 %v3271_v41  ;;  %2093 = vmatprep.mubr.f32.mxu1 %v3831_v58  ;;  %v4225_v11 = vld [vmem:[#allocation2 + $0xc2] sm:$0xff]  ;;  %v4228_v15 = vld [vmem:[#allocation2 + $0xd9] sm:$0xff]  ;;  %v1708_v37 = vld [vmem:[%s5096_s1 + $0x310] sm:$0xff] }
  0xac   : > { %2224 = vmatprep.subr.mxu0 %v5125_v51  ;;  %2445 = vmatprep.subr.mxu1 %v5125_v51  ;;  %v3275_v39 = vld [vmem:[#allocation2 + $0xa9] sm:$0xff]  ;;  %v3276_v36 = vld [vmem:[#allocation2 + $0xb1] sm:$0xff]  ;;  %v4259_v41 = vld [vmem:[#allocation2 + $0xda] sm:$0xff] }
  0xad   : > { %2225 = vmatpush1.msra.mxu0 %v1679_v48  ;;  %2446 = vmatpush1.msra.mxu1 %v1713_v54  ;;  %v4242_v61 = vld [vmem:[#allocation2 + $0xca] sm:$0xff]  ;;  %v4245_v48 = vld [vmem:[#allocation2 + $0xe1] sm:$0xff] }
  0xae   : > { %1869 = vmatmul.mubr.f32.gmra.mxu0 %v3812_v46  ;;  %2094 = vmatmul.mubr.f32.gmra.mxu1 %v3821_v55  ;;  %v4180_v46 = vld [vmem:[#allocation2 + $0xb0] sm:$0xff]  ;;  %v1677_v55 = vld [vmem:[%s5096_s1 + $0x218] sm:$0xff]  ;;  %v1707_v54 = vld [vmem:[%s5096_s1 + $0x308] sm:$0xff] }
  0xaf   : > { %1873 = vmatprep.mubr.f32.mxu0 %v3272_v28  ;;  %2098 = vmatprep.mubr.f32.mxu1 %v3836_v6  ;;  %v1704_v28 = vld [vmem:[%s5096_s1 + $0x2f0] sm:$0xff] }
  0xb0   : > { %2226 = vmatprep.subr.mxu0 %v5125_v51  ;;  %2447 = vmatprep.subr.mxu1 %v5125_v51 }
  0xb1   : > { %2227 = vmatpush1.msra.mxu0 %v1678_v53  ;;  %2448 = vmatpush1.msra.mxu1 %v1712_v18  ;;  %v3277_v53 = vld [vmem:[#allocation2 + $0xc1] sm:$0xff]  ;;  %v4262_v18 = vld [vmem:[#allocation2 + $0xf1] sm:$0xff] }
  0xb2   : > { %1874 = vmatmul.mubr.f32.gmra.mxu0 %v3817_v52  ;;  %2099 = vmatmul.mubr.f32.gmra.mxu1 %v3833_v59  ;;  %v4198_v52 = vld [vmem:[#allocation2 + $0xc0] sm:$0xff]  ;;  %v1676_v59 = vld [vmem:[%s5096_s1 + $0x210] sm:$0xff] }
  0xb3   : > { %1878 = vmatprep.mubr.f32.mxu0 %v3273_v19  ;;  %2103 = vmatprep.mubr.f32.mxu1 %v3847_v13  ;;  %v5140_v19 = vld [vmem:[#allocation7_spill] sm:$0xff] }
  0xb4   : > { %2228 = vmatprep.subr.mxu0 %v5125_v51  ;;  %2449 = vmatprep.subr.mxu1 %v5125_v51 }
  0xb5   : > { %2229 = vmatpush1.msra.mxu0 %v1677_v55  ;;  %2450 = vmatpush1.msra.mxu1 %v1711_v38  ;;  %v1706_v55 = vld [vmem:[%s5096_s1 + $0x300] sm:$0xff]  ;;  %v3278_v38 = vld [vmem:[#allocation2 + $0xc9] sm:$0xff] }
  0xb6   : > { %1879 = vmatmul.mubr.f32.gmra.mxu0 %v3831_v58  ;;  %2104 = vmatmul.mubr.f32.gmra.mxu1 %v3838_v7  ;;  %v4215_v58 = vld [vmem:[#allocation2 + $0xc8] sm:$0xff] }
  0xb7   : > { %1883 = vmatprep.mubr.f32.mxu0 %v3274_v47  ;;  %2108 = vmatprep.mubr.f32.mxu1 %v3850_v22  ;;  %v1675_v7 = vld [vmem:[%s5096_s1 + $0x208] sm:$0xff]  ;;  %v5141_v47 = vld [vmem:[#allocation5_spill] sm:$0xff] }
  0xb8   : > { %2230 = vmatprep.subr.mxu0 %v5125_v51  ;;  %2451 = vmatprep.subr.mxu1 %v5125_v51 }
  0xb9   : > { %2231 = vmatpush1.msra.mxu0 %v1676_v59  ;;  %2452 = vmatpush1.msra.mxu1 %v1710_v32  ;;  %v4279_v59 = vld [vmem:[#allocation2 + $0xe2] sm:$0xff]  ;;  %v4283_v32 = vld [vmem:[#allocation2 + $0xf8] sm:$0xff] }
  0xba   : > { %1884 = vmatmul.mubr.f32.gmra.mxu0 %v3836_v6  ;;  %2109 = vmatmul.mubr.f32.gmra.mxu1 %v3840_v8  ;;  %v4232_v6 = vld [vmem:[#allocation2 + $0xd8] sm:$0xff]  ;;  %v1674_v8 = vld [vmem:[%s5096_s1 + $0x200] sm:$0xff] }
  0xbb   : > { %1888 = vmatprep.mubr.f32.mxu0 %v3275_v39  ;;  %2113 = vmatprep.mubr.f32.mxu1 %v3865_v42  ;;  %v3279_v39 = vld [vmem:[#allocation2 + $0xd9] sm:$0xff] }
  0xbc   : > { %2232 = vmatprep.subr.mxu0 %v5125_v51  ;;  %2453 = vmatprep.subr.mxu1 %v5125_v51 }
  0xbd   : > { %2233 = vmatpush1.msra.mxu0 %v1675_v7  ;;  %2454 = vmatpush1.msra.mxu1 %v1709_v26  ;;  %v1703_v7 = vld [vmem:[%s5096_s1 + $0x2e8] sm:$0xff]  ;;  %v1737_v26 = vld [vmem:[%s5096_s1 + $0x3f8] sm:$0xff] }
  0xbe   : > { %1889 = vmatmul.mubr.f32.gmra.mxu0 %v3847_v13  ;;  %2114 = vmatmul.mubr.f32.gmra.mxu1 %v3852_v23  ;;  %v4249_v13 = vld [vmem:[#allocation2 + $0xe0] sm:$0xff]  ;;  %v1705_v23 = vld [vmem:[%s5096_s1 + $0x2f8] sm:$0xff] }
  0xbf   : > { %1893 = vmatprep.mubr.f32.mxu0 %v3276_v36  ;;  %2118 = vmatprep.mubr.f32.mxu1 %v3867_v43  ;;  %v5142_v36 = vld [vmem:[#allocation8_spill] sm:$0xff] }
  0xc0   : > { %2234 = vmatprep.subr.mxu0 %v5125_v51  ;;  %2455 = vmatprep.subr.mxu1 %v5125_v51 }
  0xc1   : > { %2235 = vmatpush1.msra.mxu0 %v1674_v8  ;;  %2456 = vmatpush1.msra.mxu1 %v1708_v37  ;;  %v4296_v8 = vld [vmem:[#allocation2 + $0xf2] sm:$0xff]  ;;  %v4301_v37 = vld [vmem:[#allocation2 + $0x108] sm:$0xff] }
  0xc2   : > { %1894 = vmatmul.mubr.f32.gmra.mxu0 %v3850_v22  ;;  %2119 = vmatmul.mubr.f32.gmra.mxu1 %v3854_v24  ;;  %v4266_v22 = vld [vmem:[#allocation2 + $0xf0] sm:$0xff]  ;;  %1115 = vst [vmem:[#allocation3 + $0x650] sm:$0xff] %v4296_v8 }
  0xc3   : > { %1898 = vmatprep.mubr.f32.mxu0 %v3277_v53  ;;  %2123 = vmatprep.mubr.f32.mxu1 %v3879_v17  ;;  %v5139_v24 = vld [vmem:[#allocation4_spill] sm:$0xff]  ;;  %v3280_v53 = vld [vmem:[#allocation2 + $0xe1] sm:$0xff] }
  0xc4   : > { %2236 = vmatprep.subr.mxu0 %v5125_v51  ;;  %2457 = vmatprep.subr.mxu1 %v5125_v51 }
  0xc5   : > { %2237 = vmatpush2.msra.mxu0 %v1705_v23  ;;  %2458 = vmatpush1.msra.mxu1 %v1707_v54  ;;  %v1702_v23 = vld [vmem:[%s5096_s1 + $0x2e0] sm:$0xff]  ;;  %v1736_v54 = vld [vmem:[%s5096_s1 + $0x3f0] sm:$0xff] }
  0xc6   : > { %1899 = vmatmul.mubr.f32.gmra.mxu0 %v3865_v42  ;;  %2124 = vmatmul.mubr.f32.gmra.mxu1 %v5139_v24  ;;  %v4281_v42 = vld [vmem:[#allocation2 + $0xf9] sm:$0xff] }
  0xc7   : > { %1903 = vmatprep.mubr.f32.mxu0 %v3278_v38  ;;  %2128 = vmatprep.mubr.f32.mxu1 %v5140_v19  ;;  %v4314_v24 = vld [vmem:[#allocation2 + $0xfa] sm:$0xff] }
  0xc8   : > { %2238 = vmatprep.subr.mxu0 %v5125_v51  ;;  %2459 = vmatprep.subr.mxu1 %v5125_v51  ;;  %1116 = vst [vmem:[#allocation3 + $0x5b8] sm:$0xff] %v4314_v24  ;;  %v1701_v38 = vld [vmem:[%s5096_s1 + $0x2d8] sm:$0xff] }
  0xc9   : > { %2239 = vmatpush2.msra.mxu0 %v1704_v28  ;;  %2460 = vmatpush1.msra.mxu1 %v1706_v55  ;;  %v4319_v28 = vld [vmem:[#allocation2 + $0x110] sm:$0xff]  ;;  %v5143_v55 = vld [vmem:[#allocation9_spill] sm:$0xff] }
  0xca   : > { %1904 = vmatmul.mubr.f32.gmra.mxu0 %v3867_v43  ;;  %2129 = vmatmul.mubr.f32.gmra.mxu1 %v5141_v47  ;;  %v4298_v43 = vld [vmem:[#allocation2 + $0x109] sm:$0xff] }
  0xcb   : > { %1908 = vmatprep.mubr.f32.mxu0 %v3279_v39  ;;  %2133 = vmatprep.mubr.f32.mxu1 %v3956_v25  ;;  %v1735_v47 = vld [vmem:[%s5096_s1 + $0x3e8] sm:$0xff]  ;;  %v4337_v39 = vld [vmem:[#allocation2 + $0x120] sm:$0xff] }
  0xcc   : > { %2240 = vmatprep.subr.mxu0 %v5125_v51  ;;  %2461 = vmatprep.subr.mxu1 %v5125_v51 }
  0xcd   : > { %2241 = vmatpush2.msra.mxu0 %v1703_v7  ;;  %2462 = vmatpush2.msra.mxu1 %v1737_v26  ;;  %v3281_v7 = vld [vmem:[#allocation2 + $0xf1] sm:$0xff] }
  0xce   : > { %1909 = vmatmul.mubr.f32.gmra.mxu0 %v3879_v17  ;;  %2134 = vmatmul.mubr.f32.gmra.mxu1 %v5142_v36  ;;  %v4316_v17 = vld [vmem:[#allocation2 + $0x111] sm:$0xff] }
  0xcf   : > { %1913 = vmatprep.mubr.f32.mxu0 %v3280_v53  ;;  %2138 = vmatprep.mubr.f32.mxu1 %v3976_v16  ;;  %v4332_v26 = vld [vmem:[#allocation2 + $0x10a] sm:$0xff] }
  0xd0   : > { %2242 = vmatprep.subr.mxu0 %v5125_v51  ;;  %2463 = vmatprep.subr.mxu1 %v5125_v51  ;;  %1117 = vst [vmem:[#allocation3 + $0x6c8] sm:$0xff] %v4332_v26  ;;  %v1700_v36 = vld [vmem:[%s5096_s1 + $0x2d0] sm:$0xff] }
  0xd1   : > { %2243 = vmatpush2.msra.mxu0 %v1702_v23  ;;  %2464 = vmatpush2.msra.mxu1 %v1736_v54  ;;  %v1734_v23 = vld [vmem:[%s5096_s1 + $0x3e0] sm:$0xff] }
  0xd2   : > { %1914 = vmatmul.mubr.f32.gmra.mxu0 %v5140_v19  ;;  %2139 = vmatmul.mubr.f32.gmra.mxu1 %v5143_v55  ;;  %v4334_v19 = vld [vmem:[#allocation2 + $0x121] sm:$0xff] }
  0xd3   : > { %1918 = vmatprep.mubr.f32.mxu0 %v3281_v7  ;;  %2143 = vmatprep.mubr.f32.mxu1 %v3986_v33  ;;  %v5144_v54 = vld [vmem:[#allocation6_spill] sm:$0xff]  ;;  %v4357_v55 = vld [vmem:[#allocation2 + $0x128] sm:$0xff]  ;;  %v5146_v7 = vmax.f32 %v3908_v40, 0.0 }
  0xd4   : > { %2244 = vmatprep.subr.mxu0 %v5125_v51  ;;  %2465 = vmatprep.subr.mxu1 %v5125_v51  ;;  %v5145_v53 = vmax.f32 %v5144_v54, 0.0  ;;  %v1698_v40 = vld [vmem:[%s5096_s1 + $0x2c0] sm:$0xff]  ;;  %v3282_v54 = vld [vmem:[#allocation2 + $0x111] sm:$0xff] }
  0xd5   : > { %2245 = vmatpush2.msra.mxu0 %v1701_v38  ;;  %2466 = vmatpush2.msra.mxu1 %v1735_v47  ;;  %v1699_v38 = vld [vmem:[%s5096_s1 + $0x2c8] sm:$0xff]  ;;  %v1733_v47 = vld [vmem:[%s5096_s1 + $0x3d8] sm:$0xff] }
  0xd6   : > { %1919 = vmatmul.mubr.f32.gmra.mxu0 %v3956_v25  ;;  %2144 = vmatmul.mubr.f32.gmra.mxu1 %v3978_v44  ;;  %v4352_v25 = vld [vmem:[#allocation2 + $0x112] sm:$0xff]  ;;  %v4354_v44 = vld [vmem:[#allocation2 + $0x129] sm:$0xff] }
  0xd7   : > { %1923 = vmatprep.mubr.f32.mxu0 %v5145_v53  ;;  %2148 = vmatprep.mubr.f32.mxu1 %v3991_v10  ;;  %1118 = vst [vmem:[#allocation3 + $0x670] sm:$0xff] %v4352_v25  ;;  %v4390_v53 = vld [vmem:[#allocation2 + $0x12a] sm:$0xff] }
  0xd8   : > { %2246 = vmatprep.subr.mxu0 %v5125_v51  ;;  %2467 = vmatprep.subr.mxu1 %v5125_v51 }
  0xd9   : > { %2247 = vmatpush2.msra.mxu0 %v1700_v36  ;;  %2468 = vmatpush2.msra.mxu1 %v1734_v23  ;;  %v4377_v36 = vld [vmem:[#allocation2 + $0x138] sm:$0xff]  ;;  %v1732_v23 = vld [vmem:[%s5096_s1 + $0x3d0] sm:$0xff] }
  0xda   : > { %1924 = vmatmul.mubr.f32.gmra.mxu0 %v3976_v16  ;;  %2149 = vmatmul.mubr.f32.gmra.mxu1 %v3980_v60  ;;  %v4372_v16 = vld [vmem:[#allocation2 + $0x122] sm:$0xff]  ;;  %v4374_v60 = vld [vmem:[#allocation2 + $0x139] sm:$0xff] }
  0xdb   : > { %1928 = vmatprep.mubr.f32.mxu0 %v5146_v7  ;;  %2153 = vmatprep.mubr.f32.mxu1 %v4003_v35  ;;  %1119 = vst [vmem:[#allocation3 + $0x1f8] sm:$0xff] %v4372_v16  ;;  %v1731_v7 = vld [vmem:[%s5096_s1 + $0x3c8] sm:$0xff] }
  0xdc   : > { %2248 = vmatprep.subr.mxu0 %v5125_v51  ;;  %2469 = vmatprep.subr.mxu1 %v5125_v51 }
  0xdd   : > { %2249 = vmatpush2.msra.mxu0 %v1699_v38  ;;  %2470 = vmatpush2.msra.mxu1 %v1733_v47  ;;  %v5148_v38 = vld [vmem:[#allocation10_spill] sm:$0xff]  ;;  %v1697_v47 = vld [vmem:[%s5096_s1 + $0x2b8] sm:$0xff] }
  0xde   : > { %1929 = vmatmul.mubr.f32.gmra.mxu0 %v3986_v33  ;;  %2154 = vmatmul.mubr.f32.gmra.mxu1 %v3993_v12  ;;  %v4392_v33 = vld [vmem:[#allocation2 + $0x141] sm:$0xff] }
  0xdf   : > { %1933 = vmatprep.mubr.f32.mxu0 %v3282_v54  ;;  %2158 = vmatprep.mubr.f32.mxu1 %v4007_v63  ;;  %v4394_v12 = vld [vmem:[#allocation2 + $0x140] sm:$0xff] }
  0xe0   : > { %2250 = vmatprep.subr.mxu0 %v5125_v51  ;;  %2471 = vmatprep.subr.mxu1 %v5125_v51  ;;  %5147 = vst [vmem:[#allocation4_spill] sm:$0xff] %v4394_v12  ;;  %v3283_v54 = vld [vmem:[#allocation2 + $0x121] sm:$0xff]  ;;  %v3284_v12 = vld [vmem:[#allocation2 + $0x129] sm:$0xff] }
  0xe1   : > { %2251 = vmatpush2.msra.mxu0 %v1698_v40  ;;  %2472 = vmatpush2.msra.mxu1 %v1732_v23  ;;  %v4407_v40 = vld [vmem:[#allocation2 + $0x13a] sm:$0xff]  ;;  %v4411_v23 = vld [vmem:[#allocation2 + $0x150] sm:$0xff] }
  0xe2   : > { %1934 = vmatmul.mubr.f32.gmra.mxu0 %v3991_v10  ;;  %2159 = vmatmul.mubr.f32.gmra.mxu1 %v5148_v38  ;;  %v4409_v10 = vld [vmem:[#allocation2 + $0x151] sm:$0xff]  ;;  %5150 = vst [vmem:[#allocation5_spill] sm:$0xff] %v4411_v23 }
  0xe3   : > { %1938 = vmatprep.mubr.f32.mxu0 %v3283_v54  ;;  %2163 = vmatprep.mubr.f32.mxu1 %v4025_v21  ;;  %5149 = vst [vmem:[#allocation7_spill] sm:$0xff] %v4409_v10  ;;  %v1696_v38 = vld [vmem:[%s5096_s1 + $0x2b0] sm:$0xff]  ;;  %v1730_v54 = vld [vmem:[%s5096_s1 + $0x3c0] sm:$0xff]  ;;  %v1729_v23 = vld [vmem:[%s5096_s1 + $0x3b8] sm:$0xff] }
  0xe4   : > { %2252 = vmatprep.subr.mxu0 %v5125_v51  ;;  %2473 = vmatprep.subr.mxu1 %v5125_v51  ;;  %v3285_v10 = vld [vmem:[#allocation2 + $0x139] sm:$0xff] }
  0xe5   : > { %2253 = vmatpush2.msra.mxu0 %v1697_v47  ;;  %2474 = vmatpush2.msra.mxu1 %v1731_v7  ;;  %v4424_v47 = vld [vmem:[#allocation2 + $0x142] sm:$0xff] }
  0xe6   : > { %1939 = vmatmul.mubr.f32.gmra.mxu0 %v4003_v35  ;;  %2164 = vmatmul.mubr.f32.gmra.mxu1 %v4009_v56  ;;  %5151 = vst [vmem:[#allocation8_spill] sm:$0xff] %v4424_v47  ;;  %v4426_v35 = vld [vmem:[#allocation2 + $0x159] sm:$0xff]  ;;  %v5154_v7 = vld [vmem:[#allocation11_spill] sm:$0xff] }
  0xe7   : > { %1943 = vmatprep.mubr.f32.mxu0 %v3284_v12  ;;  %2168 = vmatprep.mubr.f32.mxu1 %v4033_v34  ;;  %5152 = vst [vmem:[#allocation9_spill] sm:$0xff] %v4426_v35  ;;  %v4428_v56 = vld [vmem:[#allocation2 + $0x158] sm:$0xff]  ;;  %v1695_v12 = vld [vmem:[%s5096_s1 + $0x2a8] sm:$0xff]  ;;  %v5155_v47 = vld [vmem:[#allocation14_spill] sm:$0xff] }
  0xe8   : > { %2254 = vmatprep.subr.mxu0 %v5125_v51  ;;  %2475 = vmatprep.subr.mxu1 %v5125_v51  ;;  %5153 = vst [vmem:[#allocation6_spill] sm:$0xff] %v4428_v56  ;;  %v1728_v56 = vld [vmem:[%s5096_s1 + $0x3b0] sm:$0xff]  ;;  %v3286_v35 = vld [vmem:[#allocation2 + $0x141] sm:$0xff] }
  0xe9   : > { %2255 = vmatpush2.msra.mxu0 %v1696_v38  ;;  %2476 = vmatpush2.msra.mxu1 %v1730_v54  ;;  %v4441_v38 = vld [vmem:[#allocation2 + $0x152] sm:$0xff]  ;;  %v4445_v54 = vld [vmem:[#allocation2 + $0x168] sm:$0xff] }
  0xea   : > { %1944 = vmatmul.mubr.f32.gmra.mxu0 %v4007_v63  ;;  %2169 = vmatmul.mubr.f32.gmra.mxu1 %v5154_v7  ;;  %v4443_v63 = vld [vmem:[#allocation2 + $0x169] sm:$0xff]  ;;  %5157 = vst [vmem:[#allocation11_spill] sm:$0xff] %v4445_v54 }
  0xeb   : > { %1948 = vmatprep.mubr.f32.mxu0 %v3285_v10  ;;  %2173 = vmatprep.mubr.f32.mxu1 %v5155_v47  ;;  %5156 = vst [vmem:[#allocation10_spill] sm:$0xff] %v4443_v63  ;;  %v5158_v7 = vld [vmem:[#allocation12_spill] sm:$0xff]  ;;  %v1694_v10 = vld [vmem:[%s5096_s1 + $0x2a0] sm:$0xff]  ;;  %v1727_v54 = vld [vmem:[%s5096_s1 + $0x3a8] sm:$0xff] }
  0xec   : > { %2256 = vmatprep.subr.mxu0 %v5125_v51  ;;  %2477 = vmatprep.subr.mxu1 %v5125_v51  ;;  %v3287_v63 = vld [vmem:[#allocation2 + $0x151] sm:$0xff] }
  0xed   : > { %2257 = vmatpush2.msra.mxu0 %v1695_v12  ;;  %2478 = vmatpush2.msra.mxu1 %v1729_v23  ;;  %v4458_v23 = vld [vmem:[#allocation2 + $0x15a] sm:$0xff]  ;;  %v4462_v12 = vld [vmem:[#allocation2 + $0x170] sm:$0xff] }
  0xee   : > { %1949 = vmatmul.mubr.f32.gmra.mxu0 %v4025_v21  ;;  %2174 = vmatmul.mubr.f32.gmra.mxu1 %v5158_v7  ;;  %v4460_v21 = vld [vmem:[#allocation2 + $0x171] sm:$0xff]  ;;  %5159 = vst [vmem:[#allocation14_spill] sm:$0xff] %v4462_v12  ;;  %v3288_v12 = vld [vmem:[#allocation2 + $0x159] sm:$0xff] }
  0xef   : > { %1953 = vmatprep.mubr.f32.mxu0 %v3286_v35  ;;  %2178 = vmatprep.mubr.f32.mxu1 %v4050_v9  ;;  %v5160_v7 = vld [vmem:[#allocation13_spill] sm:$0xff] }
  0xf0   : > { %2258 = vmatprep.subr.mxu0 %v5125_v51  ;;  %2479 = vmatprep.subr.mxu1 %v5125_v51  ;;  %v1693_v35 = vld [vmem:[%s5096_s1 + $0x298] sm:$0xff] }
  0xf1   : > { %2259 = vmatpush2.msra.mxu0 %v1694_v10  ;;  %2480 = vmatpush2.msra.mxu1 %v1728_v56  ;;  %v4475_v56 = vld [vmem:[#allocation2 + $0x16a] sm:$0xff]  ;;  %v4479_v10 = vld [vmem:[#allocation2 + $0x180] sm:$0xff] }
  0xf2   : > { %1954 = vmatmul.mubr.f32.gmra.mxu0 %v4033_v34  ;;  %2179 = vmatmul.mubr.f32.gmra.mxu1 %v5160_v7  ;;  %v4477_v34 = vld [vmem:[#allocation2 + $0x181] sm:$0xff]  ;;  %5161 = vst [vmem:[#allocation12_spill] sm:$0xff] %v4479_v10  ;;  %v3289_v10 = vld [vmem:[#allocation2 + $0x169] sm:$0xff] }
  0xf3   : > { %1958 = vmatprep.mubr.f32.mxu0 %v3287_v63  ;;  %2183 = vmatprep.mubr.f32.mxu1 %v4064_v4  ;;  %v1692_v63 = vld [vmem:[%s5096_s1 + $0x290] sm:$0xff]  ;;  %v1726_v7 = vld [vmem:[%s5096_s1 + $0x3a0] sm:$0xff] }
  0xf4   : > { %2260 = vmatprep.subr.mxu0 %v5125_v51  ;;  %2481 = vmatprep.subr.mxu1 %v5125_v51 }
  0xf5   : > { %2261 = vmatpush2.msra.mxu0 %v1693_v35  ;;  %2482 = vmatpush2.msra.mxu1 %v1727_v54  ;;  %v4492_v54 = vld [vmem:[#allocation2 + $0x172] sm:$0xff] }
  0xf6   : > { %1959 = vmatmul.mubr.f32.gmra.mxu0 %v5155_v47  ;;  %2184 = vmatmul.mubr.f32.gmra.mxu1 %v4052_v3  ;;  %v4494_v47 = vld [vmem:[#allocation2 + $0x189] sm:$0xff]  ;;  %v1725_v35 = vld [vmem:[%s5096_s1 + $0x398] sm:$0xff] }
  0xf7   : > { %1963 = vmatprep.mubr.f32.mxu0 %v3288_v12  ;;  %2188 = vmatprep.mubr.f32.mxu1 %v4068_v1  ;;  %v4496_v3 = vld [vmem:[#allocation2 + $0x188] sm:$0xff] }
  0xf8   : > { %2262 = vmatprep.subr.mxu0 %v5125_v51  ;;  %2483 = vmatprep.subr.mxu1 %v5125_v51  ;;  %v1691_v12 = vld [vmem:[%s5096_s1 + $0x288] sm:$0xff] }
  0xf9   : > { %2263 = vmatpush2.msra.mxu0 %v1692_v63  ;;  %2484 = vmatpush2.msra.mxu1 %v1726_v7  ;;  %v4509_v63 = vld [vmem:[#allocation2 + $0x182] sm:$0xff]  ;;  %v4516_v7 = vld [vmem:[#allocation2 + $0x198] sm:$0xff] }
  0xfa   : > { %1964 = vmatmul.mubr.f32.gmra.mxu0 %v4050_v9  ;;  %2189 = vmatmul.mubr.f32.gmra.mxu1 %v4054_v31  ;;  %v4511_v9 = vld [vmem:[#allocation2 + $0x199] sm:$0xff]  ;;  %v1724_v31 = vld [vmem:[%s5096_s1 + $0x390] sm:$0xff]  ;;  %5163 = vst [vmem:[#allocation15_spill] sm:$0xff] %v4516_v7  ;;  %v4559_v7 = vld [vmem:[#allocation2 + $0x62] sm:$0xff] }
  0xfb   : > { %1968 = vmatprep.mubr.f32.mxu0 %v3289_v10  ;;  %2193 = vmatprep.mubr.f32.mxu1 %v4082_v5  ;;  %5162 = vst [vmem:[#allocation13_spill] sm:$0xff] %v4511_v9  ;;  %v3290_v5 = vld [vmem:[#allocation2 + $0x171] sm:$0xff]  ;;  %v1690_v10 = vld [vmem:[%s5096_s1 + $0x280] sm:$0xff]  ;;  %5171 = vst [vmem:[#allocation23_spill] sm:$0xff] %v4559_v7 }
  0xfc   : > { %2264 = vmatprep.subr.mxu0 %v5125_v51  ;;  %2485 = vmatprep.subr.mxu1 %v5125_v51  ;;  %v4568_v7 = vld [vmem:[#allocation2 + $0x82] sm:$0xff]  ;;  %v3317_v9 = vld [vmem:[#allocation3 + $0x5a0] sm:$0xff] }
  0xfd   : > { %2265 = vmatpush2.msra.mxu0 %v1691_v12  ;;  %2486 = vmatpush2.msra.mxu1 %v1725_v35  ;;  %v1723_v12 = vld [vmem:[%s5096_s1 + $0x388] sm:$0xff]  ;;  %5174 = vst [vmem:[#allocation26_spill] sm:$0xff] %v4568_v7  ;;  %v3308_v7 = vld [vmem:[#allocation3] sm:$0xff] }
  0xfe   : > { %1969 = vmatmul.mubr.f32.gmra.mxu0 %v4064_v4  ;;  %2194 = vmatmul.mubr.f32.gmra.mxu1 %v4070_v49  ;;  %v4528_v35 = vld [vmem:[#allocation2 + $0x18a] sm:$0xff]  ;;  %v4530_v4 = vld [vmem:[#allocation2 + $0x1a1] sm:$0xff] }
  0xff   : > { %2487 = vmatprep.subr.mxu1 %v5125_v51  ;;  %1973 = vmatprep.mubr.f32.mxu0 %v3290_v5  ;;  %5164 = vst [vmem:[#allocation16_spill] sm:$0xff] %v4528_v35  ;;  %5165 = vst [vmem:[#allocation17_spill] sm:$0xff] %v4530_v4  ;;  %v4534_v49 = vld [vmem:[#allocation2 + $0x1a0] sm:$0xff]  ;;  %v1753_v5 = vld [vmem:[%s5096_s1 + $0x478] sm:$0xff] }
 0x100   : > { %2198 = vmatprep.mubr.f32.mxu1 %v4094_v20  ;;  %2488 = vmatpush2.msra.mxu1 %v1724_v31  ;;  %5166 = vst [vmem:[#allocation18_spill] sm:$0xff] %v4534_v49  ;;  %v1722_v20 = vld [vmem:[%s5096_s1 + $0x380] sm:$0xff]  ;;  %v3291_v31 = vld [vmem:[#allocation3 + $0x438] sm:$0xff]  ;;  %v4545_v4 = vld [vmem:[#allocation2 + $0x32] sm:$0xff] }
 0x101   : > { %2266 = vmatprep.subr.mxu0 %v5125_v51  ;;  %2489 = vmatprep.subr.mxu1 %v5125_v51  ;;  %5167 = vst [vmem:[#allocation19_spill] sm:$0xff] %v4545_v4  ;;  %v3293_v49 = vld [vmem:[#allocation3 + $0x320] sm:$0xff]  ;;  %v3294_v35 = vld [vmem:[#allocation3 + $0x8f8] sm:$0xff]  ;;  %v3299_v4 = vld [vmem:[#allocation3 + $0x90] sm:$0xff] }
 0x102   : > { %1974 = vmatmul.mubr.f32.gmra.mxu0 %v4068_v1  ;;  %2199 = vmatmul.mubr.f32.gmra.mxu1 %v4072_v57  ;;  %v3292_v1 = vld [vmem:[#allocation3 + $0x4d0] sm:$0xff] }
 0x103   : > { %2267 = vmatpush2.msra.mxu0 %v1690_v10  ;;  %2490 = vmatpush2.msra.mxu1 %v1723_v12  ;;  %v4547_v57 = vld [vmem:[#allocation2 + $0x3a] sm:$0xff] }
 0x104   : > { %2491 = vmatprep.subr.mxu1 %v5125_v51  ;;  %2268 = vmatprep.mubr.f32.mxu0 %v3291_v31  ;;  %5168 = vst [vmem:[#allocation20_spill] sm:$0xff] %v4547_v57  ;;  %v1752_v51 = vld [vmem:[%s5096_s1 + $0x470] sm:$0xff]  ;;  %v3295_v10 = vld [vmem:[#allocation3 + $0x570] sm:$0xff]  ;;  %v3296_v12 = vld [vmem:[#allocation3 + $0x3a8] sm:$0xff] }
 0x105   : > { %2492 = vmatpush2.msra.mxu1 %v1722_v20  ;;  %2493 = vmatprep.mubr.f32.mxu1 %v3292_v1  ;;  %v4552_v31 = vld [vmem:[#allocation2 + $0x4a] sm:$0xff]  ;;  %v4554_v20 = vld [vmem:[#allocation2 + $0x52] sm:$0xff]  ;;  %v3297_v57 = vld [vmem:[#allocation3 + $0x7f0] sm:$0xff] }
 0x106   : > { %2269 = vmatmul.mubr.f32.vlgmr.msra.gmra.mxu0 %v3293_v49  ;;  %2494 = vmatmul.mubr.f32.vlgmr.msra.gmra.mxu1 %v3294_v35  ;;  %5169 = vst [vmem:[#allocation21_spill] sm:$0xff] %v4552_v31  ;;  %5170 = vst [vmem:[#allocation22_spill] sm:$0xff] %v4554_v20  ;;  %v3298_v49 = vld [vmem:[#allocation3 + $0x580] sm:$0xff]  ;;  %v1751_v35 = vld [vmem:[%s5096_s1 + $0x468] sm:$0xff] }
 0x107   : > { %3148 = vmatprep.subr.mxu0 %v1753_v5  ;;  %2273 = vmatprep.mubr.f32.mxu0 %v3295_v10  ;;  %v3300_v10 = vld [vmem:[#allocation3 + $0x830] sm:$0xff]  ;;  %v4561_v31 = vld [vmem:[#allocation2 + $0x6a] sm:$0xff] }
 0x108   : > { %3149 = vmatpush3.msra.mxu0 %v1753_v5  ;;  %2498 = vmatprep.mubr.f32.mxu1 %v3296_v12  ;;  %5172 = vst [vmem:[#allocation24_spill] sm:$0xff] %v4561_v31  ;;  %v3302_v20 = vld [vmem:[#allocation3 + $0x6f0] sm:$0xff] }
 0x109   : > { %3150 = vmatprep.subr.mxu0 %v1752_v51  ;;  %3228 = vmatprep.subr.mxu1 %v1753_v5  ;;  %v3305_v31 = vld [vmem:[#allocation3 + $0x630] sm:$0xff] }
 0x10a   : > { %2274 = vmatmul.mubr.f32.gmra.mxu0 %v3297_v57  ;;  %2499 = vmatmul.mubr.f32.gmra.mxu1 %v3298_v49  ;;  %v3301_v57 = vld [vmem:[#allocation3 + $0x368] sm:$0xff]  ;;  %v1750_v49 = vld [vmem:[%s5096_s1 + $0x460] sm:$0xff] }
 0x10b   : > { %2278 = vmatprep.mubr.f32.mxu0 %v3299_v4  ;;  %2503 = vmatprep.mubr.f32.mxu1 %v3300_v10  ;;  %v3303_v4 = vld [vmem:[#allocation3 + $0x5c0] sm:$0xff] }
 0x10c   : > { %3151 = vmatpush3.msra.mxu0 %v1752_v51  ;;  %3244 = vmatpush3.msra.mxu1 %v1753_v5  ;;  %v4566_v5 = vld [vmem:[#allocation2 + $0x7a] sm:$0xff] }
 0x10d   : > { %3152 = vmatprep.subr.mxu0 %v1751_v35  ;;  %3229 = vmatprep.subr.mxu1 %v1752_v51  ;;  %5173 = vst [vmem:[#allocation25_spill] sm:$0xff] %v4566_v5  ;;  %v4575_v5 = vld [vmem:[#allocation2 + $0x9a] sm:$0xff] }
 0x10e   : > { %2279 = vmatmul.mubr.f32.gmra.mxu0 %v3292_v1  ;;  %2504 = vmatmul.mubr.f32.gmra.mxu1 %v3301_v57  ;;  %v3304_v1 = vld [vmem:[#allocation3 + $0x4a0] sm:$0xff]  ;;  %v1749_v57 = vld [vmem:[%s5096_s1 + $0x458] sm:$0xff]  ;;  %5176 = vst [vmem:[#allocation28_spill] sm:$0xff] %v4575_v5 }
 0x10f   : > { %2283 = vmatprep.mubr.f32.mxu0 %v3302_v20  ;;  %2508 = vmatprep.mubr.f32.mxu1 %v3303_v4  ;;  %v3306_v20 = vld [vmem:[#allocation3 + $0x470] sm:$0xff]  ;;  %v3311_v5 = vld [vmem:[#allocation3 + $0x288] sm:$0xff] }
 0x110   : > { %3153 = vmatpush3.msra.mxu0 %v1751_v35  ;;  %3245 = vmatpush3.msra.mxu1 %v1752_v51  ;;  %v4573_v51 = vld [vmem:[#allocation2 + $0x92] sm:$0xff] }
 0x111   : > { %3154 = vmatprep.subr.mxu0 %v1750_v49  ;;  %3230 = vmatprep.subr.mxu1 %v1751_v35  ;;  %5175 = vst [vmem:[#allocation27_spill] sm:$0xff] %v4573_v51  ;;  %v4582_v51 = vld [vmem:[#allocation2 + $0xb2] sm:$0xff] }
 0x112   : > { %2284 = vmatmul.mubr.f32.gmra.mxu0 %v3296_v12  ;;  %2509 = vmatmul.mubr.f32.gmra.mxu1 %v3304_v1  ;;  %v3307_v12 = vld [vmem:[#allocation3 + $0x328] sm:$0xff]  ;;  %v1748_v1 = vld [vmem:[%s5096_s1 + $0x450] sm:$0xff]  ;;  %5178 = vst [vmem:[#allocation30_spill] sm:$0xff] %v4582_v51 }
 0x113   : > { %2288 = vmatprep.mubr.f32.mxu0 %v3305_v31  ;;  %2513 = vmatprep.mubr.f32.mxu1 %v3306_v20  ;;  %v3309_v31 = vld [vmem:[#allocation3 + $0x720] sm:$0xff]  ;;  %v3314_v51 = vld [vmem:[#allocation3 + $0x788] sm:$0xff] }
 0x114   : > { %3155 = vmatpush3.msra.mxu0 %v1750_v49  ;;  %3246 = vmatpush3.msra.mxu1 %v1751_v35  ;;  %v4580_v35 = vld [vmem:[#allocation2 + $0xaa] sm:$0xff] }
 0x115   : > { %3156 = vmatprep.subr.mxu0 %v1749_v57  ;;  %3231 = vmatprep.subr.mxu1 %v1750_v49  ;;  %5177 = vst [vmem:[#allocation29_spill] sm:$0xff] %v4580_v35  ;;  %v4589_v35 = vld [vmem:[#allocation2 + $0xca] sm:$0xff] }
 0x116   : > { %2289 = vmatmul.mubr.f32.gmra.mxu0 %v3300_v10  ;;  %2514 = vmatmul.mubr.f32.gmra.mxu1 %v3307_v12  ;;  %v3310_v10 = vld [vmem:[#allocation3 + $0x638] sm:$0xff]  ;;  %5180 = vst [vmem:[#allocation32_spill] sm:$0xff] %v4589_v35 }
 0x117   : > { %2293 = vmatprep.mubr.f32.mxu0 %v3308_v7  ;;  %2518 = vmatprep.mubr.f32.mxu1 %v3309_v31  ;;  %v1747_v12 = vld [vmem:[%s5096_s1 + $0x448] sm:$0xff]  ;;  %v3312_v7 = vld [vmem:[#allocation3 + $0x68] sm:$0xff] }
 0x118   : > { %3157 = vmatpush3.msra.mxu0 %v1749_v57  ;;  %3247 = vmatpush3.msra.mxu1 %v1750_v49  ;;  %v4587_v49 = vld [vmem:[#allocation2 + $0xc2] sm:$0xff] }
 0x119   : > { %3158 = vmatprep.subr.mxu0 %v1748_v1  ;;  %3232 = vmatprep.subr.mxu1 %v1749_v57  ;;  %5179 = vst [vmem:[#allocation31_spill] sm:$0xff] %v4587_v49  ;;  %v4596_v49 = vld [vmem:[#allocation2 + $0x19a] sm:$0xff]  ;;  %v4598_v35 = vld [vmem:[#allocation2 + $0xe2] sm:$0xff] }
 0x11a   : > { %2294 = vmatmul.mubr.f32.gmra.mxu0 %v3303_v4  ;;  %2519 = vmatmul.mubr.f32.gmra.mxu1 %v3310_v10  ;;  %v3313_v4 = vld [vmem:[#allocation3 + $0x40] sm:$0xff]  ;;  %v1746_v10 = vld [vmem:[%s5096_s1 + $0x440] sm:$0xff]  ;;  %5181 = vst [vmem:[#allocation33_spill] sm:$0xff] %v4596_v49  ;;  %v3319_v49 = vld [vmem:[#allocation3 + $0x5d8] sm:$0xff] }
 0x11b   : > { %2298 = vmatprep.mubr.f32.mxu0 %v3311_v5  ;;  %2523 = vmatprep.mubr.f32.mxu1 %v3312_v7  ;;  %v3315_v5 = vld [vmem:[#allocation3 + $0x218] sm:$0xff] }
 0x11c   : > { %3159 = vmatpush3.msra.mxu0 %v1748_v1  ;;  %3248 = vmatpush3.msra.mxu1 %v1749_v57  ;;  %v4594_v57 = vld [vmem:[#allocation2 + $0xda] sm:$0xff] }
 0x11d   : > { %3160 = vmatprep.subr.mxu0 %v1747_v12  ;;  %3233 = vmatprep.subr.mxu1 %v1748_v1 }
 0x11e   : > { %2299 = vmatmul.mubr.f32.gmra.mxu0 %v3306_v20  ;;  %2524 = vmatmul.mubr.f32.gmra.mxu1 %v3313_v4  ;;  %v4600_v20 = vld [vmem:[#allocation2 + $0x1a2] sm:$0xff]  ;;  %v3316_v4 = vld [vmem:[#allocation3 + $0x688] sm:$0xff] }
 0x11f   : > { %2303 = vmatprep.mubr.f32.mxu0 %v3314_v51  ;;  %2528 = vmatprep.mubr.f32.mxu1 %v3315_v5  ;;  %5182 = vst [vmem:[#allocation34_spill] sm:$0xff] %v4600_v20  ;;  %v1745_v51 = vld [vmem:[%s5096_s1 + $0x438] sm:$0xff]  ;;  %v3321_v20 = vld [vmem:[#allocation3 + $0x600] sm:$0xff] }
 0x120   : > { %3161 = vmatpush3.msra.mxu0 %v1747_v12  ;;  %3249 = vmatpush3.msra.mxu1 %v1748_v1  ;;  %v3318_v1 = vld [vmem:[#allocation3 + $0xe0] sm:$0xff] }
 0x121   : > { %3162 = vmatprep.subr.mxu0 %v1746_v10  ;;  %3234 = vmatprep.subr.mxu1 %v1747_v12 }
 0x122   : > { %2304 = vmatmul.mubr.f32.gmra.mxu0 %v3309_v31  ;;  %2529 = vmatmul.mubr.f32.gmra.mxu1 %v3316_v4  ;;  %v1744_v31 = vld [vmem:[%s5096_s1 + $0x430] sm:$0xff] }
 0x123   : > { %2308 = vmatprep.mubr.f32.mxu0 %v3317_v9  ;;  %2533 = vmatprep.mubr.f32.mxu1 %v3318_v1  ;;  %v3320_v4 = vld [vmem:[#allocation3 + $0x800] sm:$0xff]  ;;  %v3322_v9 = vld [vmem:[#allocation3 + $0x450] sm:$0xff] }
 0x124   : > { %3163 = vmatpush3.msra.mxu0 %v1746_v10  ;;  %3250 = vmatpush3.msra.mxu1 %v1747_v12  ;;  %v1743_v12 = vld [vmem:[%s5096_s1 + $0x428] sm:$0xff] }
 0x125   : > { %3164 = vmatprep.subr.mxu0 %v1745_v51  ;;  %3235 = vmatprep.subr.mxu1 %v1746_v10 }
 0x126   : > { %2309 = vmatmul.mubr.f32.gmra.mxu0 %v3312_v7  ;;  %2534 = vmatmul.mubr.f32.gmra.mxu1 %v3319_v49  ;;  %v1742_v7 = vld [vmem:[%s5096_s1 + $0x420] sm:$0xff] }
 0x127   : > { %2313 = vmatprep.mubr.f32.mxu0 %v3320_v4  ;;  %2538 = vmatprep.mubr.f32.mxu1 %v3321_v20 }
 0x128   : > { %3165 = vmatpush3.msra.mxu0 %v1745_v51  ;;  %3251 = vmatpush3.msra.mxu1 %v1746_v10 }
 0x129   : > { %3166 = vmatprep.subr.mxu0 %v1744_v31  ;;  %3236 = vmatprep.subr.mxu1 %v1745_v51 }
 0x12a   : > { %2314 = vmatmul.mubr.f32.gmra.mxu0 %v3315_v5  ;;  %2539 = vmatmul.mubr.f32.gmra.mxu1 %v3322_v9 }
 0x12b   : > { %2318 = vmatprep.mubr.f32.mxu0 %v4154_v14  ;;  %2543 = vmatprep.mubr.f32.mxu1 %v4157_v0  ;;  %v1741_v14 = vld [vmem:[%s5096_s1 + $0x418] sm:$0xff]  ;;  %v3323_v0 = vld [vmem:[#allocation3 + $0x8b8] sm:$0xff] }
 0x12c   : > { %3167 = vmatpush3.msra.mxu0 %v1744_v31  ;;  %3252 = vmatpush3.msra.mxu1 %v1745_v51 }
 0x12d   : > { %3168 = vmatprep.subr.mxu0 %v1743_v12  ;;  %3237 = vmatprep.subr.mxu1 %v1744_v31 }
 0x12e   : > { %2319 = vmatmul.mubr.f32.gmra.mxu0 %v3318_v1  ;;  %2544 = vmatmul.mubr.f32.gmra.mxu1 %v4162_v45  ;;  %v1740_v45 = vld [vmem:[%s5096_s1 + $0x410] sm:$0xff] }
 0x12f   : > { %2323 = vmatprep.mubr.f32.mxu0 %v4172_v62  ;;  %2548 = vmatprep.mubr.f32.mxu1 %v4175_v27  ;;  %v3324_v62 = vld [vmem:[#allocation3 + $0x2b0] sm:$0xff]  ;;  %v1739_v27 = vld [vmem:[%s5096_s1 + $0x408] sm:$0xff] }
 0x130   : > { %3169 = vmatpush3.msra.mxu0 %v1743_v12  ;;  %3253 = vmatpush3.msra.mxu1 %v1744_v31 }
 0x131   : > { %3170 = vmatprep.subr.mxu0 %v1742_v7  ;;  %3238 = vmatprep.subr.mxu1 %v1743_v12 }
 0x132   : > { %2324 = vmatmul.mubr.f32.gmra.mxu0 %v3321_v20  ;;  %2549 = vmatmul.mubr.f32.gmra.mxu1 %v4180_v46  ;;  %v3325_v46 = vld [vmem:[#allocation3 + $0x388] sm:$0xff] }
 0x133   : > { %2328 = vmatprep.mubr.f32.mxu0 %v4190_v29  ;;  %2553 = vmatprep.mubr.f32.mxu1 %v4193_v2  ;;  %v1738_v29 = vld [vmem:[%s5096_s1 + $0x400] sm:$0xff] }
 0x134   : > { %3171 = vmatpush3.msra.mxu0 %v1742_v7  ;;  %3254 = vmatpush3.msra.mxu1 %v1743_v12  ;;  %v5183_v12 = vld [vmem:[#allocation4_spill] sm:$0xff] }
 0x135   : > { %3172 = vmatprep.subr.mxu0 %v1741_v14  ;;  %3239 = vmatprep.subr.mxu1 %v1742_v7 }
 0x136   : > { %2329 = vmatmul.mubr.f32.gmra.mxu0 %v3323_v0  ;;  %2554 = vmatmul.mubr.f32.gmra.mxu1 %v4198_v52 }
 0x137   : > { %2333 = vmatprep.mubr.f32.mxu0 %v4208_v30  ;;  %2558 = vmatprep.mubr.f32.mxu1 %v4211_v50 }
 0x138   : > { %3173 = vmatpush3.msra.mxu0 %v1741_v14  ;;  %3255 = vmatpush3.msra.mxu1 %v1742_v7 }
 0x139   : > { %3174 = vmatprep.subr.mxu0 %v1740_v45  ;;  %3240 = vmatprep.subr.mxu1 %v1741_v14 }
 0x13a   : > { %2334 = vmatmul.mubr.f32.gmra.mxu0 %v3324_v62  ;;  %2559 = vmatmul.mubr.f32.gmra.mxu1 %v4215_v58  ;;  %v5185_v62 = vld [vmem:[#allocation5_spill] sm:$0xff] }
 0x13b   : > { %2338 = vmatprep.mubr.f32.mxu0 %v4225_v11  ;;  %2563 = vmatprep.mubr.f32.mxu1 %v4228_v15 }
 0x13c   : > { %3175 = vmatpush3.msra.mxu0 %v1740_v45  ;;  %3256 = vmatpush3.msra.mxu1 %v1741_v14 }
 0x13d   : > { %3176 = vmatprep.subr.mxu0 %v1739_v27  ;;  %3241 = vmatprep.subr.mxu1 %v1740_v45 }
 0x13e   : > { %2339 = vmatmul.mubr.f32.gmra.mxu0 %v3325_v46  ;;  %2564 = vmatmul.mubr.f32.gmra.mxu1 %v4232_v6  ;;  %v5186_v46 = vld [vmem:[#allocation8_spill] sm:$0xff] }
 0x13f   : > { %2343 = vmatprep.mubr.f32.mxu0 %v4242_v61  ;;  %2568 = vmatprep.mubr.f32.mxu1 %v4245_v48 }
 0x140   : > { %3177 = vmatpush3.msra.mxu0 %v1739_v27  ;;  %3257 = vmatpush3.msra.mxu1 %v1740_v45 }
 0x141   : > { %3178 = vmatprep.subr.mxu0 %v1738_v29  ;;  %3242 = vmatprep.subr.mxu1 %v1739_v27 }
 0x142   : > { %2344 = vmatmul.mubr.f32.gmra.mxu0 %v4211_v50  ;;  %2569 = vmatmul.mubr.f32.gmra.mxu1 %v4249_v13 }
 0x143   : > { %2348 = vmatprep.mubr.f32.mxu0 %v4259_v41  ;;  %2573 = vmatprep.mubr.f32.mxu1 %v4262_v18 }
 0x144   : > { %3179 = vmatpush3.msra.mxu0 %v1738_v29  ;;  %3258 = vmatpush3.msra.mxu1 %v1739_v27 }
 0x145   : > { %3243 = vmatprep.subr.mxu1 %v1738_v29 }
 0x146   : > { %v1820_v2 = vpop.f32.mrf.mxu0  ;;  %v2045_v52 = vpop.f32.mrf.mxu1  ;;  %2349 = vmatmul.mubr.f32.gmra.mxu0 %v4228_v15  ;;  %2574 = vmatmul.mubr.f32.gmra.mxu1 %v4266_v22 }
 0x147   : > { %v4649_v30 = vadd.f32 %v2045_v52, %v1820_v2  ;;  %2353 = vmatprep.mubr.f32.mxu0 %v4279_v59  ;;  %2578 = vmatprep.mubr.f32.mxu1 %v4281_v42 }
 0x148   : > { %v1822_v50 = vpop.f32.mrf.mxu0  ;;  %v2047_v58 = vpop.f32.mrf.mxu1  ;;  %3259 = vmatpush3.msra.mxu1 %v1738_v29 }
 0x149   : > { %v5188_v58 = vld [vmem:[#allocation6_spill] sm:$0xff] }
 0x14a   : > { %v1825_v11 = vpop.f32.mrf.mxu0  ;;  %v2050_v6 = vpop.f32.mrf.mxu1  ;;  %2354 = vmatmul.mubr.f32.gmra.mxu0 %v4245_v48  ;;  %2579 = vmatmul.mubr.f32.gmra.mxu1 %v4283_v32 }
 0x14b   : > { %v4655_v61 = vadd.f32 %v2050_v6, %v1825_v11  ;;  %2358 = vmatprep.mubr.f32.mxu0 %v4296_v8  ;;  %2583 = vmatprep.mubr.f32.mxu1 %v4298_v43 }
 0x14c   : > { %v1827_v15 = vpop.f32.mrf.mxu0  ;;  %v2052_v13 = vpop.f32.mrf.mxu1 }
 0x14e   : > { %v1830_v41 = vpop.f32.mrf.mxu0  ;;  %v2055_v22 = vpop.f32.mrf.mxu1  ;;  %2359 = vmatmul.mubr.f32.gmra.mxu0 %v4262_v18  ;;  %2584 = vmatmul.mubr.f32.gmra.mxu1 %v4301_v37 }
 0x14f   : > { %v4661_v59 = vadd.f32 %v2055_v22, %v1830_v41  ;;  %2363 = vmatprep.mubr.f32.mxu0 %v4314_v24  ;;  %2588 = vmatprep.mubr.f32.mxu1 %v4316_v17  ;;  %v5190_v22 = vld [vmem:[#allocation11_spill] sm:$0xff] }
 0x150   : > { %v1832_v48 = vpop.f32.mrf.mxu0  ;;  %v2057_v32 = vpop.f32.mrf.mxu1 }
 0x152   : > { %v1835_v49 = vpop.f32.mrf.mxu0  ;;  %v2060_v8 = vpop.f32.mrf.mxu1  ;;  %2364 = vmatmul.mubr.f32.gmra.mxu0 %v4281_v42  ;;  %2589 = vmatmul.mubr.f32.gmra.mxu1 %v4319_v28 }
 0x153   : > { %v4667_v10 = vadd.f32 %v2060_v8, %v1835_v49  ;;  %2368 = vmatprep.mubr.f32.mxu0 %v4332_v26  ;;  %2593 = vmatprep.mubr.f32.mxu1 %v4334_v19 }
 0x154   : > { %v1837_v18 = vpop.f32.mrf.mxu0  ;;  %v2062_v37 = vpop.f32.mrf.mxu1 }
 0x155   : > { %v5191_v18 = vld [vmem:[#allocation14_spill] sm:$0xff] }
 0x156   : > { %v1840_v5 = vpop.f32.mrf.mxu0  ;;  %v2065_v24 = vpop.f32.mrf.mxu1  ;;  %2369 = vmatmul.mubr.f32.gmra.mxu0 %v4298_v43  ;;  %2594 = vmatmul.mubr.f32.gmra.mxu1 %v4337_v39 }
 0x157   : > { %v4673_v20 = vadd.f32 %v2065_v24, %v1840_v5  ;;  %2373 = vmatprep.mubr.f32.mxu0 %v4352_v25  ;;  %2598 = vmatprep.mubr.f32.mxu1 %v4354_v44 }
 0x158   : > { %v1842_v42 = vpop.f32.mrf.mxu0  ;;  %v2067_v28 = vpop.f32.mrf.mxu1 }
 0x15a   : > { %v1845_v51 = vpop.f32.mrf.mxu0  ;;  %v2070_v26 = vpop.f32.mrf.mxu1  ;;  %2374 = vmatmul.mubr.f32.gmra.mxu0 %v4316_v17  ;;  %2599 = vmatmul.mubr.f32.gmra.mxu1 %v4357_v55 }
 0x15b   : > { %v4679_v1 = vadd.f32 %v2070_v26, %v1845_v51  ;;  %2378 = vmatprep.mubr.f32.mxu0 %v4372_v16  ;;  %2603 = vmatprep.mubr.f32.mxu1 %v4374_v60  ;;  %v5192_v51 = vld [vmem:[#allocation12_spill] sm:$0xff] }
 0x15c   : > { %v1847_v43 = vpop.f32.mrf.mxu0  ;;  %v2072_v39 = vpop.f32.mrf.mxu1 }
 0x15e   : > { %v1850_v31 = vpop.f32.mrf.mxu0  ;;  %v2075_v25 = vpop.f32.mrf.mxu1  ;;  %2379 = vmatmul.mubr.f32.gmra.mxu0 %v4334_v19  ;;  %2604 = vmatmul.mubr.f32.gmra.mxu1 %v4377_v36  ;;  %v5184_v19 = vld [vmem:[#allocation7_spill] sm:$0xff] }
 0x15f   : > { %v4685_v4 = vadd.f32 %v2075_v25, %v1850_v31  ;;  %2383 = vmatprep.mubr.f32.mxu0 %v4390_v53  ;;  %2608 = vmatprep.mubr.f32.mxu1 %v4392_v33 }
 0x160   : > { %v1852_v17 = vpop.f32.mrf.mxu0  ;;  %v2077_v55 = vpop.f32.mrf.mxu1 }
 0x161   : > { %v5193_v55 = vld [vmem:[#allocation13_spill] sm:$0xff] }
 0x162   : > { %v1855_v9 = vpop.f32.mrf.mxu0  ;;  %v2080_v16 = vpop.f32.mrf.mxu1  ;;  %2384 = vmatmul.mubr.f32.gmra.mxu0 %v4354_v44  ;;  %2609 = vmatmul.mubr.f32.gmra.mxu1 %v5183_v12  ;;  %v5187_v44 = vld [vmem:[#allocation9_spill] sm:$0xff] }
 0x163   : > { %v4691_v7 = vadd.f32 %v2080_v16, %v1855_v9  ;;  %2388 = vmatprep.mubr.f32.mxu0 %v4407_v40  ;;  %2613 = vmatprep.mubr.f32.mxu1 %v5184_v19 }
 0x164   : > { %v1857_v36 = vpop.f32.mrf.mxu0  ;;  %v2082_v14 = vpop.f32.mrf.mxu1 }
 0x165   : > { %v5194_v36 = vld [vmem:[#allocation15_spill] sm:$0xff] }
 0x166   : > { %v1860_v0 = vpop.f32.mrf.mxu0  ;;  %v2085_v45 = vpop.f32.mrf.mxu1  ;;  %2389 = vmatmul.mubr.f32.gmra.mxu0 %v4374_v60  ;;  %2614 = vmatmul.mubr.f32.gmra.mxu1 %v5185_v62  ;;  %v5189_v60 = vld [vmem:[#allocation10_spill] sm:$0xff] }
 0x167   : > { %v4697_v27 = vadd.f32 %v2085_v45, %v1860_v0  ;;  %2393 = vmatprep.mubr.f32.mxu0 %v5186_v46  ;;  %2618 = vmatprep.mubr.f32.mxu1 %v5187_v44  ;;  %v5195_v0 = vld [vmem:[#allocation16_spill] sm:$0xff] }
 0x168   : > { %v1862_v29 = vpop.f32.mrf.mxu0  ;;  %v2087_v2 = vpop.f32.mrf.mxu1 }
 0x169   : > { %v5197_v29 = vld [vmem:[#allocation18_spill] sm:$0xff] }
 0x16a   : > { %v1865_v52 = vpop.f32.mrf.mxu0  ;;  %v2090_v50 = vpop.f32.mrf.mxu1  ;;  %2394 = vmatmul.mubr.f32.gmra.mxu0 %v4392_v33  ;;  %2619 = vmatmul.mubr.f32.gmra.mxu1 %v5188_v58 }
 0x16b   : > { %v4703_v11 = vadd.f32 %v2090_v50, %v1865_v52  ;;  %2398 = vmatprep.mubr.f32.mxu0 %v4441_v38  ;;  %2623 = vmatprep.mubr.f32.mxu1 %v5189_v60  ;;  %v5198_v52 = vld [vmem:[#allocation19_spill] sm:$0xff] }
 0x16c   : > { %v1867_v6 = vpop.f32.mrf.mxu0  ;;  %v2092_v15 = vpop.f32.mrf.mxu1 }
 0x16d   : > { %v5199_v15 = vld [vmem:[#allocation20_spill] sm:$0xff] }
 0x16e   : > { %v1870_v13 = vpop.f32.mrf.mxu0  ;;  %v2095_v41 = vpop.f32.mrf.mxu1  ;;  %2399 = vmatmul.mubr.f32.gmra.mxu0 %v5184_v19  ;;  %2624 = vmatmul.mubr.f32.gmra.mxu1 %v5190_v22  ;;  %v5200_v22 = vld [vmem:[#allocation21_spill] sm:$0xff] }
 0x16f   : > { %v4709_v48 = vadd.f32 %v2095_v41, %v1870_v13  ;;  %2403 = vmatprep.mubr.f32.mxu0 %v4458_v23  ;;  %2628 = vmatprep.mubr.f32.mxu1 %v4460_v21  ;;  %v3327_v13 = vld [vmem:[#allocation3 + $0x5b8] sm:$0xff] }
 0x170   : > { %v1872_v33 = vpop.f32.mrf.mxu0  ;;  %v2097_v32 = vpop.f32.mrf.mxu1 }
 0x172   : > { %v1875_v49 = vpop.f32.mrf.mxu0  ;;  %v2100_v8 = vpop.f32.mrf.mxu1  ;;  %2404 = vmatmul.mubr.f32.gmra.mxu0 %v5187_v44  ;;  %2629 = vmatmul.mubr.f32.gmra.mxu1 %v5191_v18  ;;  %v5201_v18 = vld [vmem:[#allocation22_spill] sm:$0xff] }
 0x173   : > { %v4715_v37 = vadd.f32 %v2100_v8, %v1875_v49  ;;  %2408 = vmatprep.mubr.f32.mxu0 %v4475_v56  ;;  %2633 = vmatprep.mubr.f32.mxu1 %v4477_v34 }
 0x174   : > { %v1877_v5 = vpop.f32.mrf.mxu0  ;;  %v2102_v24 = vpop.f32.mrf.mxu1 }
 0x175   : > { %v3329_v5 = vld [vmem:[#allocation3 + $0x670] sm:$0xff] }
 0x176   : > { %v1880_v42 = vpop.f32.mrf.mxu0  ;;  %v2105_v28 = vpop.f32.mrf.mxu1  ;;  %2409 = vmatmul.mubr.f32.gmra.mxu0 %v5189_v60  ;;  %2634 = vmatmul.mubr.f32.gmra.mxu1 %v5192_v51 }
 0x177   : > { %v4721_v26 = vadd.f32 %v2105_v28, %v1880_v42  ;;  %2413 = vmatprep.mubr.f32.mxu0 %v4492_v54  ;;  %2638 = vmatprep.mubr.f32.mxu1 %v4494_v47  ;;  %v5202_v42 = vld [vmem:[#allocation23_spill] sm:$0xff] }
 0x178   : > { %v1882_v43 = vpop.f32.mrf.mxu0  ;;  %v2107_v39 = vpop.f32.mrf.mxu1  ;;  %v3330_v28 = vld [vmem:[#allocation3 + $0x1f8] sm:$0xff] }
 0x17a   : > { %v1885_v31 = vpop.f32.mrf.mxu0  ;;  %v2110_v25 = vpop.f32.mrf.mxu1  ;;  %2414 = vmatmul.mubr.f32.gmra.mxu0 %v4460_v21  ;;  %2639 = vmatmul.mubr.f32.gmra.mxu1 %v4496_v3  ;;  %v5196_v21 = vld [vmem:[#allocation17_spill] sm:$0xff] }
 0x17b   : > { %v4727_v17 = vadd.f32 %v2110_v25, %v1885_v31  ;;  %2418 = vmatprep.mubr.f32.mxu0 %v4509_v63  ;;  %2643 = vmatprep.mubr.f32.mxu1 %v5193_v55  ;;  %v5203_v25 = vld [vmem:[#allocation24_spill] sm:$0xff] }
 0x17c   : > { %v1887_v9 = vpop.f32.mrf.mxu0  ;;  %v2112_v16 = vpop.f32.mrf.mxu1 }
 0x17d   : > { %v5204_v9 = vld [vmem:[#allocation25_spill] sm:$0xff] }
 0x17e   : > { %v1890_v12 = vpop.f32.mrf.mxu0  ;;  %v2115_v19 = vpop.f32.mrf.mxu1  ;;  %2419 = vmatmul.mubr.f32.gmra.mxu0 %v4477_v34  ;;  %2644 = vmatmul.mubr.f32.gmra.mxu1 %v5194_v36  ;;  %v3326_v34 = vld [vmem:[#allocation3 + $0x650] sm:$0xff] }
 0x17f   : > { %v4733_v14 = vadd.f32 %v2115_v19, %v1890_v12  ;;  %2423 = vmatprep.mubr.f32.mxu0 %v5195_v0  ;;  %2648 = vmatprep.mubr.f32.mxu1 %v5196_v21  ;;  %v5205_v21 = vld [vmem:[#allocation26_spill] sm:$0xff] }
 0x180   : > { %v1892_v3 = vpop.f32.mrf.mxu0  ;;  %v2117_v45 = vpop.f32.mrf.mxu1 }
 0x181   : > { %v5206_v45 = vld [vmem:[#allocation27_spill] sm:$0xff] }
 0x182   : > { %v1895_v62 = vpop.f32.mrf.mxu0  ;;  %v2120_v44 = vpop.f32.mrf.mxu1  ;;  %2424 = vmatmul.mubr.f32.gmra.mxu0 %v4494_v47  ;;  %2649 = vmatmul.mubr.f32.gmra.mxu1 %v5197_v29  ;;  %v3328_v47 = vld [vmem:[#allocation3 + $0x6c8] sm:$0xff] }
 0x183   : > { %v4739_v2 = vadd.f32 %v2120_v44, %v1895_v62  ;;  %3180 = vmatprep.mubr.f32.mxu0 %v5198_v52  ;;  %3204 = vmatprep.mubr.f32.mxu1 %v3326_v34  ;;  %v5207_v52 = vld [vmem:[#allocation28_spill] sm:$0xff]  ;;  %v5208_v34 = vld [vmem:[#allocation29_spill] sm:$0xff] }
 0x184   : > { %v1897_v50 = vpop.f32.mrf.mxu0  ;;  %v2122_v58 = vpop.f32.mrf.mxu1 }
 0x186   : > { %v1900_v60 = vpop.f32.mrf.mxu0  ;;  %v2125_v6 = vpop.f32.mrf.mxu1  ;;  %3181 = vmatmul.mubr.f32.vlgmr.msra.gmra.mxu0 %v5199_v15  ;;  %3205 = vmatmul.mubr.f32.vlgmr.msra.gmra.mxu1 %v3327_v13  ;;  %v5210_v15 = vld [vmem:[#allocation31_spill] sm:$0xff] }
 0x187   : > { %v4743_v41 = vadd.f32 %v2125_v6, %v1900_v60  ;;  %3183 = vmatprep.mubr.f32.mxu0 %v5200_v22  ;;  %3207 = vmatprep.mubr.f32.mxu1 %v3328_v47  ;;  %v5209_v6 = vld [vmem:[#allocation30_spill] sm:$0xff] }
 0x188   : > { %v1902_v33 = vpop.f32.mrf.mxu0  ;;  %v2127_v32 = vpop.f32.mrf.mxu1 }
 0x189   : > { %v5211_v33 = vld [vmem:[#allocation32_spill] sm:$0xff]  ;;  %v5212_v32 = vld [vmem:[#allocation33_spill] sm:$0xff] }
 0x18a   : > { %v1905_v49 = vpop.f32.mrf.mxu0  ;;  %v2130_v8 = vpop.f32.mrf.mxu1  ;;  %3184 = vmatmul.mubr.f32.gmra.mxu0 %v5201_v18  ;;  %3208 = vmatmul.mubr.f32.gmra.mxu1 %v3329_v5 }
 0x18b   : > { %v4747_v24 = vadd.f32 %v2130_v8, %v1905_v49  ;;  %3186 = vmatprep.mubr.f32.mxu0 %v5202_v42  ;;  %3210 = vmatprep.mubr.f32.mxu1 %v3330_v28 }
 0x18c   : > { %v1907_v51 = vpop.f32.mrf.mxu0  ;;  %v2132_v43 = vpop.f32.mrf.mxu1 }
 0x18e   : > { %v1910_v39 = vpop.f32.mrf.mxu0  ;;  %v2135_v31 = vpop.f32.mrf.mxu1  ;;  %3187 = vmatmul.mubr.f32.gmra.mxu0 %v5203_v25  ;;  %3211 = vmatmul.mubr.f32.gmra.mxu1 %v4390_v53 }
 0x18f   : > { %v4752_v55 = vadd.f32 %v2135_v31, %v1910_v39  ;;  %3189 = vmatprep.mubr.f32.mxu0 %v5204_v9  ;;  %3213 = vmatprep.mubr.f32.mxu1 %v4407_v40 }
 0x190   : > { %v1912_v16 = vpop.f32.mrf.mxu0  ;;  %v2137_v12 = vpop.f32.mrf.mxu1 }
 0x192   : > { %v1915_v19 = vpop.f32.mrf.mxu0  ;;  %v2140_v36 = vpop.f32.mrf.mxu1  ;;  %3190 = vmatmul.mubr.f32.gmra.mxu0 %v5205_v21  ;;  %3214 = vmatmul.mubr.f32.gmra.mxu1 %v5186_v46 }
 0x193   : > { %v4758_v3 = vadd.f32 %v2140_v36, %v1915_v19  ;;  %3192 = vmatprep.mubr.f32.mxu0 %v5206_v45  ;;  %3216 = vmatprep.mubr.f32.mxu1 %v4441_v38 }
 0x194   : > { %v1917_v53 = vpop.f32.mrf.mxu0  ;;  %v2142_v62 = vpop.f32.mrf.mxu1 }
 0x196   : > { %v1920_v44 = vpop.f32.mrf.mxu0  ;;  %v2145_v29 = vpop.f32.mrf.mxu1  ;;  %3193 = vmatmul.mubr.f32.gmra.mxu0 %v5207_v52  ;;  %3217 = vmatmul.mubr.f32.gmra.mxu1 %v4458_v23 }
 0x197   : > { %v4764_v40 = vadd.f32 %v2145_v29, %v1920_v44  ;;  %3195 = vmatprep.mubr.f32.mxu0 %v5208_v34  ;;  %3219 = vmatprep.mubr.f32.mxu1 %v4475_v56 }
 0x198   : > { %v1922_v46 = vpop.f32.mrf.mxu0  ;;  %v2147_v50 = vpop.f32.mrf.mxu1 }
 0x19a   : > { %v1925_v58 = vpop.f32.mrf.mxu0  ;;  %v2150_v60 = vpop.f32.mrf.mxu1  ;;  %3196 = vmatmul.mubr.f32.gmra.mxu0 %v5209_v6  ;;  %3220 = vmatmul.mubr.f32.gmra.mxu1 %v4492_v54 }
 0x19b   : > { %v4770_v38 = vadd.f32 %v2150_v60, %v1925_v58  ;;  %3198 = vmatprep.mubr.f32.mxu0 %v5210_v15  ;;  %3222 = vmatprep.mubr.f32.mxu1 %v4509_v63  ;;  %v5213_v63 = vld [vmem:[#allocation34_spill] sm:$0xff] }
 0x19c   : > { %v1927_v23 = vpop.f32.mrf.mxu0  ;;  %v2152_v13 = vpop.f32.mrf.mxu1 }
 0x19e   : > { %v1930_v22 = vpop.f32.mrf.mxu0  ;;  %v2155_v47 = vpop.f32.mrf.mxu1  ;;  %3199 = vmatmul.mubr.f32.gmra.mxu0 %v5211_v33  ;;  %3223 = vmatmul.mubr.f32.gmra.mxu1 %v5195_v0 }
 0x19f   : > { %v4776_v56 = vadd.f32 %v2155_v47, %v1930_v22  ;;  %3201 = vmatprep.mubr.f32.mxu0 %v4594_v57  ;;  %3225 = vmatprep.mubr.f32.mxu1 %v5212_v32 }
 0x1a0   : > { %v1932_v54 = vpop.f32.mrf.mxu0  ;;  %v2157_v49 = vpop.f32.mrf.mxu1 }
 0x1a2   : > { %v1935_v8 = vpop.f32.mrf.mxu0  ;;  %v2160_v18 = vpop.f32.mrf.mxu1  ;;  %3202 = vmatmul.mubr.f32.gmra.mxu0 %v4598_v35  ;;  %3226 = vmatmul.mubr.f32.gmra.mxu1 %v5213_v63 }
 0x1a3   : > { %v4782_v5 = vadd.f32 %v2160_v18, %v1935_v8 }
 0x1a4   : > { %v1937_v42 = vpop.f32.mrf.mxu0  ;;  %v2162_v28 = vpop.f32.mrf.mxu1 }
 0x1a6   : > { %v1940_v51 = vpop.f32.mrf.mxu0  ;;  %v2165_v0 = vpop.f32.mrf.mxu1 }
 0x1a7   : > { %v4784_v43 = vadd.f32 %v2165_v0, %v1940_v51 }
 0x1a8   : > { %v1942_v39 = vpop.f32.mrf.mxu0  ;;  %v2167_v57 = vpop.f32.mrf.mxu1 }
 0x1aa   : > { %v1945_v31 = vpop.f32.mrf.mxu0  ;;  %v2170_v25 = vpop.f32.mrf.mxu1 }
 0x1ab   : > { %v4786_v9 = vadd.f32 %v2170_v25, %v1945_v31 }
 0x1ac   : > { %v1947_v16 = vpop.f32.mrf.mxu0  ;;  %v2172_v12 = vpop.f32.mrf.mxu1 }
 0x1ae   : > { %v1950_v19 = vpop.f32.mrf.mxu0  ;;  %v2175_v35 = vpop.f32.mrf.mxu1 }
 0x1af   : > { %v4788_v36 = vadd.f32 %v2175_v35, %v1950_v19 }
 0x1b0   : > { %v1952_v21 = vpop.f32.mrf.mxu0  ;;  %v2177_v45 = vpop.f32.mrf.mxu1 }
 0x1b2   : > { %v1955_v53 = vpop.f32.mrf.mxu0  ;;  %v2180_v62 = vpop.f32.mrf.mxu1 }
 0x1b3   : > { %v4790_v44 = vadd.f32 %v2180_v62, %v1955_v53 }
 0x1b4   : > { %v1957_v29 = vpop.f32.mrf.mxu0  ;;  %v2182_v52 = vpop.f32.mrf.mxu1 }
 0x1b6   : > { %v1960_v34 = vpop.f32.mrf.mxu0  ;;  %v2185_v46 = vpop.f32.mrf.mxu1 }
 0x1b7   : > { %v4792_v50 = vadd.f32 %v2185_v46, %v1960_v34 }
 0x1b8   : > { %v1962_v58 = vpop.f32.mrf.mxu0  ;;  %v2187_v60 = vpop.f32.mrf.mxu1 }
 0x1ba   : > { %v1965_v6 = vpop.f32.mrf.mxu0  ;;  %v2190_v15 = vpop.f32.mrf.mxu1 }
 0x1bb   : > { %v4794_v23 = vadd.f32 %v2190_v15, %v1965_v6 }
 0x1bc   : > { %v1967_v13 = vpop.f32.mrf.mxu0  ;;  %v2192_v22 = vpop.f32.mrf.mxu1 }
 0x1be   : > { %v1970_v47 = vpop.f32.mrf.mxu0  ;;  %v2195_v33 = vpop.f32.mrf.mxu1 }
 0x1bf   : > { %v4796_v32 = vadd.f32 %v2195_v33, %v1970_v47 }
 0x1c0   : > { %v1972_v54 = vpop.f32.mrf.mxu0  ;;  %v2197_v49 = vpop.f32.mrf.mxu1 }
 0x1c1   : > { %5214 = vst [vmem:[#allocation4_spill] sm:$0xff] %v4796_v32 }
 0x1c2   : > { %v1975_v8 = vpop.f32.mrf.mxu0  ;;  %v2200_v18 = vpop.f32.mrf.mxu1 }
 0x1c3   : > { %v4798_v63 = vadd.f32 %v2200_v18, %v1975_v8 }
 0x1c4   : > { %v1977_v42 = vpop.f32.mrf.mxu0  ;;  %v2202_v28 = vpop.f32.mrf.mxu1 }
 0x1c5   : > { %5215 = vst [vmem:[#allocation7_spill] sm:$0xff] %v4798_v63 }
 0x1c6   : > { %v2270_v51 = vpop.f32.mrf.mxu0  ;;  %v2495_v0 = vpop.f32.mrf.mxu1 }
 0x1c7   : > { %v2271_v39 = vadd.f32 %v2270_v51, %v4649_v30 }
 0x1c8   : > { %v2272_v57 = vpop.f32.mrf.mxu0  ;;  %v2497_v31 = vpop.f32.mrf.mxu1 }
 0x1c9   : > { %v4801_v25 = vadd.f32 %v2495_v0, %v2271_v39 }
 0x1ca   : > { %v2275_v16 = vpop.f32.mrf.mxu0  ;;  %v2500_v12 = vpop.f32.mrf.mxu1 }
 0x1cb   : > { %v2276_v19 = vadd.f32 %v2275_v16, %v4655_v61 }
 0x1cc   : > { %v2277_v35 = vpop.f32.mrf.mxu0  ;;  %v2502_v21 = vpop.f32.mrf.mxu1 }
 0x1cd   : > { %v4804_v45 = vadd.f32 %v2500_v12, %v2276_v19 }
 0x1ce   : > { %v2280_v53 = vpop.f32.mrf.mxu0  ;;  %v2505_v62 = vpop.f32.mrf.mxu1 }
 0x1cf   : > { %v2281_v29 = vadd.f32 %v2280_v53, %v4661_v59 }
 0x1d0   : > { %v2282_v52 = vpop.f32.mrf.mxu0  ;;  %v2507_v34 = vpop.f32.mrf.mxu1 }
 0x1d1   : > { %v4807_v46 = vadd.f32 %v2505_v62, %v2281_v29 }
 0x1d2   : > { %v2285_v30 = vpop.f32.mrf.mxu0  ;;  %v2510_v58 = vpop.f32.mrf.mxu1 }
 0x1d3   : > { %v2286_v60 = vadd.f32 %v2285_v30, %v4667_v10 }
 0x1d4   : > { %v2287_v6 = vpop.f32.mrf.mxu0  ;;  %v2512_v15 = vpop.f32.mrf.mxu1 }
 0x1d5   : > { %v4810_v13 = vadd.f32 %v2510_v58, %v2286_v60 }
 0x1d6   : > { %v2290_v61 = vpop.f32.mrf.mxu0  ;;  %v2515_v22 = vpop.f32.mrf.mxu1 }
 0x1d7   : > { %v2291_v47 = vadd.f32 %v2290_v61, %v4673_v20 }
 0x1d8   : > { %v2292_v33 = vpop.f32.mrf.mxu0  ;;  %v2517_v54 = vpop.f32.mrf.mxu1 }
 0x1d9   : > { %v4813_v49 = vadd.f32 %v2515_v22, %v2291_v47 }
 0x1da   : > { %v2295_v59 = vpop.f32.mrf.mxu0  ;;  %v2520_v8 = vpop.f32.mrf.mxu1 }
 0x1db   : > { %v2296_v18 = vadd.f32 %v2295_v59, %v4679_v1 }
 0x1dc   : > { %v2297_v42 = vpop.f32.mrf.mxu0  ;;  %v2522_v28 = vpop.f32.mrf.mxu1 }
 0x1dd   : > { %v4816_v51 = vadd.f32 %v2520_v8, %v2296_v18 }
 0x1de   : > { %v2300_v10 = vpop.f32.mrf.mxu0  ;;  %v2525_v0 = vpop.f32.mrf.mxu1 }
 0x1df   : > { %v2301_v39 = vadd.f32 %v2300_v10, %v4685_v4 }
 0x1e0   : > { %v2302_v57 = vpop.f32.mrf.mxu0  ;;  %v2527_v31 = vpop.f32.mrf.mxu1 }
 0x1e1   : > { %v4819_v16 = vadd.f32 %v2525_v0, %v2301_v39 }
 0x1e2   : > { %v2305_v20 = vpop.f32.mrf.mxu0  ;;  %v2530_v12 = vpop.f32.mrf.mxu1 }
 0x1e3   : > { %v2306_v19 = vadd.f32 %v2305_v20, %v4691_v7 }
 0x1e4   : > { %v2307_v35 = vpop.f32.mrf.mxu0  ;;  %v2532_v21 = vpop.f32.mrf.mxu1 }
 0x1e5   : > { %v4822_v53 = vadd.f32 %v2530_v12, %v2306_v19 }
 0x1e6   : > { %v2310_v1 = vpop.f32.mrf.mxu0  ;;  %v2535_v62 = vpop.f32.mrf.mxu1 }
 0x1e7   : > { %v2311_v29 = vadd.f32 %v2310_v1, %v4697_v27 }
 0x1e8   : > { %v2312_v52 = vpop.f32.mrf.mxu0  ;;  %v2537_v34 = vpop.f32.mrf.mxu1 }
 0x1e9   : > { %v4825_v30 = vadd.f32 %v2535_v62, %v2311_v29 }
 0x1ea   : > { %v2315_v4 = vpop.f32.mrf.mxu0  ;;  %v2540_v58 = vpop.f32.mrf.mxu1 }
 0x1eb   : > { %v2316_v60 = vadd.f32 %v2315_v4, %v4703_v11 }
 0x1ec   : > { %v2317_v6 = vpop.f32.mrf.mxu0  ;;  %v2542_v15 = vpop.f32.mrf.mxu1 }
 0x1ed   : > { %v4828_v61 = vadd.f32 %v2540_v58, %v2316_v60 }
 0x1ee   : > { %v2320_v7 = vpop.f32.mrf.mxu0  ;;  %v2545_v22 = vpop.f32.mrf.mxu1 }
 0x1ef   : > { %v2321_v47 = vadd.f32 %v2320_v7, %v4709_v48 }
 0x1f0   : > { %v2322_v33 = vpop.f32.mrf.mxu0  ;;  %v2547_v54 = vpop.f32.mrf.mxu1 }
 0x1f1   : > { %v4831_v59 = vadd.f32 %v2545_v22, %v2321_v47 }
 0x1f2   : > { %v2325_v27 = vpop.f32.mrf.mxu0  ;;  %v2550_v8 = vpop.f32.mrf.mxu1 }
 0x1f3   : > { %v2326_v18 = vadd.f32 %v2325_v27, %v4715_v37 }
 0x1f4   : > { %v2327_v42 = vpop.f32.mrf.mxu0  ;;  %v2552_v28 = vpop.f32.mrf.mxu1 }
 0x1f5   : > { %v4834_v10 = vadd.f32 %v2550_v8, %v2326_v18 }
 0x1f6   : > { %v2330_v11 = vpop.f32.mrf.mxu0  ;;  %v2555_v0 = vpop.f32.mrf.mxu1 }
 0x1f7   : > { %v2331_v39 = vadd.f32 %v2330_v11, %v4721_v26 }
 0x1f8   : > { %v2332_v57 = vpop.f32.mrf.mxu0  ;;  %v2557_v31 = vpop.f32.mrf.mxu1 }
 0x1f9   : > { %v4837_v20 = vadd.f32 %v2555_v0, %v2331_v39 }
 0x1fa   : > { %v2335_v48 = vpop.f32.mrf.mxu0  ;;  %v2560_v12 = vpop.f32.mrf.mxu1 }
 0x1fb   : > { %5216 = vst [vmem:[#allocation5_spill] sm:$0xff] %v4837_v20  ;;  %v2336_v19 = vadd.f32 %v2335_v48, %v4727_v17 }
 0x1fc   : > { %v2337_v35 = vpop.f32.mrf.mxu0  ;;  %v2562_v21 = vpop.f32.mrf.mxu1 }
 0x1fd   : > { %v4840_v1 = vadd.f32 %v2560_v12, %v2336_v19 }
 0x1fe   : > { %v2340_v37 = vpop.f32.mrf.mxu0  ;;  %v2565_v62 = vpop.f32.mrf.mxu1 }
 0x1ff   : > { %5217 = vst [vmem:[#allocation8_spill] sm:$0xff] %v4840_v1  ;;  %v2341_v29 = vadd.f32 %v2340_v37, %v4733_v14 }
 0x200   : > { %v2342_v52 = vpop.f32.mrf.mxu0  ;;  %v2567_v34 = vpop.f32.mrf.mxu1 }
 0x201   : > { %v4843_v4 = vadd.f32 %v2565_v62, %v2341_v29 }
 0x202   : > { %v2345_v26 = vpop.f32.mrf.mxu0  ;;  %v2570_v58 = vpop.f32.mrf.mxu1 }
 0x203   : > { %5218 = vst [vmem:[#allocation9_spill] sm:$0xff] %v4843_v4  ;;  %v2346_v60 = vadd.f32 %v2345_v26, %v4739_v2 }
 0x204   : > { %v2347_v6 = vpop.f32.mrf.mxu0  ;;  %v2572_v15 = vpop.f32.mrf.mxu1 }
 0x205   : > { %v4846_v7 = vadd.f32 %v2570_v58, %v2346_v60 }
 0x206   : > { %v2350_v17 = vpop.f32.mrf.mxu0  ;;  %v2575_v22 = vpop.f32.mrf.mxu1 }
 0x207   : > { %5219 = vst [vmem:[#allocation6_spill] sm:$0xff] %v4846_v7  ;;  %v2351_v47 = vadd.f32 %v2350_v17, %v4743_v41 }
 0x208   : > { %v2352_v33 = vpop.f32.mrf.mxu0  ;;  %v2577_v54 = vpop.f32.mrf.mxu1 }
 0x209   : > { %v4849_v27 = vadd.f32 %v2575_v22, %v2351_v47 }
 0x20a   : > { %v2355_v14 = vpop.f32.mrf.mxu0  ;;  %v2580_v8 = vpop.f32.mrf.mxu1 }
 0x20c   : > { %v2357_v18 = vpop.f32.mrf.mxu0  ;;  %v2582_v42 = vpop.f32.mrf.mxu1 }
 0x20e   : > { %v2360_v28 = vpop.f32.mrf.mxu0  ;;  %v4851_v11 = vpop.f32.mrf.mxu1 }
 0x210   : > { %v2362_v2 = vpop.f32.mrf.mxu0  ;;  %v2587_v0 = vpop.f32.mrf.mxu1 }
 0x212   : > { %v2365_v39 = vpop.f32.mrf.mxu0  ;;  %v4853_v57 = vpop.f32.mrf.mxu1 }
 0x214   : > { %v2367_v31 = vpop.f32.mrf.mxu0  ;;  %v2592_v48 = vpop.f32.mrf.mxu1 }
 0x216   : > { %v4855_v12 = vpop.f32.mrf.mxu0  ;;  %v4857_v41 = vpop.f32.mrf.mxu1 }
 0x218   : > { %v2372_v19 = vpop.f32.mrf.mxu0  ;;  %v2597_v35 = vpop.f32.mrf.mxu1 }
 0x21a   : > { %v2375_v21 = vpop.f32.mrf.mxu0  ;;  %v4859_v37 = vpop.f32.mrf.mxu1 }
 0x21c   : > { %v2377_v62 = vpop.f32.mrf.mxu0  ;;  %v2602_v29 = vpop.f32.mrf.mxu1 }
 0x21e   : > { %v4861_v52 = vpop.f32.mrf.mxu0  ;;  %v4863_v34 = vpop.f32.mrf.mxu1 }
 0x220   : > { %v2382_v26 = vpop.f32.mrf.mxu0  ;;  %v2607_v58 = vpop.f32.mrf.mxu1 }
 0x222   : > { %v4865_v60 = vpop.f32.mrf.mxu0  ;;  %v4867_v6 = vpop.f32.mrf.mxu1 }
 0x224   : > { %v2387_v15 = vpop.f32.mrf.mxu0  ;;  %v2612_v17 = vpop.f32.mrf.mxu1 }
 0x226   : > { %v4869_v22 = vpop.f32.mrf.mxu0  ;;  %v4871_v47 = vpop.f32.mrf.mxu1 }
 0x228   : > { %v2392_v33 = vpop.f32.mrf.mxu0  ;;  %v2617_v54 = vpop.f32.mrf.mxu1 }
 0x22a   : > { %v4873_v18 = vpop.f32.mrf.mxu0  ;;  %v4875_v42 = vpop.f32.mrf.mxu1 }
 0x22c   : > { %v2397_v2 = vpop.f32.mrf.mxu0  ;;  %v2622_v0 = vpop.f32.mrf.mxu1 }
 0x22e   : > { %v4877_v31 = vpop.f32.mrf.mxu0  ;;  %v4879_v48 = vpop.f32.mrf.mxu1 }
 0x230   : > { %v2402_v19 = vpop.f32.mrf.mxu0  ;;  %v2627_v35 = vpop.f32.mrf.mxu1 }
 0x232   : > { %v4881_v62 = vpop.f32.mrf.mxu0  ;;  %v4883_v29 = vpop.f32.mrf.mxu1 }
 0x234   : > { %v2407_v26 = vpop.f32.mrf.mxu0  ;;  %v2632_v58 = vpop.f32.mrf.mxu1 }
 0x235   : > { %v2356_v58 = vadd.f32 %v2355_v14, %v4747_v24 }
 0x236   : > { %v4885_v15 = vpop.f32.mrf.mxu0  ;;  %v4887_v17 = vpop.f32.mrf.mxu1 }
 0x237   : > { %5220 = vst [vmem:[#allocation10_spill] sm:$0xff] %v4887_v17  ;;  %v2581_v1 = vadd.f32 %v2580_v8, %v2356_v58 }
 0x238   : > { %v2412_v33 = vpop.f32.mrf.mxu0  ;;  %v2637_v54 = vpop.f32.mrf.mxu1 }
 0x23a   : > { %v4889_v2 = vpop.f32.mrf.mxu0  ;;  %v4891_v0 = vpop.f32.mrf.mxu1 }
 0x23c   : > { %v2417_v4 = vpop.f32.mrf.mxu0  ;;  %v2642_v7 = vpop.f32.mrf.mxu1 }
 0x23d   : > { %v2361_v4 = vadd.f32 %v2360_v28, %v4752_v55  ;;  %v2366_v7 = vadd.f32 %v2365_v39, %v4758_v3 }
 0x23e   : > { %v4893_v19 = vpop.f32.mrf.mxu0  ;;  %v4895_v35 = vpop.f32.mrf.mxu1 }
 0x23f   : > { %5221 = vst [vmem:[#allocation11_spill] sm:$0xff] %v4893_v19  ;;  %v2586_v55 = vadd.f32 %v4851_v11, %v2361_v4  ;;  %v2591_v3 = vadd.f32 %v4853_v57, %v2366_v7 }
 0x240   : > { %v2422_v20 = vpop.f32.mrf.mxu0  ;;  %v2647_v26 = vpop.f32.mrf.mxu1 }
 0x242   : > { %v4898_v32 = vpop.f32.mrf.mxu0  ;;  %v4900_v33 = vpop.f32.mrf.mxu1 }
 0x244   : > { %v2427_v54 = vpop.f32.mrf.mxu0  ;;  %v2652_v17 = vpop.f32.mrf.mxu1 }
 0x246   : > { %v3182_v19 = vpop.f32.mrf.mxu0  ;;  %v3206_v63 = vpop.f32.mrf.mxu1 }
 0x247   : > { %v2726_v20 = vadd.f32 %v3182_v19, %v4804_v45  ;;  %v4905_v26 = vadd.f32 %v3206_v63, %v2581_v1  ;;  %v2376_v45 = vadd.f32 %v2375_v21, %v4770_v38 }
 0x248   : > { %v2720_v24 = vpop.f32.mrf.mxu0  ;;  %v2800_v14 = vpop.f32.mrf.mxu1 }
 0x249   : > { %2992 = vst [vmem:[%s3387_s27 + $0x8] sm:$0xff] %v2726_v20  ;;  %3008 = vst [vmem:[%s3387_s27 + $0x88] sm:$0xff] %v4905_v26  ;;  %v2721_v17 = vadd.f32 %v2720_v24, %v4801_v25  ;;  %v4912_v8 = vadd.f32 %v2800_v14, %v4849_v27  ;;  %v2921_v28 = vmul.f32 %v2726_v20, %v2726_v20 }
 0x24a   : > { %v3185_v63 = vpop.f32.mrf.mxu0  ;;  %v3209_v1 = vpop.f32.mrf.mxu1  ;;  %v2371_v27 = vadd.f32 %v4855_v12, %v4764_v40  ;;  %v2601_v4 = vadd.f32 %v4859_v37, %v2376_v45  ;;  %v2381_v37 = vadd.f32 %v4861_v52, %v4776_v56 }
 0x24b   : > { %v2880_v39 = vadd.f32 %v2726_v20, %v2721_v17  ;;  %v2920_v19 = vmul.f32 %v2721_v17, %v2721_v17  ;;  %2991 = vst [vmem:[%s3387_s27] sm:$0xff] %v2721_v17  ;;  %3007 = vst [vmem:[%s3387_s27 + $0x80] sm:$0xff] %v4912_v8  ;;  %v2736_v25 = vadd.f32 %v3185_v63, %v4810_v13 }
 0x24c   : > { %v4923_v11 = vadd.f32 %v3209_v1, %v2591_v3  ;;  %v2730_v57 = vpop.f32.mrf.mxu0  ;;  %v2810_v38 = vpop.f32.mrf.mxu1  ;;  %v2386_v13 = vadd.f32 %v4865_v60, %v4782_v5  ;;  %v2596_v24 = vadd.f32 %v4857_v41, %v2371_v27 }
 0x24d   : > { %v2952_v21 = vadd.f32 %v2921_v28, %v2920_v19  ;;  %2994 = vst [vmem:[%s3387_s27 + $0x18] sm:$0xff] %v2736_v25  ;;  %v2731_v58 = vadd.f32 %v2730_v57, %v4807_v46  ;;  %v4927_v54 = vadd.f32 %v2810_v38, %v2586_v55  ;;  %v2923_v17 = vmul.f32 %v2736_v25, %v2736_v25 }
 0x24e   : > { %3010 = vst [vmem:[%s3387_s27 + $0x98] sm:$0xff] %v4923_v11  ;;  %v3188_v40 = vpop.f32.mrf.mxu0  ;;  %v3212_v12 = vpop.f32.mrf.mxu1  ;;  %v2611_v63 = vadd.f32 %v4867_v6, %v2386_v13  ;;  %v2606_v19 = vadd.f32 %v4863_v34, %v2381_v37  ;;  %v2391_v6 = vadd.f32 %v4869_v22, %v4784_v43  ;;  %v2406_v34 = vadd.f32 %v4881_v62, %v4790_v44 }
 0x24f   : > { %v2881_v7 = vadd.f32 %v2880_v39, %v2731_v58  ;;  %v2922_v20 = vmul.f32 %v2731_v58, %v2731_v58  ;;  %2993 = vst [vmem:[%s3387_s27 + $0x10] sm:$0xff] %v2731_v58  ;;  %3009 = vst [vmem:[%s3387_s27 + $0x90] sm:$0xff] %v4927_v54  ;;  %v2746_v46 = vadd.f32 %v3188_v40, %v4816_v51 }
 0x250   : > { %v4941_v14 = vadd.f32 %v3212_v12, %v2601_v4  ;;  %v2740_v5 = vpop.f32.mrf.mxu0  ;;  %v2820_v60 = vpop.f32.mrf.mxu1  ;;  %v2396_v51 = vadd.f32 %v4873_v18, %v4786_v9  ;;  %v2616_v12 = vadd.f32 %v4871_v47, %v2391_v6  ;;  %v2416_v47 = vadd.f32 %v4889_v2, %v4794_v23  ;;  %v5223_v6 = vld [vmem:[#allocation8_spill] sm:$0xff] }
 0x251   : > { %v2953_v55 = vadd.f32 %v2952_v21, %v2922_v20  ;;  %2996 = vst [vmem:[%s3387_s27 + $0x28] sm:$0xff] %v2746_v46  ;;  %v2741_v3 = vadd.f32 %v2740_v5, %v4813_v49  ;;  %v2882_v45 = vadd.f32 %v2881_v7, %v2736_v25  ;;  %v4950_v56 = vadd.f32 %v2820_v60, %v2596_v24 }
 0x252   : > { %3012 = vst [vmem:[%s3387_s27 + $0xa8] sm:$0xff] %v4941_v14  ;;  %v3191_v41 = vpop.f32.mrf.mxu0  ;;  %v3215_v52 = vpop.f32.mrf.mxu1  ;;  %v2925_v27 = vmul.f32 %v2746_v46, %v2746_v46 }
 0x253   : > { %v2883_v1 = vadd.f32 %v2882_v45, %v2741_v3  ;;  %v2924_v28 = vmul.f32 %v2741_v3, %v2741_v3  ;;  %v2954_v39 = vadd.f32 %v2953_v55, %v2923_v17  ;;  %2995 = vst [vmem:[%s3387_s27 + $0x20] sm:$0xff] %v2741_v3  ;;  %v2756_v49 = vadd.f32 %v3191_v41, %v4822_v53 }
 0x254   : > { %3011 = vst [vmem:[%s3387_s27 + $0xa0] sm:$0xff] %v4950_v56  ;;  %v4959_v9 = vadd.f32 %v3215_v52, %v2611_v63  ;;  %v2750_v18 = vpop.f32.mrf.mxu0  ;;  %v2830_v25 = vpop.f32.mrf.mxu1  ;;  %v2621_v53 = vadd.f32 %v4875_v42, %v2396_v51  ;;  %v2401_v42 = vadd.f32 %v4877_v31, %v4788_v36 }
 0x255   : > { %v2955_v57 = vadd.f32 %v2954_v39, %v2924_v28  ;;  %2998 = vst [vmem:[%s3387_s27 + $0x38] sm:$0xff] %v2756_v49  ;;  %v2751_v38 = vadd.f32 %v2750_v18, %v4819_v16  ;;  %v2884_v21 = vadd.f32 %v2883_v1, %v2746_v46  ;;  %v4968_v43 = vadd.f32 %v2830_v25, %v2606_v19  ;;  %v5224_v18 = vld [vmem:[#allocation10_spill] sm:$0xff] }
 0x256   : > { %3014 = vst [vmem:[%s3387_s27 + $0xb8] sm:$0xff] %v4959_v9  ;;  %v3194_v22 = vpop.f32.mrf.mxu0  ;;  %v3218_v58 = vpop.f32.mrf.mxu1  ;;  %v2927_v20 = vmul.f32 %v2756_v49, %v2756_v49  ;;  %v2626_v3 = vadd.f32 %v4879_v48, %v2401_v42  ;;  %v5222_v48 = vld [vmem:[#allocation7_spill] sm:$0xff] }
 0x257   : > { %v2885_v4 = vadd.f32 %v2884_v21, %v2751_v38  ;;  %v2926_v13 = vmul.f32 %v2751_v38, %v2751_v38  ;;  %v2956_v40 = vadd.f32 %v2955_v57, %v2925_v27  ;;  %2997 = vst [vmem:[%s3387_s27 + $0x30] sm:$0xff] %v2751_v38  ;;  %v2766_v16 = vadd.f32 %v3194_v22, %v4828_v61  ;;  %v5226_v27 = vld [vmem:[#allocation11_spill] sm:$0xff]  ;;  %v5227_v22 = vld [vmem:[#allocation5_spill] sm:$0xff] }
 0x258   : > { %3013 = vst [vmem:[%s3387_s27 + $0xb0] sm:$0xff] %v4968_v43  ;;  %v4977_v44 = vadd.f32 %v3218_v58, %v2621_v53  ;;  %v2760_v62 = vpop.f32.mrf.mxu0  ;;  %v2840_v7 = vpop.f32.mrf.mxu1  ;;  %v2631_v61 = vadd.f32 %v4883_v29, %v2406_v34  ;;  %v2411_v29 = vadd.f32 %v4885_v15, %v4792_v50  ;;  %v2426_v1 = vadd.f32 %v4898_v32, %v5222_v48 }
 0x259   : > { %v2957_v46 = vadd.f32 %v2956_v40, %v2926_v13  ;;  %3000 = vst [vmem:[%s3387_s27 + $0x48] sm:$0xff] %v2766_v16  ;;  %v2761_v24 = vadd.f32 %v2760_v62, %v4825_v30  ;;  %v2886_v37 = vadd.f32 %v2885_v4, %v2756_v49  ;;  %v4986_v36 = vadd.f32 %v2840_v7, %v2616_v12 }
 0x25a   : > { %3016 = vst [vmem:[%s3387_s27 + $0xc8] sm:$0xff] %v4977_v44  ;;  %v3197_v31 = vpop.f32.mrf.mxu0  ;;  %v3221_v5 = vpop.f32.mrf.mxu1  ;;  %v2929_v63 = vmul.f32 %v2766_v16, %v2766_v16  ;;  %v2636_v25 = vadd.f32 %v5224_v18, %v2411_v29  ;;  %v2651_v13 = vadd.f32 %v4900_v33, %v2426_v1  ;;  %v2938_v1 = vmul.f32 %v4927_v54, %v4927_v54 }
 0x25b   : > { %v2887_v60 = vadd.f32 %v2886_v37, %v2761_v24  ;;  %v2928_v17 = vmul.f32 %v2761_v24, %v2761_v24  ;;  %v2958_v55 = vadd.f32 %v2957_v46, %v2927_v20  ;;  %2999 = vst [vmem:[%s3387_s27 + $0x40] sm:$0xff] %v2761_v24  ;;  %v2776_v30 = vadd.f32 %v3197_v31, %v4834_v10  ;;  %v5228_v20 = vld [vmem:[#allocation6_spill] sm:$0xff] }
 0x25c   : > { %3015 = vst [vmem:[%s3387_s27 + $0xc0] sm:$0xff] %v4986_v36  ;;  %v4995_v23 = vadd.f32 %v3221_v5, %v2631_v61  ;;  %v2770_v2 = vpop.f32.mrf.mxu0  ;;  %v2850_v45 = vpop.f32.mrf.mxu1  ;;  %v2641_v10 = vadd.f32 %v4891_v0, %v2416_v47  ;;  %v5225_v0 = vld [vmem:[#allocation4_spill] sm:$0xff]  ;;  %v5229_v5 = vld [vmem:[#allocation9_spill] sm:$0xff] }
 0x25d   : > { %v2959_v51 = vadd.f32 %v2958_v55, %v2928_v17  ;;  %3002 = vst [vmem:[%s3387_s27 + $0x58] sm:$0xff] %v2776_v30  ;;  %v2771_v41 = vadd.f32 %v2770_v2, %v4831_v59  ;;  %v2888_v52 = vadd.f32 %v2887_v60, %v2766_v16  ;;  %v5004_v50 = vadd.f32 %v2850_v45, %v2626_v3 }
 0x25e   : > { %3018 = vst [vmem:[%s3387_s27 + $0xd8] sm:$0xff] %v4995_v23  ;;  %v3200_v15 = vpop.f32.mrf.mxu0  ;;  %v3224_v28 = vpop.f32.mrf.mxu1  ;;  %v2421_v57 = vadd.f32 %v5226_v27, %v5225_v0  ;;  %v2931_v53 = vmul.f32 %v2776_v30, %v2776_v30 }
 0x25f   : > { %v2889_v39 = vadd.f32 %v2888_v52, %v2771_v41  ;;  %v2930_v49 = vmul.f32 %v2771_v41, %v2771_v41  ;;  %v2960_v19 = vadd.f32 %v2959_v51, %v2929_v63  ;;  %3001 = vst [vmem:[%s3387_s27 + $0x50] sm:$0xff] %v2771_v41  ;;  %v2786_v59 = vadd.f32 %v3200_v15, %v5223_v6 }
 0x260   : > { %3017 = vst [vmem:[%s3387_s27 + $0xd0] sm:$0xff] %v5004_v50  ;;  %v5013_v32 = vadd.f32 %v3224_v28, %v2641_v10  ;;  %v2780_v38 = vpop.f32.mrf.mxu0  ;;  %v2860_v21 = vpop.f32.mrf.mxu1  ;;  %v2646_v24 = vadd.f32 %v4895_v35, %v2421_v57  ;;  %v2936_v63 = vmul.f32 %v4912_v8, %v4912_v8  ;;  %v2937_v52 = vmul.f32 %v4905_v26, %v4905_v26 }
 0x261   : > { %v2961_v34 = vadd.f32 %v2960_v19, %v2930_v49  ;;  %3004 = vst [vmem:[%s3387_s27 + $0x68] sm:$0xff] %v2786_v59  ;;  %v2781_v58 = vadd.f32 %v2780_v38, %v5227_v22  ;;  %v2890_v4 = vadd.f32 %v2889_v39, %v2776_v30  ;;  %v5020_v40 = vadd.f32 %v2860_v21, %v2636_v25 }
 0x262   : > { %3020 = vst [vmem:[%s3387_s27 + $0xe8] sm:$0xff] %v5013_v32  ;;  %v3203_v16 = vpop.f32.mrf.mxu0  ;;  %v3227_v12 = vpop.f32.mrf.mxu1  ;;  %v2933_v47 = vmul.f32 %v2786_v59, %v2786_v59  ;;  %v2939_v39 = vmul.f32 %v4923_v11, %v4923_v11 }
 0x263   : > { %v2891_v42 = vadd.f32 %v2890_v4, %v2781_v58  ;;  %v2932_v62 = vmul.f32 %v2781_v58, %v2781_v58  ;;  %v2962_v7 = vadd.f32 %v2961_v34, %v2931_v53  ;;  %3003 = vst [vmem:[%s3387_s27 + $0x60] sm:$0xff] %v2781_v58  ;;  %v2796_v46 = vadd.f32 %v3203_v16, %v5228_v20 }
 0x264   : > { %3019 = vst [vmem:[%s3387_s27 + $0xe0] sm:$0xff] %v5020_v40  ;;  %v5027_v33 = vadd.f32 %v3227_v12, %v2651_v13  ;;  %v2790_v37 = vpop.f32.mrf.mxu0  ;;  %v2870_v61 = vpop.f32.mrf.mxu1 }
 0x265   : > { %v2963_v31 = vadd.f32 %v2962_v7, %v2932_v62  ;;  %3006 = vst [vmem:[%s3387_s27 + $0x78] sm:$0xff] %v2796_v46  ;;  %v2791_v60 = vadd.f32 %v2790_v37, %v5229_v5  ;;  %v2892_v17 = vadd.f32 %v2891_v42, %v2786_v59  ;;  %v2871_v55 = vadd.f32 %v2870_v61, %v2646_v24 }
 0x266   : > { %3022 = vst [vmem:[%s3387_s27 + $0xf8] sm:$0xff] %v5027_v33  ;;  %v2935_v35 = vmul.f32 %v2796_v46, %v2796_v46  ;;  %v2951_v24 = vmul.f32 %v5027_v33, %v5027_v33 }
 0x267   : > { %v2893_v30 = vadd.f32 %v2892_v17, %v2791_v60  ;;  %v2934_v3 = vmul.f32 %v2791_v60, %v2791_v60  ;;  %v2964_v29 = vadd.f32 %v2963_v31, %v2933_v47  ;;  %3005 = vst [vmem:[%s3387_s27 + $0x70] sm:$0xff] %v2791_v60  ;;  %3021 = vst [vmem:[%s3387_s27 + $0xf0] sm:$0xff] %v2871_v55 }
 0x268   : > { %v2950_v20 = vmul.f32 %v2871_v55, %v2871_v55 }
 0x269   : > { %v2894_v2 = vadd.f32 %v2893_v30, %v2796_v46  ;;  %v2965_v45 = vadd.f32 %v2964_v29, %v2934_v3 }
 0x26b   : > { %v2895_v51 = vadd.f32 %v2894_v2, %v4912_v8  ;;  %v2966_v41 = vadd.f32 %v2965_v45, %v2935_v35  ;;  %v2940_v8 = vmul.f32 %v4950_v56, %v4950_v56 }
 0x26d   : > { %v2896_v10 = vadd.f32 %v2895_v51, %v4905_v26  ;;  %v2967_v48 = vadd.f32 %v2966_v41, %v2936_v63  ;;  %v2941_v26 = vmul.f32 %v4941_v14, %v4941_v14 }
 0x26f   : > { %v2897_v15 = vadd.f32 %v2896_v10, %v4927_v54  ;;  %v2968_v28 = vadd.f32 %v2967_v48, %v2937_v52  ;;  %v2942_v54 = vmul.f32 %v4968_v43, %v4968_v43 }
 0x271   : > { %v2898_v49 = vadd.f32 %v2897_v15, %v4923_v11  ;;  %v2969_v19 = vadd.f32 %v2968_v28, %v2938_v1  ;;  %v2943_v11 = vmul.f32 %v4959_v9, %v4959_v9 }
 0x273   : > { %v2899_v6 = vadd.f32 %v2898_v49, %v4950_v56  ;;  %v2970_v59 = vadd.f32 %v2969_v19, %v2939_v39  ;;  %v2944_v56 = vmul.f32 %v4986_v36, %v4986_v36 }
 0x275   : > { %v2900_v18 = vadd.f32 %v2899_v6, %v4941_v14  ;;  %v2971_v25 = vadd.f32 %v2970_v59, %v2940_v8  ;;  %v2945_v14 = vmul.f32 %v4977_v44, %v4977_v44 }
 0x277   : > { %v2972_v0 = vadd.f32 %v2971_v25, %v2941_v26  ;;  %v2901_v27 = vadd.f32 %v2900_v18, %v4968_v43  ;;  %v2946_v43 = vmul.f32 %v5004_v50, %v5004_v50 }
 0x279   : > { %v2902_v57 = vadd.f32 %v2901_v27, %v4959_v9  ;;  %v2973_v38 = vadd.f32 %v2972_v0, %v2942_v54  ;;  %v2947_v9 = vmul.f32 %v4995_v23, %v4995_v23 }
 0x27b   : > { %v2903_v21 = vadd.f32 %v2902_v57, %v4986_v36  ;;  %v2974_v53 = vadd.f32 %v2973_v38, %v2943_v11  ;;  %v2948_v36 = vmul.f32 %v5020_v40, %v5020_v40 }
 0x27d   : > { %v2904_v34 = vadd.f32 %v2903_v21, %v4977_v44  ;;  %v2975_v22 = vadd.f32 %v2974_v53, %v2944_v56  ;;  %v2949_v44 = vmul.f32 %v5013_v32, %v5013_v32 }
 0x27f   : > { %v2905_v58 = vadd.f32 %v2904_v34, %v5004_v50  ;;  %v2976_v4 = vadd.f32 %v2975_v22, %v2945_v14 }
 0x281   : > { %v2906_v13 = vadd.f32 %v2905_v58, %v4995_v23  ;;  %v2977_v16 = vadd.f32 %v2976_v4, %v2946_v43 }
 0x283   : > { %v2907_v12 = vadd.f32 %v2906_v13, %v5020_v40  ;;  %v2978_v42 = vadd.f32 %v2977_v16, %v2947_v9 }
 0x285   : > { %v2908_v62 = vadd.f32 %v2907_v12, %v5013_v32  ;;  %v2979_v7 = vadd.f32 %v2978_v42, %v2948_v36 }
 0x287   : > { %v2909_v50 = vadd.f32 %v2908_v62, %v2871_v55  ;;  %v2980_v46 = vadd.f32 %v2979_v7, %v2949_v44  ;;  %v2879_v55 = vld [vmem:[%s5100_s5] sm:$0x1] }
 0x289   : > { %v2910_v23 = vadd.f32 %v2909_v50, %v5027_v33  ;;  %v2981_v37 = vadd.f32 %v2980_v46, %v2950_v20  ;;  %v2919_v33 = vld [vmem:[%s5100_s5 + $0x1] sm:$0x1] }
 0x28b   : > { %v2911_v61 = vrot.slane %v2910_v23, 4  ;;  %v2982_v47 = vadd.f32 %v2981_v37, %v2951_v24 }
 0x28d   : > { %v2912_v31 = vadd.f32 %v2911_v61, %v2910_v23  ;;  %v2983_v40 = vrot.slane %v2982_v47, 4 }
 0x28f   : > { %v2913_v5 = vrot.slane %v2912_v31, 2  ;;  %v2984_v60 = vadd.f32 %v2983_v40, %v2982_v47 }
 0x291   : > { %v2914_v17 = vadd.f32 %v2913_v5, %v2912_v31  ;;  %v2985_v30 = vrot.slane %v2984_v60, 2 }
 0x293   : > { %v2915_v3 = vrot.slane %v2914_v17, 1  ;;  %v2986_v32 = vadd.f32 %v2985_v30, %v2984_v60 }
 0x295   : > { %v2916_v29 = vadd.f32 %v2915_v3, %v2914_v17  ;;  %v2987_v35 = vrot.slane %v2986_v32, 1 }
 0x297   : > { %v2917_v2 = vadd.f32 %v2916_v29, %v2879_v55  ;;  %v2988_v45 = vadd.f32 %v2987_v35, %v2986_v32 }
 0x299   : > { %2918 = vst [vmem:[%s5100_s5] sm:$0x1] %v2917_v2  ;;  %v2989_v63 = vadd.f32 %v2988_v45, %v2919_v33 }
 0x29b   : > { %2990 = vst [vmem:[%s5100_s5 + $0x1] sm:$0x1] %v2989_v63 }
 0x29c PF: > { %s16_s18 = sadd.s32 1, %s3337_s18  }
 0x29d   : > { %p13_p5 = scmp.ge.s32.totalorder %s16_s18, 4  }
 0x29f   :  { %15 = sbr.rel (!%p13_p5) target bundleno = 1 (0x1), region = 80 }

</bundles_post_ra>
